<compile_context>
chip_gen: v5e
topology: v5e:2x2
jax: 0.10.0
libtpu: 0.0.40
codegen_flags: <defaults>
</compile_context>

<pallas_src>
import math

import jax
import jax.numpy as jnp
from jax.experimental import pallas as pl
from jax.experimental.pallas import tpu as pltpu


def _layer_norm(x, w, b, eps=1e-5):
    # x: (T, D) f32, w/b: (1, D). Matches torch.nn.LayerNorm (biased variance).
    mean = jnp.mean(x, axis=-1, keepdims=True)
    var = jnp.mean((x - mean) ** 2, axis=-1, keepdims=True)
    inv = jax.lax.rsqrt(var + eps)
    return (x - mean) * inv * w + b


def _gelu_exact(x):
    # torch.nn.GELU() default (exact, erf-based)
    return 0.5 * x * (1.0 + jax.lax.erf(x * (1.0 / math.sqrt(2.0))))


def whisper_encoder_layer_kernel(
    xf_ref, xq_ref,
    wk_ref, wv_ref, bv_ref, wq_ref, bq_ref, wo_ref, bo_ref,
    ln1_w_ref, ln1_b_ref,
    w1_ref, b1_ref, w2_ref, b2_ref,
    ln2_w_ref, ln2_b_ref,
    out_ref,
    k_scr, v_scr,
):
    qi = pl.program_id(1)

    # --- K / V projections: once per batch element, cached in bf16 scratch ---
    @pl.when(qi == 0)
    def _():
        xf = xf_ref[...].astype(jnp.bfloat16)                        # (S, D)
        k = jnp.dot(xf, wk_ref[...], preferred_element_type=jnp.float32)
        v = jnp.dot(xf, wv_ref[...], preferred_element_type=jnp.float32) + bv_ref[...]
        k_scr[...] = k.astype(jnp.bfloat16)
        v_scr[...] = v.astype(jnp.bfloat16)

    x_q = xq_ref[...]                                                # (TQ, D) f32
    d_model = x_q.shape[-1]
    scale = 1.0 / math.sqrt(d_model)

    # --- Q projection; fold the 1/sqrt(d) scale into q ((TQ,D) VPU work) ---
    q = jnp.dot(x_q.astype(jnp.bfloat16), wq_ref[...],
                preferred_element_type=jnp.float32) + bq_ref[...]
    q = q * scale

    # --- scores = q @ k^T via dot_general (no transposed copy of K) ---
    scores = jax.lax.dot_general(
        q.astype(jnp.bfloat16), k_scr[...],
        dimension_numbers=(((1,), (1,)), ((), ())),
        preferred_element_type=jnp.float32)                          # (TQ, S)

    # --- softmax over keys, f32, EUP reciprocal for the denominator ---
    m = jnp.max(scores, axis=-1, keepdims=True)
    p = jnp.exp(scores - m)
    denom = jnp.sum(p, axis=-1, keepdims=True)
    probs = p * pl.reciprocal(denom, approx=True)

    ctx = jnp.dot(probs.astype(jnp.bfloat16), v_scr[...],
                  preferred_element_type=jnp.float32)                # (TQ, D)
    attn = jnp.dot(ctx.astype(jnp.bfloat16), wo_ref[...],
                   preferred_element_type=jnp.float32) + bo_ref[...]

    # --- residual + LayerNorm 1 (f32) ---
    h = _layer_norm(x_q + attn, ln1_w_ref[...], ln1_b_ref[...])

    # --- feed-forward: only a (TQ, d_ff) intermediate is live ---
    f = jnp.dot(h.astype(jnp.bfloat16), w1_ref[...],
                preferred_element_type=jnp.float32) + b1_ref[...]
    f = _gelu_exact(f)
    f = jnp.dot(f.astype(jnp.bfloat16), w2_ref[...],
                preferred_element_type=jnp.float32) + b2_ref[...]

    # --- residual + LayerNorm 2 (f32) ---
    out_ref[...] = _layer_norm(h + f, ln2_w_ref[...], ln2_b_ref[...])


def whisper_encoder_layer(x, params, *, tq=128):
    """x: (B, S, D) float32. params: dict of weights, linear weights stored
    pre-transposed to (in, out) and in bf16; biases / LN params in f32."""
    B, S, D = x.shape
    d_ff = params["w1"].shape[1]
    tq = min(tq, S)
    assert S % tq == 0, "sequence length must be divisible by the query tile"
    nq = S // tq

    def _full(shape):
        # Whole-array block with a constant index map: the block index never
        # changes across the grid, so Mosaic does not re-DMA these per step.
        return pl.BlockSpec(shape, lambda b, qi: (0, 0))

    in_specs = [
        pl.BlockSpec((None, S, D), lambda b, qi: (b, 0, 0)),    # full x (for K/V)
        pl.BlockSpec((None, tq, D), lambda b, qi: (b, qi, 0)),  # query tile of x
        _full((D, D)),                       # wk
        _full((D, D)), _full((1, D)),        # wv, bv
        _full((D, D)), _full((1, D)),        # wq, bq
        _full((D, D)), _full((1, D)),        # wo, bo
        _full((1, D)), _full((1, D)),        # ln1 w, b
        _full((D, d_ff)), _full((1, d_ff)),  # w1, b1
        _full((d_ff, D)), _full((1, D)),     # w2, b2
        _full((1, D)), _full((1, D)),        # ln2 w, b
    ]

    return pl.pallas_call(
        whisper_encoder_layer_kernel,
        out_shape=jax.ShapeDtypeStruct((B, S, D), jnp.float32),
        grid_spec=pltpu.PrefetchScalarGridSpec(
            num_scalar_prefetch=0,
            grid=(B, nq),
            in_specs=in_specs,
            out_specs=pl.BlockSpec((None, tq, D), lambda b, qi: (b, qi, 0)),
            scratch_shapes=[
                pltpu.VMEM((S, D), jnp.bfloat16),   # cached K
                pltpu.VMEM((S, D), jnp.bfloat16),   # cached V
            ],
        ),
        compiler_params=pltpu.CompilerParams(
            # batch axis parallel (megacore); query-tile axis carries the
            # per-batch K/V cache so it must stay sequential.
            dimension_semantics=("parallel", "arbitrary"),
            vmem_limit_bytes=64 * 1024 * 1024,
        ),
    )(
        x, x,
        params["wk"],
        params["wv"], params["bv"],
        params["wq"], params["bq"],
        params["wo"], params["bo"],
        params["ln1_w"], params["ln1_b"],
        params["w1"], params["b1"],
        params["w2"], params["b2"],
        params["ln2_w"], params["ln2_b"],
    )


def init_params(key, d_model, d_ff):
    """Deterministic parameter init. Linear weights are stored pre-transposed
    to (in, out) so the kernel computes x @ W (== x @ W_torch.T), in bf16."""
    ks = jax.random.split(key, 6)
    s = 0.02

    def w(k, shape):
        return (s * jax.random.normal(k, shape, jnp.float32)).astype(jnp.bfloat16)

    return {
        "wk": w(ks[0], (d_model, d_model)),
        "wv": w(ks[1], (d_model, d_model)),
        "bv": jnp.zeros((1, d_model), jnp.float32),
        "wq": w(ks[2], (d_model, d_model)),
        "bq": 0.01 * jnp.ones((1, d_model), jnp.float32),
        "wo": w(ks[3], (d_model, d_model)),
        "bo": jnp.zeros((1, d_model), jnp.float32),
        "ln1_w": jnp.ones((1, d_model), jnp.float32),
        "ln1_b": jnp.zeros((1, d_model), jnp.float32),
        "w1": w(ks[4], (d_model, d_ff)),
        "b1": 0.01 * jnp.ones((1, d_ff), jnp.float32),
        "w2": w(ks[5], (d_ff, d_model)),
        "b2": jnp.zeros((1, d_model), jnp.float32),
        "ln2_w": jnp.ones((1, d_model), jnp.float32),
        "ln2_b": jnp.zeros((1, d_model), jnp.float32),
    }


def _reference(x, p):
    """Pure-JAX f32 reference mirroring the PyTorch forward (sanity check)."""
    f32 = lambda a: a.astype(jnp.float32)
    k = x @ f32(p["wk"])
    v = x @ f32(p["wv"]) + p["bv"]
    q = x @ f32(p["wq"]) + p["bq"]
    scores = jnp.einsum("bsd,btd->bst", q, k) / jnp.sqrt(jnp.float32(x.shape[-1]))
    probs = jax.nn.softmax(scores, axis=-1)
    ctx = jnp.einsum("bst,btd->bsd", probs, v)
    attn = ctx @ f32(p["wo"]) + p["bo"]

    def ln(y, w, b):
        m = jnp.mean(y, -1, keepdims=True)
        var = jnp.mean((y - m) ** 2, -1, keepdims=True)
        return (y - m) * jax.lax.rsqrt(var + 1e-5) * w + b

    h = ln(x + attn, p["ln1_w"], p["ln1_b"])
    f = jax.nn.gelu(h @ f32(p["w1"]) + p["b1"], approximate=False) @ f32(p["w2"]) + p["b2"]
    return ln(h + f, p["ln2_w"], p["ln2_b"])


if __name__ == "__main__":
    # Small but lane-aligned shapes (S, D, d_ff multiples of 128; 2 query tiles).
    B, S, D, D_FF, TQ = 2, 256, 128, 512, 128
    key = jax.random.PRNGKey(0)
    kx, kp = jax.random.split(key)
    x = jax.random.normal(kx, (B, S, D), jnp.float32)
    params = init_params(kp, D, D_FF)

    out = whisper_encoder_layer(x, params, tq=TQ)
    out = jax.block_until_ready(out)

    ref = _reference(x, params)
    assert out.shape == (B, S, D)
    max_err = float(jnp.max(jnp.abs(out - ref)))
    # bf16 matmul inputs + approx reciprocal => relaxed tolerance vs f32 ref.
    assert jnp.allclose(out, ref, atol=3e-2, rtol=3e-2), f"mismatch vs reference (max abs err {max_err})"
    print("KERNEL_OK")
</pallas_src>

<mosaic_0001>
module attributes {stable_mosaic.version = 11 : i64} {
  func.func @whisper_encoder_layer_kernel(%arg0: i32, %arg1: i32, %arg2: memref<1x256x128xf32, #tpu.memory_space<vmem>>, %arg3: memref<1x128x128xf32, #tpu.memory_space<vmem>>, %arg4: memref<128x128xbf16, #tpu.memory_space<vmem>>, %arg5: memref<128x128xbf16, #tpu.memory_space<vmem>>, %arg6: memref<1x128xf32, #tpu.memory_space<vmem>>, %arg7: memref<128x128xbf16, #tpu.memory_space<vmem>>, %arg8: memref<1x128xf32, #tpu.memory_space<vmem>>, %arg9: memref<128x128xbf16, #tpu.memory_space<vmem>>, %arg10: memref<1x128xf32, #tpu.memory_space<vmem>>, %arg11: memref<1x128xf32, #tpu.memory_space<vmem>>, %arg12: memref<1x128xf32, #tpu.memory_space<vmem>>, %arg13: memref<128x512xbf16, #tpu.memory_space<vmem>>, %arg14: memref<1x512xf32, #tpu.memory_space<vmem>>, %arg15: memref<512x128xbf16, #tpu.memory_space<vmem>>, %arg16: memref<1x128xf32, #tpu.memory_space<vmem>>, %arg17: memref<1x128xf32, #tpu.memory_space<vmem>>, %arg18: memref<1x128xf32, #tpu.memory_space<vmem>>, %arg19: memref<1x128x128xf32, #tpu.memory_space<vmem>>, %arg20: memref<256x128xbf16, #tpu.memory_space<vmem>>, %arg21: memref<256x128xbf16, #tpu.memory_space<vmem>>) attributes {dimension_semantics = [#tpu.dimension_semantics<parallel>, #tpu.dimension_semantics<arbitrary>], iteration_bounds = array<i64: 2, 2>, scalar_prefetch = 0 : i64, scratch_operands = 2 : i64, tpu.core_type = #tpu.core_type<tc>, window_params = [{transform_indices = @transform_0, window_bounds = array<i64: 1, 256, 128>}, {transform_indices = @transform_1, window_bounds = array<i64: 1, 128, 128>}, {pipeline_mode = #tpu.pipeline_mode<synchronous>, transform_indices = @transform_2, window_bounds = array<i64: 128, 128>}, {pipeline_mode = #tpu.pipeline_mode<synchronous>, transform_indices = @transform_3, window_bounds = array<i64: 128, 128>}, {pipeline_mode = #tpu.pipeline_mode<synchronous>, transform_indices = @transform_4, window_bounds = array<i64: 1, 128>}, {pipeline_mode = #tpu.pipeline_mode<synchronous>, transform_indices = @transform_5, window_bounds = array<i64: 128, 128>}, {pipeline_mode = #tpu.pipeline_mode<synchronous>, transform_indices = @transform_6, window_bounds = array<i64: 1, 128>}, {pipeline_mode = #tpu.pipeline_mode<synchronous>, transform_indices = @transform_7, window_bounds = array<i64: 128, 128>}, {pipeline_mode = #tpu.pipeline_mode<synchronous>, transform_indices = @transform_8, window_bounds = array<i64: 1, 128>}, {pipeline_mode = #tpu.pipeline_mode<synchronous>, transform_indices = @transform_9, window_bounds = array<i64: 1, 128>}, {pipeline_mode = #tpu.pipeline_mode<synchronous>, transform_indices = @transform_10, window_bounds = array<i64: 1, 128>}, {pipeline_mode = #tpu.pipeline_mode<synchronous>, transform_indices = @transform_11, window_bounds = array<i64: 128, 512>}, {pipeline_mode = #tpu.pipeline_mode<synchronous>, transform_indices = @transform_12, window_bounds = array<i64: 1, 512>}, {pipeline_mode = #tpu.pipeline_mode<synchronous>, transform_indices = @transform_13, window_bounds = array<i64: 512, 128>}, {pipeline_mode = #tpu.pipeline_mode<synchronous>, transform_indices = @transform_14, window_bounds = array<i64: 1, 128>}, {pipeline_mode = #tpu.pipeline_mode<synchronous>, transform_indices = @transform_15, window_bounds = array<i64: 1, 128>}, {pipeline_mode = #tpu.pipeline_mode<synchronous>, transform_indices = @transform_16, window_bounds = array<i64: 1, 128>}, {transform_indices = @transform_17, window_bounds = array<i64: 1, 128, 128>}]} {
    %c0_i32 = arith.constant 0 : i32
    %0 = arith.cmpi eq, %arg1, %c0_i32 : i32
    %1 = arith.extui %0 : i1 to i32
    %c0_i32_0 = arith.constant 0 : i32
    %2 = arith.cmpi ne, %1, %c0_i32_0 : i32
    scf.if %2 {
      %c0_55 = arith.constant 0 : index
      %c0_56 = arith.constant 0 : index
      %c0_57 = arith.constant 0 : index
      %108 = vector.load %arg2[%c0_55, %c0_56, %c0_57] : memref<1x256x128xf32, #tpu.memory_space<vmem>>, vector<1x256x128xf32>
      %109 = vector.shape_cast %108 : vector<1x256x128xf32> to vector<256x128xf32>
      %110 = arith.truncf %109 : vector<256x128xf32> to vector<256x128xbf16>
      %c0_58 = arith.constant 0 : index
      %c0_59 = arith.constant 0 : index
      %111 = vector.load %arg4[%c0_58, %c0_59] : memref<128x128xbf16, #tpu.memory_space<vmem>>, vector<128x128xbf16>
      %cst_60 = arith.constant dense<0.000000e+00> : vector<256x128xf32>
      %112 = tpu.matmul %110, %111, %cst_60 {dimension_numbers = #tpu.dot_dimension_numbers<[1], [0], [0], [1], [0, 0, 1, 1], [], []>} : vector<256x128xbf16>, vector<128x128xbf16>, vector<256x128xf32> -> vector<256x128xf32>
      %c0_61 = arith.constant 0 : index
      %c0_62 = arith.constant 0 : index
      %113 = vector.load %arg5[%c0_61, %c0_62] : memref<128x128xbf16, #tpu.memory_space<vmem>>, vector<128x128xbf16>
      %cst_63 = arith.constant dense<0.000000e+00> : vector<256x128xf32>
      %114 = tpu.matmul %110, %113, %cst_63 {dimension_numbers = #tpu.dot_dimension_numbers<[1], [0], [0], [1], [0, 0, 1, 1], [], []>} : vector<256x128xbf16>, vector<128x128xbf16>, vector<256x128xf32> -> vector<256x128xf32>
      %c0_64 = arith.constant 0 : index
      %c0_65 = arith.constant 0 : index
      %115 = vector.load %arg6[%c0_64, %c0_65] : memref<1x128xf32, #tpu.memory_space<vmem>>, vector<1x128xf32>
      %116 = vector.broadcast %115 : vector<1x128xf32> to vector<256x128xf32>
      %117 = arith.addf %114, %116 : vector<256x128xf32>
      %118 = arith.truncf %112 : vector<256x128xf32> to vector<256x128xbf16>
      %c0_66 = arith.constant 0 : index
      %c0_67 = arith.constant 0 : index
      %119 = vector.load %arg20[%c0_66, %c0_67] : memref<256x128xbf16, #tpu.memory_space<vmem>>, vector<256x128xbf16>
      tpu.vector_store %arg20[%c0_66, %c0_67], %118 {strides = array<i32>} : memref<256x128xbf16, #tpu.memory_space<vmem>>, vector<256x128xbf16>,
      %120 = arith.truncf %117 : vector<256x128xf32> to vector<256x128xbf16>
      %c0_68 = arith.constant 0 : index
      %c0_69 = arith.constant 0 : index
      %121 = vector.load %arg21[%c0_68, %c0_69] : memref<256x128xbf16, #tpu.memory_space<vmem>>, vector<256x128xbf16>
      tpu.vector_store %arg21[%c0_68, %c0_69], %120 {strides = array<i32>} : memref<256x128xbf16, #tpu.memory_space<vmem>>, vector<256x128xbf16>,
    } else {
    }
    %c0 = arith.constant 0 : index
    %c0_1 = arith.constant 0 : index
    %c0_2 = arith.constant 0 : index
    %3 = vector.load %arg3[%c0, %c0_1, %c0_2] : memref<1x128x128xf32, #tpu.memory_space<vmem>>, vector<1x128x128xf32>
    %4 = vector.shape_cast %3 : vector<1x128x128xf32> to vector<128x128xf32>
    %5 = arith.truncf %4 : vector<128x128xf32> to vector<128x128xbf16>
    %c0_3 = arith.constant 0 : index
    %c0_4 = arith.constant 0 : index
    %6 = vector.load %arg7[%c0_3, %c0_4] : memref<128x128xbf16, #tpu.memory_space<vmem>>, vector<128x128xbf16>
    %cst = arith.constant dense<0.000000e+00> : vector<128x128xf32>
    %7 = tpu.matmul %5, %6, %cst {dimension_numbers = #tpu.dot_dimension_numbers<[1], [0], [0], [1], [0, 0, 1, 1], [], []>} : vector<128x128xbf16>, vector<128x128xbf16>, vector<128x128xf32> -> vector<128x128xf32>
    %c0_5 = arith.constant 0 : index
    %c0_6 = arith.constant 0 : index
    %8 = vector.load %arg8[%c0_5, %c0_6] : memref<1x128xf32, #tpu.memory_space<vmem>>, vector<1x128xf32>
    %9 = vector.broadcast %8 : vector<1x128xf32> to vector<128x128xf32>
    %10 = arith.addf %7, %9 : vector<128x128xf32>
    %cst_7 = arith.constant 0.0883883461 : f32
    %11 = vector.broadcast %cst_7 : f32 to vector<128x128xf32>
    %12 = arith.mulf %10, %11 : vector<128x128xf32>
    %13 = arith.truncf %12 : vector<128x128xf32> to vector<128x128xbf16>
    %c0_8 = arith.constant 0 : index
    %c0_9 = arith.constant 0 : index
    %14 = vector.load %arg20[%c0_8, %c0_9] : memref<256x128xbf16, #tpu.memory_space<vmem>>, vector<256x128xbf16>
    %cst_10 = arith.constant dense<0.000000e+00> : vector<128x256xf32>
    %15 = tpu.matmul %13, %14, %cst_10 {dimension_numbers = #tpu.dot_dimension_numbers<[1], [1], [0], [0], [0, 0, 1, 0], [], []>} : vector<128x128xbf16>, vector<256x128xbf16>, vector<128x256xf32> -> vector<128x256xf32>
    %cst_11 = arith.constant dense<0xFF800000> : vector<128xf32>
    %16 = vector.multi_reduction <maximumf>, %15, %cst_11 [1] : vector<128x256xf32> to vector<128xf32>
    %17 = vector.shape_cast %16 : vector<128xf32> to vector<128x1xf32>
    %18 = vector.broadcast %17 : vector<128x1xf32> to vector<128x256xf32>
    %19 = arith.subf %15, %18 : vector<128x256xf32>
    %20 = math.exp %19 : vector<128x256xf32>
    %cst_12 = arith.constant dense<0.000000e+00> : vector<128xf32>
    %21 = vector.multi_reduction <add>, %20, %cst_12 [1] : vector<128x256xf32> to vector<128xf32>
    %22 = vector.shape_cast %21 : vector<128xf32> to vector<128x1xf32>
    %23 = tpu.reciprocal %22 {approx = true} : vector<128x1xf32> -> vector<128x1xf32>
    %24 = vector.broadcast %23 : vector<128x1xf32> to vector<128x256xf32>
    %25 = arith.mulf %20, %24 : vector<128x256xf32>
    %26 = arith.truncf %25 : vector<128x256xf32> to vector<128x256xbf16>
    %c0_13 = arith.constant 0 : index
    %c0_14 = arith.constant 0 : index
    %27 = vector.load %arg21[%c0_13, %c0_14] : memref<256x128xbf16, #tpu.memory_space<vmem>>, vector<256x128xbf16>
    %cst_15 = arith.constant dense<0.000000e+00> : vector<128x128xf32>
    %28 = tpu.matmul %26, %27, %cst_15 {dimension_numbers = #tpu.dot_dimension_numbers<[1], [0], [0], [1], [0, 0, 1, 1], [], []>} : vector<128x256xbf16>, vector<256x128xbf16>, vector<128x128xf32> -> vector<128x128xf32>
    %29 = arith.truncf %28 : vector<128x128xf32> to vector<128x128xbf16>
    %c0_16 = arith.constant 0 : index
    %c0_17 = arith.constant 0 : index
    %30 = vector.load %arg9[%c0_16, %c0_17] : memref<128x128xbf16, #tpu.memory_space<vmem>>, vector<128x128xbf16>
    %cst_18 = arith.constant dense<0.000000e+00> : vector<128x128xf32>
    %31 = tpu.matmul %29, %30, %cst_18 {dimension_numbers = #tpu.dot_dimension_numbers<[1], [0], [0], [1], [0, 0, 1, 1], [], []>} : vector<128x128xbf16>, vector<128x128xbf16>, vector<128x128xf32> -> vector<128x128xf32>
    %c0_19 = arith.constant 0 : index
    %c0_20 = arith.constant 0 : index
    %32 = vector.load %arg10[%c0_19, %c0_20] : memref<1x128xf32, #tpu.memory_space<vmem>>, vector<1x128xf32>
    %33 = vector.broadcast %32 : vector<1x128xf32> to vector<128x128xf32>
    %34 = arith.addf %31, %33 : vector<128x128xf32>
    %35 = arith.addf %4, %34 : vector<128x128xf32>
    %c0_21 = arith.constant 0 : index
    %c0_22 = arith.constant 0 : index
    %36 = vector.load %arg11[%c0_21, %c0_22] : memref<1x128xf32, #tpu.memory_space<vmem>>, vector<1x128xf32>
    %c0_23 = arith.constant 0 : index
    %c0_24 = arith.constant 0 : index
    %37 = vector.load %arg12[%c0_23, %c0_24] : memref<1x128xf32, #tpu.memory_space<vmem>>, vector<1x128xf32>
    %cst_25 = arith.constant dense<0.000000e+00> : vector<128xf32>
    %38 = vector.multi_reduction <add>, %35, %cst_25 [1] : vector<128x128xf32> to vector<128xf32>
    %39 = vector.shape_cast %38 : vector<128xf32> to vector<128x1xf32>
    %cst_26 = arith.constant 1.280000e+02 : f32
    %40 = vector.broadcast %cst_26 : f32 to vector<128x1xf32>
    %41 = arith.divf %39, %40 : vector<128x1xf32>
    %42 = vector.broadcast %41 : vector<128x1xf32> to vector<128x128xf32>
    %43 = arith.subf %35, %42 : vector<128x128xf32>
    %44 = arith.mulf %43, %43 : vector<128x128xf32>
    %cst_27 = arith.constant dense<0.000000e+00> : vector<128xf32>
    %45 = vector.multi_reduction <add>, %44, %cst_27 [1] : vector<128x128xf32> to vector<128xf32>
    %46 = vector.shape_cast %45 : vector<128xf32> to vector<128x1xf32>
    %cst_28 = arith.constant 1.280000e+02 : f32
    %47 = vector.broadcast %cst_28 : f32 to vector<128x1xf32>
    %48 = arith.divf %46, %47 : vector<128x1xf32>
    %cst_29 = arith.constant 9.99999974E-6 : f32
    %49 = vector.broadcast %cst_29 : f32 to vector<128x1xf32>
    %50 = arith.addf %48, %49 : vector<128x1xf32>
    %51 = math.rsqrt %50 : vector<128x1xf32>
    %52 = vector.broadcast %41 : vector<128x1xf32> to vector<128x128xf32>
    %53 = arith.subf %35, %52 : vector<128x128xf32>
    %54 = vector.broadcast %51 : vector<128x1xf32> to vector<128x128xf32>
    %55 = arith.mulf %53, %54 : vector<128x128xf32>
    %56 = vector.broadcast %36 : vector<1x128xf32> to vector<128x128xf32>
    %57 = arith.mulf %55, %56 : vector<128x128xf32>
    %58 = vector.broadcast %37 : vector<1x128xf32> to vector<128x128xf32>
    %59 = arith.addf %57, %58 : vector<128x128xf32>
    %60 = arith.truncf %59 : vector<128x128xf32> to vector<128x128xbf16>
    %c0_30 = arith.constant 0 : index
    %c0_31 = arith.constant 0 : index
    %61 = vector.load %arg13[%c0_30, %c0_31] : memref<128x512xbf16, #tpu.memory_space<vmem>>, vector<128x512xbf16>
    %cst_32 = arith.constant dense<0.000000e+00> : vector<128x512xf32>
    %62 = tpu.matmul %60, %61, %cst_32 {dimension_numbers = #tpu.dot_dimension_numbers<[1], [0], [0], [1], [0, 0, 1, 1], [], []>} : vector<128x128xbf16>, vector<128x512xbf16>, vector<128x512xf32> -> vector<128x512xf32>
    %c0_33 = arith.constant 0 : index
    %c0_34 = arith.constant 0 : index
    %63 = vector.load %arg14[%c0_33, %c0_34] : memref<1x512xf32, #tpu.memory_space<vmem>>, vector<1x512xf32>
    %64 = vector.broadcast %63 : vector<1x512xf32> to vector<128x512xf32>
    %65 = arith.addf %62, %64 : vector<128x512xf32>
    %cst_35 = arith.constant 5.000000e-01 : f32
    %66 = vector.broadcast %cst_35 : f32 to vector<128x512xf32>
    %67 = arith.mulf %66, %65 : vector<128x512xf32>
    %cst_36 = arith.constant 0.707106769 : f32
    %68 = vector.broadcast %cst_36 : f32 to vector<128x512xf32>
    %69 = arith.mulf %65, %68 : vector<128x512xf32>
    %70 = math.erf %69 : vector<128x512xf32>
    %cst_37 = arith.constant 1.000000e+00 : f32
    %71 = vector.broadcast %cst_37 : f32 to vector<128x512xf32>
    %72 = arith.addf %71, %70 : vector<128x512xf32>
    %73 = arith.mulf %67, %72 : vector<128x512xf32>
    %74 = arith.truncf %73 : vector<128x512xf32> to vector<128x512xbf16>
    %c0_38 = arith.constant 0 : index
    %c0_39 = arith.constant 0 : index
    %75 = vector.load %arg15[%c0_38, %c0_39] : memref<512x128xbf16, #tpu.memory_space<vmem>>, vector<512x128xbf16>
    %cst_40 = arith.constant dense<0.000000e+00> : vector<128x128xf32>
    %76 = tpu.matmul %74, %75, %cst_40 {dimension_numbers = #tpu.dot_dimension_numbers<[1], [0], [0], [1], [0, 0, 1, 1], [], []>} : vector<128x512xbf16>, vector<512x128xbf16>, vector<128x128xf32> -> vector<128x128xf32>
    %c0_41 = arith.constant 0 : index
    %c0_42 = arith.constant 0 : index
    %77 = vector.load %arg16[%c0_41, %c0_42] : memref<1x128xf32, #tpu.memory_space<vmem>>, vector<1x128xf32>
    %78 = vector.broadcast %77 : vector<1x128xf32> to vector<128x128xf32>
    %79 = arith.addf %76, %78 : vector<128x128xf32>
    %80 = arith.addf %59, %79 : vector<128x128xf32>
    %c0_43 = arith.constant 0 : index
    %c0_44 = arith.constant 0 : index
    %81 = vector.load %arg17[%c0_43, %c0_44] : memref<1x128xf32, #tpu.memory_space<vmem>>, vector<1x128xf32>
    %c0_45 = arith.constant 0 : index
    %c0_46 = arith.constant 0 : index
    %82 = vector.load %arg18[%c0_45, %c0_46] : memref<1x128xf32, #tpu.memory_space<vmem>>, vector<1x128xf32>
    %cst_47 = arith.constant dense<0.000000e+00> : vector<128xf32>
    %83 = vector.multi_reduction <add>, %80, %cst_47 [1] : vector<128x128xf32> to vector<128xf32>
    %84 = vector.shape_cast %83 : vector<128xf32> to vector<128x1xf32>
    %cst_48 = arith.constant 1.280000e+02 : f32
    %85 = vector.broadcast %cst_48 : f32 to vector<128x1xf32>
    %86 = arith.divf %84, %85 : vector<128x1xf32>
    %87 = vector.broadcast %86 : vector<128x1xf32> to vector<128x128xf32>
    %88 = arith.subf %80, %87 : vector<128x128xf32>
    %89 = arith.mulf %88, %88 : vector<128x128xf32>
    %cst_49 = arith.constant dense<0.000000e+00> : vector<128xf32>
    %90 = vector.multi_reduction <add>, %89, %cst_49 [1] : vector<128x128xf32> to vector<128xf32>
    %91 = vector.shape_cast %90 : vector<128xf32> to vector<128x1xf32>
    %cst_50 = arith.constant 1.280000e+02 : f32
    %92 = vector.broadcast %cst_50 : f32 to vector<128x1xf32>
    %93 = arith.divf %91, %92 : vector<128x1xf32>
    %cst_51 = arith.constant 9.99999974E-6 : f32
    %94 = vector.broadcast %cst_51 : f32 to vector<128x1xf32>
    %95 = arith.addf %93, %94 : vector<128x1xf32>
    %96 = math.rsqrt %95 : vector<128x1xf32>
    %97 = vector.broadcast %86 : vector<128x1xf32> to vector<128x128xf32>
    %98 = arith.subf %80, %97 : vector<128x128xf32>
    %99 = vector.broadcast %96 : vector<128x1xf32> to vector<128x128xf32>
    %100 = arith.mulf %98, %99 : vector<128x128xf32>
    %101 = vector.broadcast %81 : vector<1x128xf32> to vector<128x128xf32>
    %102 = arith.mulf %100, %101 : vector<128x128xf32>
    %103 = vector.broadcast %82 : vector<1x128xf32> to vector<128x128xf32>
    %104 = arith.addf %102, %103 : vector<128x128xf32>
    %c0_52 = arith.constant 0 : index
    %c0_53 = arith.constant 0 : index
    %c0_54 = arith.constant 0 : index
    %105 = vector.load %arg19[%c0_52, %c0_53, %c0_54] : memref<1x128x128xf32, #tpu.memory_space<vmem>>, vector<1x128x128xf32>
    %106 = vector.shape_cast %105 : vector<1x128x128xf32> to vector<128x128xf32>
    %107 = vector.shape_cast %104 : vector<128x128xf32> to vector<1x128x128xf32>
    tpu.vector_store %arg19[%c0_52, %c0_53, %c0_54], %107 {strides = array<i32>} : memref<1x128x128xf32, #tpu.memory_space<vmem>>, vector<1x128x128xf32>,
    return
  }
  func.func @transform_0(%arg0: i32, %arg1: i32) -> (i32, i32, i32) {
    %c0_i32 = arith.constant 0 : i32
    %c0_i32_0 = arith.constant 0 : i32
    %c0_i32_1 = arith.constant 0 : i32
    return %arg0, %c0_i32, %c0_i32_0 : i32, i32, i32
  }
  func.func @transform_1(%arg0: i32, %arg1: i32) -> (i32, i32, i32) {
    %c0_i32 = arith.constant 0 : i32
    %c0_i32_0 = arith.constant 0 : i32
    return %arg0, %arg1, %c0_i32 : i32, i32, i32
  }
  func.func @transform_2(%arg0: i32, %arg1: i32) -> (i32, i32) {
    %c0_i32 = arith.constant 0 : i32
    %c0_i32_0 = arith.constant 0 : i32
    %c0_i32_1 = arith.constant 0 : i32
    return %c0_i32, %c0_i32_0 : i32, i32
  }
  func.func @transform_3(%arg0: i32, %arg1: i32) -> (i32, i32) {
    %c0_i32 = arith.constant 0 : i32
    %c0_i32_0 = arith.constant 0 : i32
    %c0_i32_1 = arith.constant 0 : i32
    return %c0_i32, %c0_i32_0 : i32, i32
  }
  func.func @transform_4(%arg0: i32, %arg1: i32) -> (i32, i32) {
    %c0_i32 = arith.constant 0 : i32
    %c0_i32_0 = arith.constant 0 : i32
    %c0_i32_1 = arith.constant 0 : i32
    return %c0_i32, %c0_i32_0 : i32, i32
  }
  func.func @transform_5(%arg0: i32, %arg1: i32) -> (i32, i32) {
    %c0_i32 = arith.constant 0 : i32
    %c0_i32_0 = arith.constant 0 : i32
    %c0_i32_1 = arith.constant 0 : i32
    return %c0_i32, %c0_i32_0 : i32, i32
  }
  func.func @transform_6(%arg0: i32, %arg1: i32) -> (i32, i32) {
    %c0_i32 = arith.constant 0 : i32
    %c0_i32_0 = arith.constant 0 : i32
    %c0_i32_1 = arith.constant 0 : i32
    return %c0_i32, %c0_i32_0 : i32, i32
  }
  func.func @transform_7(%arg0: i32, %arg1: i32) -> (i32, i32) {
    %c0_i32 = arith.constant 0 : i32
    %c0_i32_0 = arith.constant 0 : i32
    %c0_i32_1 = arith.constant 0 : i32
    return %c0_i32, %c0_i32_0 : i32, i32
  }
  func.func @transform_8(%arg0: i32, %arg1: i32) -> (i32, i32) {
    %c0_i32 = arith.constant 0 : i32
    %c0_i32_0 = arith.constant 0 : i32
    %c0_i32_1 = arith.constant 0 : i32
    return %c0_i32, %c0_i32_0 : i32, i32
  }
  func.func @transform_9(%arg0: i32, %arg1: i32) -> (i32, i32) {
    %c0_i32 = arith.constant 0 : i32
    %c0_i32_0 = arith.constant 0 : i32
    %c0_i32_1 = arith.constant 0 : i32
    return %c0_i32, %c0_i32_0 : i32, i32
  }
  func.func @transform_10(%arg0: i32, %arg1: i32) -> (i32, i32) {
    %c0_i32 = arith.constant 0 : i32
    %c0_i32_0 = arith.constant 0 : i32
    %c0_i32_1 = arith.constant 0 : i32
    return %c0_i32, %c0_i32_0 : i32, i32
  }
  func.func @transform_11(%arg0: i32, %arg1: i32) -> (i32, i32) {
    %c0_i32 = arith.constant 0 : i32
    %c0_i32_0 = arith.constant 0 : i32
    %c0_i32_1 = arith.constant 0 : i32
    return %c0_i32, %c0_i32_0 : i32, i32
  }
  func.func @transform_12(%arg0: i32, %arg1: i32) -> (i32, i32) {
    %c0_i32 = arith.constant 0 : i32
    %c0_i32_0 = arith.constant 0 : i32
    %c0_i32_1 = arith.constant 0 : i32
    return %c0_i32, %c0_i32_0 : i32, i32
  }
  func.func @transform_13(%arg0: i32, %arg1: i32) -> (i32, i32) {
    %c0_i32 = arith.constant 0 : i32
    %c0_i32_0 = arith.constant 0 : i32
    %c0_i32_1 = arith.constant 0 : i32
    return %c0_i32, %c0_i32_0 : i32, i32
  }
  func.func @transform_14(%arg0: i32, %arg1: i32) -> (i32, i32) {
    %c0_i32 = arith.constant 0 : i32
    %c0_i32_0 = arith.constant 0 : i32
    %c0_i32_1 = arith.constant 0 : i32
    return %c0_i32, %c0_i32_0 : i32, i32
  }
  func.func @transform_15(%arg0: i32, %arg1: i32) -> (i32, i32) {
    %c0_i32 = arith.constant 0 : i32
    %c0_i32_0 = arith.constant 0 : i32
    %c0_i32_1 = arith.constant 0 : i32
    return %c0_i32, %c0_i32_0 : i32, i32
  }
  func.func @transform_16(%arg0: i32, %arg1: i32) -> (i32, i32) {
    %c0_i32 = arith.constant 0 : i32
    %c0_i32_0 = arith.constant 0 : i32
    %c0_i32_1 = arith.constant 0 : i32
    return %c0_i32, %c0_i32_0 : i32, i32
  }
  func.func @transform_17(%arg0: i32, %arg1: i32) -> (i32, i32, i32) {
    %c0_i32 = arith.constant 0 : i32
    %c0_i32_0 = arith.constant 0 : i32
    return %arg0, %arg1, %c0_i32 : i32, i32, i32
  }
}

</mosaic_0001>

<bundles_post_ra>
// kernel: tpu_custom_call.1
= control target key start
LH: loop header
LB: loop body
LE: loop exit
PB: predicated region body
PF: predicated region fallthrough
CT: control target
= control target key end

     0   :  { %s13791_s0 = inlined_call_operand.hbm [shape: f32[2,256,128], index: 0, kind: input, shape index: {}]   ;;  %s13792_s1 = inlined_call_operand.hbm [shape: f32[2,256,128], index: 1, kind: input, shape index: {}]   ;;  %s13793_s2 = inlined_call_operand.hbm [shape: bf16[128,128], index: 2, kind: input, shape index: {}]   ;;  %s13794_s3 = inlined_call_operand.hbm [shape: bf16[128,128], index: 3, kind: input, shape index: {}]   ;;  %s13795_s4 = inlined_call_operand.vmem [shape: f32[1,128], index: 4, kind: input, shape index: {}]   ;;  %s13796_s5 = inlined_call_operand.hbm [shape: bf16[128,128], index: 5, kind: input, shape index: {}]   ;;  %s13797_s6 = inlined_call_operand.vmem [shape: f32[1,128], index: 6, kind: input, shape index: {}]   ;;  %s13798_s7 = inlined_call_operand.hbm [shape: bf16[128,128], index: 7, kind: input, shape index: {}]   ;;  %s13799_s8 = inlined_call_operand.vmem [shape: f32[1,128], index: 8, kind: input, shape index: {}]   ;;  %s13800_s9 = inlined_call_operand.vmem [shape: f32[1,128], index: 9, kind: input, shape index: {}]   ;;  %s13801_s10 = inlined_call_operand.vmem [shape: f32[1,128], index: 10, kind: input, shape index: {}]   ;;  %s13802_s11 = inlined_call_operand.hbm [shape: bf16[128,512], index: 11, kind: input, shape index: {}]   ;;  %s13803_s12 = inlined_call_operand.vmem [shape: f32[1,512], index: 12, kind: input, shape index: {}]   ;;  %s13804_s13 = inlined_call_operand.hbm [shape: bf16[512,128], index: 13, kind: input, shape index: {}]   ;;  %s13805_s14 = inlined_call_operand.vmem [shape: f32[1,128], index: 14, kind: input, shape index: {}]   ;;  %s13806_s15 = inlined_call_operand.vmem [shape: f32[1,128], index: 15, kind: input, shape index: {}]   ;;  %s13807_s16 = inlined_call_operand.vmem [shape: f32[1,128], index: 16, kind: input, shape index: {}]   ;;  %s13808_s17 = inlined_call_operand.hbm [shape: f32[2,256,128], index: 17, kind: output, shape index: {}]  }
   0x1   :  { %13868 = sst [smem:[#allocation76_spill]] %s13791_s0 }
   0x2   :  { %13869 = sst [smem:[#allocation77_spill]] %s13792_s1 }
   0x3   :  { %13870 = sst [smem:[#allocation78_spill]] %s13793_s2 }
   0x4   :  { %13871 = sst [smem:[#allocation79_spill]] %s13794_s3 }
   0x5   :  { %13872 = sst [smem:[#allocation80_spill]] %s13795_s4 }
   0x6   :  { %13873 = sst [smem:[#allocation81_spill]] %s13796_s5 }
   0x7   :  { %13874 = sst [smem:[#allocation82_spill]] %s13797_s6 }
   0x8   :  { %13875 = sst [smem:[#allocation83_spill]] %s13798_s7 }
   0x9   :  { %13876 = sst [smem:[#allocation84_spill]] %s13799_s8 }
   0xa   :  { %13877 = sst [smem:[#allocation85_spill]] %s13800_s9 }
   0xb   :  { %13878 = sst [smem:[#allocation86_spill]] %s13801_s10 }
   0xc   :  { %13879 = sst [smem:[#allocation87_spill]] %s13802_s11 }
   0xd   :  { %13880 = sst [smem:[#allocation88_spill]] %s13803_s12 }
   0xe   :  { %13881 = sst [smem:[#allocation89_spill]] %s13804_s13 }
   0xf   :  { %13882 = sst [smem:[#allocation90_spill]] %s13805_s14 }
  0x10   :  { %13883 = sst [smem:[#allocation91_spill]] %s13806_s15 }
  0x11   :  { %13884 = sst [smem:[#allocation92_spill]] %s13807_s16 }
  0x12   :  { %13885 = sst [smem:[#allocation93_spill]] %s13808_s17 }
  0x13   :  { %22 = vsyncpa [#allocation5], 0 }
  0x14   :  { %24 = vsyncpa [#allocation5 + $0x1], 0 }
  0x15   :  { %25 = vsyncpa [#allocation8], 0 }
  0x16   :  { %27 = vsyncpa [#allocation8 + $0x1], 0 }
  0x17   :  { %28 = vsyncpa [#allocation11], 0 }
  0x18   :  { %29 = vsyncpa [#allocation14], 0 }
  0x19   :  { %30 = vsyncpa [#allocation17], 0 }
  0x1a   :  { %31 = vsyncpa [#allocation6], 0 }
  0x1b   :  { %33 = vsyncpa [#allocation6 + $0x1], 0  ;;  %s8836_s24 = smov 0   ;;  %s8838_s25 = smov 0  }
  0x1c   :  { %s8840_s26 = smov 0   ;;  %s8842_s27 = smov 0  }
  0x1d   :  { %s8844_s28 = smov 0   ;;  %s8846_s29 = smov 0  }
  0x1e   :  { %s8848_s0 = smov 0   ;;  %s8850_s30 = smov 0  }
  0x1f   :  { %s8852_s18 = smov 0   ;;  %s8854_s19 = smov 0  }
  0x20   :  { %s8856_s1 = smov 0  }
  0x21 LB: > { %13886 = sst [smem:[#allocation26_spill]] %s8689_s24  ;;  %s8892_s20 = sadd.s32 4294967295, %s8729_s1   ;;  %s8729_s1 = sphi %s8856_s1, %s39_s1   ;;  %s8725_s19 = sphi %s8854_s19, %s14291_s19   ;;  %s8721_s18 = sphi %s8852_s18, %s14290_s18   ;;  %s8717_s30 = sphi %s8850_s30, %s14289_s30   ;;  %s8713_s0 = sphi %s8848_s0, %s14288_s0   ;;  %s8709_s29 = sphi %s8846_s29, %s14287_s29   ;;  %s8705_s28 = sphi %s8844_s28, %s14286_s28   ;;  %s8701_s27 = sphi %s8842_s27, %s14285_s27   ;;  %s8697_s26 = sphi %s8840_s26, %s14284_s26   ;;  %s8693_s25 = sphi %s8838_s25, %s14283_s25   ;;  %s8689_s24 = sphi %s8836_s24, %s14282_s24  }
  0x22   : > { %13887 = sst [smem:[#allocation27_spill]] %s8713_s0  ;;  %p6893_p0 = scmp.ge.s32.totalorder %s8729_s1, 1 }
  0x23   : > { %13888 = sst [smem:[#allocation28_spill]] %s8717_s30  ;;  %p13812_p1 = scmp.eq.s32.totalorder %s8892_s20, 0 }
  0x24   : > { %p453_p2 = scmp.lt.s32.totalorder %s8729_s1, 5  ;;  %s13889_s2 = sld [smem:[#allocation78_spill]] }
  0x25   : > { %s8731_s30 = smov [#allocation9]   ;;  %s13892_s3 = sld [smem:[#allocation79_spill]] }
  0x26   : > { %p8900_p3 = pnand %p6893_p0, %p453_p2  ;;  %s466_s16 = sshll.u32 %s8731_s30, 4  ;;  %s467_s16 = int_to_ptr.vmem [resolvable:$true] %s466_s16 }
  0x27   : > { %s8732_s22 = smov 64   ;;  %s8734_s30 = smov [#allocation10]  }
  0x28   : > { %p7882_p4 = pneg %p8900_p3  ;;  %s480_s10 = sshll.u32 %s8734_s30, 4  ;;  %s481_s10 = int_to_ptr.vmem [resolvable:$true] %s480_s10 }
  0x29   : > { %s13893_s7 = sld [smem:[#allocation83_spill]]  ;;  %s8735_s4 = smov [#allocation13]  }
  0x2a   : > { %s464_s23 = sshll.u32 %s13889_s2, 4  ;;  %p8908_p5 = pnand %p7882_p4, %p13812_p1  ;;  %s465_s23 = int_to_ptr.hbm [resolvable:$true] %s464_s23 }
  0x2b   : > { %s478_s21 = sshll.u32 %s13892_s3, 4  ;;  %s8733_s2 = smov 4   ;;  %s479_s21 = int_to_ptr.hbm [resolvable:$true] %s478_s21 }
  0x2c   : > { %7885 = dma.hbm_to_vmem [thread:$0]  (!%p8908_p5), %s465_s23, 1024, %s467_s16, [#allocation8], %s8732_s22, %s8732_s22, %s8733_s2  }
  0x2d   : > { %7888 = dma.hbm_to_vmem [thread:$0]  (!%p8908_p5), %s479_s21, 1024, %s481_s10, [#allocation11], %s8732_s22, %s8732_s22, %s8733_s2  }
  0x2e   : > { %s13894_s5 = sld [smem:[#allocation81_spill]]  ;;  %s514_s16 = sshll.u32 %s8735_s4, 4  ;;  %s515_s16 = int_to_ptr.vmem [resolvable:$true] %s514_s16 }
  0x2f   : > { %s512_s6 = sshll.u32 %s13893_s7, 4  ;;  %s8736_s8 = smov [#allocation12]   ;;  %s513_s6 = int_to_ptr.hbm [resolvable:$true] %s512_s6 }
  0x30   : > { %7894 = dma.hbm_to_vmem [thread:$0]  (!%p8908_p5), %s513_s6, 1024, %s515_s16, [#allocation14], %s8732_s22, %s8732_s22, %s8733_s2  }
  0x31   : > { %s497_s9 = sshll.u32 %s8736_s8, 4  ;;  %s13895_s11 = sld [smem:[#allocation87_spill]]  ;;  %s498_s9 = int_to_ptr.vmem [resolvable:$true] %s497_s9 }
  0x32   : > { %s8737_s4 = smov [#allocation15]   ;;  %s13896_s13 = sld [smem:[#allocation89_spill]] }
  0x33   : > { %s537_s6 = sshll.u32 %s8737_s4, 4  ;;  %s8738_s16 = smov 256   ;;  %s538_s6 = int_to_ptr.vmem [resolvable:$true] %s537_s6 }
  0x34   : > { %s495_s3 = sshll.u32 %s13894_s5, 4  ;;  %s8739_s8 = smov 16   ;;  %s496_s3 = int_to_ptr.hbm [resolvable:$true] %s495_s3 }
  0x35   : > { %7891 = dma.hbm_to_vmem [thread:$0]  (!%p8908_p5), %s496_s3, 1024, %s498_s9, [#allocation11], %s8732_s22, %s8732_s22, %s8733_s2  }
  0x36   : > { %s8740_s3 = smov [#allocation16]   ;;  %s51_s23 = sadd.s32 1, %s8725_s19 }
  0x37   : > { %s535_s10 = sshll.u32 %s13895_s11, 4  ;;  %s554_s9 = sshll.u32 %s8740_s3, 4  ;;  %s536_s10 = int_to_ptr.hbm [resolvable:$true] %s535_s10  ;;  %s555_s9 = int_to_ptr.vmem [resolvable:$true] %s554_s9 }
  0x38   : > { %s552_s14 = sshll.u32 %s13896_s13, 4  ;;  %s58_s30 = sadd.s32 1, %s8709_s29  ;;  %s553_s14 = int_to_ptr.hbm [resolvable:$true] %s552_s14 }
  0x39   : > { %7897 = dma.hbm_to_vmem [thread:$0]  (!%p8908_p5), %s536_s10, 4096, %s538_s6, [#allocation14], %s8738_s16, %s8738_s16, %s8739_s8  }
  0x3a   : > { %7900 = dma.hbm_to_vmem [thread:$0]  (!%p8908_p5), %s553_s14, 4096, %s555_s9, [#allocation17], %s8732_s22, %s8732_s22, %s8733_s2  }
  0x3b   : > { %p65_p6 = scmp.ne.s32.totalorder %s8709_s29, %s8705_s28  ;;  %p66_p7 = scmp.eq.s32.totalorder %s8729_s1, 0 }
  0x3c   : > { %p71_p8 = scmp.ne.s32.totalorder %s8705_s28, %s8701_s27  ;;  %p7918_p9 = scmp.lt.s32.totalorder %s8729_s1, 4 }
  0x3d   : > { %p67_p10 = por %p66_p7, %p65_p6  ;;  %s577_s10 = sand.u32 1, %s8709_s29  }
  0x3e   : > { %p8967_p11 = por %p13812_p1, %p71_p8  ;;  %s6901_s15 = sshll.u32 %s577_s10, 8 }
  0x3f   : > { %s7501_s2 = sshll.u32 %s8725_s19, 8  ;;  %s13898_s21 = sld [smem:[#allocation76_spill]] }
  0x40   : > { %s581_s14 = scalar_lea.vmem [#allocation4], %s6901_s15  ;;  %p7902_p12 = pnand %p7918_p9, %p67_p10 }
  0x41   : > { %s589_s16 = sshll.u32 %s581_s14, 4  ;;  %s578_s8 = scalar_lea.sflag [#allocation5], %s577_s10  ;;  %s590_s16 = int_to_ptr.vmem [resolvable:$true] %s589_s16 }
  0x42   : > { %s13813_s3 = smov 128   ;;  %s13814_s9 = smov 8  }
  0x43   : > { %s48_s15 = sadd.s32 1, %s8721_s18  ;;  %s86_s22 = sadd.s32 1, %s8697_s26 }
  0x44   : > { %p49_p13 = scmp.ge.s32.totalorder %s48_s15, 2  ;;  %p93_p0 = scmp.ne.s32.totalorder %s8697_s26, %s8693_s25 }
  0x45   : > { %s586_s27 = scalar_lea.hbm %s13898_s21, %s7501_s2  ;;  %s6892_s2 = sadd.s32 4294967294, %s8729_s1  }
  0x46   : > { %s587_s12 = sshll.u32 %s586_s27, 4  ;;  %p99_p2 = scmp.ne.s32.totalorder %s8693_s25, %s8689_s24  ;;  %s588_s12 = int_to_ptr.hbm [resolvable:$true] %s587_s12 }
  0x47   : > { %7904 = dma.hbm_to_vmem [thread:$0]  (!%p7902_p12), %s588_s12, 4096, %s590_s16, %s578_s8, %s13813_s3, %s13813_s3, %s13814_s9  }
  0x48   : > { %s14293_s15 = smov (%p49_p13, %s48_s15), 0  ;;  %s14295_s23 = smov (!%p49_p13, %s51_s23), %s8725_s19 }
  0x49   : > { %13899 = sst [smem:[#allocation29_spill]] %s14293_s15  ;;  %s82_s10 = ssub.s32 %s8721_s18, %s14293_s15 }
  0x4a   : > { %p8996_p4 = por %p93_p0, %p66_p7  ;;  %p53_p5 = scmp.ge.s32.totalorder %s14295_s23, 2 }
  0x4b   : > { %p9002_p6 = por %p99_p2, %p13812_p1  ;;  %p440_p8 = scmp.eq.s32.totalorder %s8892_s20, 3 }
  0x4c   : > { %p446_p10 = scmp.eq.s32.totalorder %s6892_s2, 3  ;;  %s14297_s23 = smov (%p53_p5, %s14295_s23), 0 }
  0x4d   : > { %s13901_s21 = scalar_select %p9002_p6, 1, 0 }
  0x4e   : > { %13903 = sst [smem:[#allocation31_spill]] %s14297_s23  ;;  %p9009_p12 = por %p440_p8, %p93_p0 }
  0x4f   : > { %13902 = sst [smem:[#allocation30_spill]] %s13901_s21  ;;  %p9013_p7 = por %p446_p10, %p99_p2 }
  0x50   : > { %s13904_s27 = scalar_select %p9009_p12, 1, 0 }
  0x51   : > { %s13906_s12 = scalar_select %p9013_p7, 1, 0 }
  0x52   : > { %13905 = sst [smem:[#allocation32_spill]] %s13904_s27  ;;  %s55_s14 = ssub.s32 %s8725_s19, %s14297_s23 }
  0x53   : > { %13907 = sst [smem:[#allocation33_spill]] %s13906_s12  ;;  %s599_s16 = sand.u32 1, %s8729_s1  }
  0x54   : > { %p56_p13 = scmp.eq.s32.totalorder %s55_s14, 0  ;;  %s83_s8 = sor.u32 %s82_s10, %s55_s14 }
  0x55   : > { %p84_p1 = scmp.eq.s32.totalorder %s83_s8, 0  ;;  %s601_s9 = sand.u32 1, %s8697_s26  }
  0x56   : > { %s9023_s2 = scalar_select %p56_p13, %s8709_s29, %s58_s30  }
  0x57   : > { %s9026_s3 = scalar_select %p84_p1, %s8697_s26, %s86_s22  }
  0x58   : > { %s6905_s5 = sshll.u32 %s8721_s18, 4  ;;  %s6904_s7 = sshll.u32 %s601_s9, 7 }
  0x59   : > { %s6906_s11 = sshll.u32 %s8725_s19, 5  ;;  %s603_s24 = scalar_lea.vmem [#allocation7], %s6904_s7 }
  0x5a   : > { %s608_s13 = sadd.s32 %s6906_s11, %s6905_s5  ;;  %s613_s12 = sshll.u32 %s603_s24, 4  ;;  %s614_s12 = int_to_ptr.vmem [resolvable:$true] %s613_s12 }
  0x5b   : > { %s6907_s15 = sshll.u32 %s608_s13, 3  ;;  %s13908_s0 = sld [smem:[#allocation77_spill]] }
  0x5c   : > { %p7905_p0 = pnand %p7918_p9, %p8996_p4  ;;  %s600_s30 = scalar_lea.sflag [#allocation8], %s599_s16 }
  0x5d   : > { %s13909_s22 = smov 8   ;;  %s13910_s14 = smov 128  }
  0x5f   : > { %625 = sbr.rel (%p8900_p3) target bundleno = 2887 (0xb47), region = 88 }
  0x61   : > { %s610_s21 = scalar_lea.hbm %s13908_s0, %s6907_s15 }
  0x62   : > { %s611_s10 = sshll.u32 %s610_s21, 4  ;;  %s612_s10 = int_to_ptr.hbm [resolvable:$true] %s611_s10 }
  0x63   : > { %7907 = dma.hbm_to_vmem [thread:$0]  (!%p7905_p0), %s612_s10, 2048, %s614_s12, %s600_s30, %s13910_s14, %s13910_s14, %s13909_s22  }
  0x64   : > { %s627_s5 = sand.u32 1, %s8705_s28  }
  0x65   : > { %s6909_s7 = sshll.u32 %s627_s5, 8  ;;  %s628_s11 = scalar_lea.sflag [#allocation5], %s627_s5 }
  0x66   : > { %s9044_s13 = scalar_lea.vmem [#allocation4], %s6909_s7 }
  0x67   : > { %8660 = dma.done.wait (%p8967_p11), %s628_s11, 4096  }
  0x68   : > { %8662 = vsyncadd (%p8967_p11), %s628_s11, 4294963200  ;;  %s637_s0 = sand.u32 1, %s8892_s20   ;;  %s639_s23 = sand.u32 1, %s8693_s25  }
  0x69   : > { %s6910_s17 = sshll.u32 %s639_s23, 7  ;;  %s638_s9 = scalar_lea.sflag [#allocation8], %s637_s0 }
  0x6a   : > { %s9054_s15 = scalar_lea.vmem [#allocation7], %s6910_s17 }
  0x6b   : > { %8664 = dma.done.wait (%p9002_p6), %s638_s9, 2048  }
  0x6c   : > { %8666 = vsyncadd (%p9002_p6), %s638_s9, 4294965248  ;;  %p13912_p1 = scmp.eq.s32.totalorder %s8892_s20, 0 }
  0x6e   : > { %8668 = dma.done.wait (%p13912_p1), [#allocation8], 1024   ;;  %p13913_p3 = pmov %p13912_p1 }
  0x6f   : > { %p13914_p9 = pmov %p13912_p1 }
  0x70   : > { %8670 = vsyncadd (%p13913_p3), [#allocation8], 4294966272 }
  0x71   : > { %8672 = dma.done.wait (%p13914_p9), [#allocation11], 2048   ;;  %p13915_p11 = pmov %p13912_p1 }
  0x72   : > { %p13916_p2 = pmov %p13912_p1 }
  0x73   : > { %8674 = vsyncadd (%p13915_p11), [#allocation11], 4294965248 }
  0x74   : > { %8676 = dma.done.wait (%p13916_p2), [#allocation14], 5120   ;;  %p13917_p4 = pmov %p13912_p1 }
  0x75   : > { %p13918_p5 = pmov %p13912_p1 }
  0x76   : > { %8678 = vsyncadd (%p13917_p4), [#allocation14], 4294962176 }
  0x77   : > { %8680 = dma.done.wait (%p13918_p5), [#allocation17], 4096   ;;  %p13919_p6 = pmov %p13912_p1 }
  0x78   : > { %s9076_s4 = scalar_lea.vmem [#allocation18], %s6910_s17  ;;  %s13920_s6 = sld [smem:[#allocation27_spill]] }
  0x79   : > { %8682 = vsyncadd (%p13919_p6), [#allocation17], 4294963200 }
  0x7e   : > { %p6918_p8 = scmp.ne.s32.totalorder %s13920_s6, 0 }
  0x7f   : > { %s13921_s27 = sld [smem:[#allocation80_spill]] (!%p6918_p8) }
  0x80   : > { %733 = sbr.rel (%p6918_p8) target bundleno = 423 (0x1a7), region = 124 }
  0x85   : > { %v7509_v0 = vld [vmem:[#allocation9 + $0x38] sm:$0xff]  ;;  %v7508_v2 = vld [vmem:[#allocation9 + $0x30] sm:$0xff]  ;;  %v7507_v4 = vld [vmem:[#allocation9 + $0x28] sm:$0xff] }
  0x86   : > { %v7517_v1 = vld [vmem:[#allocation10 + $0x38] sm:$0xff]  ;;  %846 = vmatpush.bf16.msra.mxu0 %v7509_v0  ;;  %7820 = vmatpush.bf16.msra.mxu2 %v7509_v0  ;;  %v7516_v3 = vld [vmem:[#allocation10 + $0x30] sm:$0xff]  ;;  %v7515_v5 = vld [vmem:[#allocation10 + $0x28] sm:$0xff] }
  0x87   : > { %1003 = vmatpush.bf16.msra.mxu1 %v7517_v1  ;;  %7828 = vmatpush.bf16.msra.mxu3 %v7517_v1  ;;  %v7506_v6 = vld [vmem:[#allocation9 + $0x20] sm:$0xff]  ;;  %v7505_v8 = vld [vmem:[#allocation9 + $0x18] sm:$0xff]  ;;  %v7504_v10 = vld [vmem:[#allocation9 + $0x10] sm:$0xff] }
  0x88   : > { %v7514_v7 = vld [vmem:[#allocation10 + $0x20] sm:$0xff]  ;;  %v7513_v9 = vld [vmem:[#allocation10 + $0x18] sm:$0xff]  ;;  %v7512_v11 = vld [vmem:[#allocation10 + $0x10] sm:$0xff] }
  0x89   : > { %v7503_v12 = vld [vmem:[#allocation9 + $0x8] sm:$0xff]  ;;  %v7502_v14 = vld [vmem:[#allocation9] sm:$0xff]  ;;  %v736_v22 = vld [vmem:[%s9044_s13 + $0x10] sm:$0xff] }
  0x8a   : > { %847 = vmatpush.bf16.msra.mxu0 %v7508_v2  ;;  %7821 = vmatpush.bf16.msra.mxu2 %v7508_v2  ;;  %v7511_v13 = vld [vmem:[#allocation10 + $0x8] sm:$0xff]  ;;  %v734_v15 = vld [vmem:[%s9044_s13] sm:$0xff]  ;;  %v737_v23 = vld [vmem:[%s9044_s13 + $0x18] sm:$0xff] }
  0x8b   : > { %1004 = vmatpush.bf16.msra.mxu1 %v7516_v3  ;;  %7829 = vmatpush.bf16.msra.mxu3 %v7516_v3  ;;  %v735_v16 = vld [vmem:[%s9044_s13 + $0x8] sm:$0xff]  ;;  %v750_v17 = vld [vmem:[%s9044_s13 + $0x80] sm:$0xff]  ;;  %v752_v24 = vld [vmem:[%s9044_s13 + $0x90] sm:$0xff]  ;;  %v767_v26 = vpack.c.bf16 %v737_v23, %v736_v22 }
  0x8c   : > { %v751_v18 = vld [vmem:[%s9044_s13 + $0x88] sm:$0xff]  ;;  %v7510_v19 = vld [vmem:[#allocation10] sm:$0xff]  ;;  %v766_v20 = vpack.c.bf16 %v735_v16, %v734_v15  ;;  %v753_v25 = vld [vmem:[%s9044_s13 + $0x98] sm:$0xff] }
  0x8d   : > { %v774_v21 = vpack.c.bf16 %v751_v18, %v750_v17  ;;  %v775_v27 = vpack.c.bf16 %v753_v25, %v752_v24  ;;  %v738_v28 = vld [vmem:[%s9044_s13 + $0x20] sm:$0xff]  ;;  %v739_v29 = vld [vmem:[%s9044_s13 + $0x28] sm:$0xff]  ;;  %v740_v34 = vld [vmem:[%s9044_s13 + $0x30] sm:$0xff] }
  0x8e   : > { %848 = vmatpush.bf16.msra.mxu0 %v7507_v4  ;;  %7822 = vmatpush.bf16.msra.mxu2 %v7507_v4  ;;  %v754_v30 = vld [vmem:[%s9044_s13 + $0xa0] sm:$0xff]  ;;  %v755_v31 = vld [vmem:[%s9044_s13 + $0xa8] sm:$0xff]  ;;  %v768_v32 = vpack.c.bf16 %v739_v29, %v738_v28  ;;  %v741_v35 = vld [vmem:[%s9044_s13 + $0x38] sm:$0xff] }
  0x8f   : > { %1005 = vmatpush.bf16.msra.mxu1 %v7515_v5  ;;  %7830 = vmatpush.bf16.msra.mxu3 %v7515_v5  ;;  %v776_v33 = vpack.c.bf16 %v755_v31, %v754_v30  ;;  %v756_v36 = vld [vmem:[%s9044_s13 + $0xb0] sm:$0xff]  ;;  %v757_v37 = vld [vmem:[%s9044_s13 + $0xb8] sm:$0xff]  ;;  %v769_v38 = vpack.c.bf16 %v741_v35, %v740_v34  ;;  %v742_v40 = vld [vmem:[%s9044_s13 + $0x40] sm:$0xff] }
  0x90   : > { %v777_v39 = vpack.c.bf16 %v757_v37, %v756_v36  ;;  %v743_v41 = vld [vmem:[%s9044_s13 + $0x48] sm:$0xff]  ;;  %v758_v42 = vld [vmem:[%s9044_s13 + $0xc0] sm:$0xff]  ;;  %v744_v46 = vld [vmem:[%s9044_s13 + $0x50] sm:$0xff] }
  0x91   : > { %v759_v43 = vld [vmem:[%s9044_s13 + $0xc8] sm:$0xff]  ;;  %v770_v44 = vpack.c.bf16 %v743_v41, %v742_v40  ;;  %v745_v47 = vld [vmem:[%s9044_s13 + $0x58] sm:$0xff]  ;;  %v760_v48 = vld [vmem:[%s9044_s13 + $0xd0] sm:$0xff] }
  0x92   : > { %849 = vmatpush.bf16.msra.mxu0 %v7506_v6  ;;  %7823 = vmatpush.bf16.msra.mxu2 %v7506_v6  ;;  %v778_v45 = vpack.c.bf16 %v759_v43, %v758_v42  ;;  %v761_v49 = vld [vmem:[%s9044_s13 + $0xd8] sm:$0xff]  ;;  %v771_v50 = vpack.c.bf16 %v745_v47, %v744_v46  ;;  %v746_v52 = vld [vmem:[%s9044_s13 + $0x60] sm:$0xff]  ;;  %v747_v53 = vld [vmem:[%s9044_s13 + $0x68] sm:$0xff] }
  0x93   : > { %1006 = vmatpush.bf16.msra.mxu1 %v7514_v7  ;;  %7831 = vmatpush.bf16.msra.mxu3 %v7514_v7  ;;  %v779_v51 = vpack.c.bf16 %v761_v49, %v760_v48  ;;  %v762_v54 = vld [vmem:[%s9044_s13 + $0xe0] sm:$0xff]  ;;  %v763_v55 = vld [vmem:[%s9044_s13 + $0xe8] sm:$0xff]  ;;  %v772_v56 = vpack.c.bf16 %v747_v53, %v746_v52  ;;  %v748_v58 = vld [vmem:[%s9044_s13 + $0x70] sm:$0xff] }
  0x94   : > { %v780_v57 = vpack.c.bf16 %v763_v55, %v762_v54  ;;  %v749_v59 = vld [vmem:[%s9044_s13 + $0x78] sm:$0xff]  ;;  %v764_v60 = vld [vmem:[%s9044_s13 + $0xf0] sm:$0xff]  ;;  %v9114_v2 = vld [vmem:[%s13921_s27] ss:$0 sm:$0xff] }
  0x95   : > { %v765_v61 = vld [vmem:[%s9044_s13 + $0xf8] sm:$0xff]  ;;  %v773_v62 = vpack.c.bf16 %v749_v59, %v748_v58 }
  0x96   : > { %850 = vmatpush.bf16.msra.mxu0 %v7505_v8  ;;  %7824 = vmatpush.bf16.msra.mxu2 %v7505_v8  ;;  %v781_v63 = vpack.c.bf16 %v765_v61, %v764_v60 }
  0x97   : > { %1007 = vmatpush.bf16.msra.mxu1 %v7513_v9  ;;  %7832 = vmatpush.bf16.msra.mxu3 %v7513_v9 }
  0x9a   : > { %851 = vmatpush.bf16.msra.mxu0 %v7504_v10  ;;  %7825 = vmatpush.bf16.msra.mxu2 %v7504_v10 }
  0x9b   : > { %1008 = vmatpush.bf16.msra.mxu1 %v7512_v11  ;;  %7833 = vmatpush.bf16.msra.mxu3 %v7512_v11 }
  0x9e   : > { %852 = vmatpush.bf16.msra.mxu0 %v7503_v12  ;;  %7826 = vmatpush.bf16.msra.mxu2 %v7503_v12 }
  0x9f   : > { %1009 = vmatpush.bf16.msra.mxu1 %v7511_v13  ;;  %7834 = vmatpush.bf16.msra.mxu3 %v7511_v13 }
  0xa2   : > { %853 = vmatpush.bf16.msra.mxu0 %v7502_v14  ;;  %7827 = vmatpush.bf16.msra.mxu2 %v7502_v14 }
  0xa3   : > { %1010 = vmatpush.bf16.msra.mxu1 %v7510_v19  ;;  %7835 = vmatpush.bf16.msra.mxu3 %v7510_v19 }
  0xa5   : > { %854 = vmatmul.bf16.vlgmr.msra.gmra.mxu0 %v766_v20  ;;  %894 = vmatmul.bf16.vlgmr.msra.gmra.mxu2 %v774_v21 }
  0xa6   : > { %1011 = vmatmul.bf16.vlgmr.msra.gmra.mxu1 %v766_v20  ;;  %1051 = vmatmul.bf16.vlgmr.msra.gmra.mxu3 %v774_v21 }
  0xb5   : > { %859 = vmatmul.bf16.gmra.mxu0 %v767_v26  ;;  %899 = vmatmul.bf16.gmra.mxu2 %v775_v27 }
  0xb6   : > { %1016 = vmatmul.bf16.gmra.mxu1 %v767_v26  ;;  %1056 = vmatmul.bf16.gmra.mxu3 %v775_v27 }
  0xc5   : > { %864 = vmatmul.bf16.gmra.mxu0 %v768_v32  ;;  %904 = vmatmul.bf16.gmra.mxu2 %v776_v33 }
  0xc6   : > { %1021 = vmatmul.bf16.gmra.mxu1 %v768_v32  ;;  %1061 = vmatmul.bf16.gmra.mxu3 %v776_v33 }
  0xd5   : > { %869 = vmatmul.bf16.gmra.mxu0 %v769_v38  ;;  %909 = vmatmul.bf16.gmra.mxu2 %v777_v39 }
  0xd6   : > { %1026 = vmatmul.bf16.gmra.mxu1 %v769_v38  ;;  %1066 = vmatmul.bf16.gmra.mxu3 %v777_v39 }
  0xe5   : > { %874 = vmatmul.bf16.gmra.mxu0 %v770_v44  ;;  %914 = vmatmul.bf16.gmra.mxu2 %v778_v45 }
  0xe6   : > { %1031 = vmatmul.bf16.gmra.mxu1 %v770_v44  ;;  %1071 = vmatmul.bf16.gmra.mxu3 %v778_v45 }
  0xf5   : > { %879 = vmatmul.bf16.gmra.mxu0 %v771_v50  ;;  %919 = vmatmul.bf16.gmra.mxu2 %v779_v51 }
  0xf6   : > { %1036 = vmatmul.bf16.gmra.mxu1 %v771_v50  ;;  %1076 = vmatmul.bf16.gmra.mxu3 %v779_v51 }
 0x105   : > { %884 = vmatmul.bf16.gmra.mxu0 %v772_v56  ;;  %924 = vmatmul.bf16.gmra.mxu2 %v780_v57 }
 0x106   : > { %1041 = vmatmul.bf16.gmra.mxu1 %v772_v56  ;;  %1081 = vmatmul.bf16.gmra.mxu3 %v780_v57 }
 0x115   : > { %889 = vmatmul.bf16.gmra.mxu0 %v773_v62  ;;  %929 = vmatmul.bf16.gmra.mxu2 %v781_v63 }
 0x116   : > { %1046 = vmatmul.bf16.gmra.mxu1 %v773_v62  ;;  %1086 = vmatmul.bf16.gmra.mxu3 %v781_v63 }
 0x122   : > { %v855_v0 = vpop.f32.mrf.mxu0 }
 0x123   : > { %v1012_v1 = vpop.f32.mrf.mxu1 }
 0x124   : > { %v1013_v8 = vadd.f32 %v9114_v2, %v1012_v1 }
 0x128   : > { %v895_v3 = vpop.f32.mrf.mxu2 }
 0x129   : > { %v1052_v4 = vpop.f32.mrf.mxu3 }
 0x12a   : > { %v857_v5 = vpop.f32.mrf.mxu0  ;;  %v1053_v14 = vadd.f32 %v9114_v2, %v1052_v4 }
 0x12b   : > { %v7633_v6 = vpack.c.bf16 %v857_v5, %v855_v0  ;;  %v1014_v7 = vpop.f32.mrf.mxu1 }
 0x12c   : > { %v1015_v9 = vadd.f32 %v9114_v2, %v1014_v7 }
 0x12d   : > { %7634 = vst [vmem:[#allocation2 + $0x30] sm:$0xff] %v7633_v6  }
 0x12e   : > { %v7713_v10 = vpack.c.bf16 %v1015_v9, %v1013_v8 }
 0x130   : > { %7714 = vst [vmem:[#allocation3 + $0x28] sm:$0xff] %v7713_v10   ;;  %v897_v11 = vpop.f32.mrf.mxu2 }
 0x131   : > { %v7673_v12 = vpack.c.bf16 %v897_v11, %v895_v3  ;;  %v1054_v13 = vpop.f32.mrf.mxu3 }
 0x132   : > { %v1055_v15 = vadd.f32 %v9114_v2, %v1054_v13  ;;  %v860_v16 = vpop.f32.mrf.mxu0 }
 0x133   : > { %7797 = vst [vmem:[#allocation2 + $0x40] sm:$0xff] %v7673_v12   ;;  %v1017_v17 = vpop.f32.mrf.mxu1 }
 0x134   : > { %v7753_v18 = vpack.c.bf16 %v1055_v15, %v1053_v14  ;;  %v1018_v24 = vadd.f32 %v9114_v2, %v1017_v17 }
 0x136   : > { %7812 = vst [vmem:[#allocation3 + $0x20] sm:$0xff] %v7753_v18  }
 0x138   : > { %v900_v19 = vpop.f32.mrf.mxu2 }
 0x139   : > { %v1057_v20 = vpop.f32.mrf.mxu3 }
 0x13a   : > { %v862_v21 = vpop.f32.mrf.mxu0  ;;  %v1058_v30 = vadd.f32 %v9114_v2, %v1057_v20 }
 0x13b   : > { %v7638_v22 = vpack.c.bf16 %v862_v21, %v860_v16  ;;  %v1019_v23 = vpop.f32.mrf.mxu1 }
 0x13c   : > { %v1020_v25 = vadd.f32 %v9114_v2, %v1019_v23 }
 0x13d   : > { %7790 = vst [vmem:[#allocation2] sm:$0xff] %v7638_v22  }
 0x13e   : > { %v7718_v26 = vpack.c.bf16 %v1020_v25, %v1018_v24 }
 0x140   : > { %7805 = vst [vmem:[#allocation3 + $0x68] sm:$0xff] %v7718_v26   ;;  %v902_v27 = vpop.f32.mrf.mxu2 }
 0x141   : > { %v7678_v28 = vpack.c.bf16 %v902_v27, %v900_v19  ;;  %v1059_v29 = vpop.f32.mrf.mxu3 }
 0x142   : > { %v1060_v31 = vadd.f32 %v9114_v2, %v1059_v29  ;;  %v865_v32 = vpop.f32.mrf.mxu0 }
 0x143   : > { %7798 = vst [vmem:[#allocation2 + $0x20] sm:$0xff] %v7678_v28   ;;  %v1022_v33 = vpop.f32.mrf.mxu1 }
 0x144   : > { %v7758_v34 = vpack.c.bf16 %v1060_v31, %v1058_v30  ;;  %v1023_v40 = vadd.f32 %v9114_v2, %v1022_v33 }
 0x146   : > { %7813 = vst [vmem:[#allocation3 + $0x78] sm:$0xff] %v7758_v34  }
 0x148   : > { %v905_v35 = vpop.f32.mrf.mxu2 }
 0x149   : > { %v1062_v36 = vpop.f32.mrf.mxu3 }
 0x14a   : > { %v867_v37 = vpop.f32.mrf.mxu0  ;;  %v1063_v46 = vadd.f32 %v9114_v2, %v1062_v36 }
 0x14b   : > { %v7643_v38 = vpack.c.bf16 %v867_v37, %v865_v32  ;;  %v1024_v39 = vpop.f32.mrf.mxu1 }
 0x14c   : > { %v1025_v41 = vadd.f32 %v9114_v2, %v1024_v39 }
 0x14d   : > { %7791 = vst [vmem:[#allocation2 + $0x58] sm:$0xff] %v7643_v38  }
 0x14e   : > { %v7723_v42 = vpack.c.bf16 %v1025_v41, %v1023_v40 }
 0x150   : > { %7806 = vst [vmem:[#allocation3 + $0x10] sm:$0xff] %v7723_v42   ;;  %v907_v43 = vpop.f32.mrf.mxu2 }
 0x151   : > { %v7683_v44 = vpack.c.bf16 %v907_v43, %v905_v35  ;;  %v1064_v45 = vpop.f32.mrf.mxu3 }
 0x152   : > { %v1065_v47 = vadd.f32 %v9114_v2, %v1064_v45  ;;  %v870_v48 = vpop.f32.mrf.mxu0 }
 0x153   : > { %7799 = vst [vmem:[#allocation2 + $0x10] sm:$0xff] %v7683_v44   ;;  %v1027_v49 = vpop.f32.mrf.mxu1 }
 0x154   : > { %v7763_v50 = vpack.c.bf16 %v1065_v47, %v1063_v46  ;;  %v1028_v56 = vadd.f32 %v9114_v2, %v1027_v49 }
 0x156   : > { %7814 = vst [vmem:[#allocation3 + $0x18] sm:$0xff] %v7763_v50  }
 0x158   : > { %v910_v51 = vpop.f32.mrf.mxu2 }
 0x159   : > { %v1067_v52 = vpop.f32.mrf.mxu3 }
 0x15a   : > { %v872_v53 = vpop.f32.mrf.mxu0  ;;  %v1068_v62 = vadd.f32 %v9114_v2, %v1067_v52 }
 0x15b   : > { %v7648_v54 = vpack.c.bf16 %v872_v53, %v870_v48  ;;  %v1029_v55 = vpop.f32.mrf.mxu1 }
 0x15c   : > { %v1030_v57 = vadd.f32 %v9114_v2, %v1029_v55 }
 0x15d   : > { %7792 = vst [vmem:[#allocation2 + $0x18] sm:$0xff] %v7648_v54  }
 0x15e   : > { %v7728_v58 = vpack.c.bf16 %v1030_v57, %v1028_v56 }
 0x160   : > { %7807 = vst [vmem:[#allocation3 + $0x40] sm:$0xff] %v7728_v58   ;;  %v912_v59 = vpop.f32.mrf.mxu2 }
 0x161   : > { %v7688_v60 = vpack.c.bf16 %v912_v59, %v910_v51  ;;  %v1069_v61 = vpop.f32.mrf.mxu3 }
 0x162   : > { %v1070_v63 = vadd.f32 %v9114_v2, %v1069_v61  ;;  %v875_v0 = vpop.f32.mrf.mxu0 }
 0x163   : > { %7800 = vst [vmem:[#allocation2 + $0x38] sm:$0xff] %v7688_v60   ;;  %v1032_v1 = vpop.f32.mrf.mxu1 }
 0x164   : > { %v7768_v3 = vpack.c.bf16 %v1070_v63, %v1068_v62  ;;  %v1033_v9 = vadd.f32 %v9114_v2, %v1032_v1 }
 0x166   : > { %7815 = vst [vmem:[#allocation3 + $0x58] sm:$0xff] %v7768_v3  }
 0x168   : > { %v915_v4 = vpop.f32.mrf.mxu2 }
 0x169   : > { %v1072_v5 = vpop.f32.mrf.mxu3 }
 0x16a   : > { %v877_v6 = vpop.f32.mrf.mxu0  ;;  %v1073_v15 = vadd.f32 %v9114_v2, %v1072_v5 }
 0x16b   : > { %v7653_v7 = vpack.c.bf16 %v877_v6, %v875_v0  ;;  %v1034_v8 = vpop.f32.mrf.mxu1 }
 0x16c   : > { %v1035_v10 = vadd.f32 %v9114_v2, %v1034_v8 }
 0x16d   : > { %7793 = vst [vmem:[#allocation2 + $0x50] sm:$0xff] %v7653_v7  }
 0x16e   : > { %v7733_v11 = vpack.c.bf16 %v1035_v10, %v1033_v9 }
 0x170   : > { %7808 = vst [vmem:[#allocation3 + $0x48] sm:$0xff] %v7733_v11   ;;  %v917_v12 = vpop.f32.mrf.mxu2 }
 0x171   : > { %v7693_v13 = vpack.c.bf16 %v917_v12, %v915_v4  ;;  %v1074_v14 = vpop.f32.mrf.mxu3 }
 0x172   : > { %v1075_v16 = vadd.f32 %v9114_v2, %v1074_v14  ;;  %v880_v17 = vpop.f32.mrf.mxu0 }
 0x173   : > { %7801 = vst [vmem:[#allocation2 + $0x60] sm:$0xff] %v7693_v13   ;;  %v1037_v18 = vpop.f32.mrf.mxu1 }
 0x174   : > { %v7773_v19 = vpack.c.bf16 %v1075_v16, %v1073_v15  ;;  %v1038_v25 = vadd.f32 %v9114_v2, %v1037_v18 }
 0x176   : > { %7816 = vst [vmem:[#allocation3] sm:$0xff] %v7773_v19  }
 0x178   : > { %v920_v20 = vpop.f32.mrf.mxu2 }
 0x179   : > { %v1077_v21 = vpop.f32.mrf.mxu3 }
 0x17a   : > { %v882_v22 = vpop.f32.mrf.mxu0  ;;  %v1078_v31 = vadd.f32 %v9114_v2, %v1077_v21 }
 0x17b   : > { %v7658_v23 = vpack.c.bf16 %v882_v22, %v880_v17  ;;  %v1039_v24 = vpop.f32.mrf.mxu1 }
 0x17c   : > { %v1040_v26 = vadd.f32 %v9114_v2, %v1039_v24 }
 0x17d   : > { %7794 = vst [vmem:[#allocation2 + $0x68] sm:$0xff] %v7658_v23  }
 0x17e   : > { %v7738_v27 = vpack.c.bf16 %v1040_v26, %v1038_v25 }
 0x180   : > { %7809 = vst [vmem:[#allocation3 + $0x30] sm:$0xff] %v7738_v27   ;;  %v922_v28 = vpop.f32.mrf.mxu2 }
 0x181   : > { %v7698_v29 = vpack.c.bf16 %v922_v28, %v920_v20  ;;  %v1079_v30 = vpop.f32.mrf.mxu3 }
 0x182   : > { %v1080_v32 = vadd.f32 %v9114_v2, %v1079_v30  ;;  %v885_v33 = vpop.f32.mrf.mxu0 }
 0x183   : > { %7802 = vst [vmem:[#allocation2 + $0x70] sm:$0xff] %v7698_v29   ;;  %v1042_v34 = vpop.f32.mrf.mxu1 }
 0x184   : > { %v7778_v35 = vpack.c.bf16 %v1080_v32, %v1078_v31  ;;  %v1043_v41 = vadd.f32 %v9114_v2, %v1042_v34 }
 0x186   : > { %7817 = vst [vmem:[#allocation3 + $0x8] sm:$0xff] %v7778_v35  }
 0x188   : > { %v925_v36 = vpop.f32.mrf.mxu2 }
 0x189   : > { %v1082_v37 = vpop.f32.mrf.mxu3 }
 0x18a   : > { %v887_v38 = vpop.f32.mrf.mxu0  ;;  %v1083_v47 = vadd.f32 %v9114_v2, %v1082_v37 }
 0x18b   : > { %v7663_v39 = vpack.c.bf16 %v887_v38, %v885_v33  ;;  %v1044_v40 = vpop.f32.mrf.mxu1 }
 0x18c   : > { %v1045_v42 = vadd.f32 %v9114_v2, %v1044_v40 }
 0x18d   : > { %7795 = vst [vmem:[#allocation2 + $0x8] sm:$0xff] %v7663_v39  }
 0x18e   : > { %v7743_v43 = vpack.c.bf16 %v1045_v42, %v1043_v41 }
 0x190   : > { %7810 = vst [vmem:[#allocation3 + $0x70] sm:$0xff] %v7743_v43   ;;  %v927_v44 = vpop.f32.mrf.mxu2 }
 0x191   : > { %v7703_v45 = vpack.c.bf16 %v927_v44, %v925_v36  ;;  %v1084_v46 = vpop.f32.mrf.mxu3 }
 0x192   : > { %v1085_v48 = vadd.f32 %v9114_v2, %v1084_v46  ;;  %v890_v49 = vpop.f32.mrf.mxu0 }
 0x193   : > { %7803 = vst [vmem:[#allocation2 + $0x78] sm:$0xff] %v7703_v45   ;;  %v1047_v50 = vpop.f32.mrf.mxu1 }
 0x194   : > { %v7783_v51 = vpack.c.bf16 %v1085_v48, %v1083_v47  ;;  %v1048_v57 = vadd.f32 %v9114_v2, %v1047_v50 }
 0x196   : > { %7818 = vst [vmem:[#allocation3 + $0x60] sm:$0xff] %v7783_v51  }
 0x198   : > { %v930_v52 = vpop.f32.mrf.mxu2 }
 0x199   : > { %v1087_v53 = vpop.f32.mrf.mxu3 }
 0x19a   : > { %v892_v54 = vpop.f32.mrf.mxu0  ;;  %v1088_v63 = vadd.f32 %v9114_v2, %v1087_v53 }
 0x19b   : > { %v7668_v55 = vpack.c.bf16 %v892_v54, %v890_v49  ;;  %v1049_v56 = vpop.f32.mrf.mxu1 }
 0x19c   : > { %v1050_v58 = vadd.f32 %v9114_v2, %v1049_v56 }
 0x19d   : > { %7796 = vst [vmem:[#allocation2 + $0x48] sm:$0xff] %v7668_v55  }
 0x19e   : > { %v7748_v59 = vpack.c.bf16 %v1050_v58, %v1048_v57 }
 0x1a0   : > { %7811 = vst [vmem:[#allocation3 + $0x38] sm:$0xff] %v7748_v59   ;;  %v932_v60 = vpop.f32.mrf.mxu2 }
 0x1a1   : > { %v7708_v61 = vpack.c.bf16 %v932_v60, %v930_v52  ;;  %v1089_v62 = vpop.f32.mrf.mxu3 }
 0x1a2   : > { %v1090_v0 = vadd.f32 %v9114_v2, %v1089_v62 }
 0x1a3   : > { %7804 = vst [vmem:[#allocation2 + $0x28] sm:$0xff] %v7708_v61  }
 0x1a4   : > { %v7788_v1 = vpack.c.bf16 %v1090_v0, %v1088_v63 }
 0x1a6   : > { %7819 = vst [vmem:[#allocation3 + $0x50] sm:$0xff] %v7788_v1  }
 0x1a7 PF: > { %v7525_v3 = vld [vmem:[#allocation12 + $0x38] sm:$0xff]  ;;  %v7524_v4 = vld [vmem:[#allocation12 + $0x30] sm:$0xff]  ;;  %v7523_v5 = vld [vmem:[#allocation12 + $0x28] sm:$0xff]  ;;  %s13922_s8 = sld [smem:[#allocation82_spill]]  ;;  %s6704_s11 = scalar_lea.sflag [#allocation6], %s639_s23 }
 0x1a8   : > { %1312 = vmatpush.bf16.msra.mxu0 %v7525_v3  ;;  %v7522_v6 = vld [vmem:[#allocation12 + $0x20] sm:$0xff]  ;;  %v7521_v7 = vld [vmem:[#allocation12 + $0x18] sm:$0xff]  ;;  %v7520_v2 = vld [vmem:[#allocation12 + $0x10] sm:$0xff]  ;;  %s13923_s22 = sld [smem:[#allocation84_spill]] }
 0x1a9   : > { %v7519_v8 = vld [vmem:[#allocation12 + $0x8] sm:$0xff]  ;;  %v7518_v9 = vld [vmem:[#allocation12] sm:$0xff]  ;;  %v1222_v13 = vld [vmem:[%s9054_s15 + $0x10] sm:$0xff]  ;;  %s13925_s7 = sld [smem:[#allocation85_spill]] }
 0x1aa   : > { %v1220_v10 = vld [vmem:[%s9054_s15] sm:$0xff]  ;;  %v1221_v11 = vld [vmem:[%s9054_s15 + $0x8] sm:$0xff]  ;;  %v1223_v14 = vld [vmem:[%s9054_s15 + $0x18] sm:$0xff]  ;;  %s13926_s24 = sld [smem:[#allocation86_spill]] }
 0x1ab   : > { %v1236_v12 = vpack.c.bf16 %v1221_v11, %v1220_v10  ;;  %v1237_v15 = vpack.c.bf16 %v1223_v14, %v1222_v13  ;;  %v1224_v16 = vld [vmem:[%s9054_s15 + $0x20] sm:$0xff]  ;;  %v1225_v17 = vld [vmem:[%s9054_s15 + $0x28] sm:$0xff]  ;;  %v7540_v22 = vld [vmem:[#allocation2 + $0x78] sm:$0xff]  ;;  %s14243_s14 = sld [smem:[#allocation90_spill]] }
 0x1ac   : > { %1313 = vmatpush.bf16.msra.mxu0 %v7524_v4  ;;  %v1238_v18 = vpack.c.bf16 %v1225_v17, %v1224_v16  ;;  %v7533_v19 = vld [vmem:[#allocation2 + $0x48] sm:$0xff]  ;;  %v1226_v23 = vld [vmem:[%s9054_s15 + $0x30] sm:$0xff]  ;;  %v1227_v24 = vld [vmem:[%s9054_s15 + $0x38] sm:$0xff]  ;;  %s14272_s13 = sld [smem:[#allocation91_spill]] }
 0x1ad   : > { %v7541_v20 = vld [vmem:[#allocation2 + $0x28] sm:$0xff]  ;;  %1513 = vmatpush.bf16.xpose.msra.mxu1 %v7533_v19  ;;  %v1239_v25 = vpack.c.bf16 %v1227_v24, %v1226_v23  ;;  %v7539_v27 = vld [vmem:[#allocation2 + $0x70] sm:$0xff]  ;;  %v7538_v29 = vld [vmem:[#allocation2 + $0x60] sm:$0xff]  ;;  %s14273_s9 = sld [smem:[#allocation92_spill]] }
 0x1ae   : > { %1562 = vmatpush.bf16.xpose.msra.mxu2 %v7541_v20  ;;  %v7532_v21 = vld [vmem:[#allocation2 + $0x8] sm:$0xff]  ;;  %v7530_v28 = vld [vmem:[#allocation2 + $0x50] sm:$0xff]  ;;  %v1228_v30 = vld [vmem:[%s9054_s15 + $0x40] sm:$0xff]  ;;  %s14275_s6 = sld [smem:[#allocation28_spill]] }
 0x1af   : > { %v7531_v26 = vld [vmem:[#allocation2 + $0x68] sm:$0xff]  ;;  %v7529_v33 = vld [vmem:[#allocation2 + $0x18] sm:$0xff]  ;;  %v7536_v36 = vld [vmem:[#allocation2 + $0x10] sm:$0xff]  ;;  %s14276_s10 = sld [smem:[#allocation93_spill]] }
 0x1b0   : > { %1314 = vmatpush.bf16.msra.mxu0 %v7523_v5  ;;  %v1229_v31 = vld [vmem:[%s9054_s15 + $0x48] sm:$0xff]  ;;  %v7537_v34 = vld [vmem:[#allocation2 + $0x38] sm:$0xff]  ;;  %v1230_v37 = vld [vmem:[%s9054_s15 + $0x50] sm:$0xff]  ;;  %s13927_s17 = smov %s13926_s24 }
 0x1b1   : > { %v1240_v32 = vpack.c.bf16 %v1229_v31, %v1228_v30  ;;  %v7528_v35 = vld [vmem:[#allocation2 + $0x58] sm:$0xff]  ;;  %v7527_v40 = vld [vmem:[#allocation2] sm:$0xff]  ;;  %v7526_v42 = vld [vmem:[#allocation2 + $0x30] sm:$0xff] }
 0x1b2   : > { %v1231_v38 = vld [vmem:[%s9054_s15 + $0x58] sm:$0xff]  ;;  %v7535_v41 = vld [vmem:[#allocation2 + $0x20] sm:$0xff]  ;;  %v1233_v45 = vld [vmem:[%s9054_s15 + $0x68] sm:$0xff] }
 0x1b3   : > { %v1241_v39 = vpack.c.bf16 %v1231_v38, %v1230_v37  ;;  %v7534_v43 = vld [vmem:[#allocation2 + $0x40] sm:$0xff]  ;;  %v1234_v47 = vld [vmem:[%s9054_s15 + $0x70] sm:$0xff]  ;;  %v1235_v48 = vld [vmem:[%s9054_s15 + $0x78] sm:$0xff] }
 0x1b4   : > { %1315 = vmatpush.bf16.msra.mxu0 %v7522_v6  ;;  %v1232_v44 = vld [vmem:[%s9054_s15 + $0x60] sm:$0xff]  ;;  %v1243_v49 = vpack.c.bf16 %v1235_v48, %v1234_v47  ;;  %s7497_s21 = sshll.u32 %s14275_s6, 5 }
 0x1b5   : > { %1514 = vmatpush.bf16.xpose.msra.mxu1 %v7532_v21  ;;  %v1242_v46 = vpack.c.bf16 %v1233_v45, %v1232_v44  ;;  %v9167_v51 = vld [vmem:[%s13922_s8] ss:$0 sm:$0xff] }
 0x1b6   : > { %1563 = vmatpush.bf16.xpose.msra.mxu2 %v7540_v22 }
 0x1b8   : > { %1316 = vmatpush.bf16.msra.mxu0 %v7521_v7 }
 0x1bc   : > { %1317 = vmatpush.bf16.msra.mxu0 %v7520_v2 }
 0x1bd   : > { %1515 = vmatpush.bf16.xpose.msra.mxu1 %v7531_v26 }
 0x1be   : > { %1564 = vmatpush.bf16.xpose.msra.mxu2 %v7539_v27 }
 0x1c0   : > { %1318 = vmatpush.bf16.msra.mxu0 %v7519_v8 }
 0x1c4   : > { %1319 = vmatpush.bf16.msra.mxu0 %v7518_v9 }
 0x1c5   : > { %1516 = vmatpush.bf16.xpose.msra.mxu1 %v7530_v28 }
 0x1c6   : > { %1565 = vmatpush.bf16.xpose.msra.mxu2 %v7538_v29 }
 0x1c7   : > { %1320 = vmatmul.bf16.vlgmr.msra.gmra.mxu0 %v1236_v12 }
 0x1cd   : > { %1517 = vmatpush.bf16.xpose.msra.mxu1 %v7529_v33 }
 0x1ce   : > { %1566 = vmatpush.bf16.xpose.msra.mxu2 %v7537_v34 }
 0x1d5   : > { %1518 = vmatpush.bf16.xpose.msra.mxu1 %v7528_v35 }
 0x1d6   : > { %1567 = vmatpush.bf16.xpose.msra.mxu2 %v7536_v36 }
 0x1d7   : > { %1325 = vmatmul.bf16.gmra.mxu0 %v1237_v15 }
 0x1dd   : > { %1519 = vmatpush.bf16.xpose.msra.mxu1 %v7527_v40 }
 0x1de   : > { %1568 = vmatpush.bf16.xpose.msra.mxu2 %v7535_v41 }
 0x1e5   : > { %1520 = vmatpush.bf16.xpose.msra.mxu1 %v7526_v42 }
 0x1e6   : > { %1569 = vmatpush.bf16.xpose.msra.mxu2 %v7534_v43 }
 0x1e7   : > { %1330 = vmatmul.bf16.gmra.mxu0 %v1238_v18 }
 0x1f7   : > { %1335 = vmatmul.bf16.gmra.mxu0 %v1239_v25 }
 0x207   : > { %1340 = vmatmul.bf16.gmra.mxu0 %v1240_v32 }
 0x217   : > { %1345 = vmatmul.bf16.gmra.mxu0 %v1241_v39 }
 0x227   : > { %1350 = vmatmul.bf16.gmra.mxu0 %v1242_v46 }
 0x237   : > { %1355 = vmatmul.bf16.gmra.mxu0 %v1243_v49 }
 0x244   : > { %v1321_v50 = vpop.f32.mrf.mxu0 }
 0x245   : > { %v1322_v52 = vadd.f32 %v9167_v51, %v1321_v50 }
 0x247   : > { %v1361_v55 = vmul.f32 0.088388346, %v1322_v52 }
 0x24c   : > { %v1323_v53 = vpop.f32.mrf.mxu0 }
 0x24d   : > { %v1324_v54 = vadd.f32 %v9167_v51, %v1323_v53 }
 0x24f   : > { %v1362_v56 = vmul.f32 0.088388346, %v1324_v54 }
 0x251   : > { %v1377_v57 = vpack.c.bf16 %v1362_v56, %v1361_v55 }
 0x253   : > { %1521 = vmatmul.bf16.vlgmr.msra.gmra.mxu1 %v1377_v57  ;;  %1570 = vmatmul.bf16.vlgmr.msra.gmra.mxu2 %v1377_v57 }
 0x254   : > { %v1326_v58 = vpop.f32.mrf.mxu0 }
 0x255   : > { %v1327_v59 = vadd.f32 %v9167_v51, %v1326_v58 }
 0x257   : > { %v1363_v62 = vmul.f32 0.088388346, %v1327_v59 }
 0x25c   : > { %v1328_v60 = vpop.f32.mrf.mxu0 }
 0x25d   : > { %v1329_v61 = vadd.f32 %v9167_v51, %v1328_v60 }
 0x25f   : > { %v1364_v63 = vmul.f32 0.088388346, %v1329_v61 }
 0x261   : > { %v1378_v0 = vpack.c.bf16 %v1364_v63, %v1363_v62 }
 0x263   : > { %1526 = vmatmul.bf16.gmra.mxu1 %v1378_v0  ;;  %1575 = vmatmul.bf16.gmra.mxu2 %v1378_v0 }
 0x264   : > { %v1331_v1 = vpop.f32.mrf.mxu0 }
 0x265   : > { %v1332_v3 = vadd.f32 %v9167_v51, %v1331_v1 }
 0x267   : > { %v1365_v6 = vmul.f32 0.088388346, %v1332_v3 }
 0x26c   : > { %v1333_v4 = vpop.f32.mrf.mxu0 }
 0x26d   : > { %v1334_v5 = vadd.f32 %v9167_v51, %v1333_v4 }
 0x26f   : > { %v1366_v7 = vmul.f32 0.088388346, %v1334_v5 }
 0x271   : > { %v1379_v2 = vpack.c.bf16 %v1366_v7, %v1365_v6 }
 0x273   : > { %1531 = vmatmul.bf16.gmra.mxu1 %v1379_v2  ;;  %1580 = vmatmul.bf16.gmra.mxu2 %v1379_v2 }
 0x274   : > { %v1336_v8 = vpop.f32.mrf.mxu0 }
 0x275   : > { %v1337_v9 = vadd.f32 %v9167_v51, %v1336_v8 }
 0x277   : > { %v1367_v12 = vmul.f32 0.088388346, %v1337_v9 }
 0x27c   : > { %v1338_v10 = vpop.f32.mrf.mxu0 }
 0x27d   : > { %v1339_v11 = vadd.f32 %v9167_v51, %v1338_v10 }
 0x27f   : > { %v1368_v13 = vmul.f32 0.088388346, %v1339_v11 }
 0x281   : > { %v1380_v14 = vpack.c.bf16 %v1368_v13, %v1367_v12 }
 0x283   : > { %1536 = vmatmul.bf16.gmra.mxu1 %v1380_v14  ;;  %1585 = vmatmul.bf16.gmra.mxu2 %v1380_v14 }
 0x284   : > { %v1341_v15 = vpop.f32.mrf.mxu0 }
 0x285   : > { %v1342_v16 = vadd.f32 %v9167_v51, %v1341_v15 }
 0x287   : > { %v1369_v18 = vmul.f32 0.088388346, %v1342_v16 }
 0x28c   : > { %v1343_v17 = vpop.f32.mrf.mxu0 }
 0x28d   : > { %v1344_v19 = vadd.f32 %v9167_v51, %v1343_v17 }
 0x28f   : > { %v1370_v20 = vmul.f32 0.088388346, %v1344_v19 }
 0x291   : > { %v1381_v21 = vpack.c.bf16 %v1370_v20, %v1369_v18 }
 0x293   : > { %1590 = vmatmul.bf16.gmra.mxu2 %v1381_v21  ;;  %1541 = vmatmul.bf16.gmra.mxu1 %v1381_v21 }
 0x294   : > { %v1346_v22 = vpop.f32.mrf.mxu0 }
 0x295   : > { %v1347_v23 = vadd.f32 %v9167_v51, %v1346_v22 }
 0x297   : > { %v1371_v25 = vmul.f32 0.088388346, %v1347_v23 }
 0x29c   : > { %v1348_v24 = vpop.f32.mrf.mxu0 }
 0x29d   : > { %v1349_v26 = vadd.f32 %v9167_v51, %v1348_v24 }
 0x29f   : > { %v1372_v27 = vmul.f32 0.088388346, %v1349_v26 }
 0x2a1   : > { %v1382_v28 = vpack.c.bf16 %v1372_v27, %v1371_v25 }
 0x2a3   : > { %1595 = vmatmul.bf16.gmra.mxu2 %v1382_v28  ;;  %1546 = vmatmul.bf16.gmra.mxu1 %v1382_v28 }
 0x2a4   : > { %v1351_v29 = vpop.f32.mrf.mxu0 }
 0x2a5   : > { %v1352_v30 = vadd.f32 %v9167_v51, %v1351_v29 }
 0x2a7   : > { %v1373_v32 = vmul.f32 0.088388346, %v1352_v30 }
 0x2ac   : > { %v1353_v31 = vpop.f32.mrf.mxu0 }
 0x2ad   : > { %v1354_v33 = vadd.f32 %v9167_v51, %v1353_v31 }
 0x2af   : > { %v1374_v34 = vmul.f32 0.088388346, %v1354_v33 }
 0x2b1   : > { %v1383_v35 = vpack.c.bf16 %v1374_v34, %v1373_v32 }
 0x2b3   : > { %1600 = vmatmul.bf16.gmra.mxu2 %v1383_v35  ;;  %1551 = vmatmul.bf16.gmra.mxu1 %v1383_v35 }
 0x2b4   : > { %v1356_v36 = vpop.f32.mrf.mxu0 }
 0x2b5   : > { %v1357_v37 = vadd.f32 %v9167_v51, %v1356_v36 }
 0x2b7   : > { %v1375_v39 = vmul.f32 0.088388346, %v1357_v37 }
 0x2bc   : > { %v1358_v38 = vpop.f32.mrf.mxu0 }
 0x2bd   : > { %v1359_v40 = vadd.f32 %v9167_v51, %v1358_v38 }
 0x2bf   : > { %v1376_v41 = vmul.f32 0.088388346, %v1359_v40 }
 0x2c1   : > { %v1384_v42 = vpack.c.bf16 %v1376_v41, %v1375_v39 }
 0x2c3   : > { %1605 = vmatmul.bf16.gmra.mxu2 %v1384_v42  ;;  %1556 = vmatmul.bf16.gmra.mxu1 %v1384_v42 }
 0x2d0   : > { %v1522_v43 = vpop.f32.mrf.mxu1 }
 0x2d6   : > { %v1571_v44 = vpop.f32.mrf.mxu2 }
 0x2d7   : > { %v1611_v45 = vmax.f32 %v1522_v43, %v1571_v44 }
 0x2d8   : > { %v1524_v46 = vpop.f32.mrf.mxu1 }
 0x2d9   : > { %1612 = vmax.xlane.f32.xlu0 %v1611_v45 }
 0x2de   : > { %v1573_v47 = vpop.f32.mrf.mxu2 }
 0x2df   : > { %v1614_v48 = vmax.f32 %v1524_v46, %v1573_v47 }
 0x2e0   : > { %v1527_v49 = vpop.f32.mrf.mxu1 }
 0x2e1   : > { %1615 = vmax.xlane.f32.xlu0 %v1614_v48 }
 0x2e6   : > { %v1576_v50 = vpop.f32.mrf.mxu2 }
 0x2e7   : > { %v1617_v52 = vmax.f32 %v1527_v49, %v1576_v50 }
 0x2e8   : > { %v9185_v53 = vpop.f32.mrf.mxu1 }
 0x2e9   : > { %1618 = vmax.xlane.f32.xlu1 %v1617_v52 }
 0x2ee   : > { %v9187_v54 = vpop.f32.mrf.mxu2 }
 0x2ef   : > { %v1620_v51 = vmax.f32 %v9185_v53, %v9187_v54 }
 0x2f0   : > { %v9191_v55 = vpop.f32.mrf.mxu1 }
 0x2f1   : > { %1621 = vmax.xlane.f32.xlu1 %v1620_v51  ;;  %v7549_v51 = vld [vmem:[#allocation3 + $0x38] sm:$0xff] }
 0x2f2   : > { %1995 = vmatpush.bf16.msrb.mxu2 %v7549_v51  ;;  %7836 = vmatpush.bf16.msra.mxu3 %v7549_v51 }
 0x2f6   : > { %v9193_v56 = vpop.f32.mrf.mxu2 }
 0x2f7   : > { %v1623_v57 = vmax.f32 %v9191_v55, %v9193_v56 }
 0x2f8   : > { %v9197_v58 = vpop.f32.mrf.mxu1 }
 0x2f9   : > { %1624 = vmax.xlane.f32.xlu2 %v1623_v57 }
 0x2fe   : > { %v9199_v59 = vpop.f32.mrf.mxu2 }
 0x2ff   : > { %v1626_v60 = vmax.f32 %v9197_v58, %v9199_v59 }
 0x300   : > { %v9203_v61 = vpop.f32.mrf.mxu1 }
 0x301   : > { %1627 = vmax.xlane.f32.xlu2 %v1626_v60 }
 0x306   : > { %v9205_v62 = vpop.f32.mrf.mxu2 }
 0x307   : > { %v1629_v63 = vmax.f32 %v9203_v61, %v9205_v62 }
 0x308   : > { %v9209_v0 = vpop.f32.mrf.mxu1 }
 0x309   : > { %1630 = vmax.xlane.f32.xlu0 %v1629_v63 }
 0x30e   : > { %v9211_v1 = vpop.f32.mrf.mxu2 }
 0x30f   : > { %v1632_v3 = vmax.f32 %v9209_v0, %v9211_v1 }
 0x310   : > { %v9215_v4 = vpop.f32.mrf.mxu1 }
 0x311   : > { %1633 = vmax.xlane.f32.xlu1 %v1632_v3 }
 0x316   : > { %v9217_v5 = vpop.f32.mrf.mxu2 }
 0x317   : > { %v1635_v6 = vmax.f32 %v9215_v4, %v9217_v5 }
 0x318   : > { %v9221_v11 = vpop.f32.mrf.mxu1 }
 0x319   : > { %1636 = vmax.xlane.f32.xlu1 %v1635_v6 }
 0x31e   : > { %v9223_v12 = vpop.f32.mrf.mxu2 }
 0x31f   : > { %v1638_v31 = vmax.f32 %v9221_v11, %v9223_v12 }
 0x320   : > { %v9231_v21 = vpop.f32.mrf.mxu1 }
 0x326   : > { %v9233_v22 = vpop.f32.mrf.mxu2 }
 0x327   : > { %v1641_v42 = vmax.f32 %v9231_v21, %v9233_v22 }
 0x328   : > { %v9243_v33 = vpop.f32.mrf.mxu1 }
 0x32e   : > { %v9247_v36 = vpop.f32.mrf.mxu2 }
 0x336   : > { %v9265_v52 = vpop.f32.mrf.mxu2 }
 0x34c   : > { %v1613_v7 = vpop.xlane.xlu0 %1612 }
 0x34d   : > { %v1659_v2 = vsub.f32 %v1522_v43, %v1613_v7  ;;  %v1660_v8 = vsub.f32 %v1571_v44, %v1613_v7 }
 0x34f   : > { %v1691_v9 = vmul.f32 1.442695, %v1659_v2  ;;  %v1693_v10 = vmul.f32 1.442695, %v1660_v8 }
 0x351   : > { %8037 = vpow2.f32 %v1691_v9 }
 0x352   : > { %8039 = vpow2.f32 %v1693_v10  ;;  %v7556_v10 = vld [vmem:[#allocation3 + $0x60] sm:$0xff] }
 0x354   : > { %v1616_v13 = vpop.xlane.xlu0 %1615 }
 0x355   : > { %v1661_v14 = vsub.f32 %v1524_v46, %v1616_v13  ;;  %v1662_v15 = vsub.f32 %v1573_v47, %v1616_v13  ;;  %v9261_v47 = vpop.f32.mrf.mxu1 }
 0x356   : > { %v1647_v9 = vmax.f32 %v9261_v47, %v9265_v52 }
 0x357   : > { %v9225_v16 = vpop.eup %8037  ;;  %v1695_v17 = vmul.f32 1.442695, %v1661_v14  ;;  %v1697_v18 = vmul.f32 1.442695, %v1662_v15 }
 0x358   : > { %v9227_v19 = vpop.eup %8039 }
 0x359   : > { %8041 = vpow2.f32 %v1695_v17  ;;  %v1755_v20 = vadd.f32 %v9227_v19, %v9225_v16  ;;  %v7547_v17 = vld [vmem:[#allocation3 + $0x30] sm:$0xff] }
 0x35a   : > { %8043 = vpow2.f32 %v1697_v18  ;;  %v7555_v18 = vld [vmem:[#allocation3 + $0x8] sm:$0xff] }
 0x35b   : > { %1756 = vadd.xlane.f32.xlu2 %v1755_v20 }
 0x35c   : > { %v1619_v23 = vpop.xlane.xlu1 %1618 }
 0x35d   : > { %v1663_v24 = vsub.f32 %v1527_v49, %v1619_v23  ;;  %v1664_v25 = vsub.f32 %v1576_v50, %v1619_v23  ;;  %v9277_v2 = vpop.f32.mrf.mxu1 }
 0x35f   : > { %v9235_v26 = vpop.eup %8041  ;;  %v1699_v27 = vmul.f32 1.442695, %v1663_v24  ;;  %v1701_v28 = vmul.f32 1.442695, %v1664_v25 }
 0x360   : > { %v9237_v29 = vpop.eup %8043 }
 0x361   : > { %8045 = vpow2.f32 %v1699_v27  ;;  %v1758_v30 = vadd.f32 %v9237_v29, %v9235_v26 }
 0x362   : > { %8047 = vpow2.f32 %v1701_v28  ;;  %v7554_v28 = vld [vmem:[#allocation3] sm:$0xff] }
 0x363   : > { %1759 = vadd.xlane.f32.xlu0 %v1758_v30  ;;  %1639 = vmax.xlane.f32.xlu2 %v1638_v31 }
 0x364   : > { %v1622_v32 = vpop.xlane.xlu1 %1621 }
 0x365   : > { %v1665_v34 = vsub.f32 %v9185_v53, %v1622_v32  ;;  %v1666_v35 = vsub.f32 %v9187_v54, %v1622_v32  ;;  %v1644_v54 = vmax.f32 %v9243_v33, %v9247_v36  ;;  %v9295_v30 = vpop.f32.mrf.mxu1 }
 0x367   : > { %v9249_v37 = vpop.eup %8045  ;;  %v1703_v38 = vmul.f32 1.442695, %v1665_v34  ;;  %v1705_v39 = vmul.f32 1.442695, %v1666_v35 }
 0x368   : > { %v9251_v40 = vpop.eup %8047 }
 0x369   : > { %8049 = vpow2.f32 %v1703_v38  ;;  %v1761_v41 = vadd.f32 %v9251_v40, %v9249_v37 }
 0x36a   : > { %8051 = vpow2.f32 %v1705_v39 }
 0x36b   : > { %1762 = vadd.xlane.f32.xlu0 %v1761_v41  ;;  %1642 = vmax.xlane.f32.xlu2 %v1641_v42 }
 0x36c   : > { %v1625_v43 = vpop.xlane.xlu2 %1624 }
 0x36d   : > { %v1667_v44 = vsub.f32 %v9191_v55, %v1625_v43  ;;  %v1668_v45 = vsub.f32 %v9193_v56, %v1625_v43  ;;  %v7557_v55 = vld [vmem:[#allocation3 + $0x50] sm:$0xff] }
 0x36e   : > { %2044 = vmatpush.bf16.msrb.mxu0 %v7557_v55  ;;  %7844 = vmatpush.bf16.msrb.mxu1 %v7557_v55 }
 0x36f   : > { %v9259_v46 = vpop.eup %8049  ;;  %v1707_v48 = vmul.f32 1.442695, %v1667_v44  ;;  %v1709_v49 = vmul.f32 1.442695, %v1668_v45 }
 0x370   : > { %v9263_v50 = vpop.eup %8051 }
 0x371   : > { %8053 = vpow2.f32 %v1707_v48  ;;  %v1764_v53 = vadd.f32 %v9263_v50, %v9259_v46  ;;  %v9311_v48 = vpop.f32.mrf.mxu1 }
 0x372   : > { %8055 = vpow2.f32 %v1709_v49  ;;  %2045 = vmatpush.bf16.msrb.mxu0 %v7556_v10  ;;  %7845 = vmatpush.bf16.msrb.mxu1 %v7556_v10  ;;  %v7551_v10 = vld [vmem:[#allocation3 + $0x78] sm:$0xff] }
 0x373   : > { %1765 = vadd.xlane.f32.xlu1 %v1764_v53  ;;  %1645 = vmax.xlane.f32.xlu0 %v1644_v54 }
 0x374   : > { %v1628_v56 = vpop.xlane.xlu2 %1627 }
 0x375   : > { %v1669_v57 = vsub.f32 %v9197_v58, %v1628_v56  ;;  %v1670_v60 = vsub.f32 %v9199_v59, %v1628_v56  ;;  %v9283_v58 = vpop.f32.mrf.mxu2  ;;  %v7548_v59 = vld [vmem:[#allocation3 + $0x70] sm:$0xff] }
 0x376   : > { %1996 = vmatpush.bf16.msrb.mxu2 %v7548_v59  ;;  %7837 = vmatpush.bf16.msra.mxu3 %v7548_v59  ;;  %v7543_v59 = vld [vmem:[#allocation3 + $0x68] sm:$0xff] }
 0x377   : > { %v9273_v63 = vpop.eup %8053  ;;  %v1711_v3 = vmul.f32 1.442695, %v1669_v57  ;;  %v1713_v6 = vmul.f32 1.442695, %v1670_v60  ;;  %2046 = vmatpush.bf16.msrb.mxu0 %v7555_v18  ;;  %7846 = vmatpush.bf16.msrb.mxu1 %v7555_v18 }
 0x378   : > { %v9275_v7 = vpop.eup %8055 }
 0x379   : > { %8057 = vpow2.f32 %v1711_v3  ;;  %v1767_v8 = vadd.f32 %v9275_v7, %v9273_v63  ;;  %v7545_v3 = vld [vmem:[#allocation3 + $0x40] sm:$0xff] }
 0x37a   : > { %8059 = vpow2.f32 %v1713_v6  ;;  %1997 = vmatpush.bf16.msrb.mxu2 %v7547_v17  ;;  %7838 = vmatpush.bf16.msra.mxu3 %v7547_v17  ;;  %v7553_v6 = vld [vmem:[#allocation3 + $0x58] sm:$0xff] }
 0x37b   : > { %1768 = vadd.xlane.f32.xlu1 %v1767_v8  ;;  %1648 = vmax.xlane.f32.xlu0 %v1647_v9  ;;  %v7544_v8 = vld [vmem:[#allocation3 + $0x10] sm:$0xff]  ;;  %v7552_v9 = vld [vmem:[#allocation3 + $0x18] sm:$0xff] }
 0x37c   : > { %v1631_v13 = vpop.xlane.xlu0 %1630  ;;  %2047 = vmatpush.bf16.msrb.mxu0 %v7554_v28  ;;  %7847 = vmatpush.bf16.msrb.mxu1 %v7554_v28 }
 0x37d   : > { %v1671_v14 = vsub.f32 %v9203_v61, %v1631_v13  ;;  %v1672_v15 = vsub.f32 %v9205_v62, %v1631_v13  ;;  %v1650_v61 = vmax.f32 %v9277_v2, %v9283_v58  ;;  %v7546_v62 = vld [vmem:[#allocation3 + $0x48] sm:$0xff]  ;;  %v9297_v31 = vpop.f32.mrf.mxu2 }
 0x37e   : > { %1998 = vmatpush.bf16.msrb.mxu2 %v7546_v62  ;;  %7839 = vmatpush.bf16.msra.mxu3 %v7546_v62  ;;  %v1653_v44 = vmax.f32 %v9295_v30, %v9297_v31  ;;  %v7542_v13 = vld [vmem:[#allocation3 + $0x28] sm:$0xff] }
 0x37f   : > { %v9287_v20 = vpop.eup %8057  ;;  %v1715_v23 = vmul.f32 1.442695, %v1671_v14  ;;  %v1717_v24 = vmul.f32 1.442695, %v1672_v15  ;;  %v7550_v14 = vld [vmem:[#allocation3 + $0x20] sm:$0xff] }
 0x380   : > { %v9289_v25 = vpop.eup %8059  ;;  %2048 = vmatpush.bf16.msrb.mxu0 %v7553_v6  ;;  %7848 = vmatpush.bf16.msrb.mxu1 %v7553_v6 }
 0x381   : > { %8061 = vpow2.f32 %v1715_v23  ;;  %v1770_v27 = vadd.f32 %v9289_v25, %v9287_v20 }
 0x382   : > { %8063 = vpow2.f32 %v1717_v24  ;;  %1999 = vmatpush.bf16.msrb.mxu2 %v7545_v3  ;;  %7840 = vmatpush.bf16.msra.mxu3 %v7545_v3 }
 0x383   : > { %1771 = vadd.xlane.f32.xlu2 %v1770_v27  ;;  %1651 = vmax.xlane.f32.xlu1 %v1650_v61 }
 0x384   : > { %v1634_v32 = vpop.xlane.xlu1 %1633  ;;  %2049 = vmatpush.bf16.msrb.mxu0 %v7552_v9  ;;  %7849 = vmatpush.bf16.msrb.mxu1 %v7552_v9 }
 0x385   : > { %v1673_v34 = vsub.f32 %v9209_v0, %v1634_v32  ;;  %v1674_v35 = vsub.f32 %v9211_v1, %v1634_v32  ;;  %v9313_v49 = vpop.f32.mrf.mxu2 }
 0x386   : > { %v1656_v57 = vmax.f32 %v9311_v48, %v9313_v49  ;;  %2000 = vmatpush.bf16.msrb.mxu2 %v7544_v8  ;;  %7841 = vmatpush.bf16.msra.mxu3 %v7544_v8 }
 0x387   : > { %v9301_v38 = vpop.eup %8061  ;;  %v1719_v39 = vmul.f32 1.442695, %v1673_v34  ;;  %v1721_v41 = vmul.f32 1.442695, %v1674_v35 }
 0x388   : > { %v9303_v42 = vpop.eup %8063  ;;  %2050 = vmatpush.bf16.msrb.mxu0 %v7551_v10  ;;  %7850 = vmatpush.bf16.msrb.mxu1 %v7551_v10 }
 0x389   : > { %8065 = vpow2.f32 %v1719_v39  ;;  %v1773_v43 = vadd.f32 %v9303_v42, %v9301_v38 }
 0x38a   : > { %8067 = vpow2.f32 %v1721_v41  ;;  %2001 = vmatpush.bf16.msrb.mxu2 %v7543_v59  ;;  %7842 = vmatpush.bf16.msra.mxu3 %v7543_v59 }
 0x38b   : > { %1774 = vadd.xlane.f32.xlu2 %v1773_v43  ;;  %1654 = vmax.xlane.f32.xlu1 %v1653_v44 }
 0x38c   : > { %v1637_v0 = vpop.xlane.xlu1 %1636  ;;  %2051 = vmatpush.bf16.msrb.mxu0 %v7550_v14  ;;  %7851 = vmatpush.bf16.msrb.mxu1 %v7550_v14 }
 0x38d   : > { %v1675_v1 = vsub.f32 %v9215_v4, %v1637_v0  ;;  %v1676_v45 = vsub.f32 %v9217_v5, %v1637_v0 }
 0x38e   : > { %2002 = vmatpush.bf16.msrb.mxu2 %v7542_v13  ;;  %7843 = vmatpush.bf16.msra.mxu3 %v7542_v13 }
 0x38f   : > { %v9315_v53 = vpop.eup %8065  ;;  %v1723_v54 = vmul.f32 1.442695, %v1675_v1  ;;  %v1725_v51 = vmul.f32 1.442695, %v1676_v45 }
 0x390   : > { %v9317_v55 = vpop.eup %8067 }
 0x391   : > { %8069 = vpow2.f32 %v1723_v54  ;;  %v1776_v56 = vadd.f32 %v9317_v55, %v9315_v53 }
 0x392   : > { %8071 = vpow2.f32 %v1725_v51 }
 0x393   : > { %1777 = vadd.xlane.f32.xlu0 %v1776_v56  ;;  %1657 = vmax.xlane.f32.xlu2 %v1656_v57 }
 0x397   : > { %v9323_v4 = vpop.eup %8069 }
 0x398   : > { %v9325_v5 = vpop.eup %8071 }
 0x399   : > { %v1779_v60 = vadd.f32 %v9325_v5, %v9323_v4 }
 0x39b   : > { %1780 = vadd.xlane.f32.xlu0 %v1779_v60 }
 0x3ce   : > { %v1757_v15 = vpop.xlane.xlu2 %1756 }
 0x3cf   : > { %8073 = vrcp.f32 %v1757_v15 }
 0x3d5   : > { %v8074_v62 = vpop.eup %8073 }
 0x3d6   : > { %v1760_v17 = vpop.xlane.xlu0 %1759  ;;  %v1640_v18 = vpop.xlane.xlu2 %1639  ;;  %v1819_v35 = vmul.f32 %v8074_v62, %v9225_v16  ;;  %v1820_v41 = vmul.f32 %v8074_v62, %v9227_v19 }
 0x3d7   : > { %8075 = vrcp.f32 %v1760_v17  ;;  %v1677_v23 = vsub.f32 %v9221_v11, %v1640_v18  ;;  %v1678_v24 = vsub.f32 %v9223_v12, %v1640_v18 }
 0x3d9   : > { %v1727_v27 = vmul.f32 1.442695, %v1677_v23  ;;  %v1729_v61 = vmul.f32 1.442695, %v1678_v24 }
 0x3db   : > { %8077 = vpow2.f32 %v1727_v27 }
 0x3dc   : > { %8079 = vpow2.f32 %v1729_v61 }
 0x3dd   : > { %v8076_v28 = vpop.eup %8075 }
 0x3de   : > { %v1763_v32 = vpop.xlane.xlu0 %1762  ;;  %v1643_v34 = vpop.xlane.xlu2 %1642  ;;  %v1821_v39 = vmul.f32 %v8076_v28, %v9235_v26  ;;  %v1822_v43 = vmul.f32 %v8076_v28, %v9237_v29 }
 0x3df   : > { %v1679_v11 = vsub.f32 %v9231_v21, %v1643_v34  ;;  %v1680_v12 = vsub.f32 %v9233_v22, %v1643_v34 }
 0x3e0   : > { %v1851_v44 = vpack.c.bf16 %v1821_v39, %v1819_v35  ;;  %v1852_v0 = vpack.c.bf16 %v1822_v43, %v1820_v41 }
 0x3e1   : > { %v9337_v1 = vpop.eup %8077  ;;  %v1731_v45 = vmul.f32 1.442695, %v1679_v11  ;;  %v1733_v54 = vmul.f32 1.442695, %v1680_v12 }
 0x3e2   : > { %v9339_v51 = vpop.eup %8079  ;;  %2003 = vmatmul.bf16.vlgmr.msrb.gmra.mxu2 %v1851_v44  ;;  %2052 = vmatmul.bf16.vlgmr.msrb.gmra.mxu0 %v1852_v0 }
 0x3e3   : > { %8081 = vpow2.f32 %v1731_v45  ;;  %v1782_v16 = vadd.f32 %v9339_v51, %v9337_v1 }
 0x3e4   : > { %8083 = vpow2.f32 %v1733_v54 }
 0x3e5   : > { %8085 = vrcp.f32 %v1763_v32  ;;  %1783 = vadd.xlane.f32.xlu1 %v1782_v16 }
 0x3e6   : > { %v1766_v19 = vpop.xlane.xlu1 %1765  ;;  %v1646_v21 = vpop.xlane.xlu0 %1645 }
 0x3e7   : > { %8087 = vrcp.f32 %v1766_v19  ;;  %v1681_v22 = vsub.f32 %v9243_v33, %v1646_v21  ;;  %v1682_v26 = vsub.f32 %v9247_v36, %v1646_v21 }
 0x3e9   : > { %v9345_v29 = vpop.eup %8081  ;;  %v1735_v56 = vmul.f32 1.442695, %v1681_v22  ;;  %v1737_v57 = vmul.f32 1.442695, %v1682_v26 }
 0x3ea   : > { %v9347_v60 = vpop.eup %8083 }
 0x3eb   : > { %v8086_v3 = vpop.eup %8085  ;;  %8089 = vpow2.f32 %v1735_v56  ;;  %v1785_v6 = vadd.f32 %v9347_v60, %v9345_v29 }
 0x3ec   : > { %8091 = vpow2.f32 %v1737_v57  ;;  %v1823_v33 = vmul.f32 %v8086_v3, %v9249_v37  ;;  %v1824_v10 = vmul.f32 %v8086_v3, %v9251_v40  ;;  %v7565_v40 = vld [vmem:[#allocation13 + $0x38] sm:$0xff] }
 0x3ed   : > { %v8088_v8 = vpop.eup %8087  ;;  %1786 = vadd.xlane.f32.xlu2 %v1785_v6  ;;  %2169 = vmatpush.bf16.msrb.mxu3 %v7565_v40 }
 0x3ee   : > { %v1769_v9 = vpop.xlane.xlu1 %1768  ;;  %v1649_v59 = vpop.xlane.xlu0 %1648  ;;  %v1825_v36 = vmul.f32 %v8088_v8, %v9259_v46  ;;  %v1826_v13 = vmul.f32 %v8088_v8, %v9263_v50 }
 0x3ef   : > { %v1683_v14 = vsub.f32 %v9261_v47, %v1649_v59  ;;  %v1684_v15 = vsub.f32 %v9265_v52, %v1649_v59 }
 0x3f0   : > { %v1853_v17 = vpack.c.bf16 %v1825_v36, %v1823_v33  ;;  %v1854_v18 = vpack.c.bf16 %v1826_v13, %v1824_v10 }
 0x3f1   : > { %v9357_v23 = vpop.eup %8089  ;;  %v1739_v24 = vmul.f32 1.442695, %v1683_v14  ;;  %v1741_v27 = vmul.f32 1.442695, %v1684_v15 }
 0x3f2   : > { %v9359_v61 = vpop.eup %8091  ;;  %2008 = vmatmul.bf16.gmra.mxu2 %v1853_v17  ;;  %2057 = vmatmul.bf16.gmra.mxu0 %v1854_v18  ;;  %v7564_v17 = vld [vmem:[#allocation13 + $0x30] sm:$0xff]  ;;  %v7561_v18 = vld [vmem:[#allocation13 + $0x18] sm:$0xff] }
 0x3f3   : > { %8093 = vpow2.f32 %v1739_v24  ;;  %v1788_v37 = vadd.f32 %v9359_v61, %v9357_v23  ;;  %2170 = vmatpush.bf16.msrb.mxu3 %v7564_v17 }
 0x3f4   : > { %8095 = vpow2.f32 %v1741_v27 }
 0x3f5   : > { %8097 = vrcp.f32 %v1769_v9  ;;  %1789 = vadd.xlane.f32.xlu0 %v1788_v37 }
 0x3f6   : > { %v1772_v46 = vpop.xlane.xlu2 %1771  ;;  %v1652_v47 = vpop.xlane.xlu1 %1651 }
 0x3f7   : > { %8099 = vrcp.f32 %v1772_v46  ;;  %v1685_v50 = vsub.f32 %v9277_v2, %v1652_v47  ;;  %v1686_v52 = vsub.f32 %v9283_v58, %v1652_v47 }
 0x3f9   : > { %v9365_v62 = vpop.eup %8093  ;;  %v1743_v28 = vmul.f32 1.442695, %v1685_v50  ;;  %v1745_v32 = vmul.f32 1.442695, %v1686_v52 }
 0x3fa   : > { %v9367_v34 = vpop.eup %8095 }
 0x3fb   : > { %v8098_v35 = vpop.eup %8097  ;;  %8101 = vpow2.f32 %v1743_v28  ;;  %v1791_v39 = vadd.f32 %v9367_v34, %v9365_v62 }
 0x3fc   : > { %8103 = vpow2.f32 %v1745_v32  ;;  %v1827_v2 = vmul.f32 %v8098_v35, %v9273_v63  ;;  %v1828_v12 = vmul.f32 %v8098_v35, %v9275_v7  ;;  %v7560_v32 = vld [vmem:[#allocation13 + $0x10] sm:$0xff] }
 0x3fd   : > { %v8100_v41 = vpop.eup %8099  ;;  %1792 = vadd.xlane.f32.xlu1 %v1791_v39 }
 0x3fe   : > { %v1775_v43 = vpop.xlane.xlu2 %1774  ;;  %v1655_v11 = vpop.xlane.xlu1 %1654  ;;  %v1829_v58 = vmul.f32 %v8100_v41, %v9287_v20  ;;  %v1830_v44 = vmul.f32 %v8100_v41, %v9289_v25 }
 0x3ff   : > { %v1687_v0 = vsub.f32 %v9295_v30, %v1655_v11  ;;  %v1688_v45 = vsub.f32 %v9297_v31, %v1655_v11 }
 0x400   : > { %v1855_v54 = vpack.c.bf16 %v1829_v58, %v1827_v2  ;;  %v1856_v16 = vpack.c.bf16 %v1830_v44, %v1828_v12  ;;  %v7558_v12 = vld [vmem:[#allocation13] sm:$0xff] }
 0x401   : > { %v9377_v19 = vpop.eup %8101  ;;  %v1747_v21 = vmul.f32 1.442695, %v1687_v0  ;;  %v1749_v22 = vmul.f32 1.442695, %v1688_v45 }
 0x402   : > { %v9379_v26 = vpop.eup %8103  ;;  %2013 = vmatmul.bf16.gmra.mxu2 %v1855_v54  ;;  %2062 = vmatmul.bf16.gmra.mxu0 %v1856_v16 }
 0x403   : > { %8105 = vpow2.f32 %v1747_v21  ;;  %v1794_v63 = vadd.f32 %v9379_v26, %v9377_v19 }
 0x404   : > { %8107 = vpow2.f32 %v1749_v22 }
 0x405   : > { %8109 = vrcp.f32 %v1775_v43  ;;  %1795 = vadd.xlane.f32.xlu2 %v1794_v63  ;;  %v7559_v43 = vld [vmem:[#allocation13 + $0x8] sm:$0xff] }
 0x406   : > { %v1778_v7 = vpop.xlane.xlu0 %1777  ;;  %v1658_v20 = vpop.xlane.xlu2 %1657 }
 0x407   : > { %8111 = vrcp.f32 %v1778_v7  ;;  %v1689_v25 = vsub.f32 %v9311_v48, %v1658_v20  ;;  %v1690_v30 = vsub.f32 %v9313_v49, %v1658_v20 }
 0x409   : > { %v9385_v31 = vpop.eup %8105  ;;  %v1751_v56 = vmul.f32 1.442695, %v1689_v25  ;;  %v1753_v57 = vmul.f32 1.442695, %v1690_v30 }
 0x40a   : > { %v9387_v3 = vpop.eup %8107 }
 0x40b   : > { %v8110_v6 = vpop.eup %8109  ;;  %8113 = vpow2.f32 %v1751_v56  ;;  %v1797_v8 = vadd.f32 %v9387_v3, %v9385_v31 }
 0x40c   : > { %8115 = vpow2.f32 %v1753_v57  ;;  %v1831_v59 = vmul.f32 %v8110_v6, %v9301_v38  ;;  %v1832_v49 = vmul.f32 %v8110_v6, %v9303_v42  ;;  %v7563_v38 = vld [vmem:[#allocation13 + $0x28] sm:$0xff] }
 0x40d   : > { %v8112_v9 = vpop.eup %8111  ;;  %1798 = vadd.xlane.f32.xlu0 %v1797_v8  ;;  %2171 = vmatpush.bf16.msrb.mxu3 %v7563_v38 }
 0x40e   : > { %v1833_v48 = vmul.f32 %v8112_v9, %v9315_v53  ;;  %v1834_v33 = vmul.f32 %v8112_v9, %v9317_v55  ;;  %v7562_v53 = vld [vmem:[#allocation13 + $0x20] sm:$0xff]  ;;  %v1781_v42 = vpop.xlane.xlu0 %1780 }
 0x40f   : > { %8117 = vrcp.f32 %v1781_v42 }
 0x410   : > { %v1857_v36 = vpack.c.bf16 %v1833_v48, %v1831_v59  ;;  %v1858_v10 = vpack.c.bf16 %v1834_v33, %v1832_v49 }
 0x411   : > { %v9395_v13 = vpop.eup %8113  ;;  %2172 = vmatpush.bf16.msrb.mxu3 %v7562_v53 }
 0x412   : > { %v9397_v14 = vpop.eup %8115  ;;  %2018 = vmatmul.bf16.vlgmr.msra.gmra.mxu3 %v1857_v36  ;;  %2067 = vmatmul.bf16.gmra.mxu0 %v1858_v10 }
 0x413   : > { %v1800_v15 = vadd.f32 %v9397_v14, %v9395_v13 }
 0x415   : > { %1801 = vadd.xlane.f32.xlu1 %v1800_v15  ;;  %2173 = vmatpush.bf16.msrb.mxu3 %v7561_v18  ;;  %v8118_v24 = vpop.eup %8117 }
 0x416   : > { %v1835_v37 = vmul.f32 %v8118_v24, %v9323_v4  ;;  %v1836_v46 = vmul.f32 %v8118_v24, %v9325_v5 }
 0x419   : > { %2174 = vmatpush.bf16.msrb.mxu3 %v7560_v32 }
 0x41d   : > { %2175 = vmatpush.bf16.msrb.mxu3 %v7559_v43 }
 0x421   : > { %2176 = vmatpush.bf16.msrb.mxu3 %v7558_v12 }
 0x458   : > { %v1784_v55 = vpop.xlane.xlu1 %1783 }
 0x459   : > { %8119 = vrcp.f32 %v1784_v55 }
 0x45f   : > { %v8120_v27 = vpop.eup %8119  ;;  %v2053_v22 = vpop.f32.mrf.mxu0 }
 0x460   : > { %v1837_v40 = vmul.f32 %v8120_v27, %v9337_v1  ;;  %v1838_v47 = vmul.f32 %v8120_v27, %v9339_v51  ;;  %v1787_v28 = vpop.xlane.xlu2 %1786 }
 0x461   : > { %8121 = vrcp.f32 %v1787_v28 }
 0x462   : > { %v1859_v50 = vpack.c.bf16 %v1837_v40, %v1835_v37  ;;  %v1860_v52 = vpack.c.bf16 %v1838_v47, %v1836_v46 }
 0x464   : > { %2023 = vmatmul.bf16.gmra.mxu3 %v1859_v50  ;;  %2072 = vmatmul.bf16.gmra.mxu0 %v1860_v52 }
 0x465   : > { %v2004_v7 = vpop.f32.mrf.mxu2 }
 0x466   : > { %v2054_v48 = vadd.f32 %v2053_v22, %v2004_v7 }
 0x467   : > { %v8122_v39 = vpop.eup %8121  ;;  %v2055_v30 = vpop.f32.mrf.mxu0 }
 0x468   : > { %v1790_v35 = vpop.xlane.xlu0 %1789  ;;  %v1839_v4 = vmul.f32 %v8122_v39, %v9345_v29  ;;  %v1840_v5 = vmul.f32 %v8122_v39, %v9347_v60 }
 0x469   : > { %8123 = vrcp.f32 %v1790_v35 }
 0x46d   : > { %v2006_v6 = vpop.f32.mrf.mxu2 }
 0x46e   : > { %v2056_v59 = vadd.f32 %v2055_v30, %v2006_v6  ;;  %v8329_v6 = vld [vmem:[%s9054_s15 + $0x10] sm:$0xff] }
 0x46f   : > { %v8124_v41 = vpop.eup %8123  ;;  %v2058_v8 = vpop.f32.mrf.mxu0 }
 0x470   : > { %v1841_v1 = vmul.f32 %v8124_v41, %v9357_v23  ;;  %v1842_v51 = vmul.f32 %v8124_v41, %v9359_v61  ;;  %v1793_v58 = vpop.xlane.xlu1 %1792  ;;  %v2093_v49 = vpack.c.bf16 %v2056_v59, %v2054_v48  ;;  %v8330_v48 = vld [vmem:[%s9054_s15 + $0x18] sm:$0xff] }
 0x471   : > { %8125 = vrcp.f32 %v1793_v58 }
 0x472   : > { %v1861_v11 = vpack.c.bf16 %v1841_v1, %v1839_v4  ;;  %v1862_v2 = vpack.c.bf16 %v1842_v51, %v1840_v5 }
 0x474   : > { %2028 = vmatmul.bf16.gmra.mxu3 %v1861_v11  ;;  %2077 = vmatmul.bf16.vlgmr.msrb.gmra.mxu1 %v1862_v2 }
 0x475   : > { %v2009_v9 = vpop.f32.mrf.mxu2 }
 0x477   : > { %v8126_v0 = vpop.eup %8125  ;;  %v2060_v33 = vpop.f32.mrf.mxu0 }
 0x478   : > { %v1796_v44 = vpop.xlane.xlu2 %1795  ;;  %v1843_v29 = vmul.f32 %v8126_v0, %v9365_v62  ;;  %v1844_v60 = vmul.f32 %v8126_v0, %v9367_v34 }
 0x479   : > { %8127 = vrcp.f32 %v1796_v44 }
 0x47f   : > { %v8128_v45 = vpop.eup %8127  ;;  %v2063_v10 = vpop.f32.mrf.mxu0 }
 0x480   : > { %v1845_v23 = vmul.f32 %v8128_v45, %v9377_v19  ;;  %v1846_v61 = vmul.f32 %v8128_v45, %v9379_v26  ;;  %v1799_v21 = vpop.xlane.xlu0 %1798 }
 0x481   : > { %8129 = vrcp.f32 %v1799_v21 }
 0x482   : > { %v1863_v54 = vpack.c.bf16 %v1845_v23, %v1843_v29  ;;  %v1864_v16 = vpack.c.bf16 %v1846_v61, %v1844_v60 }
 0x484   : > { %2033 = vmatmul.bf16.gmra.mxu3 %v1863_v54  ;;  %2082 = vmatmul.bf16.gmra.mxu1 %v1864_v16 }
 0x487   : > { %v8130_v20 = vpop.eup %8129 }
 0x488   : > { %v1802_v63 = vpop.xlane.xlu1 %1801  ;;  %v1847_v62 = vmul.f32 %v8130_v20, %v9385_v31  ;;  %v1848_v34 = vmul.f32 %v8130_v20, %v9387_v3  ;;  %v2011_v31 = vpop.f32.mrf.mxu2 }
 0x489   : > { %8131 = vrcp.f32 %v1802_v63  ;;  %v2061_v36 = vadd.f32 %v2060_v33, %v2011_v31  ;;  %v9420_v63 = vld [vmem:[%s13923_s22] ss:$0 sm:$0xff] }
 0x48f   : > { %v8132_v25 = vpop.eup %8131 }
 0x490   : > { %v1849_v19 = vmul.f32 %v8132_v25, %v9395_v13  ;;  %v1850_v26 = vmul.f32 %v8132_v25, %v9397_v14  ;;  %v2059_v13 = vadd.f32 %v2058_v8, %v2009_v9  ;;  %v2014_v3 = vpop.f32.mrf.mxu2  ;;  %v2065_v14 = vpop.f32.mrf.mxu0  ;;  %v8327_v25 = vld [vmem:[%s9054_s15] sm:$0xff] }
 0x491   : > { %v2064_v53 = vadd.f32 %v2063_v10, %v2014_v3 }
 0x492   : > { %v1865_v56 = vpack.c.bf16 %v1849_v19, %v1847_v62  ;;  %v1866_v57 = vpack.c.bf16 %v1850_v26, %v1848_v34  ;;  %v2094_v15 = vpack.c.bf16 %v2061_v36, %v2059_v13  ;;  %v8328_v26 = vld [vmem:[%s9054_s15 + $0x8] sm:$0xff]  ;;  %v8331_v36 = vld [vmem:[%s9054_s15 + $0x20] sm:$0xff] }
 0x494   : > { %2038 = vmatmul.bf16.gmra.mxu3 %v1865_v56  ;;  %2087 = vmatmul.bf16.gmra.mxu1 %v1866_v57 }
 0x495   : > { %v2019_v42 = vpop.f32.mrf.mxu3 }
 0x498   : > { %v2016_v17 = vpop.f32.mrf.mxu2  ;;  %v2068_v18 = vpop.f32.mrf.mxu0 }
 0x499   : > { %v2066_v38 = vadd.f32 %v2065_v14, %v2016_v17  ;;  %v2069_v40 = vadd.f32 %v2068_v18, %v2019_v42 }
 0x49b   : > { %v2095_v55 = vpack.c.bf16 %v2066_v38, %v2064_v53  ;;  %v8333_v53 = vld [vmem:[%s9054_s15 + $0x30] sm:$0xff] }
 0x49d   : > { %v2021_v24 = vpop.f32.mrf.mxu3 }
 0x4a0   : > { %v2070_v27 = vpop.f32.mrf.mxu0 }
 0x4a1   : > { %v2071_v37 = vadd.f32 %v2070_v27, %v2021_v24 }
 0x4a3   : > { %v2096_v46 = vpack.c.bf16 %v2071_v37, %v2069_v40 }
 0x4a4   : > { %2177 = vmatmul.bf16.vlgmr.msrb.gmra.mxu3 %v2093_v49 }
 0x4b4   : > { %2182 = vmatmul.bf16.gmra.mxu3 %v2094_v15  ;;  %v8332_v15 = vld [vmem:[%s9054_s15 + $0x28] sm:$0xff] }
 0x4c4   : > { %2187 = vmatmul.bf16.gmra.mxu3 %v2095_v55  ;;  %v8743_v55 = vmov 128.0  }
 0x4c5   : > { %8133 = vrcp.f32 %v8743_v55 }
 0x4cb   : > { %v8134_v18 = vpop.eup %8133 }
 0x4cc   : > { %v2269_v24 = vmul.f32 128.0, %v8134_v18  ;;  %vm2273_vm0 = vweird.f32 %v8134_v18 }
 0x4ce   : > { %v2270_v27 = vsub.f32 1.0, %v2269_v24  ;;  %v8341_v24 = vld [vmem:[%s9054_s15 + $0x70] sm:$0xff] }
 0x4d0   : > { %v2271_v37 = vmul.f32 %v8134_v18, %v2270_v27 }
 0x4d4   : > { %2192 = vmatmul.bf16.gmra.mxu3 %v2096_v46  ;;  %v2272_v46 = vadd.f32 %v8134_v18, %v2271_v37  ;;  %v7289_v37 = vld [vmem:[#allocation15 + $0xe0] sm:$0xf] }
 0x4e1   : > { %v2073_v47 = vpop.f32.mrf.mxu0 }
 0x4e7   : > { %v2024_v50 = vpop.f32.mrf.mxu3 }
 0x4e8   : > { %v2074_v32 = vadd.f32 %v2073_v47, %v2024_v50  ;;  %v9442_v47 = vsel %vm2273_vm0, %v8134_v18, %v2272_v46  ;;  %v7594_v46 = vld [vmem:[#allocation15 + $0xe4] sm:$0xf] }
 0x4e9   : > { %v2075_v52 = vpop.f32.mrf.mxu0  ;;  %13924 = vst [vmem:[#allocation34_spill] sm:$0xff] %v9442_v47 }
 0x4ef   : > { %v2026_v28 = vpop.f32.mrf.mxu3 }
 0x4f0   : > { %v2076_v35 = vadd.f32 %v2075_v52, %v2026_v28 }
 0x4f1   : > { %v2078_v39 = vpop.f32.mrf.mxu1 }
 0x4f2   : > { %v2097_v41 = vpack.c.bf16 %v2076_v35, %v2074_v32 }
 0x4f4   : > { %2197 = vmatmul.bf16.gmra.mxu3 %v2097_v41 }
 0x4f7   : > { %v2029_v43 = vpop.f32.mrf.mxu3 }
 0x4f8   : > { %v2079_v5 = vadd.f32 %v2078_v39, %v2029_v43 }
 0x4f9   : > { %v2080_v4 = vpop.f32.mrf.mxu1 }
 0x4ff   : > { %v2031_v1 = vpop.f32.mrf.mxu3 }
 0x500   : > { %v2081_v51 = vadd.f32 %v2080_v4, %v2031_v1 }
 0x501   : > { %v2083_v11 = vpop.f32.mrf.mxu1 }
 0x502   : > { %v2098_v2 = vpack.c.bf16 %v2081_v51, %v2079_v5  ;;  %v8334_v51 = vld [vmem:[%s9054_s15 + $0x38] sm:$0xff] }
 0x504   : > { %2202 = vmatmul.bf16.gmra.mxu3 %v2098_v2 }
 0x507   : > { %v2034_v58 = vpop.f32.mrf.mxu3 }
 0x508   : > { %v2084_v0 = vadd.f32 %v2083_v11, %v2034_v58 }
 0x509   : > { %v2085_v12 = vpop.f32.mrf.mxu1 }
 0x50f   : > { %v2036_v44 = vpop.f32.mrf.mxu3 }
 0x510   : > { %v2086_v45 = vadd.f32 %v2085_v12, %v2036_v44 }
 0x511   : > { %v2088_v23 = vpop.f32.mrf.mxu1 }
 0x512   : > { %v2099_v29 = vpack.c.bf16 %v2086_v45, %v2084_v0  ;;  %v8335_v45 = vld [vmem:[%s9054_s15 + $0x40] sm:$0xff] }
 0x514   : > { %2207 = vmatmul.bf16.gmra.mxu3 %v2099_v29 }
 0x517   : > { %v2039_v60 = vpop.f32.mrf.mxu3 }
 0x518   : > { %v2089_v16 = vadd.f32 %v2088_v23, %v2039_v60 }
 0x519   : > { %v2090_v61 = vpop.f32.mrf.mxu1 }
 0x51f   : > { %v2041_v54 = vpop.f32.mrf.mxu3 }
 0x520   : > { %v2091_v21 = vadd.f32 %v2090_v61, %v2041_v54 }
 0x522   : > { %v2100_v22 = vpack.c.bf16 %v2091_v21, %v2089_v16  ;;  %v8336_v21 = vld [vmem:[%s9054_s15 + $0x48] sm:$0xff] }
 0x524   : > { %2212 = vmatmul.bf16.gmra.mxu3 %v2100_v22 }
 0x527   : > { %v2178_v7 = vpop.f32.mrf.mxu3 }
 0x528   : > { %v2179_v20 = vadd.f32 %v9420_v63, %v2178_v7 }
 0x52a   : > { %v2218_v62 = vadd.f32 %v8327_v25, %v2179_v20 }
 0x52c   : > { %2236 = vadd.xlane.f32.xlu2 %v2218_v62 }
 0x52f   : > { %v2180_v19 = vpop.f32.mrf.mxu3 }
 0x530   : > { %v2181_v34 = vadd.f32 %v9420_v63, %v2180_v19 }
 0x532   : > { %v2219_v30 = vadd.f32 %v8328_v26, %v2181_v34  ;;  %v8337_v26 = vld [vmem:[%s9054_s15 + $0x50] sm:$0xff] }
 0x534   : > { %2238 = vadd.xlane.f32.xlu0 %v2219_v30 }
 0x537   : > { %v2183_v56 = vpop.f32.mrf.mxu3 }
 0x538   : > { %v2184_v57 = vadd.f32 %v9420_v63, %v2183_v56 }
 0x53a   : > { %v2220_v8 = vadd.f32 %v8329_v6, %v2184_v57 }
 0x53c   : > { %2240 = vadd.xlane.f32.xlu1 %v2220_v8 }
 0x53f   : > { %v2185_v9 = vpop.f32.mrf.mxu3 }
 0x540   : > { %v2186_v59 = vadd.f32 %v9420_v63, %v2185_v9 }
 0x542   : > { %v2221_v49 = vadd.f32 %v8330_v48, %v2186_v59 }
 0x544   : > { %2242 = vadd.xlane.f32.xlu2 %v2221_v49 }
 0x547   : > { %v2188_v33 = vpop.f32.mrf.mxu3 }
 0x548   : > { %v2189_v31 = vadd.f32 %v9420_v63, %v2188_v33 }
 0x54a   : > { %v2222_v10 = vadd.f32 %v8331_v36, %v2189_v31 }
 0x54c   : > { %2244 = vadd.xlane.f32.xlu0 %v2222_v10 }
 0x54f   : > { %v2190_v13 = vpop.f32.mrf.mxu3 }
 0x550   : > { %v2191_v3 = vadd.f32 %v9420_v63, %v2190_v13 }
 0x552   : > { %v9434_v14 = vadd.f32 %v8332_v15, %v2191_v3 }
 0x554   : > { %2246 = vadd.xlane.f32.xlu1 %v9434_v14 }
 0x557   : > { %v2193_v17 = vpop.f32.mrf.mxu3 }
 0x558   : > { %v2194_v38 = vadd.f32 %v9420_v63, %v2193_v17 }
 0x55a   : > { %v9439_v42 = vadd.f32 %v8333_v53, %v2194_v38  ;;  %v8340_v53 = vld [vmem:[%s9054_s15 + $0x68] sm:$0xff] }
 0x55c   : > { %2248 = vadd.xlane.f32.xlu1 %v9439_v42 }
 0x55f   : > { %v2195_v40 = vpop.f32.mrf.mxu3 }
 0x560   : > { %v2196_v41 = vadd.f32 %v9420_v63, %v2195_v40  ;;  %v7596_v40 = vld [vmem:[#allocation15 + $0xec] sm:$0xf0] }
 0x562   : > { %v9456_v11 = vadd.f32 %v8334_v51, %v2196_v41  ;;  %v7273_v51 = vld [vmem:[#allocation15 + $0xc0] sm:$0xf] }
 0x577   : > { %v2198_v28 = vpop.f32.mrf.mxu3 }
 0x578   : > { %v2199_v58 = vadd.f32 %v9420_v63, %v2198_v28  ;;  %v7297_v28 = vld [vmem:[#allocation15 + $0xe8] sm:$0xf] }
 0x57a   : > { %v9466_v29 = vadd.f32 %v8335_v45, %v2199_v58  ;;  %v7590_v58 = vld [vmem:[#allocation15 + $0xc4] sm:$0xf]  ;;  %v7281_v45 = vld [vmem:[#allocation15 + $0xc8] sm:$0xf] }
 0x57f   : > { %v2200_v1 = vpop.f32.mrf.mxu3 }
 0x580   : > { %v2201_v61 = vadd.f32 %v9420_v63, %v2200_v1  ;;  %v7299_v1 = vld [vmem:[#allocation15 + $0xf8] sm:$0xf0] }
 0x582   : > { %v9474_v22 = vadd.f32 %v8336_v21, %v2201_v61  ;;  %v7283_v21 = vld [vmem:[#allocation15 + $0xd8] sm:$0xf0] }
 0x587   : > { %v2203_v23 = vpop.f32.mrf.mxu3 }
 0x58f   : > { %v2205_v20 = vpop.f32.mrf.mxu3 }
 0x590   : > { %v2206_v6 = vadd.f32 %v9420_v63, %v2205_v20  ;;  %v7257_v20 = vld [vmem:[#allocation15 + $0xa0] sm:$0xf] }
 0x597   : > { %v2208_v9 = vpop.f32.mrf.mxu3 }
 0x598   : > { %v2209_v36 = vadd.f32 %v9420_v63, %v2208_v9  ;;  %v7587_v9 = vld [vmem:[#allocation15 + $0xac] sm:$0xf] }
 0x59f   : > { %v2237_v50 = vpop.xlane.xlu2 %2236  ;;  %v2210_v3 = vpop.f32.mrf.mxu3 }
 0x5a0   : > { %v2275_v52 = vmul.f32 %v9442_v47, %v2237_v50  ;;  %v2211_v38 = vadd.f32 %v9420_v63, %v2210_v3  ;;  %v7290_v50 = vor.u32 %v7596_v40, %v7289_v37  ;;  %v7225_v40 = vld [vmem:[#allocation15 + $0x60] sm:$0xf] }
 0x5a2   : > { %v9445_v32 = vsub.f32 %v2218_v62, %v2275_v52  ;;  %v2204_v62 = vadd.f32 %v9420_v63, %v2203_v23  ;;  %v9513_v55 = vadd.f32 %v8340_v53, %v2211_v38  ;;  %v7291_v52 = vld [vmem:[#allocation15 + $0xf0] sm:$0xf0]  ;;  %2811 = vmatpush.bf16.msra.mxu1 %v7290_v50  ;;  %v7593_v23 = vld [vmem:[#allocation15 + $0xd4] sm:$0xf0]  ;;  %v7578_v50 = vld [vmem:[#allocation15 + $0x64] sm:$0xf] }
 0x5a3   : > { %v7282_v61 = vor.u32 %v7593_v23, %v7281_v45  ;;  %v7585_v38 = vld [vmem:[#allocation15 + $0x94] sm:$0xf0]  ;;  %v7211_v45 = vld [vmem:[#allocation15 + $0x50] sm:$0xf0]  ;;  %v7217_v23 = vld [vmem:[#allocation15 + $0x48] sm:$0xf] }
 0x5a4   : > { %v2307_v35 = vmul.f32 %v9445_v32, %v9445_v32 }
 0x5a6   : > { %2323 = vadd.xlane.f32.xlu2 %v2307_v35  ;;  %v7597_v35 = vld [vmem:[#allocation15 + $0xf4] sm:$0xf0] }
 0x5a7   : > { %v2239_v39 = vpop.xlane.xlu0 %2238  ;;  %v2213_v18 = vpop.f32.mrf.mxu3  ;;  %v7298_v41 = vor.u32 %v7597_v35, %v7297_v28  ;;  %v7227_v28 = vld [vmem:[#allocation15 + $0x70] sm:$0xf0]  ;;  %v7233_v35 = vld [vmem:[#allocation15 + $0x68] sm:$0xf] }
 0x5a8   : > { %v2276_v43 = vmul.f32 %v9442_v47, %v2239_v39  ;;  %v7294_v39 = vor.u32 %v7594_v46, %v7291_v52  ;;  %v7580_v46 = vld [vmem:[#allocation15 + $0x6c] sm:$0xf0] }
 0x5a9   : > { %2909 = vmatpush.bf16.msra.mxu0 %v7298_v41  ;;  %v7226_v52 = vor.u32 %v7580_v46, %v7225_v40  ;;  %v7230_v41 = vor.u32 %v7578_v50, %v7227_v28  ;;  %v7567_v46 = vld [vmem:[#allocation15 + $0xc] sm:$0xf]  ;;  %v7187_v50 = vld [vmem:[#allocation15 + $0x18] sm:$0xf0] }
 0x5aa   : > { %v9451_v4 = vsub.f32 %v2219_v30, %v2276_v43  ;;  %v9484_v30 = vadd.f32 %v8337_v26, %v2204_v62  ;;  %v7595_v43 = vld [vmem:[#allocation15 + $0xec] sm:$0xf]  ;;  %2860 = vmatpush.bf16.msra.mxu2 %v7294_v39  ;;  %v7586_v62 = vld [vmem:[#allocation15 + $0xa4] sm:$0xf]  ;;  %v7259_v26 = vld [vmem:[#allocation15 + $0xb0] sm:$0xf0] }
 0x5ab   : > { %v7581_v39 = vld [vmem:[#allocation15 + $0x74] sm:$0xf0] }
 0x5ac   : > { %v2308_v5 = vmul.f32 %v9451_v4, %v9451_v4 }
 0x5ad   : > { %2910 = vmatpush.bf16.msra.mxu0 %v7282_v61 }
 0x5ae   : > { %2325 = vadd.xlane.f32.xlu0 %v2308_v5  ;;  %2250 = vadd.xlane.f32.xlu2 %v9456_v11  ;;  %v7302_v5 = vor.u32 %v7595_v43, %v7299_v1  ;;  %v7234_v43 = vor.u32 %v7581_v39, %v7233_v35  ;;  %v7579_v1 = vld [vmem:[#allocation15 + $0x6c] sm:$0xf] }
 0x5af   : > { %v2241_v2 = vpop.xlane.xlu1 %2240 }
 0x5b0   : > { %v2277_v12 = vmul.f32 %v9442_v47, %v2241_v2  ;;  %v7592_v2 = vld [vmem:[#allocation15 + $0xcc] sm:$0xf0]  ;;  %2958 = vmatpush.bf16.msra.mxu3 %v7302_v5  ;;  %v7235_v5 = vld [vmem:[#allocation15 + $0x78] sm:$0xf0] }
 0x5b2   : > { %v9461_v44 = vsub.f32 %v2220_v8, %v2277_v12  ;;  %v7274_v12 = vor.u32 %v7592_v2, %v7273_v51  ;;  %v7238_v51 = vor.u32 %v7579_v1, %v7235_v5  ;;  %v7209_v2 = vld [vmem:[#allocation15 + $0x40] sm:$0xf] }
 0x5b4   : > { %v2309_v0 = vmul.f32 %v9461_v44, %v9461_v44  ;;  %2812 = vmatpush.bf16.msra.mxu1 %v7274_v12  ;;  %v7574_v12 = vld [vmem:[#allocation15 + $0x44] sm:$0xf] }
 0x5b5   : > { %v7214_v61 = vor.u32 %v7574_v12, %v7211_v45 }
 0x5b6   : > { %2327 = vadd.xlane.f32.xlu0 %v2309_v0  ;;  %2252 = vadd.xlane.f32.xlu2 %v9466_v29  ;;  %v7275_v0 = vld [vmem:[#allocation15 + $0xd0] sm:$0xf0] }
 0x5b7   : > { %v2243_v60 = vpop.xlane.xlu2 %2242 }
 0x5b8   : > { %v2278_v54 = vmul.f32 %v9442_v47, %v2243_v60  ;;  %v7278_v60 = vor.u32 %v7590_v58, %v7275_v0  ;;  %v7576_v58 = vld [vmem:[#allocation15 + $0x4c] sm:$0xf0] }
 0x5b9   : > { %v7210_v0 = vor.u32 %v7576_v58, %v7209_v2 }
 0x5ba   : > { %v9471_v16 = vsub.f32 %v2221_v49, %v2278_v54  ;;  %v8338_v49 = vld [vmem:[%s9054_s15 + $0x58] sm:$0xff]  ;;  %v7591_v54 = vld [vmem:[#allocation15 + $0xcc] sm:$0xf]  ;;  %2861 = vmatpush.bf16.msra.mxu2 %v7278_v60 }
 0x5bb   : > { %v9497_v33 = vadd.f32 %v8338_v49, %v2206_v6  ;;  %v7262_v6 = vor.u32 %v7586_v62, %v7259_v26  ;;  %v7577_v60 = vld [vmem:[#allocation15 + $0x54] sm:$0xf0]  ;;  %v7572_v62 = vld [vmem:[#allocation15 + $0x2c] sm:$0xf0] }
 0x5bc   : > { %v2310_v7 = vmul.f32 %v9471_v16, %v9471_v16 }
 0x5be   : > { %2254 = vadd.xlane.f32.xlu0 %v9474_v22  ;;  %2329 = vadd.xlane.f32.xlu1 %v2310_v7  ;;  %v7286_v7 = vor.u32 %v7591_v54, %v7283_v21  ;;  %v7218_v54 = vor.u32 %v7577_v60, %v7217_v23  ;;  %v7575_v21 = vld [vmem:[#allocation15 + $0x4c] sm:$0xf] }
 0x5bf   : > { %v2245_v25 = vpop.xlane.xlu0 %2244  ;;  %2862 = vmatpush.bf16.msra.mxu2 %v7262_v6  ;;  %v7573_v6 = vld [vmem:[#allocation15 + $0x34] sm:$0xf0] }
 0x5c0   : > { %v2279_v19 = vmul.f32 %v9442_v47, %v2245_v25  ;;  %v7588_v25 = vld [vmem:[#allocation15 + $0xac] sm:$0xf0]  ;;  %2959 = vmatpush.bf16.msra.mxu3 %v7286_v7  ;;  %v7219_v7 = vld [vmem:[#allocation15 + $0x58] sm:$0xf0] }
 0x5c2   : > { %v9481_v34 = vsub.f32 %v2222_v10, %v2279_v19  ;;  %v7258_v19 = vor.u32 %v7588_v25, %v7257_v20  ;;  %v7222_v20 = vor.u32 %v7575_v21, %v7219_v7  ;;  %v7193_v25 = vld [vmem:[#allocation15 + $0x20] sm:$0xf] }
 0x5c3   : > { %v7194_v26 = vor.u32 %v7572_v62, %v7193_v25  ;;  %v2215_v62 = vpop.f32.mrf.mxu3 }
 0x5c4   : > { %v2311_v56 = vmul.f32 %v9481_v34, %v9481_v34  ;;  %2813 = vmatpush.bf16.msra.mxu1 %v7258_v19  ;;  %v7570_v19 = vld [vmem:[#allocation15 + $0x24] sm:$0xf] }
 0x5c6   : > { %2256 = vadd.xlane.f32.xlu0 %v9484_v30  ;;  %2331 = vadd.xlane.f32.xlu1 %v2311_v56  ;;  %v7265_v56 = vld [vmem:[#allocation15 + $0xa8] sm:$0xf] }
 0x5c7   : > { %v2247_v57 = vpop.xlane.xlu1 %2246 }
 0x5c8   : > { %v2280_v8 = vmul.f32 %v9442_v47, %v2247_v57  ;;  %v7589_v57 = vld [vmem:[#allocation15 + $0xb4] sm:$0xf0] }
 0x5ca   : > { %v9492_v59 = vsub.f32 %v9434_v14, %v2280_v8  ;;  %v8339_v14 = vld [vmem:[%s9054_s15 + $0x60] sm:$0xff]  ;;  %v7266_v8 = vor.u32 %v7589_v57, %v7265_v56  ;;  %v7195_v56 = vld [vmem:[#allocation15 + $0x30] sm:$0xf0]  ;;  %v7201_v57 = vld [vmem:[#allocation15 + $0x28] sm:$0xf] }
 0x5cb   : > { %v9508_v17 = vadd.f32 %v8339_v14, %v2209_v36  ;;  %v7584_v36 = vld [vmem:[#allocation15 + $0x8c] sm:$0xf0]  ;;  %v7249_v14 = vld [vmem:[#allocation15 + $0x88] sm:$0xf] }
 0x5cc   : > { %v2312_v48 = vmul.f32 %v9492_v59, %v9492_v59  ;;  %2911 = vmatpush.bf16.msra.mxu0 %v7266_v8  ;;  %v7198_v8 = vor.u32 %v7570_v19, %v7195_v56 }
 0x5ce   : > { %2333 = vadd.xlane.f32.xlu2 %v2312_v48  ;;  %2258 = vadd.xlane.f32.xlu1 %v9497_v33  ;;  %v7267_v48 = vld [vmem:[#allocation15 + $0xb8] sm:$0xf0] }
 0x5cf   : > { %v2249_v31 = vpop.xlane.xlu1 %2248  ;;  %v7270_v49 = vor.u32 %v7587_v9, %v7267_v48  ;;  %v7202_v9 = vor.u32 %v7573_v6, %v7201_v57  ;;  %v7571_v48 = vld [vmem:[#allocation15 + $0x2c] sm:$0xf] }
 0x5d0   : > { %v2281_v10 = vmul.f32 %v9442_v47, %v2249_v31  ;;  %v7241_v31 = vld [vmem:[#allocation15 + $0x80] sm:$0xf] }
 0x5d1   : > { %2960 = vmatpush.bf16.msra.mxu3 %v7270_v49  ;;  %v7242_v3 = vor.u32 %v7584_v36, %v7241_v31  ;;  %v7203_v49 = vld [vmem:[#allocation15 + $0x38] sm:$0xf0] }
 0x5d2   : > { %v9503_v13 = vsub.f32 %v9439_v42, %v2281_v10  ;;  %v2214_v42 = vadd.f32 %v9420_v63, %v2213_v18  ;;  %v7582_v10 = vld [vmem:[#allocation15 + $0x84] sm:$0xf]  ;;  %v7250_v18 = vor.u32 %v7585_v38, %v7249_v14  ;;  %v7206_v36 = vor.u32 %v7571_v48, %v7203_v49 }
 0x5d3   : > { %2814 = vmatpush.bf16.msra.mxu1 %v7242_v3  ;;  %v7177_v3 = vld [vmem:[#allocation15] sm:$0xf]  ;;  %v7566_v14 = vld [vmem:[#allocation15 + $0x4] sm:$0xf] }
 0x5d4   : > { %v2313_v15 = vmul.f32 %v9503_v13, %v9503_v13  ;;  %v9518_v27 = vadd.f32 %v8341_v24, %v2214_v42  ;;  %v7583_v42 = vld [vmem:[#allocation15 + $0x8c] sm:$0xf]  ;;  %v7251_v24 = vld [vmem:[#allocation15 + $0x98] sm:$0xf0]  ;;  %2912 = vmatpush.bf16.msra.mxu0 %v7250_v18  ;;  %v7185_v18 = vld [vmem:[#allocation15 + $0x8] sm:$0xf] }
 0x5d5   : > { %v7254_v37 = vor.u32 %v7583_v42, %v7251_v24  ;;  %v7569_v42 = vld [vmem:[#allocation15 + $0x14] sm:$0xf0] }
 0x5d6   : > { %2335 = vadd.xlane.f32.xlu2 %v2313_v15  ;;  %2260 = vadd.xlane.f32.xlu1 %v9508_v17  ;;  %v7243_v15 = vld [vmem:[#allocation15 + $0x90] sm:$0xf0]  ;;  %v7186_v40 = vor.u32 %v7569_v42, %v7185_v18 }
 0x5d7   : > { %v7246_v53 = vor.u32 %v7582_v10, %v7243_v15  ;;  %2961 = vmatpush.bf16.msra.mxu3 %v7254_v37  ;;  %2815 = vmatpush.bf16.msra.mxu1 %v7226_v52  ;;  %v7568_v15 = vld [vmem:[#allocation15 + $0xc] sm:$0xf0]  ;;  %v7190_v52 = vor.u32 %v7567_v46, %v7187_v50 }
 0x5d8   : > { %2913 = vmatpush.bf16.msra.mxu0 %v7234_v43  ;;  %v7178_v38 = vor.u32 %v7568_v15, %v7177_v3  ;;  %v9546_v3 = vld [vmem:[%s13925_s7] ss:$0 sm:$0xff] }
 0x5d9   : > { %2863 = vmatpush.bf16.msra.mxu2 %v7246_v53  ;;  %v7179_v53 = vld [vmem:[#allocation15 + $0x10] sm:$0xf0] }
 0x5da   : > { %v7182_v37 = vor.u32 %v7566_v14, %v7179_v53 }
 0x5db   : > { %2962 = vmatpush.bf16.msra.mxu3 %v7238_v51  ;;  %2816 = vmatpush.bf16.msra.mxu1 %v7210_v0 }
 0x5dc   : > { %2914 = vmatpush.bf16.msra.mxu0 %v7218_v54 }
 0x5dd   : > { %2864 = vmatpush.bf16.msra.mxu2 %v7230_v41 }
 0x5de   : > { %2262 = vadd.xlane.f32.xlu2 %v9513_v55 }
 0x5df   : > { %2963 = vmatpush.bf16.msra.mxu3 %v7222_v20  ;;  %2817 = vmatpush.bf16.msra.mxu1 %v7194_v26 }
 0x5e0   : > { %2915 = vmatpush.bf16.msra.mxu0 %v7202_v9 }
 0x5e1   : > { %2865 = vmatpush.bf16.msra.mxu2 %v7214_v61 }
 0x5e3   : > { %2964 = vmatpush.bf16.msra.mxu3 %v7206_v36  ;;  %2818 = vmatpush.bf16.msra.mxu1 %v7178_v38  ;;  %v8342_v38 = vld [vmem:[%s9054_s15 + $0x78] sm:$0xff]  ;;  %s13939_s15 = sld [smem:[#allocation88_spill]] }
 0x5e4   : > { %2916 = vmatpush.bf16.msra.mxu0 %v7186_v40 }
 0x5e5   : > { %2866 = vmatpush.bf16.msra.mxu2 %v7198_v8  ;;  %v2216_v8 = vadd.f32 %v9420_v63, %v2215_v62 }
 0x5e6   : > { %2264 = vadd.xlane.f32.xlu2 %v9518_v27 }
 0x5e7   : > { %2965 = vmatpush.bf16.msra.mxu3 %v7190_v52  ;;  %v9551_v53 = vadd.f32 %v8342_v38, %v2216_v8 }
 0x5e9   : > { %2867 = vmatpush.bf16.msra.mxu2 %v7182_v37 }
 0x619   : > { %v2324_v31 = vpop.xlane.xlu2 %2323 }
 0x61a   : > { %v2355_v10 = vmul.f32 %v2324_v31, %v9442_v47 }
 0x61c   : > { %v2371_v24 = vadd.f32 1e-05, %v2355_v10 }
 0x61e   : > { %8135 = vrsqrt.f32 %v2371_v24  ;;  %vm2393_vm2 = vweird.f32 %v2371_v24 }
 0x621   : > { %v2326_v28 = vpop.xlane.xlu0 %2325  ;;  %v2251_v35 = vpop.xlane.xlu2 %2250 }
 0x622   : > { %v2356_v39 = vmul.f32 %v2326_v28, %v9442_v47  ;;  %v2282_v41 = vmul.f32 %v9442_v47, %v2251_v35 }
 0x624   : > { %v8136_v43 = vpop.eup %8135  ;;  %v2372_v1 = vadd.f32 1e-05, %v2356_v39  ;;  %v9525_v5 = vsub.f32 %v9456_v11, %v2282_v41 }
 0x625   : > { %v2388_v51 = vmul.f32 %v8136_v43, %v2371_v24  ;;  %vm2394_vm1 = vweird.f32 %v8136_v43  ;;  %v9559_v24 = vld [vmem:[%s13926_s24] ss:$0 sm:$0xff] }
 0x626   : > { %8137 = vrsqrt.f32 %v2372_v1  ;;  %v2314_v2 = vmul.f32 %v9525_v5, %v9525_v5  ;;  %vm2395_vm3 = vmor %vm2393_vm2, %vm2394_vm1  ;;  %vm2403_vm5 = vweird.f32 %v2372_v1 }
 0x627   : > { %v2389_v58 = vmul.f32 %v8136_v43, %v2388_v51 }
 0x628   : > { %2337 = vadd.xlane.f32.xlu0 %v2314_v2 }
 0x629   : > { %v2390_v12 = vmul.f32 0.5, %v2389_v58  ;;  %v2328_v0 = vpop.xlane.xlu0 %2327  ;;  %v2253_v45 = vpop.xlane.xlu2 %2252 }
 0x62a   : > { %v2357_v23 = vmul.f32 %v2328_v0, %v9442_v47  ;;  %v2283_v60 = vmul.f32 %v9442_v47, %v2253_v45 }
 0x62b   : > { %v2391_v61 = vsub.f32 1.5, %v2390_v12 }
 0x62c   : > { %v8138_v54 = vpop.eup %8137  ;;  %v2373_v21 = vadd.f32 1e-05, %v2357_v23  ;;  %v9532_v11 = vsub.f32 %v9466_v29, %v2283_v60 }
 0x62d   : > { %v2392_v7 = vmul.f32 %v8136_v43, %v2391_v61  ;;  %v2398_v20 = vmul.f32 %v8138_v54, %v2372_v1  ;;  %vm2404_vm4 = vweird.f32 %v8138_v54 }
 0x62e   : > { %8139 = vrsqrt.f32 %v2373_v21  ;;  %v2315_v25 = vmul.f32 %v9532_v11, %v9532_v11  ;;  %vm2405_vm6 = vmor %vm2403_vm5, %vm2404_vm4  ;;  %vm2413_vm8 = vweird.f32 %v2373_v21 }
 0x62f   : > { %v2399_v19 = vmul.f32 %v8138_v54, %v2398_v20  ;;  %v2396_v26 = vsel %vm2395_vm3, %v8136_v43, %v2392_v7 }
 0x630   : > { %2339 = vadd.xlane.f32.xlu0 %v2315_v25  ;;  %v2547_v31 = vmul.f32 %v2396_v26, %v9445_v32 }
 0x631   : > { %v2400_v56 = vmul.f32 0.5, %v2399_v19  ;;  %v2255_v57 = vpop.xlane.xlu0 %2254  ;;  %v2330_v6 = vpop.xlane.xlu1 %2329 }
 0x632   : > { %v2284_v29 = vmul.f32 %v9442_v47, %v2255_v57  ;;  %v2358_v9 = vmul.f32 %v2330_v6, %v9442_v47  ;;  %v2566_v42 = vmul.f32 %v9546_v3, %v2547_v31 }
 0x633   : > { %v2401_v48 = vsub.f32 1.5, %v2400_v56 }
 0x634   : > { %v8140_v49 = vpop.eup %8139  ;;  %v9541_v36 = vsub.f32 %v9474_v22, %v2284_v29  ;;  %v2374_v10 = vadd.f32 1e-05, %v2358_v9  ;;  %v9568_v43 = vadd.f32 %v9559_v24, %v2566_v42 }
 0x635   : > { %v2402_v63 = vmul.f32 %v8138_v54, %v2401_v48  ;;  %v2408_v15 = vmul.f32 %v8140_v49, %v2373_v21  ;;  %vm2414_vm7 = vweird.f32 %v8140_v49 }
 0x636   : > { %8141 = vrsqrt.f32 %v2374_v10  ;;  %v2316_v14 = vmul.f32 %v9541_v36, %v9541_v36  ;;  %13928 = vst [vmem:[#allocation35_spill] sm:$0xff] %v9568_v43  ;;  %vm2415_vm9 = vmor %vm2413_vm8, %vm2414_vm7  ;;  %vm2423_vm11 = vweird.f32 %v2374_v10 }
 0x637   : > { %v2406_v32 = vsel %vm2405_vm6, %v8138_v54, %v2402_v63  ;;  %v2409_v22 = vmul.f32 %v8140_v49, %v2408_v15 }
 0x638   : > { %v2548_v18 = vmul.f32 %v2406_v32, %v9451_v4  ;;  %2341 = vadd.xlane.f32.xlu1 %v2316_v14  ;;  %2266 = vadd.xlane.f32.xlu0 %v9551_v53 }
 0x639   : > { %v2410_v37 = vmul.f32 0.5, %v2409_v22  ;;  %v2257_v40 = vpop.xlane.xlu0 %2256  ;;  %v2332_v46 = vpop.xlane.xlu1 %2331 }
 0x63a   : > { %v2285_v50 = vmul.f32 %v9442_v47, %v2257_v40  ;;  %v2359_v52 = vmul.f32 %v2332_v46, %v9442_v47  ;;  %v2567_v28 = vmul.f32 %v9546_v3, %v2548_v18 }
 0x63b   : > { %v2411_v4 = vsub.f32 1.5, %v2410_v37 }
 0x63c   : > { %v8142_v35 = vpop.eup %8141  ;;  %v9565_v39 = vsub.f32 %v9484_v30, %v2285_v50  ;;  %v2375_v41 = vadd.f32 1e-05, %v2359_v52  ;;  %v9571_v1 = vadd.f32 %v9559_v24, %v2567_v28 }
 0x63d   : > { %v2412_v51 = vmul.f32 %v8140_v49, %v2411_v4  ;;  %v2418_v2 = vmul.f32 %v8142_v35, %v2374_v10  ;;  %vm2424_vm10 = vweird.f32 %v8142_v35 }
 0x63e   : > { %13929 = vst [vmem:[#allocation36_spill] sm:$0xff] %v9571_v1  ;;  %8143 = vrsqrt.f32 %v2375_v41  ;;  %v2317_v58 = vmul.f32 %v9565_v39, %v9565_v39  ;;  %v2601_v12 = vpack.c.bf16 %v9571_v1, %v9568_v43  ;;  %vm2425_vm12 = vmor %vm2423_vm11, %vm2424_vm10  ;;  %vm2433_vm14 = vweird.f32 %v2375_v41 }
 0x63f   : > { %v2419_v30 = vmul.f32 %v8142_v35, %v2418_v2  ;;  %v2416_v0 = vsel %vm2415_vm9, %v8140_v49, %v2412_v51 }
 0x640   : > { %2343 = vadd.xlane.f32.xlu1 %v2317_v58  ;;  %2819 = vmatmul.bf16.vlgmr.msra.gmra.mxu1 %v2601_v12  ;;  %v2549_v21 = vmul.f32 %v2416_v0, %v9461_v44 }
 0x641   : > { %v2420_v45 = vmul.f32 0.5, %v2419_v30  ;;  %2868 = vmatmul.bf16.vlgmr.msra.gmra.mxu2 %v2601_v12  ;;  %2917 = vmatmul.bf16.vlgmr.msra.gmra.mxu0 %v2601_v12  ;;  %v2259_v23 = vpop.xlane.xlu1 %2258  ;;  %v2334_v60 = vpop.xlane.xlu2 %2333 }
 0x642   : > { %2966 = vmatmul.bf16.vlgmr.msra.gmra.mxu3 %v2601_v12  ;;  %v2286_v61 = vmul.f32 %v9442_v47, %v2259_v23  ;;  %v2360_v54 = vmul.f32 %v2334_v60, %v9442_v47  ;;  %v2568_v29 = vmul.f32 %v9546_v3, %v2549_v21 }
 0x643   : > { %v2421_v7 = vsub.f32 1.5, %v2420_v45 }
 0x644   : > { %v8144_v20 = vpop.eup %8143  ;;  %v9581_v25 = vsub.f32 %v9497_v33, %v2286_v61  ;;  %v2376_v62 = vadd.f32 1e-05, %v2360_v54  ;;  %v9593_v15 = vadd.f32 %v9559_v24, %v2568_v29 }
 0x645   : > { %v2422_v19 = vmul.f32 %v8142_v35, %v2421_v7  ;;  %v2428_v26 = vmul.f32 %v8144_v20, %v2375_v41  ;;  %vm2434_vm13 = vweird.f32 %v8144_v20 }
 0x646   : > { %8145 = vrsqrt.f32 %v2376_v62  ;;  %v2318_v56 = vmul.f32 %v9581_v25, %v9581_v25  ;;  %13930 = vst [vmem:[#allocation37_spill] sm:$0xff] %v9593_v15  ;;  %vm2435_vm15 = vmor %vm2433_vm14, %vm2434_vm13  ;;  %vm2443_vm1 = vweird.f32 %v2376_v62 }
 0x647   : > { %v2426_v57 = vsel %vm2425_vm12, %v8142_v35, %v2422_v19  ;;  %v2429_v6 = vmul.f32 %v8144_v20, %v2428_v26 }
 0x648   : > { %v2550_v8 = vmul.f32 %v2426_v57, %v9471_v16  ;;  %2345 = vadd.xlane.f32.xlu2 %v2318_v56 }
 0x649   : > { %v2430_v44 = vmul.f32 0.5, %v2429_v6  ;;  %v2261_v9 = vpop.xlane.xlu1 %2260  ;;  %v2336_v33 = vpop.xlane.xlu2 %2335 }
 0x64a   : > { %v2287_v48 = vmul.f32 %v9442_v47, %v2261_v9  ;;  %v2569_v49 = vmul.f32 %v9546_v3, %v2550_v8 }
 0x64b   : > { %v2431_v31 = vsub.f32 1.5, %v2430_v44 }
 0x64c   : > { %v8146_v10 = vpop.eup %8145  ;;  %v9590_v63 = vsub.f32 %v9508_v17, %v2287_v48  ;;  %v9596_v16 = vadd.f32 %v9559_v24, %v2569_v49 }
 0x64d   : > { %v2432_v14 = vmul.f32 %v8144_v20, %v2431_v31  ;;  %v2438_v38 = vmul.f32 %v8146_v10, %v2376_v62  ;;  %vm2444_vm0 = vweird.f32 %v8146_v10 }
 0x64e   : > { %13931 = vst [vmem:[#allocation38_spill] sm:$0xff] %v9596_v16  ;;  %v2602_v32 = vpack.c.bf16 %v9596_v16, %v9593_v15  ;;  %v2319_v22 = vmul.f32 %v9590_v63, %v9590_v63  ;;  %vm2445_vm2 = vmor %vm2443_vm1, %vm2444_vm0 }
 0x64f   : > { %v2439_v18 = vmul.f32 %v8146_v10, %v2438_v38  ;;  %v2436_v17 = vsel %vm2435_vm15, %v8144_v20, %v2432_v14 }
 0x650   : > { %2824 = vmatmul.bf16.gmra.mxu1 %v2602_v32  ;;  %2347 = vadd.xlane.f32.xlu0 %v2319_v22  ;;  %v2551_v50 = vmul.f32 %v2436_v17, %v9481_v34 }
 0x651   : > { %v2440_v42 = vmul.f32 0.5, %v2439_v18  ;;  %2873 = vmatmul.bf16.gmra.mxu2 %v2602_v32  ;;  %2922 = vmatmul.bf16.gmra.mxu0 %v2602_v32  ;;  %v2263_v37 = vpop.xlane.xlu2 %2262 }
 0x652   : > { %2971 = vmatmul.bf16.gmra.mxu3 %v2602_v32  ;;  %v2288_v40 = vmul.f32 %v9442_v47, %v2263_v37  ;;  %v2570_v51 = vmul.f32 %v9546_v3, %v2551_v50  ;;  %v2641_v50 = vld [vmem:[%s13939_s15] sm:$0xf]  ;;  %s14274_s15 = sld [smem:[#allocation27_spill]] }
 0x653   : > { %v2441_v46 = vsub.f32 1.5, %v2440_v42 }
 0x654   : > { %v9605_v52 = vsub.f32 %v9513_v55, %v2288_v40  ;;  %v9617_v12 = vadd.f32 %v9559_v24, %v2570_v51 }
 0x655   : > { %v2442_v28 = vmul.f32 %v8146_v10, %v2441_v46 }
 0x656   : > { %13932 = vst [vmem:[#allocation39_spill] sm:$0xff] %v9605_v52  ;;  %v2320_v4 = vmul.f32 %v9605_v52, %v9605_v52 }
 0x657   : > { %v2446_v35 = vsel %vm2445_vm2, %v8146_v10, %v2442_v28  ;;  %13934 = vst [vmem:[#allocation41_spill] sm:$0xff] %v9617_v12 }
 0x658   : > { %v2552_v41 = vmul.f32 %v2446_v35, %v9492_v59  ;;  %2349 = vadd.xlane.f32.xlu1 %v2320_v4  ;;  %v9651_v4 = vperm.slane %v2641_v50, 0  ;;  %s7496_s20 = sshll.u32 %s14274_s15, 4  ;;  %s8607_s15 = scalar_lea.hbm %s14276_s10, 512 }
 0x659   : > { %v2265_v2 = vpop.xlane.xlu2 %2264  ;;  %s6715_s27 = sadd.s32 %s7497_s21, %s7496_s20 }
 0x65a   : > { %v2289_v58 = vmul.f32 %v9442_v47, %v2265_v2  ;;  %v2571_v34 = vmul.f32 %v9546_v3, %v2552_v41  ;;  %v9653_v2 = vperm.slane %v2641_v50, 2  ;;  %s7498_s12 = sshll.u32 %s6715_s27, 3 }
 0x65b   : > { %s6717_s22 = scalar_lea.hbm %s14276_s10, %s7498_s12 }
 0x65c   : > { %v9614_v55 = vsub.f32 %v9518_v27, %v2289_v58  ;;  %v9620_v30 = vadd.f32 %v9559_v24, %v2571_v34  ;;  %v2361_v27 = vmul.f32 %v2336_v33, %v9442_v47  ;;  %s6720_s5 = sshll.u32 %s6717_s22, 4  ;;  %s6721_s5 = int_to_ptr.hbm [resolvable:$true] %s6720_s5 }
 0x65e   : > { %13933 = vst [vmem:[#allocation40_spill] sm:$0xff] %v9614_v55  ;;  %v2603_v59 = vpack.c.bf16 %v9620_v30, %v9617_v12  ;;  %v2321_v0 = vmul.f32 %v9614_v55, %v9614_v55  ;;  %v2377_v45 = vadd.f32 1e-05, %v2361_v27 }
 0x65f   : > { %13935 = vst [vmem:[#allocation42_spill] sm:$0xff] %v9620_v30 }
 0x660   : > { %2829 = vmatmul.bf16.gmra.mxu1 %v2603_v59  ;;  %2351 = vadd.xlane.f32.xlu2 %v2321_v0  ;;  %8147 = vrsqrt.f32 %v2377_v45  ;;  %vm2453_vm4 = vweird.f32 %v2377_v45 }
 0x661   : > { %2878 = vmatmul.bf16.gmra.mxu2 %v2603_v59  ;;  %2927 = vmatmul.bf16.gmra.mxu0 %v2603_v59 }
 0x662   : > { %2976 = vmatmul.bf16.gmra.mxu3 %v2603_v59 }
 0x666   : > { %v8148_v23 = vpop.eup %8147 }
 0x667   : > { %v2448_v60 = vmul.f32 %v8148_v23, %v2377_v45  ;;  %vm2454_vm3 = vweird.f32 %v8148_v23 }
 0x668   : > { %vm2455_vm5 = vmor %vm2453_vm4, %vm2454_vm3 }
 0x669   : > { %v2449_v61 = vmul.f32 %v8148_v23, %v2448_v60 }
 0x66b   : > { %v2450_v21 = vmul.f32 0.5, %v2449_v61 }
 0x66d   : > { %v2451_v62 = vsub.f32 1.5, %v2450_v21 }
 0x66f   : > { %v2452_v56 = vmul.f32 %v8148_v23, %v2451_v62 }
 0x671   : > { %v2456_v8 = vsel %vm2455_vm5, %v8148_v23, %v2452_v56  ;;  %v9664_v23 = vperm.slane %v2641_v50, 1 }
 0x672   : > { %v2553_v48 = vmul.f32 %v2456_v8, %v9503_v13 }
 0x673   : > { %13940 = vst [vmem:[#allocation46_spill] sm:$0xff] %v9664_v23 }
 0x674   : > { %v2572_v32 = vmul.f32 %v9546_v3, %v2553_v48 }
 0x676   : > { %v9639_v18 = vadd.f32 %v9559_v24, %v2572_v32 }
 0x678   : > { %13937 = vst [vmem:[#allocation44_spill] sm:$0xff] %v9639_v18 }
 0x69b   : > { %v2338_v54 = vpop.xlane.xlu0 %2337 }
 0x69c   : > { %v2362_v7 = vmul.f32 %v2338_v54, %v9442_v47 }
 0x69e   : > { %v2378_v20 = vadd.f32 1e-05, %v2362_v7  ;;  %v9666_v7 = vperm.slane %v2641_v50, 3 }
 0x6a0   : > { %8149 = vrsqrt.f32 %v2378_v20  ;;  %vm2463_vm7 = vweird.f32 %v2378_v20  ;;  %13941 = vst [vmem:[#allocation47_spill] sm:$0xff] %v9666_v7 }
 0x6a3   : > { %v2340_v19 = vpop.xlane.xlu0 %2339 }
 0x6a6   : > { %v8150_v26 = vpop.eup %8149 }
 0x6a7   : > { %v2458_v57 = vmul.f32 %v8150_v26, %v2378_v20  ;;  %vm2464_vm6 = vweird.f32 %v8150_v26 }
 0x6a8   : > { %vm2465_vm8 = vmor %vm2463_vm7, %vm2464_vm6 }
 0x6a9   : > { %v2459_v6 = vmul.f32 %v8150_v26, %v2458_v57 }
 0x6ab   : > { %v2460_v29 = vmul.f32 0.5, %v2459_v6  ;;  %v2267_v44 = vpop.xlane.xlu0 %2266  ;;  %v2342_v17 = vpop.xlane.xlu1 %2341 }
 0x6ac   : > { %v2290_v9 = vmul.f32 %v9442_v47, %v2267_v44  ;;  %v2364_v42 = vmul.f32 %v2342_v17, %v9442_v47 }
 0x6ad   : > { %v2461_v33 = vsub.f32 1.5, %v2460_v29 }
 0x6ae   : > { %v9631_v49 = vsub.f32 %v9551_v53, %v2290_v9  ;;  %v2380_v40 = vadd.f32 1e-05, %v2364_v42 }
 0x6af   : > { %v2462_v31 = vmul.f32 %v8150_v26, %v2461_v33 }
 0x6b0   : > { %13936 = vst [vmem:[#allocation43_spill] sm:$0xff] %v9631_v49  ;;  %v2322_v10 = vmul.f32 %v9631_v49, %v9631_v49  ;;  %vm2483_vm13 = vweird.f32 %v2380_v40 }
 0x6b1   : > { %v2466_v14 = vsel %vm2465_vm8, %v8150_v26, %v2462_v31 }
 0x6b2   : > { %v2554_v38 = vmul.f32 %v2466_v14, %v9525_v5  ;;  %2353 = vadd.xlane.f32.xlu0 %v2322_v10  ;;  %v2363_v5 = vmul.f32 %v2340_v19, %v9442_v47 }
 0x6b3   : > { %v2344_v50 = vpop.xlane.xlu1 %2343 }
 0x6b4   : > { %v2573_v22 = vmul.f32 %v9546_v3, %v2554_v38  ;;  %v2379_v37 = vadd.f32 1e-05, %v2363_v5 }
 0x6b6   : > { %v9642_v13 = vadd.f32 %v9559_v24, %v2573_v22  ;;  %8151 = vrsqrt.f32 %v2379_v37  ;;  %vm2473_vm11 = vweird.f32 %v2379_v37 }
 0x6b7   : > { %8153 = vrsqrt.f32 %v2380_v40 }
 0x6b8   : > { %13938 = vst [vmem:[#allocation45_spill] sm:$0xff] %v9642_v13  ;;  %v2604_v53 = vpack.c.bf16 %v9642_v13, %v9639_v18 }
 0x6ba   : > { %2834 = vmatmul.bf16.gmra.mxu1 %v2604_v53  ;;  %2883 = vmatmul.bf16.gmra.mxu2 %v2604_v53 }
 0x6bb   : > { %2932 = vmatmul.bf16.gmra.mxu0 %v2604_v53  ;;  %2981 = vmatmul.bf16.gmra.mxu3 %v2604_v53 }
 0x6bc   : > { %v8152_v46 = vpop.eup %8151 }
 0x6bd   : > { %v8154_v28 = vpop.eup %8153  ;;  %v2468_v35 = vmul.f32 %v8152_v46, %v2379_v37  ;;  %v2820_v51 = vpop.f32.mrf.mxu1  ;;  %vm2474_vm9 = vweird.f32 %v8152_v46 }
 0x6be   : > { %v2478_v41 = vmul.f32 %v8154_v28, %v2380_v40  ;;  %v9656_v58 = vadd.f32 %v2820_v51, %v9651_v4  ;;  %v2918_v34 = vpop.f32.mrf.mxu0  ;;  %vm2484_vm10 = vweird.f32 %v8154_v28  ;;  %vm2475_vm12 = vmor %vm2473_vm11, %vm2474_vm9 }
 0x6bf   : > { %v2469_v59 = vmul.f32 %v8152_v46, %v2468_v35  ;;  %v9659_v27 = vadd.f32 %v2918_v34, %v9653_v2  ;;  %vm2485_vm14 = vmor %vm2483_vm13, %vm2484_vm10 }
 0x6c0   : > { %v2479_v0 = vmul.f32 %v8154_v28, %v2478_v41  ;;  %v9662_v45 = vmul.f32 0.70710677, %v9656_v58 }
 0x6c1   : > { %v2470_v60 = vmul.f32 0.5, %v2469_v59  ;;  %v9669_v21 = vmul.f32 0.70710677, %v9659_v27 }
 0x6c2   : > { %v2480_v61 = vmul.f32 0.5, %v2479_v0  ;;  %v3135_v62 = vmul.f32 %v9662_v45, %v9662_v45 }
 0x6c3   : > { %v2471_v26 = vsub.f32 1.5, %v2470_v60  ;;  %v3215_v6 = vmul.f32 %v9669_v21, %v9669_v21 }
 0x6c4   : > { %v2869_v54 = vpop.f32.mrf.mxu2  ;;  %v2481_v56 = vsub.f32 1.5, %v2480_v61  ;;  %v9681_v8 = vmin.f32 %v3135_v62, 16.0  ;;  %v2346_v62 = vpop.xlane.xlu2 %2345 }
 0x6c5   : > { %v2967_v20 = vpop.f32.mrf.mxu3  ;;  %v9674_v19 = vadd.f32 %v2869_v54, %v9664_v23  ;;  %v2472_v44 = vmul.f32 %v8152_v46, %v2471_v26  ;;  %v9689_v48 = vmin.f32 %v3215_v6, 16.0 }
 0x6c6   : > { %v9677_v57 = vadd.f32 %v2967_v20, %v9666_v7  ;;  %v2482_v9 = vmul.f32 %v8154_v28, %v2481_v56  ;;  %v3148_v31 = vmul.f32 3.8918573e-05, %v9681_v8  ;;  %v3137_v59 = vmul.f32 2.1237322e-06, %v9681_v8 }
 0x6c7   : > { %v9684_v29 = vmul.f32 0.70710677, %v9674_v19  ;;  %v2476_v14 = vsel %vm2475_vm12, %v8152_v46, %v2472_v44  ;;  %v3228_v22 = vmul.f32 3.8918573e-05, %v9689_v48  ;;  %v3217_v20 = vmul.f32 2.1237322e-06, %v9689_v48 }
 0x6c8   : > { %v9687_v33 = vmul.f32 0.70710677, %v9677_v57  ;;  %v2486_v38 = vsel %vm2485_vm14, %v8154_v28, %v2482_v9  ;;  %v2555_v53 = vmul.f32 %v2476_v14, %v9532_v11  ;;  %v3149_v5 = vadd.f32 0.001143296, %v3148_v31  ;;  %v2822_v14 = vpop.f32.mrf.mxu1 }
 0x6c9   : > { %v3175_v10 = vmul.f32 %v9684_v29, %v9684_v29  ;;  %v2556_v17 = vmul.f32 %v2486_v38, %v9541_v36  ;;  %v3229_v40 = vadd.f32 0.001143296, %v3228_v22  ;;  %v2365_v36 = vmul.f32 %v2344_v50, %v9442_v47 }
 0x6ca   : > { %v3255_v32 = vmul.f32 %v9687_v33, %v9687_v33  ;;  %v3150_v35 = vmul.f32 %v3149_v5, %v9681_v8  ;;  %v2574_v28 = vmul.f32 %v9546_v3, %v2555_v53  ;;  %v3138_v6 = vadd.f32 0.00028619796, %v3137_v59  ;;  %v2348_v59 = vpop.xlane.xlu0 %2347 }
 0x6cb   : > { %v9699_v42 = vmin.f32 %v3175_v10, 16.0  ;;  %v2575_v41 = vmul.f32 %v9546_v3, %v2556_v17  ;;  %v3230_v34 = vmul.f32 %v3229_v40, %v9689_v48  ;;  %v9720_v56 = vadd.f32 1e-05, %v2365_v36 }
 0x6cc   : > { %v9701_v37 = vmin.f32 %v3255_v32, 16.0  ;;  %v3151_v0 = vadd.f32 0.014752088, %v3150_v35  ;;  %v9715_v61 = vadd.f32 %v9559_v24, %v2574_v28  ;;  %v2366_v31 = vmul.f32 %v2346_v62, %v9442_v47  ;;  %v2920_v32 = vpop.f32.mrf.mxu0 }
 0x6cd   : > { %v3188_v46 = vmul.f32 3.8918573e-05, %v9699_v42  ;;  %v9709_v11 = vadd.f32 %v9559_v24, %v2575_v41  ;;  %v3231_v26 = vadd.f32 0.014752088, %v3230_v34  ;;  %v3218_v10 = vadd.f32 0.00028619796, %v3217_v20 }
 0x6ce   : > { %v3268_v51 = vmul.f32 3.8918573e-05, %v9701_v37  ;;  %13943 = vst [vmem:[#allocation49_spill] sm:$0xff] %v9715_v61  ;;  %v3152_v44 = vmul.f32 %v3151_v0, %v9681_v8  ;;  %8155 = vrsqrt.f32 %v9720_v56  ;;  %v3139_v22 = vmul.f32 %v3138_v6, %v9681_v8 }
 0x6cf   : > { %13942 = vst [vmem:[#allocation48_spill] sm:$0xff] %v9709_v11  ;;  %v3189_v60 = vadd.f32 0.001143296, %v3188_v46  ;;  %v2605_v3 = vpack.c.bf16 %v9709_v11, %v9715_v61  ;;  %v3232_v38 = vmul.f32 %v3231_v26, %v9689_v48  ;;  %v9730_v40 = vadd.f32 %v2822_v14, %v9651_v4 }
 0x6d0   : > { %v3269_v54 = vadd.f32 0.001143296, %v3268_v51  ;;  %v3153_v53 = vadd.f32 0.112945676, %v3152_v44  ;;  %v9732_v50 = vadd.f32 1e-05, %v2366_v31  ;;  %v3219_v35 = vmul.f32 %v3218_v10, %v9689_v48 }
 0x6d1   : > { %v3190_v9 = vmul.f32 %v3189_v60, %v9699_v42  ;;  %2839 = vmatmul.bf16.gmra.mxu1 %v2605_v3  ;;  %2888 = vmatmul.bf16.gmra.mxu2 %v2605_v3  ;;  %v9736_v46 = vadd.f32 %v2920_v32, %v9653_v2  ;;  %v3233_v28 = vadd.f32 0.112945676, %v3232_v38  ;;  %v3140_v41 = vadd.f32 0.0036580483, %v3139_v22 }
 0x6d2   : > { %v3270_v24 = vmul.f32 %v3269_v54, %v9701_v37  ;;  %2937 = vmatmul.bf16.gmra.mxu0 %v2605_v3  ;;  %2986 = vmatmul.bf16.gmra.mxu3 %v2605_v3  ;;  %v3154_v51 = vmul.f32 %v3153_v53, %v9681_v8  ;;  %v3177_v36 = vmul.f32 2.1237322e-06, %v9699_v42  ;;  %v9743_v60 = vmul.f32 0.70710677, %v9730_v40 }
 0x6d3   : > { %v3191_v17 = vadd.f32 0.014752088, %v3190_v9  ;;  %8157 = vrsqrt.f32 %v9732_v50  ;;  %v3220_v20 = vadd.f32 0.0036580483, %v3219_v35  ;;  %v9749_v3 = vmul.f32 0.70710677, %v9736_v46 }
 0x6d4   : > { %v3271_v5 = vadd.f32 0.014752088, %v3270_v24  ;;  %13944 = vst [vmem:[#allocation50_spill] sm:$0xff] %v9743_v60  ;;  %v9745_v54 = vpop.eup %8155  ;;  %v3234_v62 = vmul.f32 %v3233_v28, %v9689_v48  ;;  %v3257_v26 = vmul.f32 2.1237322e-06, %v9701_v37  ;;  %v2367_v6 = vmul.f32 %v2348_v59, %v9442_v47 }
 0x6d5   : > { %v3192_v34 = vmul.f32 %v3191_v17, %v9699_v42  ;;  %13945 = vst [vmem:[#allocation51_spill] sm:$0xff] %v9749_v3  ;;  %v3141_v44 = vmul.f32 %v3140_v41, %v9681_v8  ;;  %v3155_v9 = vadd.f32 0.4994258, %v3154_v51  ;;  %v3178_v24 = vadd.f32 0.00028619796, %v3177_v36 }
 0x6d6   : > { %v3272_v0 = vmul.f32 %v3271_v5, %v9701_v37  ;;  %v2488_v10 = vmul.f32 %v9745_v54, %v9720_v56  ;;  %v3295_v38 = vmul.f32 %v9743_v60, %v9743_v60  ;;  %v3221_v32 = vmul.f32 %v3220_v20, %v9689_v48 }
 0x6d7   : > { %v3193_v31 = vadd.f32 0.112945676, %v3192_v34  ;;  %v3375_v22 = vmul.f32 %v9749_v3, %v9749_v3  ;;  %v3235_v53 = vadd.f32 0.4994258, %v3234_v62  ;;  %v3258_v17 = vadd.f32 0.00028619796, %v3257_v26 }
 0x6d8   : > { %v3273_v14 = vadd.f32 0.112945676, %v3272_v0  ;;  %v9762_v5 = vadd.f32 1e-05, %v2367_v6  ;;  %v3142_v28 = vadd.f32 0.05243302, %v3141_v44  ;;  %v3156_v41 = vmul.f32 %v3155_v9, %v9681_v8  ;;  %v2871_v9 = vpop.f32.mrf.mxu2 }
 0x6d9   : > { %v9764_v35 = vpop.eup %8157  ;;  %v3179_v51 = vmul.f32 %v3178_v24, %v9699_v42  ;;  %v3194_v36 = vmul.f32 %v3193_v31, %v9699_v42  ;;  %v2489_v34 = vmul.f32 %v9745_v54, %v2488_v10  ;;  %v9771_v0 = vmin.f32 %v3295_v38, 16.0 }
 0x6da   : > { %v3274_v59 = vmul.f32 %v3273_v14, %v9701_v37  ;;  %v3222_v20 = vadd.f32 0.05243302, %v3221_v32  ;;  %v9773_v62 = vmin.f32 %v3375_v22, 16.0  ;;  %v2498_v26 = vmul.f32 %v9764_v35, %v9732_v50 }
 0x6db   : > { %v3236_v6 = vmul.f32 %v3235_v53, %v9689_v48  ;;  %v3259_v44 = vmul.f32 %v3258_v17, %v9701_v37  ;;  %8159 = vrsqrt.f32 %v9762_v5  ;;  %v3143_v24 = vmul.f32 %v3142_v28, %v9681_v8 }
 0x6dc   : > { %v9781_v31 = vadd.f32 1.0, %v3156_v41  ;;  %v3180_v10 = vadd.f32 0.0036580483, %v3179_v51  ;;  %v3195_v14 = vadd.f32 0.4994258, %v3194_v36  ;;  %v2490_v38 = vmul.f32 0.5, %v2489_v34 }
 0x6dd   : > { %v3275_v32 = vadd.f32 0.4994258, %v3274_v59  ;;  %v3308_v22 = vmul.f32 3.8918573e-05, %v9771_v0  ;;  %v3223_v11 = vmul.f32 %v3222_v20, %v9689_v48  ;;  %v3388_v61 = vmul.f32 3.8918573e-05, %v9773_v62 }
 0x6de   : > { %v9787_v53 = vadd.f32 %v2871_v9, %v9664_v23  ;;  %v2499_v17 = vmul.f32 %v9764_v35, %v2498_v26  ;;  %v9790_v13 = vadd.f32 1.0, %v3236_v6  ;;  %v3260_v28 = vadd.f32 0.0036580483, %v3259_v44 }
 0x6df   : > { %v3144_v41 = vadd.f32 0.18741608, %v3143_v24  ;;  %8161 = vrcp.f32 %v9781_v31  ;;  %v3181_v51 = vmul.f32 %v3180_v10, %v9699_v42  ;;  %v3196_v36 = vmul.f32 %v3195_v14, %v9699_v42 }
 0x6e0   : > { %13946 = vst [vmem:[#allocation52_spill] sm:$0xff] %v9787_v53  ;;  %v2491_v59 = vsub.f32 1.5, %v2490_v38  ;;  %v3276_v20 = vmul.f32 %v3275_v32, %v9701_v37  ;;  %v3309_v18 = vadd.f32 0.001143296, %v3308_v22  ;;  %v3224_v9 = vadd.f32 0.18741608, %v3223_v11 }
 0x6e1   : > { %v9795_v34 = vpop.eup %8159  ;;  %v3389_v30 = vadd.f32 0.001143296, %v3388_v61  ;;  %v9799_v26 = vmul.f32 0.70710677, %v9787_v53  ;;  %v2500_v6 = vmul.f32 0.5, %v2499_v17  ;;  %8163 = vrcp.f32 %v9790_v13 }
 0x6e2   : > { %v3261_v44 = vmul.f32 %v3260_v28, %v9701_v37  ;;  %v3145_v24 = vmul.f32 %v3144_v41, %v9681_v8  ;;  %v3182_v10 = vadd.f32 0.05243302, %v3181_v51  ;;  %v9804_v14 = vadd.f32 1.0, %v3196_v36 }
 0x6e3   : > { %13947 = vst [vmem:[#allocation53_spill] sm:$0xff] %v9799_v26  ;;  %v2508_v38 = vmul.f32 %v9795_v34, %v9762_v5  ;;  %vm2494_vm15 = vweird.f32 %v9745_v54  ;;  %v9809_v11 = vadd.f32 1.0, %v3276_v20  ;;  %v3310_v61 = vmul.f32 %v3309_v18, %v9771_v0 }
 0x6e4   : > { %v9815_v22 = vmul.f32 %v9745_v54, %v2491_v59  ;;  %v3225_v17 = vmul.f32 %v3224_v9, %v9689_v48  ;;  %v3390_v8 = vmul.f32 %v3389_v30, %v9773_v62  ;;  %v3335_v28 = vmul.f32 %v9799_v26, %v9799_v26 }
 0x6e5   : > { %v9812_v32 = vpop.eup %8161  ;;  %vm2493_vm0 = vweird.f32 %v9720_v56  ;;  %v2501_v41 = vsub.f32 1.5, %v2500_v6  ;;  %v9823_v51 = vmul.f32 0.5, %v9656_v58  ;;  %v3262_v36 = vadd.f32 0.05243302, %v3261_v44 }
 0x6e6   : > { %v3146_v18 = vadd.f32 1.1283791, %v3145_v24  ;;  %v3183_v20 = vmul.f32 %v3182_v10, %v9699_v42  ;;  %8165 = vrcp.f32 %v9804_v14  ;;  %v2509_v59 = vmul.f32 %v9795_v34, %v2508_v38  ;;  %vm9832_vm1 = vmor %vm2493_vm0, %vm2494_vm15 }
 0x6e7   : > { %v9828_v48 = vpop.eup %8163  ;;  %v3159_v58 = vmul.f32 %v9812_v32, %v9781_v31  ;;  %v9839_v56 = vmul.f32 0.5, %v9659_v27  ;;  %8167 = vrcp.f32 %v9809_v11  ;;  %v3311_v9 = vadd.f32 0.014752088, %v3310_v61  ;;  %v2969_v61 = vpop.f32.mrf.mxu3 }
 0x6e8   : > { %v3226_v44 = vadd.f32 1.1283791, %v3225_v17  ;;  %v3391_v24 = vadd.f32 0.014752088, %v3390_v8  ;;  %v9846_v10 = vmin.f32 %v3335_v28, 16.0  ;;  %v9849_v38 = vmul.f32 %v9764_v35, %v2501_v41 }
 0x6e9   : > { %13950 = vst [vmem:[#allocation54_spill] sm:$0xff] %v9839_v56  ;;  %v3169_v12 = vand.u32 2147483648, %v9781_v31  ;;  %v9853_v27 = vmul.f32 0.5, %v9674_v19  ;;  %v3263_v16 = vmul.f32 %v3262_v36, %v9701_v37  ;;  %v9857_v15 = vmul.f32 %v3146_v18, %v9662_v45 }
 0x6ea   : > { %v3239_v17 = vmul.f32 %v9828_v48, %v9790_v13  ;;  %v3184_v8 = vadd.f32 0.18741608, %v3183_v20  ;;  %v2510_v28 = vmul.f32 0.5, %v2509_v59  ;;  %v3160_v6 = vsub.f32 1.0, %v3159_v58 }
 0x6eb   : > { %13951 = vst [vmem:[#allocation55_spill] sm:$0xff] %v9853_v27  ;;  %v3167_v41 = vand.u32 2147483647, %v9781_v31  ;;  %v3297_v1 = vmul.f32 2.1237322e-06, %v9771_v0  ;;  %v3312_v43 = vmul.f32 %v3311_v9, %v9771_v0  ;;  %v9867_v36 = vmul.f32 %v3226_v44, %v9669_v21 }
 0x6ec   : > { %v9864_v19 = vpop.eup %8165  ;;  %v3392_v45 = vmul.f32 %v3391_v24, %v9773_v62  ;;  %v3348_v18 = vmul.f32 3.8918573e-05, %v9846_v10  ;;  %v9872_v49 = vadd.f32 %v2969_v61, %v9666_v7  ;;  %vm3163_vm2 = vweird.f32 %v9781_v31 }
 0x6ed   : > { %v9874_v20 = vpop.eup %8167  ;;  %v3170_v59 = vor.u32 1.1754944e-38, %v3169_v12  ;;  %v3247_v58 = vand.u32 2147483647, %v9790_v13  ;;  %v3249_v9 = vand.u32 2147483648, %v9790_v13  ;;  %v3264_v55 = vadd.f32 0.18741608, %v3263_v16 }
 0x6ee   : > { %13952 = vst [vmem:[#allocation56_spill] sm:$0xff] %v9872_v49  ;;  %v3240_v26 = vsub.f32 1.0, %v3239_v17  ;;  %v3185_v21 = vmul.f32 %v3184_v8, %v9699_v42  ;;  %v2511_v44 = vsub.f32 1.5, %v2510_v28  ;;  %v3377_v24 = vmul.f32 2.1237322e-06, %v9773_v62 }
 0x6ef   : > { %v3161_v52 = vmul.f32 %v9812_v32, %v3160_v6  ;;  %v3199_v61 = vmul.f32 %v9864_v19, %v9804_v14  ;;  %v3298_v3 = vadd.f32 0.00028619796, %v3297_v1  ;;  %v3313_v60 = vadd.f32 0.112945676, %v3312_v43 }
 0x6f0   : > { %vm3243_vm3 = vweird.f32 %v9790_v13  ;;  %v3279_v12 = vmul.f32 %v9874_v20, %v9809_v11  ;;  %v3393_v7 = vadd.f32 0.112945676, %v3392_v45  ;;  %v3349_v16 = vadd.f32 0.001143296, %v3348_v18  ;;  %v2825_v18 = vpop.f32.mrf.mxu1 }
 0x6f1   : > { %v9888_v17 = vmul.f32 0.70710677, %v9872_v49  ;;  %vm3164_vm4 = vweird.f32 %v9812_v32  ;;  %vm9891_vm5 = vcmp.eq.f32.partialorder %v3167_v41, 8.507059e+37  ;;  %vm3244_vm6 = vweird.f32 %v9828_v48 }
 0x6f2   : > { %v3250_v1 = vor.u32 1.1754944e-38, %v3249_v9  ;;  %v3265_v43 = vmul.f32 %v3264_v55, %v9701_v37  ;;  %v3241_v6 = vmul.f32 %v9828_v48, %v3240_v26  ;;  %v3186_v8 = vadd.f32 1.1283791, %v3185_v21  ;;  %vm9921_vm8 = vmor %vm3163_vm2, %vm3164_vm4 }
 0x6f3   : > { %13953 = vst [vmem:[#allocation57_spill] sm:$0xff] %v9888_v17  ;;  %v9899_v28 = vmul.f32 %v9795_v34, %v2511_v44  ;;  %v3378_v45 = vadd.f32 0.00028619796, %v3377_v24  ;;  %v3162_v49 = vadd.f32 %v9812_v32, %v3161_v52  ;;  %v3200_v27 = vsub.f32 1.0, %v3199_v61  ;;  %vm9943_vm11 = vmor %vm3243_vm3, %vm3244_vm6 }
 0x6f4   : > { %v3299_v41 = vmul.f32 %v3298_v3, %v9771_v0  ;;  %v3314_v53 = vmul.f32 %v3313_v60, %v9771_v0  ;;  %v3280_v56 = vsub.f32 1.0, %v3279_v12  ;;  %v3394_v9 = vmul.f32 %v3393_v7, %v9773_v62 }
 0x6f5   : > { %v3350_v55 = vmul.f32 %v3349_v16, %v9846_v10  ;;  %v3415_v37 = vmul.f32 %v9888_v17, %v9888_v17  ;;  %vm9908_vm7 = vcmp.eq.f32.partialorder %v3247_v58, 8.507059e+37  ;;  %v3207_v21 = vand.u32 2147483647, %v9804_v14 }
 0x6f6   : > { %v3209_v52 = vand.u32 2147483648, %v9804_v14  ;;  %v3266_v44 = vadd.f32 1.1283791, %v3265_v43  ;;  %v9915_v3 = vadd.f32 %v2825_v18, %v9651_v4  ;;  %v3242_v60 = vadd.f32 %v9828_v48, %v3241_v6 }
 0x6f7   : > { %v9927_v58 = vmul.f32 %v3186_v8, %v9684_v29  ;;  %vm3203_vm9 = vweird.f32 %v9804_v14  ;;  %v3379_v24 = vmul.f32 %v3378_v45, %v9773_v62  ;;  %v3166_v61 = vsel %vm9921_vm8, %v9812_v32, %v3162_v49 }
 0x6f8   : > { %v3201_v12 = vmul.f32 %v9864_v19, %v3200_v27  ;;  %v3300_v31 = vadd.f32 0.0036580483, %v3299_v41  ;;  %v3315_v16 = vadd.f32 0.4994258, %v3314_v53  ;;  %v3281_v43 = vmul.f32 %v9874_v20, %v3280_v56 }
 0x6f9   : > { %v3395_v18 = vadd.f32 0.4994258, %v3394_v9  ;;  %v3351_v17 = vadd.f32 0.014752088, %v3350_v55  ;;  %v9936_v6 = vmin.f32 %v3415_v37, 16.0  ;;  %vm2504_vm10 = vweird.f32 %v9764_v35  ;;  %v2350_v9 = vpop.xlane.xlu1 %2349 }
 0x6fa   : > { %vm9947_vm12 = vcmp.eq.f32.partialorder %v3207_v21, 8.507059e+37  ;;  %v3210_v53 = vor.u32 1.1754944e-38, %v3209_v52  ;;  %v3267_v32 = vmul.f32 %v3266_v44, %v9687_v33  ;;  %v9953_v56 = vmul.f32 0.70710677, %v9915_v3 }
 0x6fb   : > { %v3171_v27 = vsel %vm9891_vm5, %v3170_v59, %v3166_v61  ;;  %v3246_v13 = vsel %vm9943_vm11, %v9828_v48, %v3242_v60  ;;  %vm3204_vm13 = vweird.f32 %v9864_v19  ;;  %v3380_v8 = vadd.f32 0.0036580483, %v3379_v24  ;;  %v2923_v61 = vpop.f32.mrf.mxu0 }
 0x6fc   : > { %vm2503_vm14 = vweird.f32 %v9732_v50  ;;  %v3202_v45 = vadd.f32 %v9864_v19, %v3201_v12  ;;  %vm3284_vm15 = vweird.f32 %v9874_v20  ;;  %v3301_v33 = vmul.f32 %v3300_v31, %v9771_v0  ;;  %vm9982_vm2 = vmor %vm3203_vm9, %vm3204_vm13 }
 0x6fd   : > { %v3316_v41 = vmul.f32 %v3315_v16, %v9771_v0  ;;  %v3282_v59 = vadd.f32 %v9874_v20, %v3281_v43  ;;  %vm2514_vm0 = vweird.f32 %v9795_v34  ;;  %v3396_v48 = vmul.f32 %v3395_v18, %v9773_v62 }
 0x6fe   : > { %v3352_v42 = vmul.f32 %v3351_v17, %v9846_v10  ;;  %v3428_v55 = vmul.f32 3.8918573e-05, %v9936_v6  ;;  %v3172_v37 = vmul.f32 %v3171_v27, %v9857_v15  ;;  %v3287_v21 = vand.u32 2147483647, %v9809_v11 }
 0x6ff   : > { %v3289_v52 = vand.u32 2147483648, %v9809_v11  ;;  %v3455_v44 = vmul.f32 %v9953_v56, %v9953_v56  ;;  %v3251_v7 = vsel %vm9908_vm7, %v3250_v1, %v3246_v13  ;;  %vm3283_vm3 = vweird.f32 %v9809_v11  ;;  %vm10023_vm7 = vmor %vm2503_vm14, %vm2504_vm10 }
 0x700   : > { %vm2513_vm4 = vweird.f32 %v9762_v5  ;;  %v3381_v15 = vmul.f32 %v3380_v8, %v9773_v62  ;;  %v2368_v60 = vmul.f32 %v2350_v9, %v9442_v47  ;;  %v3206_v1 = vsel %vm9982_vm2, %v9864_v19, %v3202_v45  ;;  %vm9995_vm5 = vmor %vm3283_vm3, %vm3284_vm15 }
 0x701   : > { %v3302_v26 = vadd.f32 0.05243302, %v3301_v33  ;;  %v9999_v24 = vadd.f32 1.0, %v3316_v41  ;;  %v3337_v11 = vmul.f32 2.1237322e-06, %v9846_v10  ;;  %v3286_v12 = vsel %vm9995_vm5, %v9874_v20, %v3282_v59  ;;  %vm10054_vm8 = vmor %vm2513_vm4, %vm2514_vm0 }
 0x702   : > { %v10005_v31 = vadd.f32 1.0, %v3396_v48  ;;  %v3353_v16 = vadd.f32 0.112945676, %v3352_v42  ;;  %v3429_v19 = vadd.f32 0.001143296, %v3428_v55  ;;  %v3252_v43 = vmul.f32 %v3251_v7, %v9867_v36 }
 0x703   : > { %vm3288_vm6 = vcmp.eq.f32.partialorder %v3287_v21, 8.507059e+37  ;;  %v3290_v18 = vor.u32 1.1754944e-38, %v3289_v52  ;;  %v10008_v29 = vmin.f32 %v3455_v44, 16.0  ;;  %v3211_v27 = vsel %vm9947_vm12, %v3210_v53, %v3206_v1 }
 0x704   : > { %v3382_v13 = vadd.f32 0.05243302, %v3381_v15  ;;  %v10012_v8 = vadd.f32 1e-05, %v2368_v60  ;;  %v10015_v45 = vadd.f32 %v2923_v61, %v9653_v2  ;;  %v3303_v33 = vmul.f32 %v3302_v26, %v9771_v0 }
 0x705   : > { %v3291_v20 = vsel %vm3288_vm6, %v3290_v18, %v3286_v12  ;;  %8169 = vrcp.f32 %v9999_v24  ;;  %v3338_v41 = vadd.f32 0.00028619796, %v3337_v11  ;;  %v7303_v49 = vclamps-f32 %v3172_v37, 1.0 }
 0x706   : > { %8171 = vrcp.f32 %v10005_v31  ;;  %v3354_v53 = vmul.f32 %v3353_v16, %v9846_v10  ;;  %v3430_v9 = vmul.f32 %v3429_v19, %v9936_v6  ;;  %v2506_v59 = vsel %vm10023_vm7, %v9764_v35, %v9849_v38 }
 0x707   : > { %v7305_v48 = vclamps-f32 %v3252_v43, 1.0  ;;  %v3212_v42 = vmul.f32 %v3211_v27, %v9927_v58  ;;  %v3468_v50 = vmul.f32 3.8918573e-05, %v10008_v29  ;;  %v3292_v55 = vmul.f32 %v3291_v20, %v3267_v32 }
 0x708   : > { %v3383_v21 = vmul.f32 %v3382_v13, %v9773_v62  ;;  %8173 = vrsqrt.f32 %v10012_v8  ;;  %v10039_v37 = vmul.f32 0.70710677, %v10015_v45  ;;  %v13970_v52 = vsel %vm9832_vm1, %v9745_v54, %v9815_v22  ;;  %v13974_v13 = vld [vmem:[#allocation54_spill] sm:$0xff] }
 0x709   : > { %v10047_v35 = vmul.f32 %v13970_v52, %v9565_v39  ;;  %v3010_v38 = vmul.f32 0.5, %v9677_v57  ;;  %v3304_v32 = vadd.f32 0.18741608, %v3303_v33  ;;  %v3339_v44 = vmul.f32 %v3338_v41, %v9846_v10  ;;  %v13977_v52 = vld [vmem:[#allocation55_spill] sm:$0xff] }
 0x70a   : > { %v5695_v7 = vadd.f32 1.0, %v7303_v49  ;;  %v2516_v39 = vsel %vm10054_vm8, %v9795_v34, %v9899_v28  ;;  %v3355_v54 = vadd.f32 0.4994258, %v3354_v53  ;;  %v3431_v22 = vadd.f32 0.014752088, %v3430_v9  ;;  %v2874_v28 = vpop.f32.mrf.mxu2  ;;  %v13976_v49 = vld [vmem:[#allocation52_spill] sm:$0xff] }
 0x70b   : > { %v10063_v57 = vpop.eup %8169  ;;  %v10066_v30 = vmul.f32 %v2506_v59, %v9581_v25  ;;  %v7304_v5 = vclamps-f32 %v3212_v42, 1.0  ;;  %v10069_v17 = vmul.f32 0.5, %v9730_v40  ;;  %v3469_v15 = vadd.f32 0.001143296, %v3468_v50 }
 0x70c   : > { %v10071_v60 = vpop.eup %8171  ;;  %v5697_v1 = vadd.f32 1.0, %v7305_v48  ;;  %v7306_v14 = vclamps-f32 %v3292_v55, 1.0  ;;  %v3384_v26 = vadd.f32 0.18741608, %v3383_v21  ;;  %v3535_v34 = vmul.f32 %v10039_v37, %v10039_v37  ;;  %v2972_v48 = vpop.f32.mrf.mxu3 }
 0x70d   : > { %v10076_v11 = vmul.f32 %v2516_v39, %v9590_v63  ;;  %v3305_v25 = vmul.f32 %v3304_v32, %v9771_v0  ;;  %v10080_v61 = vmul.f32 0.5, %v9736_v46  ;;  %v3340_v40 = vadd.f32 0.0036580483, %v3339_v44 }
 0x70e   : > { %v10082_v12 = vpop.eup %8173  ;;  %v10085_v16 = vmul.f32 %v5695_v7, %v9823_v51  ;;  %v3319_v19 = vmul.f32 %v10063_v57, %v9999_v24  ;;  %v3356_v43 = vmul.f32 %v3355_v54, %v9846_v10  ;;  %v3432_v18 = vmul.f32 %v3431_v22, %v9936_v6  ;;  %v13980_v22 = vld [vmem:[#allocation47_spill] sm:$0xff] }
 0x70f   : > { %v5696_v63 = vadd.f32 1.0, %v7304_v5  ;;  %v3399_v0 = vmul.f32 %v10071_v60, %v10005_v31  ;;  %v3470_v46 = vmul.f32 %v3469_v15, %v10008_v29  ;;  %v10095_v27 = vadd.f32 %v2874_v28, %v9664_v23  ;;  %v13981_v15 = vld [vmem:[#allocation50_spill] sm:$0xff] }
 0x710   : > { %13973 = vst [vmem:[#allocation58_spill] sm:$0xff] %v10085_v16  ;;  %v10098_v20 = vmul.f32 %v5697_v1, %v13974_v13  ;;  %v5698_v51 = vadd.f32 1.0, %v7306_v14  ;;  %v3385_v33 = vmul.f32 %v3384_v26, %v9773_v62  ;;  %v10101_v41 = vmin.f32 %v3535_v34, 16.0 }
 0x711   : > { %v3306_v36 = vadd.f32 1.1283791, %v3305_v25  ;;  %v10104_v53 = vmul.f32 0.5, %v13976_v49  ;;  %v3341_v9 = vmul.f32 %v3340_v40, %v9846_v10  ;;  %v2518_v59 = vmul.f32 %v10082_v12, %v10012_v8 }
 0x712   : > { %13975 = vst [vmem:[#allocation54_spill] sm:$0xff] %v10098_v20  ;;  %v3320_v42 = vsub.f32 1.0, %v3319_v19  ;;  %v10109_v50 = vadd.f32 1.0, %v3356_v43  ;;  %v3417_v55 = vmul.f32 2.1237322e-06, %v9936_v6  ;;  %v10113_v62 = vmul.f32 %v5696_v63, %v13977_v52  ;;  %v13982_v63 = vld [vmem:[#allocation51_spill] sm:$0xff] }
 0x713   : > { %v3433_v21 = vadd.f32 0.112945676, %v3432_v18  ;;  %v3400_v58 = vsub.f32 1.0, %v3399_v0  ;;  %v3471_v32 = vadd.f32 0.014752088, %v3470_v46  ;;  %v10118_v7 = vmul.f32 %v5698_v51, %v3010_v38 }
 0x714   : > { %13978 = vst [vmem:[#allocation52_spill] sm:$0xff] %v10113_v62  ;;  %v10116_v44 = vmul.f32 0.70710677, %v10095_v27  ;;  %v3386_v39 = vadd.f32 1.1283791, %v3385_v33  ;;  %v10122_v5 = vadd.f32 %v2972_v48, %v13980_v22  ;;  %v10125_v1 = vmul.f32 %v3306_v36, %v13981_v15 }
 0x715   : > { %13979 = vst [vmem:[#allocation55_spill] sm:$0xff] %v10118_v7  ;;  %v3548_v54 = vmul.f32 3.8918573e-05, %v10101_v41  ;;  %v3327_v14 = vand.u32 2147483647, %v9999_v24  ;;  %v2519_v34 = vmul.f32 %v10082_v12, %v2518_v59  ;;  %v3321_v28 = vmul.f32 %v10063_v57, %v3320_v42 }
 0x716   : > { %v3342_v26 = vadd.f32 0.05243302, %v3341_v9  ;;  %8175 = vrcp.f32 %v10109_v50  ;;  %v3418_v38 = vadd.f32 0.00028619796, %v3417_v55  ;;  %v3434_v25 = vmul.f32 %v3433_v21, %v9936_v6 }
 0x717   : > { %vm3323_vm1 = vweird.f32 %v9999_v24  ;;  %v3401_v40 = vmul.f32 %v10071_v60, %v3400_v58  ;;  %v3472_v19 = vmul.f32 %v3471_v32, %v10008_v29  ;;  %v3495_v43 = vmul.f32 %v10116_v44, %v10116_v44 }
 0x718   : > { %v3329_v18 = vand.u32 2147483648, %v9999_v24  ;;  %v3387_v0 = vmul.f32 %v3386_v39, %v13982_v63  ;;  %v3549_v46 = vadd.f32 0.001143296, %v3548_v54  ;;  %v10140_v13 = vmul.f32 0.70710677, %v10122_v5 }
 0x719   : > { %vm10142_vm9 = vcmp.eq.f32.partialorder %v3327_v14, 8.507059e+37  ;;  %v3407_v33 = vand.u32 2147483647, %v10005_v31  ;;  %v3343_v36 = vmul.f32 %v3342_v26, %v9846_v10  ;;  %v2520_v49 = vmul.f32 0.5, %v2519_v34 }
 0x71a   : > { %v3322_v9 = vadd.f32 %v10063_v57, %v3321_v28  ;;  %vm3324_vm10 = vweird.f32 %v10063_v57  ;;  %v3419_v59 = vmul.f32 %v3418_v38, %v9936_v6  ;;  %v3435_v48 = vadd.f32 0.4994258, %v3434_v25 }
 0x71b   : > { %v3402_v42 = vadd.f32 %v10071_v60, %v3401_v40  ;;  %vm3404_vm11 = vweird.f32 %v10071_v60  ;;  %v3473_v55 = vadd.f32 0.112945676, %v3472_v19  ;;  %v10153_v21 = vmin.f32 %v3495_v43, 16.0  ;;  %vm10164_vm13 = vmor %vm3323_vm1, %vm3324_vm10 }
 0x71c   : > { %v10155_v52 = vpop.eup %8175  ;;  %v3330_v58 = vor.u32 1.1754944e-38, %v3329_v18  ;;  %v3409_v32 = vand.u32 2147483648, %v10005_v31  ;;  %vm2524_vm12 = vweird.f32 %v10082_v12  ;;  %v3550_v39 = vmul.f32 %v3549_v46, %v10101_v41 }
 0x71d   : > { %v3575_v54 = vmul.f32 %v10140_v13, %v10140_v13  ;;  %vm3403_vm14 = vweird.f32 %v10005_v31  ;;  %vm10169_vm15 = vcmp.eq.f32.partialorder %v3407_v33, 8.507059e+37  ;;  %v2521_v26 = vsub.f32 1.5, %v2520_v49  ;;  %v10197_v33 = vld [vmem:[%s13925_s7] ss:$0 sm:$0xff] }
 0x71e   : > { %v3457_v34 = vmul.f32 2.1237322e-06, %v10008_v29  ;;  %v3326_v28 = vsel %vm10164_vm13, %v10063_v57, %v3322_v9  ;;  %vm10179_vm0 = vmor %vm3403_vm14, %vm3404_vm11  ;;  %v3344_v38 = vadd.f32 0.18741608, %v3343_v36  ;;  %vm2523_vm2 = vweird.f32 %v10012_v8 }
 0x71f   : > { %v3420_v31 = vadd.f32 0.0036580483, %v3419_v59  ;;  %v3436_v25 = vmul.f32 %v3435_v48, %v9936_v6  ;;  %v3406_v40 = vsel %vm10179_vm0, %v10071_v60, %v3402_v42  ;;  %v3359_v19 = vmul.f32 %v10155_v52, %v10109_v50  ;;  %vm10238_vm3 = vmor %vm2523_vm2, %vm2524_vm12 }
 0x720   : > { %v3474_v57 = vmul.f32 %v3473_v55, %v10008_v29  ;;  %v3508_v43 = vmul.f32 3.8918573e-05, %v10153_v21  ;;  %v3410_v18 = vor.u32 1.1754944e-38, %v3409_v32  ;;  %v3551_v63 = vadd.f32 0.014752088, %v3550_v39  ;;  %v2827_v39 = vpop.f32.mrf.mxu1 }
 0x721   : > { %v10192_v46 = vmin.f32 %v3575_v54, 16.0  ;;  %v2576_v36 = vmul.f32 %v10197_v33, %v10047_v35  ;;  %v3331_v60 = vsel %vm10142_vm9, %v3330_v58, %v3326_v28  ;;  %v2522_v49 = vmul.f32 %v10082_v12, %v2521_v26 }
 0x722   : > { %v3458_v9 = vadd.f32 0.00028619796, %v3457_v34  ;;  %v2577_v59 = vmul.f32 %v10197_v33, %v10066_v30  ;;  %v3411_v48 = vsel %vm10169_vm15, %v3410_v18, %v3406_v40  ;;  %v3421_v42 = vmul.f32 %v3420_v31, %v9936_v6  ;;  %v10218_v30 = vld [vmem:[%s13927_s17] ss:$0 sm:$0xff] }
 0x723   : > { %v10209_v55 = vadd.f32 1.0, %v3436_v25  ;;  %v3537_v32 = vmul.f32 2.1237322e-06, %v10101_v41  ;;  %v3345_v35 = vmul.f32 %v3344_v38, %v9846_v10  ;;  %v3360_v51 = vsub.f32 1.0, %v3359_v19 }
 0x724   : > { %v3475_v58 = vadd.f32 0.4994258, %v3474_v57  ;;  %v3509_v54 = vadd.f32 0.001143296, %v3508_v43  ;;  %v3552_v15 = vmul.f32 %v3551_v63, %v10101_v41  ;;  %v3588_v26 = vmul.f32 3.8918573e-05, %v10192_v46 }
 0x725   : > { %v10221_v14 = vadd.f32 %v10218_v30, %v2576_v36  ;;  %v10224_v34 = vadd.f32 %v10218_v30, %v2577_v59  ;;  %v3332_v10 = vmul.f32 %v3331_v60, %v10125_v1  ;;  %v3412_v28 = vmul.f32 %v3411_v48, %v3387_v0  ;;  %v13995_v1 = vld [vmem:[#allocation56_spill] sm:$0xff] }
 0x726   : > { %v3459_v24 = vmul.f32 %v3458_v9, %v10008_v29  ;;  %v10229_v38 = vadd.f32 %v2827_v39, %v9651_v4  ;;  %v3422_v31 = vadd.f32 0.05243302, %v3421_v42  ;;  %8177 = vrcp.f32 %v10209_v55 }
 0x727   : > { %13991 = vst [vmem:[#allocation50_spill] sm:$0xff] %v10221_v14  ;;  %v3538_v25 = vadd.f32 0.00028619796, %v3537_v32  ;;  %v2606_v40 = vpack.c.bf16 %v10224_v34, %v10221_v14  ;;  %v10243_v0 = vmul.f32 0.5, %v13995_v1  ;;  %v10246_v57 = vmul.f32 0.5, %v9915_v3 }
 0x728   : > { %13992 = vst [vmem:[#allocation51_spill] sm:$0xff] %v10224_v34  ;;  %v3476_v43 = vmul.f32 %v3475_v58, %v10008_v29  ;;  %v3510_v18 = vmul.f32 %v3509_v54, %v10153_v21  ;;  %v3361_v63 = vmul.f32 %v10155_v52, %v3360_v51  ;;  %v2526_v8 = vsel %vm10238_vm3, %v10082_v12, %v2522_v49  ;;  %v13996_v51 = vld [vmem:[#allocation39_spill] sm:$0xff] }
 0x729   : > { %v3553_v36 = vadd.f32 0.112945676, %v3552_v15  ;;  %v3589_v60 = vadd.f32 0.001143296, %v3588_v26  ;;  %2844 = vmatmul.bf16.gmra.mxu1 %v2606_v40  ;;  %2893 = vmatmul.bf16.gmra.mxu2 %v2606_v40  ;;  %v7307_v9 = vclamps-f32 %v3332_v10, 1.0  ;;  %v10255_v48 = vmul.f32 0.5, %v10015_v45 }
 0x72a   : > { %v3460_v59 = vadd.f32 0.0036580483, %v3459_v24  ;;  %v10258_v3 = vmul.f32 0.70710677, %v10229_v38  ;;  %2942 = vmatmul.bf16.gmra.mxu0 %v2606_v40  ;;  %2991 = vmatmul.bf16.gmra.mxu3 %v2606_v40  ;;  %v7309_v42 = vclamps-f32 %v3412_v28, 1.0  ;;  %v3423_v39 = vmul.f32 %v3422_v31, %v9936_v6 }
 0x72b   : > { %v3346_v32 = vadd.f32 1.1283791, %v3345_v35  ;;  %v3539_v12 = vmul.f32 %v3538_v25, %v10101_v41  ;;  %v3369_v49 = vand.u32 2147483648, %v10109_v50  ;;  %v10264_v58 = vmul.f32 %v2526_v8, %v13996_v51 }
 0x72c   : > { %v10266_v54 = vadd.f32 1.0, %v3476_v43  ;;  %v3511_v45 = vadd.f32 0.014752088, %v3510_v18  ;;  %v10268_v15 = vpop.eup %8177  ;;  %v3362_v26 = vadd.f32 %v10155_v52, %v3361_v63  ;;  %vm3364_vm4 = vweird.f32 %v10155_v52  ;;  %v2925_v43 = vpop.f32.mrf.mxu0 }
 0x72d   : > { %v3554_v35 = vmul.f32 %v3553_v36, %v10101_v41  ;;  %v3590_v10 = vmul.f32 %v3589_v60, %v10192_v46  ;;  %v5699_v28 = vadd.f32 1.0, %v7307_v9  ;;  %v3367_v24 = vand.u32 2147483647, %v10109_v50 }
 0x72e   : > { %v3461_v31 = vmul.f32 %v3460_v59, %v10008_v29  ;;  %v3615_v25 = vmul.f32 %v10258_v3, %v10258_v3  ;;  %v5701_v40 = vadd.f32 1.0, %v7309_v42  ;;  %vm3363_vm5 = vweird.f32 %v10109_v50 }
 0x72f   : > { %v3424_v19 = vadd.f32 0.18741608, %v3423_v39  ;;  %v3540_v1 = vadd.f32 0.0036580483, %v3539_v12  ;;  %vm10279_vm6 = vmor %vm3363_vm5, %vm3364_vm4  ;;  %v3370_v63 = vor.u32 1.1754944e-38, %v3369_v49  ;;  %v3439_v8 = vmul.f32 %v10268_v15, %v10209_v55 }
 0x730   : > { %8179 = vrcp.f32 %v10266_v54  ;;  %v3512_v36 = vmul.f32 %v3511_v45, %v10153_v21  ;;  %v3366_v60 = vsel %vm10279_vm6, %v10155_v52, %v3362_v26  ;;  %v3555_v50 = vadd.f32 0.4994258, %v3554_v35 }
 0x731   : > { %v3497_v9 = vmul.f32 2.1237322e-06, %v10153_v21  ;;  %v3591_v59 = vadd.f32 0.014752088, %v3590_v10  ;;  %v10292_v42 = vmul.f32 %v5699_v28, %v10069_v17  ;;  %v3462_v39 = vadd.f32 0.05243302, %v3461_v31 }
 0x732   : > { %v10294_v12 = vmin.f32 %v3615_v25, 16.0  ;;  %v10297_v49 = vadd.f32 %v2925_v43, %v9653_v2  ;;  %v10300_v51 = vmul.f32 %v5701_v40, %v10080_v61  ;;  %vm3368_vm7 = vcmp.eq.f32.partialorder %v3367_v24, 8.507059e+37  ;;  %v14001_v28 = vld [vmem:[#allocation53_spill] sm:$0xff] }
 0x733   : > { %13999 = vst [vmem:[#allocation56_spill] sm:$0xff] %v10292_v42  ;;  %v3425_v45 = vmul.f32 %v3424_v19, %v9936_v6  ;;  %v3541_v52 = vmul.f32 %v3540_v1, %v10101_v41  ;;  %v3371_v26 = vsel %vm3368_vm7, %v3370_v63, %v3366_v60  ;;  %v3440_v35 = vsub.f32 1.0, %v3439_v8 }
 0x734   : > { %14000 = vst [vmem:[#allocation39_spill] sm:$0xff] %v10300_v51  ;;  %v3513_v10 = vadd.f32 0.112945676, %v3512_v36  ;;  %v3577_v17 = vmul.f32 2.1237322e-06, %v10192_v46  ;;  %v3347_v31 = vmul.f32 %v3346_v32, %v14001_v28  ;;  %v3556_v25 = vmul.f32 %v3555_v50, %v10101_v41  ;;  %v2876_v50 = vpop.f32.mrf.mxu2 }
 0x735   : > { %v3498_v18 = vadd.f32 0.00028619796, %v3497_v9  ;;  %v3592_v43 = vmul.f32 %v3591_v59, %v10192_v46  ;;  %v3463_v6 = vmul.f32 %v3462_v39, %v10008_v29  ;;  %v3628_v24 = vmul.f32 3.8918573e-05, %v10294_v12 }
 0x736   : > { %v10308_v34 = vpop.eup %8179  ;;  %v10315_v40 = vmul.f32 0.70710677, %v10297_v49  ;;  %v3372_v19 = vmul.f32 %v3371_v26, %v3347_v31  ;;  %v3426_v1 = vadd.f32 1.1283791, %v3425_v45  ;;  %v3542_v63 = vadd.f32 0.05243302, %v3541_v52 }
 0x737   : > { %v3441_v8 = vmul.f32 %v10268_v15, %v3440_v35  ;;  %vm3443_vm8 = vweird.f32 %v10209_v55  ;;  %v3514_v36 = vmul.f32 %v3513_v10, %v10153_v21  ;;  %v3578_v60 = vadd.f32 0.00028619796, %v3577_v17 }
 0x738   : > { %v3479_v9 = vmul.f32 %v10308_v34, %v10266_v54  ;;  %v10324_v59 = vadd.f32 1.0, %v3556_v25  ;;  %v3499_v39 = vmul.f32 %v3498_v18, %v10153_v21  ;;  %v3593_v28 = vadd.f32 0.112945676, %v3592_v43 }
 0x739   : > { %v3447_v26 = vand.u32 2147483647, %v10209_v55  ;;  %v3464_v45 = vadd.f32 0.18741608, %v3463_v6  ;;  %v3629_v52 = vadd.f32 0.001143296, %v3628_v24  ;;  %v3695_v35 = vmul.f32 %v10315_v40, %v10315_v40 }
 0x73a   : > { %v7308_v31 = vclamps-f32 %v3372_v19, 1.0  ;;  %v3449_v10 = vand.u32 2147483648, %v10209_v55  ;;  %v3543_v17 = vmul.f32 %v3542_v63, %v10101_v41  ;;  %v10333_v32 = vadd.f32 %v2876_v50, %v9664_v23 }
 0x73b   : > { %v3442_v25 = vadd.f32 %v10268_v15, %v3441_v8  ;;  %vm3444_vm1 = vweird.f32 %v10268_v15  ;;  %v3515_v18 = vadd.f32 0.4994258, %v3514_v36  ;;  %v3579_v43 = vmul.f32 %v3578_v60, %v10192_v46 }
 0x73c   : > { %v3480_v6 = vsub.f32 1.0, %v3479_v9  ;;  %8181 = vrcp.f32 %v10324_v59  ;;  %v3500_v24 = vadd.f32 0.0036580483, %v3499_v39  ;;  %v3594_v19 = vmul.f32 %v3593_v28, %v10192_v46  ;;  %vm10355_vm10 = vmor %vm3443_vm8, %vm3444_vm1 }
 0x73d   : > { %vm10340_vm9 = vcmp.eq.f32.partialorder %v3447_v26, 8.507059e+37  ;;  %v3465_v63 = vmul.f32 %v3464_v45, %v10008_v29  ;;  %v3630_v50 = vmul.f32 %v3629_v52, %v10294_v12  ;;  %v10346_v8 = vmin.f32 %v3695_v35, 16.0 }
 0x73e   : > { %v5700_v14 = vadd.f32 1.0, %v7308_v31  ;;  %v3450_v36 = vor.u32 1.1754944e-38, %v3449_v10  ;;  %v3544_v20 = vadd.f32 0.18741608, %v3543_v17  ;;  %v10349_v60 = vmul.f32 0.70710677, %v10333_v32  ;;  %v2974_v31 = vpop.f32.mrf.mxu3 }
 0x73f   : > { %v10360_v29 = vmul.f32 0.5, %v10095_v27  ;;  %v3516_v39 = vmul.f32 %v3515_v18, %v10153_v21  ;;  %v10364_v28 = vmul.f32 0.5, %v10122_v5  ;;  %v3580_v26 = vadd.f32 0.0036580483, %v3579_v43  ;;  %v14006_v10 = vld [vmem:[#allocation57_spill] sm:$0xff] }
 0x740   : > { %v3446_v45 = vsel %vm10355_vm10, %v10268_v15, %v3442_v25  ;;  %v3481_v52 = vmul.f32 %v10308_v34, %v3480_v6  ;;  %v3501_v55 = vmul.f32 %v3500_v24, %v10153_v21  ;;  %v3595_v35 = vadd.f32 0.4994258, %v3594_v19  ;;  %v2352_v25 = vpop.xlane.xlu2 %2351 }
 0x741   : > { %v3427_v17 = vmul.f32 %v3426_v1, %v14006_v10  ;;  %v3466_v27 = vadd.f32 1.1283791, %v3465_v63  ;;  %v3631_v51 = vadd.f32 0.014752088, %v3630_v50  ;;  %v3708_v18 = vmul.f32 3.8918573e-05, %v10346_v8 }
 0x742   : > { %v10373_v16 = vpop.eup %8181  ;;  %v10376_v5 = vmul.f32 %v5700_v14, %v10104_v53  ;;  %v3489_v43 = vand.u32 2147483648, %v10266_v54  ;;  %v3545_v15 = vmul.f32 %v3544_v20, %v10101_v41  ;;  %v3655_v6 = vmul.f32 %v10349_v60, %v10349_v60 }
 0x743   : > { %v3451_v1 = vsel %vm10340_vm9, %v3450_v36, %v3446_v45  ;;  %v10384_v24 = vadd.f32 1.0, %v3516_v39  ;;  %v3581_v19 = vmul.f32 %v3580_v26, %v10192_v46  ;;  %v10388_v63 = vadd.f32 %v2974_v31, %v13980_v22 }
 0x744   : > { %14007 = vst [vmem:[#allocation53_spill] sm:$0xff] %v10376_v5  ;;  %v3482_v53 = vadd.f32 %v10308_v34, %v3481_v52  ;;  %vm3484_vm11 = vweird.f32 %v10308_v34  ;;  %v3502_v14 = vadd.f32 0.05243302, %v3501_v55  ;;  %v3596_v20 = vmul.f32 %v3595_v35, %v10192_v46 }
 0x745   : > { %v3559_v41 = vmul.f32 %v10373_v16, %v10324_v59  ;;  %v2369_v61 = vmul.f32 %v2352_v25, %v9442_v47  ;;  %v3632_v50 = vmul.f32 %v3631_v51, %v10294_v12  ;;  %v3709_v36 = vadd.f32 0.001143296, %v3708_v18 }
 0x746   : > { %v3452_v9 = vmul.f32 %v3451_v1, %v3427_v17  ;;  %vm3483_vm12 = vweird.f32 %v10266_v54  ;;  %v3487_v39 = vand.u32 2147483647, %v10266_v54  ;;  %v10399_v26 = vmin.f32 %v3655_v6, 16.0 }
 0x747   : > { %vm10401_vm13 = vmor %vm3483_vm12, %vm3484_vm11  ;;  %v3490_v52 = vor.u32 1.1754944e-38, %v3489_v43  ;;  %8183 = vrcp.f32 %v10384_v24  ;;  %v3582_v55 = vadd.f32 0.05243302, %v3581_v19  ;;  %v10407_v35 = vmul.f32 0.70710677, %v10388_v63 }
 0x748   : > { %v3486_v51 = vsel %vm10401_vm13, %v10308_v34, %v3482_v53  ;;  %v3546_v31 = vadd.f32 1.1283791, %v3545_v15  ;;  %v3503_v54 = vmul.f32 %v3502_v14, %v10153_v21  ;;  %v10413_v10 = vadd.f32 1.0, %v3596_v20 }
 0x749   : > { %v3560_v17 = vsub.f32 1.0, %v3559_v41  ;;  %v10415_v18 = vadd.f32 1e-05, %v2369_v61  ;;  %v3633_v25 = vadd.f32 0.112945676, %v3632_v50  ;;  %v3710_v43 = vmul.f32 %v3709_v36, %v10346_v8 }
 0x74a   : > { %v7310_v6 = vclamps-f32 %v3452_v9, 1.0  ;;  %v3467_v1 = vmul.f32 %v3466_v27, %v9953_v56  ;;  %vm3488_vm14 = vcmp.eq.f32.partialorder %v3487_v39, 8.507059e+37  ;;  %v3668_v19 = vmul.f32 3.8918573e-05, %v10399_v26 }
 0x74b   : > { %v3491_v42 = vsel %vm3488_vm14, %v3490_v52, %v3486_v51  ;;  %v3583_v34 = vmul.f32 %v3582_v55, %v10192_v46  ;;  %v3617_v15 = vmul.f32 2.1237322e-06, %v10294_v12  ;;  %v3735_v53 = vmul.f32 %v10407_v35, %v10407_v35 }
 0x74c   : > { %v10427_v20 = vmul.f32 %v3546_v31, %v10039_v37  ;;  %v3504_v41 = vadd.f32 0.18741608, %v3503_v54  ;;  %8185 = vrcp.f32 %v10413_v10  ;;  %v3561_v27 = vmul.f32 %v10373_v16, %v3560_v17 }
 0x74d   : > { %v10430_v56 = vpop.eup %8183  ;;  %8187 = vrsqrt.f32 %v10415_v18  ;;  %v3634_v61 = vmul.f32 %v3633_v25, %v10294_v12  ;;  %v3711_v50 = vadd.f32 0.014752088, %v3710_v43  ;;  %v5702_v36 = vadd.f32 1.0, %v7310_v6 }
 0x74e   : > { %v3492_v9 = vmul.f32 %v3491_v42, %v3467_v1  ;;  %v3567_v39 = vand.u32 2147483647, %v10324_v59  ;;  %v3669_v45 = vadd.f32 0.001143296, %v3668_v19  ;;  %v3569_v37 = vand.u32 2147483648, %v10324_v59 }
 0x74f   : > { %v3584_v52 = vadd.f32 0.18741608, %v3583_v34  ;;  %v3618_v55 = vadd.f32 0.00028619796, %v3617_v15  ;;  %v10437_v51 = vmin.f32 %v3735_v53, 16.0  ;;  %vm3563_vm15 = vweird.f32 %v10324_v59 }
 0x750   : > { %v3505_v31 = vmul.f32 %v3504_v41, %v10153_v21  ;;  %v3519_v54 = vmul.f32 %v10430_v56, %v10384_v24  ;;  %v3697_v17 = vmul.f32 2.1237322e-06, %v10346_v8  ;;  %v3562_v42 = vadd.f32 %v10373_v16, %v3561_v27 }
 0x751   : > { %vm3564_vm0 = vweird.f32 %v10373_v16  ;;  %v3635_v25 = vadd.f32 0.4994258, %v3634_v61  ;;  %v3712_v43 = vmul.f32 %v3711_v50, %v10346_v8  ;;  %v10450_v1 = vmul.f32 %v5702_v36, %v10243_v0 }
 0x752   : > { %v10447_v6 = vpop.eup %8185  ;;  %v7311_v19 = vclamps-f32 %v3492_v9, 1.0  ;;  %vm10452_vm2 = vcmp.eq.f32.partialorder %v3567_v39, 8.507059e+37  ;;  %v3670_v34 = vmul.f32 %v3669_v45, %v10399_v26  ;;  %v3570_v53 = vor.u32 1.1754944e-38, %v3569_v37  ;;  %vm10464_vm3 = vmor %vm3563_vm15, %vm3564_vm0  ;;  %v2830_v45 = vpop.f32.mrf.mxu1 }
 0x753   : > { %14010 = vst [vmem:[#allocation57_spill] sm:$0xff] %v10450_v1  ;;  %v10457_v15 = vpop.eup %8187  ;;  %v3585_v41 = vmul.f32 %v3584_v52, %v10192_v46  ;;  %v3619_v27 = vmul.f32 %v3618_v55, %v10294_v12  ;;  %v3748_v61 = vmul.f32 3.8918573e-05, %v10437_v51  ;;  %v3506_v50 = vadd.f32 1.1283791, %v3505_v31 }
 0x754   : > { %v3520_v36 = vsub.f32 1.0, %v3519_v54  ;;  %v10469_v9 = vmul.f32 0.5, %v10229_v38  ;;  %v3698_v39 = vadd.f32 0.00028619796, %v3697_v17  ;;  %v3566_v46 = vsel %vm10464_vm3, %v10373_v16, %v3562_v42 }
 0x755   : > { %v3599_v37 = vmul.f32 %v10447_v6, %v10413_v10  ;;  %v3636_v59 = vmul.f32 %v3635_v25, %v10294_v12  ;;  %v3713_v52 = vadd.f32 0.112945676, %v3712_v43  ;;  %v10479_v31 = vadd.f32 1.0, %v7311_v19 }
 0x756   : > { %v2528_v38 = vmul.f32 %v10457_v15, %v10415_v18  ;;  %v3671_v54 = vadd.f32 0.014752088, %v3670_v34  ;;  %v3586_v17 = vadd.f32 1.1283791, %v3585_v41  ;;  %v3620_v14 = vadd.f32 0.0036580483, %v3619_v27 }
 0x757   : > { %v3749_v62 = vadd.f32 0.001143296, %v3748_v61  ;;  %v10484_v16 = vadd.f32 %v2830_v45, %v9651_v4  ;;  %v3571_v42 = vsel %vm10452_vm2, %v3570_v53, %v3566_v46  ;;  %v10489_v25 = vmul.f32 %v3506_v50, %v10116_v44 }
 0x758   : > { %v3521_v43 = vmul.f32 %v10430_v56, %v3520_v36  ;;  %v3699_v19 = vmul.f32 %v3698_v39, %v10346_v8  ;;  %v3600_v0 = vsub.f32 1.0, %v3599_v37  ;;  %v10493_v55 = vadd.f32 1.0, %v3636_v59 }
 0x759   : > { %v3714_v34 = vmul.f32 %v3713_v52, %v10346_v8  ;;  %v3657_v41 = vmul.f32 2.1237322e-06, %v10399_v26  ;;  %vm3523_vm4 = vweird.f32 %v10384_v24  ;;  %v3527_v27 = vand.u32 2147483647, %v10384_v24  ;;  %v2928_v52 = vpop.f32.mrf.mxu0 }
 0x75a   : > { %v2529_v21 = vmul.f32 %v10457_v15, %v2528_v38  ;;  %v3672_v44 = vmul.f32 %v3671_v54, %v10399_v26  ;;  %v3572_v53 = vmul.f32 %v3571_v42, %v10427_v20  ;;  %v3621_v61 = vmul.f32 %v3620_v14, %v10294_v12 }
 0x75b   : > { %v3750_v50 = vmul.f32 %v3749_v62, %v10437_v51  ;;  %v10505_v36 = vmul.f32 0.70710677, %v10484_v16  ;;  %v3522_v39 = vadd.f32 %v10430_v56, %v3521_v43  ;;  %vm3524_vm5 = vweird.f32 %v10430_v56 }
 0x75c   : > { %v3529_v45 = vand.u32 2147483648, %v10384_v24  ;;  %v3700_v46 = vadd.f32 0.0036580483, %v3699_v19  ;;  %v3601_v37 = vmul.f32 %v10447_v6, %v3600_v0  ;;  %8189 = vrcp.f32 %v10493_v55  ;;  %vm10524_vm8 = vmor %vm3523_vm4, %vm3524_vm5 }
 0x75d   : > { %v3715_v59 = vadd.f32 0.4994258, %v3714_v34  ;;  %v3658_v20 = vadd.f32 0.00028619796, %v3657_v41  ;;  %vm10512_vm6 = vcmp.eq.f32.partialorder %v3527_v27, 8.507059e+37  ;;  %v3587_v62 = vmul.f32 %v3586_v17, %v10140_v13 }
 0x75e   : > { %v2530_v38 = vmul.f32 0.5, %v2529_v21  ;;  %v3673_v54 = vadd.f32 0.112945676, %v3672_v44  ;;  %v7313_v42 = vclamps-f32 %v3572_v53, 1.0  ;;  %vm2534_vm7 = vweird.f32 %v10457_v15 }
 0x75f   : > { %v3622_v43 = vadd.f32 0.05243302, %v3621_v61  ;;  %v3751_v19 = vadd.f32 0.014752088, %v3750_v50  ;;  %v3775_v0 = vmul.f32 %v10505_v36, %v10505_v36  ;;  %v3530_v41 = vor.u32 1.1754944e-38, %v3529_v45  ;;  %v2879_v45 = vpop.f32.mrf.mxu2 }
 0x760   : > { %vm3604_vm1 = vweird.f32 %v10447_v6  ;;  %v3701_v13 = vmul.f32 %v3700_v46, %v10346_v8  ;;  %v10531_v17 = vadd.f32 %v2928_v52, %v9653_v2  ;;  %v3526_v27 = vsel %vm10524_vm8, %v10430_v56, %v3522_v39 }
 0x761   : > { %v3602_v21 = vadd.f32 %v10447_v6, %v3601_v37  ;;  %vm2533_vm9 = vweird.f32 %v10415_v18  ;;  %v3716_v24 = vmul.f32 %v3715_v59, %v10346_v8  ;;  %v3659_v44 = vmul.f32 %v3658_v20, %v10399_v26 }
 0x762   : > { %vm3603_vm10 = vweird.f32 %v10413_v10  ;;  %v3607_v53 = vand.u32 2147483647, %v10413_v10  ;;  %v3609_v61 = vand.u32 2147483648, %v10413_v10  ;;  %v3674_v50 = vmul.f32 %v3673_v54, %v10399_v26  ;;  %v10544_v46 = vpop.eup %8189  ;;  %vm10591_vm13 = vmor %vm2533_vm9, %vm2534_vm7 }
 0x763   : > { %v2531_v56 = vsub.f32 1.5, %v2530_v38  ;;  %v3623_v39 = vmul.f32 %v3622_v43, %v10294_v12  ;;  %v3752_v37 = vmul.f32 %v3751_v19, %v10437_v51  ;;  %v10548_v52 = vmin.f32 %v3775_v0, 16.0  ;;  %vm10554_vm11 = vmor %vm3603_vm10, %vm3604_vm1 }
 0x764   : > { %v5705_v59 = vadd.f32 1.0, %v7313_v42  ;;  %v3531_v20 = vsel %vm10512_vm6, %v3530_v41, %v3526_v27  ;;  %v3702_v54 = vadd.f32 0.05243302, %v3701_v13  ;;  %v10559_v34 = vmul.f32 0.70710677, %v10531_v17 }
 0x765   : > { %v3606_v38 = vsel %vm10554_vm11, %v10447_v6, %v3602_v21  ;;  %v10564_v43 = vadd.f32 1.0, %v3716_v24  ;;  %v3660_v42 = vadd.f32 0.0036580483, %v3659_v44  ;;  %v10567_v14 = vadd.f32 %v2879_v45, %v9664_v23 }
 0x766   : > { %vm3608_vm12 = vcmp.eq.f32.partialorder %v3607_v53, 8.507059e+37  ;;  %v3610_v19 = vor.u32 1.1754944e-38, %v3609_v61  ;;  %v3639_v0 = vmul.f32 %v10544_v46, %v10493_v55  ;;  %v3675_v41 = vadd.f32 0.4994258, %v3674_v50 }
 0x767   : > { %v2532_v13 = vmul.f32 %v10457_v15, %v2531_v56  ;;  %v3624_v27 = vadd.f32 0.18741608, %v3623_v39  ;;  %v3753_v7 = vadd.f32 0.112945676, %v3752_v37  ;;  %v3788_v1 = vmul.f32 3.8918573e-05, %v10548_v52 }
 0x768   : > { %v3532_v6 = vmul.f32 %v3531_v20, %v10489_v25  ;;  %v3611_v21 = vsel %vm3608_vm12, %v3610_v19, %v3606_v38  ;;  %v3703_v24 = vmul.f32 %v3702_v54, %v10346_v8  ;;  %v3855_v44 = vmul.f32 %v10559_v34, %v10559_v34 }
 0x769   : > { %8191 = vrcp.f32 %v10564_v43  ;;  %v3661_v53 = vmul.f32 %v3660_v42, %v10399_v26  ;;  %v3737_v61 = vmul.f32 2.1237322e-06, %v10437_v51  ;;  %v10581_v50 = vmul.f32 0.70710677, %v10567_v14 }
 0x76a   : > { %v10585_v45 = vmul.f32 %v10479_v31, %v10246_v57  ;;  %v3640_v56 = vsub.f32 1.0, %v3639_v0  ;;  %v10596_v39 = vmul.f32 0.5, %v10297_v49  ;;  %v3676_v37 = vmul.f32 %v3675_v41, %v10399_v26  ;;  %v14025_v41 = vld [vmem:[#allocation40_spill] sm:$0xff] }
 0x76b   : > { %v3612_v20 = vmul.f32 %v3611_v21, %v3587_v62  ;;  %v2536_v57 = vsel %vm10591_vm13, %v10457_v15, %v2532_v13  ;;  %v3754_v31 = vmul.f32 %v3753_v7, %v10437_v51  ;;  %v3789_v10 = vadd.f32 0.001143296, %v3788_v1 }
 0x76c   : > { %14021 = vst [vmem:[#allocation59_spill] sm:$0xff] %v10585_v45  ;;  %v7312_v54 = vclamps-f32 %v3532_v6, 1.0  ;;  %v3625_v18 = vmul.f32 %v3624_v27, %v10294_v12  ;;  %v3704_v38 = vadd.f32 0.18741608, %v3703_v24  ;;  %v10604_v42 = vmin.f32 %v3855_v44, 16.0 }
 0x76d   : > { %v10607_v19 = vmul.f32 %v5705_v59, %v10255_v48  ;;  %v3662_v49 = vadd.f32 0.05243302, %v3661_v53  ;;  %v3738_v0 = vadd.f32 0.00028619796, %v3737_v61  ;;  %v3815_v62 = vmul.f32 %v10581_v50, %v10581_v50 }
 0x76e   : > { %v10612_v21 = vmul.f32 %v2536_v57, %v14025_v41  ;;  %v3641_v7 = vmul.f32 %v10544_v46, %v3640_v56  ;;  %v10616_v1 = vmul.f32 0.5, %v10333_v32  ;;  %v10618_v12 = vadd.f32 1.0, %v3676_v37 }
 0x76f   : > { %14024 = vst [vmem:[#allocation60_spill] sm:$0xff] %v10607_v19  ;;  %v10620_v15 = vpop.eup %8191  ;;  %v7314_v13 = vclamps-f32 %v3612_v20, 1.0  ;;  %v10623_v48 = vmul.f32 0.5, %v10388_v63  ;;  %v3755_v59 = vadd.f32 0.4994258, %v3754_v31  ;;  %v3790_v27 = vmul.f32 %v3789_v10, %v10548_v52 }
 0x770   : > { %v5704_v6 = vadd.f32 1.0, %v7312_v54  ;;  %v3626_v24 = vadd.f32 1.1283791, %v3625_v18  ;;  %v3705_v44 = vmul.f32 %v3704_v38, %v10346_v8  ;;  %v3868_v53 = vmul.f32 3.8918573e-05, %v10604_v42 }
 0x771   : > { %v3647_v32 = vand.u32 2147483647, %v10493_v55  ;;  %v3663_v61 = vmul.f32 %v3662_v49, %v10399_v26  ;;  %v3739_v25 = vmul.f32 %v3738_v0, %v10437_v51  ;;  %v10631_v56 = vmin.f32 %v3815_v62, 16.0 }
 0x772   : > { %v3642_v63 = vadd.f32 %v10544_v46, %v3641_v7  ;;  %vm3644_vm14 = vweird.f32 %v10544_v46  ;;  %v3719_v37 = vmul.f32 %v10620_v15, %v10564_v43  ;;  %8193 = vrcp.f32 %v10618_v12 }
 0x773   : > { %v5706_v8 = vadd.f32 1.0, %v7314_v13  ;;  %v3649_v20 = vand.u32 2147483648, %v10493_v55  ;;  %v3756_v57 = vmul.f32 %v3755_v59, %v10437_v51  ;;  %v3791_v31 = vadd.f32 0.014752088, %v3790_v27 }
 0x774   : > { %v3627_v10 = vmul.f32 %v3626_v24, %v10258_v3  ;;  %vm3643_vm15 = vweird.f32 %v10493_v55  ;;  %v3706_v54 = vadd.f32 1.1283791, %v3705_v44  ;;  %v3869_v18 = vadd.f32 0.001143296, %v3868_v53 }
 0x775   : > { %v10643_v38 = vmul.f32 %v5704_v6, %v10360_v29  ;;  %vm10645_vm0 = vmor %vm3643_vm15, %vm3644_vm14  ;;  %v3664_v0 = vadd.f32 0.18741608, %v3663_v61  ;;  %v3740_v62 = vadd.f32 0.0036580483, %v3739_v25  ;;  %v3828_v41 = vmul.f32 3.8918573e-05, %v10631_v56 }
 0x776   : > { %v3646_v7 = vsel %vm10645_vm0, %v10544_v46, %v3642_v63  ;;  %vm3648_vm2 = vcmp.eq.f32.partialorder %v3647_v32, 8.507059e+37  ;;  %v3720_v3 = vsub.f32 1.0, %v3719_v37  ;;  %v3777_v55 = vmul.f32 2.1237322e-06, %v10548_v52  ;;  %v2977_v32 = vpop.f32.mrf.mxu3  ;;  %v2832_v37 = vpop.f32.mrf.mxu1 }
 0x777   : > { %14026 = vst [vmem:[#allocation40_spill] sm:$0xff] %v10643_v38  ;;  %v10655_v13 = vmul.f32 %v5706_v8, %v10364_v28  ;;  %v3650_v29 = vor.u32 1.1754944e-38, %v3649_v20  ;;  %v10657_v59 = vadd.f32 1.0, %v3756_v57  ;;  %v3792_v27 = vmul.f32 %v3791_v31, %v10548_v52  ;;  %v7621_v38 = vld [vmem:[#allocation16 + $0xb8] sm:$0xff] }
 0x778   : > { %v10660_v6 = vpop.eup %8193  ;;  %v10663_v24 = vmul.f32 %v3706_v54, %v10315_v40  ;;  %v3729_v44 = vand.u32 2147483648, %v10564_v43  ;;  %v10667_v46 = vmul.f32 0.5, %v10484_v16  ;;  %v3870_v53 = vmul.f32 %v3869_v18, %v10604_v42  ;;  %6213 = vmatpush.bf16.msrb.mxu0 %v7621_v38 }
 0x779   : > { %14029 = vst [vmem:[#allocation61_spill] sm:$0xff] %v10655_v13  ;;  %v3651_v28 = vsel %vm3648_vm2, %v3650_v29, %v3646_v7  ;;  %v3665_v61 = vmul.f32 %v3664_v0, %v10399_v26  ;;  %v3741_v25 = vmul.f32 %v3740_v62, %v10437_v51  ;;  %v3829_v63 = vadd.f32 0.001143296, %v3828_v41 }
 0x77a   : > { %v3721_v8 = vmul.f32 %v10620_v15, %v3720_v3  ;;  %vm3723_vm3 = vweird.f32 %v10564_v43  ;;  %v3727_v40 = vand.u32 2147483647, %v10564_v43  ;;  %v3778_v20 = vadd.f32 0.00028619796, %v3777_v55 }
 0x77b   : > { %v3679_v16 = vmul.f32 %v10660_v6, %v10618_v12  ;;  %8195 = vrcp.f32 %v10657_v59  ;;  %v3793_v57 = vadd.f32 0.112945676, %v3792_v27  ;;  %v10679_v31 = vadd.f32 %v2977_v32, %v13980_v22  ;;  %v2930_v32 = vpop.f32.mrf.mxu0 }
 0x77c   : > { %v3652_v26 = vmul.f32 %v3651_v28, %v3627_v10  ;;  %v3730_v54 = vor.u32 1.1754944e-38, %v3729_v44  ;;  %v3871_v18 = vadd.f32 0.014752088, %v3870_v53  ;;  %v10682_v49 = vadd.f32 %v2832_v37, %v9651_v4 }
 0x77d   : > { %v3666_v0 = vadd.f32 1.1283791, %v3665_v61  ;;  %v3742_v62 = vadd.f32 0.05243302, %v3741_v25  ;;  %v3830_v41 = vmul.f32 %v3829_v63, %v10631_v56  ;;  %v2579_v7 = vmul.f32 %v10197_v33, %v10264_v58 }
 0x77e   : > { %vm3724_vm4 = vweird.f32 %v10620_v15  ;;  %vm10688_vm5 = vcmp.eq.f32.partialorder %v3727_v40, 8.507059e+37  ;;  %v3779_v10 = vmul.f32 %v3778_v20, %v10548_v52  ;;  %v3857_v55 = vmul.f32 2.1237322e-06, %v10604_v42 }
 0x77f   : > { %v2578_v29 = vmul.f32 %v10197_v33, %v10076_v11  ;;  %v3722_v27 = vadd.f32 %v10620_v15, %v3721_v8  ;;  %v3680_v44 = vsub.f32 1.0, %v3679_v16  ;;  %v3794_v53 = vmul.f32 %v3793_v57, %v10548_v52  ;;  %vm10721_vm6 = vmor %vm3723_vm3, %vm3724_vm4 }
 0x780   : > { %v10699_v58 = vmul.f32 0.70710677, %v10679_v31  ;;  %v7315_v28 = vclamps-f32 %v3652_v26, 1.0  ;;  %v10702_v61 = vmul.f32 0.5, %v10531_v17  ;;  %v3872_v25 = vmul.f32 %v3871_v18, %v10604_v42 }
 0x781   : > { %v10706_v63 = vmul.f32 0.70710677, %v10682_v49  ;;  %v10708_v37 = vpop.eup %8195  ;;  %v10711_v11 = vmul.f32 %v3666_v0, %v10349_v60  ;;  %v3743_v33 = vmul.f32 %v3742_v62, %v10437_v51  ;;  %v3831_v8 = vadd.f32 0.014752088, %v3830_v41 }
 0x782   : > { %v10715_v40 = vadd.f32 %v10218_v30, %v2579_v7  ;;  %v3780_v20 = vadd.f32 0.0036580483, %v3779_v10  ;;  %v3858_v16 = vadd.f32 0.00028619796, %v3857_v55  ;;  %v10726_v57 = vadd.f32 %v2930_v32, %v9653_v2 }
 0x783   : > { %v10729_v60 = vadd.f32 %v10218_v30, %v2578_v29  ;;  %v3726_v26 = vsel %vm10721_vm6, %v10620_v15, %v3722_v27  ;;  %v3681_v18 = vmul.f32 %v10660_v6, %v3680_v44  ;;  %v3795_v0 = vadd.f32 0.4994258, %v3794_v53 }
 0x784   : > { %14032 = vst [vmem:[#allocation62_spill] sm:$0xff] %v10715_v40  ;;  %v3895_v43 = vmul.f32 %v10699_v58, %v10699_v58  ;;  %v3759_v62 = vmul.f32 %v10708_v37, %v10657_v59  ;;  %v3873_v41 = vadd.f32 0.112945676, %v3872_v25  ;;  %v3935_v7 = vmul.f32 %v10706_v63, %v10706_v63 }
 0x785   : > { %14035 = vst [vmem:[#allocation63_spill] sm:$0xff] %v10729_v60  ;;  %v2607_v30 = vpack.c.bf16 %v10715_v40, %v10729_v60  ;;  %v5707_v10 = vadd.f32 1.0, %v7315_v28  ;;  %vm3683_vm7 = vweird.f32 %v10618_v12  ;;  %v3744_v15 = vadd.f32 0.18741608, %v3743_v33 }
 0x786   : > { %v3832_v55 = vmul.f32 %v3831_v8, %v10631_v56  ;;  %v3687_v29 = vand.u32 2147483647, %v10618_v12  ;;  %v3781_v27 = vmul.f32 %v3780_v20, %v10548_v52  ;;  %v3859_v44 = vmul.f32 %v3858_v16, %v10604_v42 }
 0x787   : > { %v10749_v53 = vmul.f32 0.70710677, %v10726_v57  ;;  %2849 = vmatmul.bf16.gmra.mxu1 %v2607_v30  ;;  %2898 = vmatmul.bf16.gmra.mxu2 %v2607_v30  ;;  %v3731_v32 = vsel %vm10688_vm5, %v3730_v54, %v3726_v26  ;;  %vm3684_vm8 = vweird.f32 %v10660_v6  ;;  %v3796_v28 = vmul.f32 %v3795_v0, %v10548_v52 }
 0x788   : > { %v10755_v25 = vmin.f32 %v3895_v43, 16.0  ;;  %2947 = vmatmul.bf16.gmra.mxu0 %v2607_v30  ;;  %2996 = vmatmul.bf16.gmra.mxu3 %v2607_v30  ;;  %v3682_v33 = vadd.f32 %v10660_v6, %v3681_v18  ;;  %v3760_v8 = vsub.f32 1.0, %v3759_v62  ;;  %v3874_v17 = vmul.f32 %v3873_v41, %v10604_v42  ;;  %vm10773_vm1 = vmor %vm3683_vm7, %vm3684_vm8 }
 0x789   : > { %v10759_v20 = vmin.f32 %v3935_v7, 16.0  ;;  %v10762_v16 = vmul.f32 %v5707_v10, %v10469_v9  ;;  %v3689_v54 = vand.u32 2147483648, %v10618_v12  ;;  %v3745_v3 = vmul.f32 %v3744_v15, %v10437_v51 }
 0x78a   : > { %v3833_v26 = vadd.f32 0.112945676, %v3832_v55  ;;  %v3732_v0 = vmul.f32 %v3731_v32, %v10663_v24  ;;  %v3782_v43 = vadd.f32 0.05243302, %v3781_v27  ;;  %v3860_v40 = vadd.f32 0.0036580483, %v3859_v44 }
 0x78b   : > { %14036 = vst [vmem:[#allocation64_spill] sm:$0xff] %v10762_v16  ;;  %v4015_v18 = vmul.f32 %v10749_v53, %v10749_v53  ;;  %vm10777_vm9 = vcmp.eq.f32.partialorder %v3687_v29, 8.507059e+37  ;;  %v10781_v51 = vadd.f32 1.0, %v3796_v28  ;;  %v3817_v24 = vmul.f32 2.1237322e-06, %v10631_v56 }
 0x78c   : > { %v3908_v41 = vmul.f32 3.8918573e-05, %v10755_v25  ;;  %v3686_v7 = vsel %vm10773_vm1, %v10660_v6, %v3682_v33  ;;  %v3761_v12 = vmul.f32 %v10708_v37, %v3760_v8  ;;  %v3875_v30 = vadd.f32 0.4994258, %v3874_v17 }
 0x78d   : > { %v3948_v10 = vmul.f32 3.8918573e-05, %v10759_v20  ;;  %v3690_v15 = vor.u32 1.1754944e-38, %v3689_v54  ;;  %v3746_v55 = vadd.f32 1.1283791, %v3745_v3  ;;  %v10791_v29 = vmul.f32 0.5, %v10567_v14  ;;  %v2881_v3 = vpop.f32.mrf.mxu2 }
 0x78e   : > { %v3834_v27 = vmul.f32 %v3833_v26, %v10631_v56  ;;  %v7317_v44 = vclamps-f32 %v3732_v0, 1.0  ;;  %v3783_v32 = vmul.f32 %v3782_v43, %v10548_v52  ;;  %v3861_v28 = vmul.f32 %v3860_v40, %v10604_v42 }
 0x78f   : > { %v10796_v60 = vmin.f32 %v4015_v18, 16.0  ;;  %v3691_v6 = vsel %vm10777_vm9, %v3690_v15, %v3686_v7  ;;  %8197 = vrcp.f32 %v10781_v51  ;;  %v3818_v33 = vadd.f32 0.00028619796, %v3817_v24 }
 0x790   : > { %v3909_v8 = vadd.f32 0.001143296, %v3908_v41  ;;  %v3762_v17 = vadd.f32 %v10708_v37, %v3761_v12  ;;  %vm3764_vm10 = vweird.f32 %v10708_v37  ;;  %v3876_v14 = vmul.f32 %v3875_v30, %v10604_v42 }
 0x791   : > { %v3949_v54 = vadd.f32 0.001143296, %v3948_v10  ;;  %vm3763_vm11 = vweird.f32 %v10657_v59  ;;  %v3767_v40 = vand.u32 2147483647, %v10657_v59  ;;  %v3769_v26 = vand.u32 2147483648, %v10657_v59 }
 0x792   : > { %v3835_v0 = vadd.f32 0.4994258, %v3834_v27  ;;  %v3692_v43 = vmul.f32 %v3691_v6, %v10711_v11  ;;  %v3784_v18 = vadd.f32 0.18741608, %v3783_v32  ;;  %v3862_v62 = vadd.f32 0.05243302, %v3861_v28  ;;  %vm10810_vm12 = vmor %vm3763_vm11, %vm3764_vm10 }
 0x793   : > { %v4028_v9 = vmul.f32 3.8918573e-05, %v10796_v60  ;;  %v3747_v24 = vmul.f32 %v3746_v55, %v10407_v35  ;;  %v3819_v7 = vmul.f32 %v3818_v33, %v10631_v56  ;;  %v3910_v12 = vmul.f32 %v3909_v8, %v10755_v25 }
 0x794   : > { %v10817_v30 = vadd.f32 %v2881_v3, %v9664_v23  ;;  %v5709_v59 = vadd.f32 1.0, %v7317_v44  ;;  %v3766_v11 = vsel %vm10810_vm12, %v10708_v37, %v3762_v17  ;;  %v10822_v10 = vadd.f32 1.0, %v3876_v14 }
 0x795   : > { %v3950_v35 = vmul.f32 %v3949_v54, %v10759_v20  ;;  %v10825_v15 = vpop.eup %8197  ;;  %vm3768_vm13 = vcmp.eq.f32.partialorder %v3767_v40, 8.507059e+37  ;;  %v3770_v55 = vor.u32 1.1754944e-38, %v3769_v26  ;;  %v3836_v27 = vmul.f32 %v3835_v0, %v10631_v56 }
 0x796   : > { %v3897_v32 = vmul.f32 2.1237322e-06, %v10755_v25  ;;  %v7316_v28 = vclamps-f32 %v3692_v43, 1.0  ;;  %v3785_v6 = vmul.f32 %v3784_v18, %v10548_v52  ;;  %v3863_v44 = vmul.f32 %v3862_v62, %v10604_v42  ;;  %v2979_v18 = vpop.f32.mrf.mxu3 }
 0x797   : > { %v4029_v33 = vadd.f32 0.001143296, %v4028_v9  ;;  %v3771_v8 = vsel %vm3768_vm13, %v3770_v55, %v3766_v11  ;;  %v3820_v37 = vadd.f32 0.0036580483, %v3819_v7  ;;  %v3911_v17 = vadd.f32 0.014752088, %v3910_v12 }
 0x798   : > { %v10832_v14 = vmul.f32 0.70710677, %v10817_v30  ;;  %v10835_v54 = vmul.f32 %v5709_v59, %v10596_v39  ;;  %v3799_v3 = vmul.f32 %v10825_v15, %v10781_v51  ;;  %8199 = vrcp.f32 %v10822_v10 }
 0x799   : > { %v3951_v40 = vadd.f32 0.014752088, %v3950_v35  ;;  %v10840_v26 = vadd.f32 1.0, %v3836_v27  ;;  %v10843_v52 = vmul.f32 0.5, %v10679_v31  ;;  %v3898_v0 = vadd.f32 0.00028619796, %v3897_v32 }
 0x79a   : > { %14043 = vst [vmem:[#allocation65_spill] sm:$0xff] %v10835_v54  ;;  %v3937_v43 = vmul.f32 2.1237322e-06, %v10759_v20  ;;  %v3772_v62 = vmul.f32 %v3771_v8, %v3747_v24  ;;  %v3786_v9 = vadd.f32 1.1283791, %v3785_v6  ;;  %v4030_v39 = vmul.f32 %v4029_v33, %v10796_v60 }
 0x79b   : > { %v3864_v41 = vadd.f32 0.18741608, %v3863_v44  ;;  %v10847_v7 = vadd.f32 1.0, %v7316_v28  ;;  %v3821_v12 = vmul.f32 %v3820_v37, %v10631_v56  ;;  %v3912_v59 = vmul.f32 %v3911_v17, %v10755_v25  ;;  %v7613_v17 = vld [vmem:[#allocation16 + $0x78] sm:$0xff] }
 0x79c   : > { %v3975_v11 = vmul.f32 %v10832_v14, %v10832_v14  ;;  %v3800_v31 = vsub.f32 1.0, %v3799_v3  ;;  %v3807_v35 = vand.u32 2147483647, %v10781_v51  ;;  %v3952_v55 = vmul.f32 %v3951_v40, %v10759_v20  ;;  %v7605_v3 = vld [vmem:[#allocation16 + $0x38] sm:$0xff]  ;;  %6164 = vmatpush.bf16.msrb.mxu2 %v7613_v17 }
 0x79d   : > { %v10856_v24 = vadd.f32 %v2979_v18, %v13980_v22  ;;  %v3809_v27 = vand.u32 2147483648, %v10781_v51  ;;  %8201 = vrcp.f32 %v10840_v26  ;;  %v3899_v32 = vmul.f32 %v3898_v0, %v10755_v25  ;;  %v7629_v40 = vld [vmem:[#allocation16 + $0xf8] sm:$0xff]  ;;  %v2354_v18 = vpop.xlane.xlu0 %2353  ;;  %6115 = vmatpush.bf16.msrb.mxu1 %v7605_v3 }
 0x79e   : > { %v3938_v28 = vadd.f32 0.00028619796, %v3937_v43  ;;  %v10861_v6 = vpop.eup %8199  ;;  %v7318_v44 = vclamps-f32 %v3772_v62, 1.0  ;;  %v10864_v33 = vmul.f32 %v3786_v9, %v10505_v36  ;;  %v3865_v8 = vmul.f32 %v3864_v41, %v10604_v42  ;;  %v7612_v42 = vld [vmem:[#allocation16 + $0x70] sm:$0xff]  ;;  %6262 = vmatpush.bf16.msrb.mxu3 %v7629_v40  ;;  %v2835_v40 = vpop.f32.mrf.mxu1 }
 0x79f   : > { %v4031_v37 = vadd.f32 0.014752088, %v4030_v39  ;;  %v3822_v13 = vadd.f32 0.05243302, %v3821_v12  ;;  %v3913_v54 = vadd.f32 0.112945676, %v3912_v59  ;;  %v2370_v0 = vmul.f32 %v2354_v18, %v9442_v47 }
 0x7a0   : > { %v10867_v19 = vmin.f32 %v3975_v11, 16.0  ;;  %v3801_v43 = vmul.f32 %v10825_v15, %v3800_v31  ;;  %vm3803_vm14 = vweird.f32 %v10781_v51  ;;  %v3953_v36 = vadd.f32 0.112945676, %v3952_v55  ;;  %v7604_v9 = vld [vmem:[#allocation16 + $0x30] sm:$0xff]  ;;  %6165 = vmatpush.bf16.msrb.mxu2 %v7612_v42 }
 0x7a1   : > { %v10873_v62 = vmul.f32 0.70710677, %v10856_v24  ;;  %v3879_v41 = vmul.f32 %v10861_v6, %v10822_v10  ;;  %v3900_v39 = vadd.f32 0.0036580483, %v3899_v32  ;;  %v3939_v12 = vmul.f32 %v3938_v28, %v10759_v20  ;;  %v7628_v11 = vld [vmem:[#allocation16 + $0xf0] sm:$0xff]  ;;  %6116 = vmatpush.bf16.msrb.mxu1 %v7604_v9 }
 0x7a2   : > { %v10878_v59 = vadd.f32 1e-05, %v2370_v0  ;;  %v7620_v31 = vld [vmem:[#allocation16 + $0xb0] sm:$0xff]  ;;  %v10880_v55 = vadd.f32 1.0, %v7318_v44  ;;  %v3810_v18 = vor.u32 1.1754944e-38, %v3809_v27  ;;  %v4032_v17 = vmul.f32 %v4031_v37, %v10796_v60  ;;  %6263 = vmatpush.bf16.msrb.mxu3 %v7628_v11 }
 0x7a3   : > { %v10882_v47 = vadd.f32 1.1283791, %v3865_v8  ;;  %v10885_v3 = vpop.eup %8201  ;;  %vm3804_vm15 = vweird.f32 %v10825_v15  ;;  %vm10888_vm0 = vcmp.eq.f32.partialorder %v3807_v35, 8.507059e+37  ;;  %v3823_v38 = vmul.f32 %v3822_v13, %v10631_v56  ;;  %6214 = vmatpush.bf16.msrb.mxu0 %v7620_v31 }
 0x7a4   : > { %v3914_v28 = vmul.f32 %v3913_v54, %v10755_v25  ;;  %v3988_v44 = vmul.f32 3.8918573e-05, %v10867_v19  ;;  %v3802_v27 = vadd.f32 %v10825_v15, %v3801_v43  ;;  %v3887_v8 = vand.u32 2147483647, %v10822_v10  ;;  %vm10917_vm2 = vmor %vm3803_vm14, %vm3804_vm15 }
 0x7a5   : > { %v3954_v37 = vmul.f32 %v3953_v36, %v10759_v20  ;;  %v4055_v0 = vmul.f32 %v10873_v62, %v10873_v62  ;;  %v3880_v35 = vsub.f32 1.0, %v3879_v41  ;;  %v3901_v16 = vmul.f32 %v3900_v39, %v10755_v25 }
 0x7a6   : > { %v3940_v13 = vadd.f32 0.0036580483, %v3939_v12  ;;  %8203 = vrsqrt.f32 %v10878_v59  ;;  %v3889_v54 = vand.u32 2147483648, %v10822_v10  ;;  %v3839_v43 = vmul.f32 %v10885_v3, %v10840_v26 }
 0x7a7   : > { %v4033_v45 = vadd.f32 0.112945676, %v4032_v17  ;;  %v10906_v36 = vadd.f32 %v2835_v40, %v9651_v4  ;;  %v10910_v42 = vmul.f32 %v10847_v7, %v10616_v1  ;;  %v3915_v9 = vadd.f32 0.4994258, %v3914_v28 }
 0x7a8   : > { %v4017_v41 = vmul.f32 2.1237322e-06, %v10796_v60  ;;  %v3989_v39 = vadd.f32 0.001143296, %v3988_v44  ;;  %v3824_v11 = vadd.f32 0.18741608, %v3823_v38  ;;  %v3806_v1 = vsel %vm10917_vm2, %v10825_v15, %v3802_v27 }
 0x7a9   : > { %14046 = vst [vmem:[#allocation66_spill] sm:$0xff] %v10910_v42  ;;  %v10922_v31 = vmul.f32 0.5, %v10682_v49  ;;  %v3955_v17 = vadd.f32 0.4994258, %v3954_v37  ;;  %v10924_v40 = vmin.f32 %v4055_v0, 16.0  ;;  %v3881_v7 = vmul.f32 %v10861_v6, %v3880_v35 }
 0x7aa   : > { %v3902_v28 = vadd.f32 0.05243302, %v3901_v16  ;;  %v3941_v51 = vmul.f32 %v3940_v13, %v10759_v20  ;;  %vm3883_vm3 = vweird.f32 %v10822_v10  ;;  %v3840_v44 = vsub.f32 1.0, %v3839_v43 }
 0x7ab   : > { %v4034_v38 = vmul.f32 %v4033_v45, %v10796_v60  ;;  %v10934_v49 = vmul.f32 0.70710677, %v10906_v36  ;;  %vm10938_vm4 = vcmp.eq.f32.partialorder %v3887_v8, 8.507059e+37  ;;  %v3890_v15 = vor.u32 1.1754944e-38, %v3889_v54 }
 0x7ac   : > { %v10936_v37 = vpop.eup %8203  ;;  %v3916_v27 = vmul.f32 %v3915_v9, %v10755_v25  ;;  %v4018_v16 = vadd.f32 0.00028619796, %v4017_v41  ;;  %v3990_v35 = vmul.f32 %v3989_v39, %v10867_v19  ;;  %v3811_v13 = vsel %vm10888_vm0, %v3810_v18, %v3806_v1 }
 0x7ad   : > { %v3825_v45 = vmul.f32 %v3824_v11, %v10631_v56  ;;  %v3956_v43 = vmul.f32 %v3955_v17, %v10759_v20  ;;  %v4068_v12 = vmul.f32 3.8918573e-05, %v10924_v40  ;;  %v3882_v8 = vadd.f32 %v10861_v6, %v3881_v7 }
 0x7ae   : > { %vm3884_vm5 = vweird.f32 %v10861_v6  ;;  %v3903_v54 = vmul.f32 %v3902_v28, %v10755_v25  ;;  %v3942_v42 = vadd.f32 0.05243302, %v3941_v51  ;;  %v3841_v9 = vmul.f32 %v10885_v3, %v3840_v44 }
 0x7af   : > { %v4035_v41 = vadd.f32 0.4994258, %v4034_v38  ;;  %v2538_v32 = vmul.f32 %v10936_v37, %v10878_v59  ;;  %v4095_v56 = vmul.f32 %v10934_v49, %v10934_v49  ;;  %v3812_v18 = vmul.f32 %v3811_v13, %v10864_v33  ;;  %vm10963_vm6 = vmor %vm3883_vm3, %vm3884_vm5 }
 0x7b0   : > { %v10958_v39 = vadd.f32 1.0, %v3916_v27  ;;  %v4019_v11 = vmul.f32 %v4018_v16, %v10796_v60  ;;  %v3991_v17 = vadd.f32 0.014752088, %v3990_v35  ;;  %v3826_v7 = vadd.f32 1.1283791, %v3825_v45 }
 0x7b1   : > { %vm3843_vm7 = vweird.f32 %v10840_v26  ;;  %v10968_v28 = vadd.f32 1.0, %v3956_v43  ;;  %v4069_v51 = vadd.f32 0.001143296, %v4068_v12  ;;  %v3886_v33 = vsel %vm10963_vm6, %v10861_v6, %v3882_v8 }
 0x7b2   : > { %vm3844_vm8 = vweird.f32 %v10885_v3  ;;  %v3904_v44 = vadd.f32 0.18741608, %v3903_v54  ;;  %v3943_v38 = vmul.f32 %v3942_v42, %v10759_v20  ;;  %v3842_v10 = vadd.f32 %v10885_v3, %v3841_v9 }
 0x7b3   : > { %v4036_v27 = vmul.f32 %v4035_v41, %v10796_v60  ;;  %v2539_v16 = vmul.f32 %v10936_v37, %v2538_v32  ;;  %v10978_v35 = vmin.f32 %v4095_v56, 16.0  ;;  %v3849_v13 = vand.u32 2147483648, %v10840_v26  ;;  %vm10994_vm1 = vmor %vm3843_vm7, %vm3844_vm8 }
 0x7b4   : > { %8205 = vrcp.f32 %v10958_v39  ;;  %v4020_v45 = vadd.f32 0.0036580483, %v4019_v11  ;;  %v3992_v6 = vmul.f32 %v3991_v17, %v10867_v19  ;;  %v3891_v43 = vsel %vm10938_vm4, %v3890_v15, %v3886_v33  ;;  %v2933_v17 = vpop.f32.mrf.mxu0 }
 0x7b5   : > { %v3847_v42 = vand.u32 2147483647, %v10840_v26  ;;  %8207 = vrcp.f32 %v10968_v28  ;;  %v4070_v12 = vmul.f32 %v4069_v51, %v10924_v40  ;;  %v7319_v8 = vclamps-f32 %v3812_v18, 1.0 }
 0x7b6   : > { %v3867_v54 = vmul.f32 %v10882_v47, %v10559_v34  ;;  %v3905_v0 = vmul.f32 %v3904_v44, %v10755_v25  ;;  %v3944_v15 = vadd.f32 0.18741608, %v3943_v38  ;;  %v3846_v41 = vsel %vm10994_vm1, %v10885_v3, %v3842_v10 }
 0x7b7   : > { %v11002_v32 = vadd.f32 1.0, %v4036_v27  ;;  %v2540_v56 = vmul.f32 0.5, %v2539_v16  ;;  %v4108_v47 = vmul.f32 3.8918573e-05, %v10978_v35  ;;  %v3850_v18 = vor.u32 1.1754944e-38, %v3849_v13 }
 0x7b8   : > { %v3892_v34 = vmul.f32 %v3891_v43, %v3867_v54  ;;  %v4021_v26 = vmul.f32 %v4020_v45, %v10796_v60  ;;  %v3993_v11 = vadd.f32 0.112945676, %v3992_v6  ;;  %v3827_v1 = vmul.f32 %v3826_v7, %v10581_v50  ;;  %v7611_v43 = vld [vmem:[#allocation16 + $0x68] sm:$0xff] }
 0x7b9   : > { %vm3848_vm9 = vcmp.eq.f32.partialorder %v3847_v42, 8.507059e+37  ;;  %v11008_v25 = vmul.f32 0.5, %v10726_v57  ;;  %v4071_v51 = vadd.f32 0.014752088, %v4070_v12  ;;  %v11012_v3 = vadd.f32 1.0, %v7319_v8  ;;  %v7603_v42 = vld [vmem:[#allocation16 + $0x28] sm:$0xff]  ;;  %6166 = vmatpush.bf16.msrb.mxu2 %v7611_v43 }
 0x7ba   : > { %v11010_v33 = vpop.eup %8205  ;;  %v3851_v44 = vsel %vm3848_vm9, %v3850_v18, %v3846_v41  ;;  %v3906_v38 = vadd.f32 1.1283791, %v3905_v0  ;;  %v3945_v10 = vmul.f32 %v3944_v15, %v10759_v20  ;;  %8209 = vrcp.f32 %v11002_v32  ;;  %v7627_v20 = vld [vmem:[#allocation16 + $0xe8] sm:$0xff]  ;;  %6117 = vmatpush.bf16.msrb.mxu1 %v7603_v42 }
 0x7bb   : > { %v11015_v27 = vpop.eup %8207  ;;  %v2541_v16 = vsub.f32 1.5, %v2540_v56  ;;  %v4109_v13 = vadd.f32 0.001143296, %v4108_v47  ;;  %v11019_v50 = vadd.f32 %v2933_v17, %v9653_v2  ;;  %v11023_v57 = vmul.f32 %v10880_v55, %v10623_v48  ;;  %v7619_v0 = vld [vmem:[#allocation16 + $0xa8] sm:$0xff]  ;;  %6264 = vmatpush.bf16.msrb.mxu3 %v7627_v20 }
 0x7bc   : > { %v7321_v7 = vclamps-f32 %v3892_v34, 1.0  ;;  %v4022_v45 = vadd.f32 0.05243302, %v4021_v26  ;;  %v3994_v6 = vmul.f32 %v3993_v11, %v10867_v19  ;;  %v11026_v12 = vmul.f32 %v3851_v44, %v3827_v1  ;;  %v2884_v1 = vpop.f32.mrf.mxu2  ;;  %6215 = vmatpush.bf16.msrb.mxu0 %v7619_v0  ;;  %v7610_v44 = vld [vmem:[#allocation16 + $0x60] sm:$0xff] }
 0x7bd   : > { %14055 = vst [vmem:[#allocation67_spill] sm:$0xff] %v11023_v57  ;;  %v3927_v8 = vand.u32 2147483647, %v10958_v39  ;;  %v3977_v54 = vmul.f32 2.1237322e-06, %v10867_v19  ;;  %v4072_v9 = vmul.f32 %v4071_v51, %v10924_v40  ;;  %v3919_v48 = vmul.f32 %v11010_v33, %v10958_v39  ;;  %v7602_v51 = vld [vmem:[#allocation16 + $0x20] sm:$0xff]  ;;  %6167 = vmatpush.bf16.msrb.mxu2 %v7610_v44 }
 0x7be   : > { %v3929_v55 = vand.u32 2147483648, %v10958_v39  ;;  %v3946_v15 = vadd.f32 1.1283791, %v3945_v10  ;;  %v3959_v41 = vmul.f32 %v11015_v27, %v10968_v28  ;;  %v2542_v56 = vmul.f32 %v10936_v37, %v2541_v16  ;;  %v7618_v10 = vld [vmem:[#allocation16 + $0xa0] sm:$0xff]  ;;  %6118 = vmatpush.bf16.msrb.mxu1 %v7602_v51 }
 0x7bf   : > { %vm2544_vm10 = vweird.f32 %v10936_v37  ;;  %v4110_v47 = vmul.f32 %v4109_v13, %v10978_v35  ;;  %v11040_v34 = vmul.f32 0.70710677, %v11019_v50  ;;  %v11042_v18 = vadd.f32 1.0, %v7321_v7  ;;  %v2982_v7 = vpop.f32.mrf.mxu3 }
 0x7c0   : > { %v11045_v26 = vmul.f32 %v3906_v38, %v10699_v58  ;;  %v4023_v11 = vmul.f32 %v4022_v45, %v10796_v60  ;;  %v3995_v17 = vadd.f32 0.4994258, %v3994_v6  ;;  %v11048_v16 = vpop.eup %8209  ;;  %v3978_v43 = vadd.f32 0.00028619796, %v3977_v54  ;;  %6216 = vmatpush.bf16.msrb.mxu0 %v7618_v10  ;;  %v14059_v6 = vld [vmem:[#allocation43_spill] sm:$0xff] }
 0x7c1   : > { %14056 = vst [vmem:[#allocation68_spill] sm:$0xff] %v11040_v34  ;;  %v4073_v42 = vadd.f32 0.112945676, %v4072_v9  ;;  %vm2543_vm11 = vweird.f32 %v10878_v59  ;;  %v3920_v20 = vsub.f32 1.0, %v3919_v48  ;;  %v11052_v58 = vor.u32 1.1754944e-38, %v3929_v55  ;;  %v7626_v48 = vld [vmem:[#allocation16 + $0xe0] sm:$0xff] }
 0x7c2   : > { %v3960_v38 = vsub.f32 1.0, %v3959_v41  ;;  %v4057_v45 = vmul.f32 2.1237322e-06, %v10924_v40  ;;  %vm11057_vm12 = vmor %vm2543_vm11, %vm2544_vm10  ;;  %v4111_v59 = vadd.f32 0.014752088, %v4110_v47  ;;  %v4175_v9 = vmul.f32 %v11040_v34, %v11040_v34  ;;  %6265 = vmatpush.bf16.msrb.mxu3 %v7626_v48 }
 0x7c3   : > { %v2546_v54 = vsel %vm11057_vm12, %v10936_v37, %v2542_v56  ;;  %v11067_v0 = vadd.f32 %v2884_v1, %v9664_v23  ;;  %vm3923_vm13 = vweird.f32 %v10958_v39  ;;  %v11071_v55 = vmul.f32 %v3946_v15, %v10706_v63 }
 0x7c4   : > { %v4039_v41 = vmul.f32 %v11048_v16, %v11002_v32  ;;  %v3996_v51 = vmul.f32 %v3995_v17, %v10867_v19  ;;  %v11077_v37 = vadd.f32 %v2982_v7, %v13980_v22  ;;  %vm3963_vm14 = vweird.f32 %v10968_v28 }
 0x7c5   : > { %v3967_v56 = vand.u32 2147483647, %v10968_v28  ;;  %v3979_v47 = vmul.f32 %v3978_v43, %v10867_v19  ;;  %v4074_v1 = vmul.f32 %v4073_v42, %v10924_v40  ;;  %v3921_v63 = vmul.f32 %v11010_v33, %v3920_v20 }
 0x7c6   : > { %v3969_v15 = vand.u32 2147483648, %v10968_v28  ;;  %v4058_v44 = vadd.f32 0.00028619796, %v4057_v45  ;;  %v2562_v17 = vmul.f32 %v2546_v54, %v14059_v6  ;;  %v3961_v7 = vmul.f32 %v11015_v27, %v3960_v38 }
 0x7c7   : > { %v4112_v10 = vmul.f32 %v4111_v59, %v10978_v35  ;;  %v11088_v13 = vmin.f32 %v4175_v9, 16.0  ;;  %v11091_v57 = vmul.f32 0.70710677, %v11067_v0  ;;  %vm11093_vm15 = vcmp.eq.f32.partialorder %v3927_v8, 8.507059e+37  ;;  %v8345_v8 = vld [vmem:[%s13925_s7] ss:$0 sm:$0xff] }
 0x7c8   : > { %v4024_v42 = vadd.f32 0.18741608, %v4023_v11  ;;  %v4040_v20 = vsub.f32 1.0, %v4039_v41  ;;  %v11097_v48 = vadd.f32 1.0, %v3996_v51  ;;  %v11100_v45 = vmul.f32 0.70710677, %v11077_v37 }
 0x7c9   : > { %vm3924_vm0 = vweird.f32 %v11010_v33  ;;  %vm11103_vm2 = vcmp.eq.f32.partialorder %v3967_v56, 8.507059e+37  ;;  %v3980_v54 = vadd.f32 0.0036580483, %v3979_v47  ;;  %v4075_v59 = vadd.f32 0.4994258, %v4074_v1 }
 0x7ca   : > { %v2580_v11 = vmul.f32 %v8345_v8, %v10612_v21  ;;  %v3922_v9 = vadd.f32 %v11010_v33, %v3921_v63  ;;  %vm3964_vm3 = vweird.f32 %v11015_v27  ;;  %v4059_v41 = vmul.f32 %v4058_v44, %v10924_v40  ;;  %vm11126_vm4 = vmor %vm3923_vm13, %vm3924_vm0 }
 0x7cb   : > { %v2581_v51 = vmul.f32 %v8345_v8, %v2562_v17  ;;  %v3962_v56 = vadd.f32 %v11015_v27, %v3961_v7  ;;  %v4113_v6 = vadd.f32 0.112945676, %v4112_v10  ;;  %v4188_v5 = vmul.f32 3.8918573e-05, %v11088_v13  ;;  %v8346_v7 = vld [vmem:[%s13927_s17] ss:$0 sm:$0xff]  ;;  %vm11145_vm5 = vmor %vm3963_vm14, %vm3964_vm3 }
 0x7cc   : > { %v4135_v47 = vmul.f32 %v11091_v57, %v11091_v57  ;;  %v3970_v1 = vor.u32 1.1754944e-38, %v3969_v15  ;;  %v4041_v34 = vmul.f32 %v11048_v16, %v4040_v20  ;;  %8211 = vrcp.f32 %v11097_v48 }
 0x7cd   : > { %v4215_v21 = vmul.f32 %v11100_v45, %v11100_v45  ;;  %v4025_v44 = vmul.f32 %v4024_v42, %v10796_v60  ;;  %v3981_v17 = vmul.f32 %v3980_v54, %v10867_v19  ;;  %v4076_v15 = vmul.f32 %v4075_v59, %v10924_v40 }
 0x7ce   : > { %v11136_v10 = vadd.f32 %v8346_v7, %v2580_v11  ;;  %v3926_v39 = vsel %vm11126_vm4, %v11010_v33, %v3922_v9  ;;  %v4047_v42 = vand.u32 2147483647, %v11002_v32  ;;  %v4060_v20 = vadd.f32 0.0036580483, %v4059_v41 }
 0x7cf   : > { %v11150_v54 = vadd.f32 %v8346_v7, %v2581_v51  ;;  %v3966_v59 = vsel %vm11145_vm5, %v11015_v27, %v3962_v56  ;;  %v4114_v8 = vmul.f32 %v4113_v6, %v10978_v35  ;;  %v4189_v33 = vadd.f32 0.001143296, %v4188_v5  ;;  %v7601_v5 = vld [vmem:[#allocation16 + $0x18] sm:$0xff] }
 0x7d0   : > { %14066 = vst [vmem:[#allocation43_spill] sm:$0xff] %v11136_v10  ;;  %v11156_v11 = vmin.f32 %v4135_v47, 16.0  ;;  %v4042_v28 = vadd.f32 %v11048_v16, %v4041_v34  ;;  %vm4044_vm6 = vweird.f32 %v11048_v16  ;;  %v4049_v9 = vand.u32 2147483648, %v11002_v32  ;;  %v7609_v56 = vld [vmem:[#allocation16 + $0x58] sm:$0xff]  ;;  %6119 = vmatpush.bf16.msrb.mxu1 %v7601_v5 }
 0x7d1   : > { %14069 = vst [vmem:[#allocation69_spill] sm:$0xff] %v11150_v54  ;;  %v11161_v63 = vmin.f32 %v4215_v21, 16.0  ;;  %v3931_v41 = vsel %vm11093_vm15, %v11052_v58, %v3926_v39  ;;  %vm4043_vm7 = vweird.f32 %v11002_v32  ;;  %v3982_v27 = vadd.f32 0.05243302, %v3981_v17  ;;  %v7617_v58 = vld [vmem:[#allocation16 + $0x98] sm:$0xff]  ;;  %6168 = vmatpush.bf16.msrb.mxu2 %v7609_v56 }
 0x7d2   : > { %v11167_v51 = vadd.f32 1.0, %v4076_v15  ;;  %v11169_v6 = vpop.eup %8211  ;;  %v3971_v34 = vsel %vm11103_vm2, %v3970_v1, %v3966_v59  ;;  %v4061_v47 = vmul.f32 %v4060_v20, %v10924_v40  ;;  %v4097_v21 = vmul.f32 2.1237322e-06, %v10978_v35  ;;  %vm11179_vm8 = vmor %vm4043_vm7, %vm4044_vm6  ;;  %v7625_v20 = vld [vmem:[#allocation16 + $0xd8] sm:$0xff]  ;;  %6217 = vmatpush.bf16.msrb.mxu0 %v7617_v58  ;;  %v2837_v58 = vpop.f32.mrf.mxu1 }
 0x7d3   : > { %v2608_v43 = vpack.c.bf16 %v11150_v54, %v11136_v10  ;;  %v4026_v7 = vadd.f32 1.1283791, %v4025_v44  ;;  %v4115_v17 = vadd.f32 0.4994258, %v4114_v8  ;;  %v4190_v15 = vmul.f32 %v4189_v33, %v11088_v13  ;;  %6266 = vmatpush.bf16.msrb.mxu3 %v7625_v20 }
 0x7d4   : > { %v4148_v38 = vmul.f32 3.8918573e-05, %v11156_v11  ;;  %v3932_v1 = vmul.f32 %v3931_v41, %v11045_v26  ;;  %v4046_v39 = vsel %vm11179_vm8, %v11048_v16, %v4042_v28  ;;  %v4050_v44 = vor.u32 1.1754944e-38, %v4049_v9 }
 0x7d5   : > { %v4228_v60 = vmul.f32 3.8918573e-05, %v11161_v63  ;;  %2854 = vmatmul.bf16.gmra.mxu1 %v2608_v43  ;;  %2903 = vmatmul.bf16.gmra.mxu2 %v2608_v43  ;;  %v3972_v59 = vmul.f32 %v3971_v34, %v11071_v55  ;;  %v3983_v8 = vmul.f32 %v3982_v27, %v10867_v19  ;;  %v3999_v33 = vmul.f32 %v11169_v6, %v11097_v48 }
 0x7d6   : > { %8213 = vrcp.f32 %v11167_v51  ;;  %2952 = vmatmul.bf16.gmra.mxu0 %v2608_v43  ;;  %3001 = vmatmul.bf16.gmra.mxu3 %v2608_v43  ;;  %v14072_v26 = vclamps-f32 %v11026_v12, 1.0  ;;  %vm4048_vm1 = vcmp.eq.f32.partialorder %v4047_v42, 8.507059e+37  ;;  %v4062_v28 = vadd.f32 0.05243302, %v4061_v47 }
 0x7d7   : > { %v4098_v9 = vadd.f32 0.00028619796, %v4097_v21  ;;  %v4051_v41 = vsel %vm4048_vm1, %v4050_v44, %v4046_v39  ;;  %v4116_v55 = vmul.f32 %v4115_v17, %v10978_v35  ;;  %v4191_v5 = vadd.f32 0.014752088, %v4190_v15 }
 0x7d8   : > { %v5712_v16 = vadd.f32 1.0, %v14072_v26  ;;  %v4149_v27 = vadd.f32 0.001143296, %v4148_v38  ;;  %v11200_v56 = vmul.f32 %v11012_v3, %v10667_v46  ;;  %v7322_v34 = vclamps-f32 %v3932_v1, 1.0 }
 0x7d9   : > { %v4027_v43 = vmul.f32 %v4026_v7, %v10749_v53  ;;  %v4229_v32 = vadd.f32 0.001143296, %v4228_v60  ;;  %v11205_v12 = vmul.f32 %v11042_v18, %v10702_v61  ;;  %v7323_v42 = vclamps-f32 %v3972_v59, 1.0 }
 0x7da   : > { %v3984_v47 = vadd.f32 0.18741608, %v3983_v8  ;;  %v4000_v21 = vsub.f32 1.0, %v3999_v33  ;;  %v11208_v17 = vmul.f32 %v5712_v16, %v10791_v29  ;;  %v4063_v38 = vmul.f32 %v4062_v28, %v10924_v40  ;;  %v2935_v28 = vpop.f32.mrf.mxu0 }
 0x7db   : > { %14073 = vst [vmem:[#allocation70_spill] sm:$0xff] %v11205_v12  ;;  %v4052_v15 = vmul.f32 %v4051_v41, %v4027_v43  ;;  %v4099_v46 = vmul.f32 %v4098_v9, %v10978_v35  ;;  %v11214_v53 = vadd.f32 1.0, %v4116_v55  ;;  %v4177_v7 = vmul.f32 2.1237322e-06, %v11088_v13 }
 0x7dc   : > { %14074 = vst [vmem:[#allocation71_spill] sm:$0xff] %v11208_v17  ;;  %v11212_v3 = vpop.eup %8213  ;;  %v4192_v61 = vmul.f32 %v4191_v5, %v11088_v13  ;;  %v4150_v18 = vmul.f32 %v4149_v27, %v11156_v11  ;;  %v5714_v1 = vadd.f32 1.0, %v7322_v34  ;;  %v11220_v39 = vmul.f32 0.5, %v10817_v30 }
 0x7dd   : > { %v4230_v29 = vmul.f32 %v4229_v32, %v11161_v63  ;;  %v11224_v44 = vadd.f32 %v2837_v58, %v9651_v4  ;;  %v5715_v60 = vadd.f32 1.0, %v7323_v42  ;;  %v3985_v20 = vmul.f32 %v3984_v47, %v10867_v19 }
 0x7de   : > { %v4001_v59 = vmul.f32 %v11169_v6, %v4000_v21  ;;  %v11229_v8 = vmul.f32 0.5, %v10856_v24  ;;  %v7325_v33 = vclamps-f32 %v4052_v15, 1.0  ;;  %v4064_v26 = vadd.f32 0.18741608, %v4063_v38 }
 0x7df   : > { %v4079_v16 = vmul.f32 %v11212_v3, %v11167_v51  ;;  %v4100_v30 = vadd.f32 0.0036580483, %v4099_v46  ;;  %8215 = vrcp.f32 %v11214_v53  ;;  %v4178_v9 = vadd.f32 0.00028619796, %v4177_v7 }
 0x7e0   : > { %v4193_v41 = vadd.f32 0.112945676, %v4192_v61  ;;  %v4151_v55 = vadd.f32 0.014752088, %v4150_v18  ;;  %v11235_v5 = vmul.f32 %v5714_v1, %v10843_v52  ;;  %v4007_v19 = vand.u32 2147483647, %v11097_v48 }
 0x7e1   : > { %v4231_v27 = vadd.f32 0.014752088, %v4230_v29  ;;  %v11239_v24 = vmul.f32 0.70710677, %v11224_v44  ;;  %v4002_v34 = vadd.f32 %v11169_v6, %v4001_v59  ;;  %vm4004_vm9 = vweird.f32 %v11169_v6 }
 0x7e2   : > { %14075 = vst [vmem:[#allocation72_spill] sm:$0xff] %v11235_v5  ;;  %v4009_v43 = vand.u32 2147483648, %v11097_v48  ;;  %v11245_v32 = vadd.f32 %v2935_v28, %v9653_v2  ;;  %v3986_v42 = vadd.f32 1.1283791, %v3985_v20  ;;  %v4080_v47 = vsub.f32 1.0, %v4079_v16 }
 0x7e3   : > { %v4101_v52 = vmul.f32 %v4100_v30, %v10978_v35  ;;  %v4137_v21 = vmul.f32 2.1237322e-06, %v11156_v11  ;;  %vm4003_vm10 = vweird.f32 %v11097_v48  ;;  %v4179_v58 = vmul.f32 %v4178_v9, %v11088_v13 }
 0x7e4   : > { %v4194_v15 = vmul.f32 %v4193_v41, %v11088_v13  ;;  %v4152_v38 = vmul.f32 %v4151_v55, %v11156_v11  ;;  %v11253_v46 = vadd.f32 1.0, %v7325_v33  ;;  %vm11255_vm11 = vmor %vm4003_vm10, %vm4004_vm9  ;;  %v4065_v61 = vmul.f32 %v4064_v26, %v10924_v40 }
 0x7e5   : > { %v4232_v18 = vmul.f32 %v4231_v27, %v11161_v63  ;;  %v4255_v1 = vmul.f32 %v11239_v24, %v11239_v24  ;;  %v11263_v48 = vpop.eup %8215  ;;  %v4006_v29 = vsel %vm11255_vm11, %v11169_v6, %v4002_v34  ;;  %vm11268_vm12 = vcmp.eq.f32.partialorder %v4007_v19, 8.507059e+37 }
 0x7e6   : > { %v4010_v59 = vor.u32 1.1754944e-38, %v4009_v43  ;;  %v11273_v33 = vmul.f32 0.70710677, %v11245_v32  ;;  %v4081_v40 = vmul.f32 %v11212_v3, %v4080_v47  ;;  %v4102_v26 = vadd.f32 0.05243302, %v4101_v52  ;;  %v7600_v43 = vld [vmem:[#allocation16 + $0x10] sm:$0xff] }
 0x7e7   : > { %v4138_v16 = vadd.f32 0.00028619796, %v4137_v21  ;;  %v4217_v30 = vmul.f32 2.1237322e-06, %v11161_v63  ;;  %v11278_v28 = vmul.f32 %v5715_v60, %v10922_v31  ;;  %v4180_v9 = vadd.f32 0.0036580483, %v4179_v58  ;;  %6120 = vmatpush.bf16.msrb.mxu1 %v7600_v43 }
 0x7e8   : > { %v4195_v41 = vadd.f32 0.4994258, %v4194_v15  ;;  %v4153_v6 = vadd.f32 0.112945676, %v4152_v38  ;;  %v3987_v55 = vmul.f32 %v3986_v42, %v10832_v14  ;;  %v4119_v19 = vmul.f32 %v11263_v48, %v11214_v53  ;;  %v7608_v47 = vld [vmem:[#allocation16 + $0x50] sm:$0xff] }
 0x7e9   : > { %14080 = vst [vmem:[#allocation73_spill] sm:$0xff] %v11278_v28  ;;  %v4233_v27 = vadd.f32 0.112945676, %v4232_v18  ;;  %v11283_v34 = vmin.f32 %v4255_v1, 16.0  ;;  %v7616_v52 = vld [vmem:[#allocation16 + $0x90] sm:$0xff]  ;;  %v4011_v21 = vsel %vm11268_vm12, %v4010_v59, %v4006_v29  ;;  %v11288_v31 = vmul.f32 0.5, %v10906_v36  ;;  %v2886_v18 = vpop.f32.mrf.mxu2  ;;  %6169 = vmatpush.bf16.msrb.mxu2 %v7608_v47 }
 0x7ea   : > { %v4066_v7 = vadd.f32 1.1283791, %v4065_v61  ;;  %v4335_v60 = vmul.f32 %v11273_v33, %v11273_v33  ;;  %v7624_v14 = vld [vmem:[#allocation16 + $0xd0] sm:$0xff]  ;;  %v4082_v42 = vadd.f32 %v11212_v3, %v4081_v40  ;;  %v4103_v58 = vmul.f32 %v4102_v26, %v10978_v35  ;;  %6218 = vmatpush.bf16.msrb.mxu0 %v7616_v52 }
 0x7eb   : > { %v4139_v15 = vmul.f32 %v4138_v16, %v11156_v11  ;;  %v4218_v38 = vadd.f32 0.00028619796, %v4217_v30  ;;  %vm4084_vm13 = vweird.f32 %v11212_v3  ;;  %v4181_v61 = vmul.f32 %v4180_v9, %v11088_v13  ;;  %6267 = vmatpush.bf16.msrb.mxu3 %v7624_v14 }
 0x7ec   : > { %v4196_v36 = vmul.f32 %v4195_v41, %v11088_v13  ;;  %v4154_v1 = vmul.f32 %v4153_v6, %v11156_v11  ;;  %v4089_v29 = vand.u32 2147483648, %v11167_v51  ;;  %v4120_v20 = vsub.f32 1.0, %v4119_v19 }
 0x7ed   : > { %v4234_v59 = vmul.f32 %v4233_v27, %v11161_v63  ;;  %v4268_v40 = vmul.f32 3.8918573e-05, %v11283_v34  ;;  %vm4083_vm14 = vweird.f32 %v11167_v51  ;;  %v4087_v26 = vand.u32 2147483647, %v11167_v51 }
 0x7ee   : > { %v11304_v16 = vmin.f32 %v4335_v60, 16.0  ;;  %v11307_v30 = vadd.f32 %v2886_v18, %v9664_v23  ;;  %v4012_v9 = vmul.f32 %v4011_v21, %v3987_v55  ;;  %vm11311_vm15 = vmor %vm4083_vm14, %vm4084_vm13  ;;  %v4104_v6 = vadd.f32 0.18741608, %v4103_v58 }
 0x7ef   : > { %v4140_v19 = vadd.f32 0.0036580483, %v4139_v15  ;;  %v4219_v27 = vmul.f32 %v4218_v38, %v11161_v63  ;;  %v4086_v51 = vsel %vm11311_vm15, %v11212_v3, %v4082_v42  ;;  %v4182_v43 = vadd.f32 0.05243302, %v4181_v61 }
 0x7f0   : > { %v11319_v47 = vadd.f32 1.0, %v4196_v36  ;;  %v4155_v52 = vadd.f32 0.4994258, %v4154_v1  ;;  %v4090_v60 = vor.u32 1.1754944e-38, %v4089_v29  ;;  %v4121_v55 = vmul.f32 %v11263_v48, %v4120_v20 }
 0x7f1   : > { %v4235_v21 = vadd.f32 0.4994258, %v4234_v59  ;;  %v4269_v14 = vadd.f32 0.001143296, %v4268_v40  ;;  %v4067_v18 = vmul.f32 %v4066_v7, %v10873_v62  ;;  %vm4088_vm0 = vcmp.eq.f32.partialorder %v4087_v26, 8.507059e+37 }
 0x7f2   : > { %v4348_v58 = vmul.f32 3.8918573e-05, %v11304_v16  ;;  %v11325_v15 = vmul.f32 0.70710677, %v11307_v30  ;;  %v7324_v38 = vclamps-f32 %v4012_v9, 1.0  ;;  %v4091_v41 = vsel %vm4088_vm0, %v4090_v60, %v4086_v51  ;;  %v7607_v51 = vld [vmem:[#allocation16 + $0x48] sm:$0xff] }
 0x7f3   : > { %v4141_v3 = vmul.f32 %v4140_v19, %v11156_v11  ;;  %v4220_v42 = vadd.f32 0.0036580483, %v4219_v27  ;;  %v4105_v61 = vmul.f32 %v4104_v6, %v10978_v35  ;;  %v4183_v36 = vmul.f32 %v4182_v43, %v11088_v13  ;;  %v2984_v19 = vpop.f32.mrf.mxu3  ;;  %6170 = vmatpush.bf16.msrb.mxu2 %v7607_v51 }
 0x7f4   : > { %8217 = vrcp.f32 %v11319_v47  ;;  %v4156_v1 = vmul.f32 %v4155_v52, %v11156_v11  ;;  %v4122_v62 = vadd.f32 %v11263_v48, %v4121_v55  ;;  %vm4124_vm2 = vweird.f32 %v11263_v48 }
 0x7f5   : > { %v4236_v7 = vmul.f32 %v4235_v21, %v11161_v63  ;;  %v4270_v29 = vmul.f32 %v4269_v14, %v11283_v34  ;;  %v4092_v20 = vmul.f32 %v4091_v41, %v4067_v18  ;;  %v4129_v59 = vand.u32 2147483648, %v11214_v53 }
 0x7f6   : > { %v4349_v40 = vadd.f32 0.001143296, %v4348_v58  ;;  %v4295_v35 = vmul.f32 %v11325_v15, %v11325_v15  ;;  %vm4123_vm3 = vweird.f32 %v11214_v53  ;;  %v4127_v26 = vand.u32 2147483647, %v11214_v53 }
 0x7f7   : > { %v4142_v9 = vadd.f32 0.05243302, %v4141_v3  ;;  %v4221_v6 = vmul.f32 %v4220_v42, %v11161_v63  ;;  %v5716_v27 = vadd.f32 1.0, %v7324_v38  ;;  %vm11342_vm4 = vmor %vm4123_vm3, %vm4124_vm2  ;;  %v4184_v43 = vadd.f32 0.18741608, %v4183_v36 }
 0x7f8   : > { %v11346_v52 = vadd.f32 1.0, %v4156_v1  ;;  %v4257_v60 = vmul.f32 2.1237322e-06, %v11283_v34  ;;  %v4106_v55 = vadd.f32 1.1283791, %v4105_v61  ;;  %v4126_v21 = vsel %vm11342_vm4, %v11263_v48, %v4122_v62 }
 0x7f9   : > { %v11352_v53 = vadd.f32 1.0, %v4236_v7  ;;  %v4271_v14 = vadd.f32 0.014752088, %v4270_v29  ;;  %v4130_v58 = vor.u32 1.1754944e-38, %v4129_v59  ;;  %v4350_v38 = vmul.f32 %v4349_v40, %v11304_v16 }
 0x7fa   : > { %v11354_v18 = vpop.eup %8217  ;;  %v11357_v41 = vmin.f32 %v4295_v35, 16.0  ;;  %v11360_v3 = vadd.f32 %v2984_v19, %v13980_v22  ;;  %v7326_v42 = vclamps-f32 %v4092_v20, 1.0  ;;  %vm4128_vm5 = vcmp.eq.f32.partialorder %v4127_v26, 8.507059e+37  ;;  %v7599_v19 = vld [vmem:[#allocation16 + $0x8] sm:$0xff] }
 0x7fb   : > { %v4143_v61 = vmul.f32 %v4142_v9, %v11156_v11  ;;  %v4222_v36 = vadd.f32 0.05243302, %v4221_v6  ;;  %v4131_v1 = vsel %vm4128_vm5, %v4130_v58, %v4126_v21  ;;  %v4185_v48 = vmul.f32 %v4184_v43, %v11088_v13  ;;  %v7615_v43 = vld [vmem:[#allocation16 + $0x88] sm:$0xff]  ;;  %6121 = vmatpush.bf16.msrb.mxu1 %v7599_v19 }
 0x7fc   : > { %8219 = vrcp.f32 %v11346_v52  ;;  %v4258_v62 = vadd.f32 0.00028619796, %v4257_v60  ;;  %v4107_v7 = vmul.f32 %v4106_v55, %v10934_v49  ;;  %v4199_v29 = vmul.f32 %v11354_v18, %v11319_v47  ;;  %v7623_v21 = vld [vmem:[#allocation16 + $0xc8] sm:$0xff]  ;;  %6219 = vmatpush.bf16.msrb.mxu0 %v7615_v43 }
 0x7fd   : > { %8221 = vrcp.f32 %v11352_v53  ;;  %v4272_v59 = vmul.f32 %v4271_v14, %v11283_v34  ;;  %v11372_v20 = vmul.f32 %v11253_v46, %v11008_v25  ;;  %v4351_v40 = vadd.f32 0.014752088, %v4350_v38  ;;  %v2840_v38 = vpop.f32.mrf.mxu1  ;;  %6268 = vmatpush.bf16.msrb.mxu3 %v7623_v21 }
 0x7fe   : > { %v4308_v35 = vmul.f32 3.8918573e-05, %v11357_v41  ;;  %v11376_v13 = vmul.f32 0.70710677, %v11360_v3  ;;  %v11379_v26 = vmul.f32 %v5716_v27, %v11220_v39  ;;  %v11381_v49 = vmul.f32 %v4131_v1, %v4107_v7 }
 0x7ff   : > { %14085 = vst [vmem:[#allocation74_spill] sm:$0xff] %v11372_v20  ;;  %v4144_v9 = vadd.f32 0.18741608, %v4143_v61  ;;  %v4223_v6 = vmul.f32 %v4222_v36, %v11161_v63  ;;  %v11384_v60 = vadd.f32 1.0, %v7326_v42  ;;  %v11387_v25 = vmul.f32 0.5, %v11019_v50 }
 0x800   : > { %14086 = vst [vmem:[#allocation75_spill] sm:$0xff] %v11379_v26  ;;  %v4186_v46 = vadd.f32 1.1283791, %v4185_v48  ;;  %v4259_v55 = vmul.f32 %v4258_v62, %v11283_v34  ;;  %v4200_v14 = vsub.f32 1.0, %v4199_v29  ;;  %v11391_v39 = vmul.f32 0.5, %v11067_v0  ;;  %v14087_v29 = vld [vmem:[#allocation68_spill] sm:$0xff] }
 0x801   : > { %v11394_v27 = vmul.f32 0.5, %v11077_v37  ;;  %v4273_v58 = vadd.f32 0.112945676, %v4272_v59  ;;  %v11399_v50 = vmul.f32 0.5, %v11224_v44  ;;  %v4352_v61 = vmul.f32 %v4351_v40, %v11304_v16 }
 0x802   : > { %v11396_v42 = vpop.eup %8219  ;;  %v4309_v36 = vadd.f32 0.001143296, %v4308_v35  ;;  %v4375_v1 = vmul.f32 %v11376_v13, %v11376_v13  ;;  %v4145_v48 = vmul.f32 %v4144_v9, %v11156_v11  ;;  %v4224_v62 = vadd.f32 0.18741608, %v4223_v6 }
 0x803   : > { %v11404_v0 = vpop.eup %8221  ;;  %v4337_v7 = vmul.f32 2.1237322e-06, %v11304_v16  ;;  %v11410_v44 = vmul.f32 %v4186_v46, %v14087_v29  ;;  %v4207_v59 = vand.u32 2147483647, %v11319_v47  ;;  %v4260_v40 = vadd.f32 0.0036580483, %v4259_v55  ;;  %v2938_v55 = vpop.f32.mrf.mxu0 }
 0x804   : > { %v11414_v35 = vadd.f32 %v2840_v38, %v9651_v4  ;;  %v4201_v19 = vmul.f32 %v11354_v18, %v4200_v14  ;;  %vm4203_vm6 = vweird.f32 %v11319_v47  ;;  %v4159_v51 = vmul.f32 %v11396_v42, %v11346_v52 }
 0x805   : > { %v4274_v11 = vmul.f32 %v4273_v58, %v11283_v34  ;;  %v4239_v9 = vmul.f32 %v11404_v0, %v11352_v53  ;;  %v4353_v6 = vadd.f32 0.112945676, %v4352_v61  ;;  %v4310_v43 = vmul.f32 %v4309_v36, %v11357_v41 }
 0x806   : > { %v11424_v46 = vmin.f32 %v4375_v1, 16.0  ;;  %v4209_v21 = vand.u32 2147483648, %v11319_v47  ;;  %v4146_v38 = vadd.f32 1.1283791, %v4145_v48  ;;  %v4225_v14 = vmul.f32 %v4224_v62, %v11161_v63 }
 0x807   : > { %v4338_v29 = vadd.f32 0.00028619796, %v4337_v7  ;;  %vm4204_vm7 = vweird.f32 %v11354_v18  ;;  %vm11429_vm8 = vcmp.eq.f32.partialorder %v4207_v59, 8.507059e+37  ;;  %v4261_v58 = vmul.f32 %v4260_v40, %v11283_v34 }
 0x808   : > { %v11435_v61 = vmul.f32 0.70710677, %v11414_v35  ;;  %v4202_v36 = vadd.f32 %v11354_v18, %v4201_v19  ;;  %v4160_v1 = vsub.f32 1.0, %v4159_v51  ;;  %v4275_v54 = vadd.f32 0.4994258, %v4274_v11  ;;  %vm11451_vm1 = vmor %vm4203_vm6, %vm4204_vm7 }
 0x809   : > { %v11439_v48 = vadd.f32 %v2938_v55, %v9653_v2  ;;  %v4240_v63 = vsub.f32 1.0, %v4239_v9  ;;  %v4354_v62 = vmul.f32 %v4353_v6, %v11304_v16  ;;  %v4311_v7 = vadd.f32 0.014752088, %v4310_v43 }
 0x80a   : > { %v4388_v59 = vmul.f32 3.8918573e-05, %v11424_v46  ;;  %v4210_v10 = vor.u32 1.1754944e-38, %v4209_v21  ;;  %v11444_v5 = vmul.f32 %v4146_v38, %v11091_v57  ;;  %v4226_v40 = vadd.f32 1.1283791, %v4225_v14 }
 0x80b   : > { %v4339_v20 = vmul.f32 %v4338_v29, %v11304_v16  ;;  %vm4163_vm9 = vweird.f32 %v11346_v52  ;;  %v4167_v51 = vand.u32 2147483647, %v11346_v52  ;;  %v4262_v11 = vadd.f32 0.05243302, %v4261_v58 }
 0x80c   : > { %v4415_v57 = vmul.f32 %v11435_v61, %v11435_v61  ;;  %v4206_v9 = vsel %vm11451_vm1, %v11354_v18, %v4202_v36  ;;  %v4161_v6 = vmul.f32 %v11396_v42, %v4160_v1  ;;  %v4276_v47 = vmul.f32 %v4275_v54, %v11283_v34 }
 0x80d   : > { %v11465_v43 = vmul.f32 0.70710677, %v11439_v48  ;;  %v4241_v55 = vmul.f32 %v11404_v0, %v4240_v63  ;;  %v4355_v21 = vadd.f32 0.4994258, %v4354_v62  ;;  %v4312_v38 = vmul.f32 %v4311_v7, %v11357_v41 }
 0x80e   : > { %v4389_v14 = vadd.f32 0.001143296, %v4388_v59  ;;  %vm4164_vm10 = vweird.f32 %v11396_v42  ;;  %v4169_v29 = vand.u32 2147483648, %v11346_v52  ;;  %vm4243_vm11 = vweird.f32 %v11352_v53 }
 0x80f   : > { %v4340_v18 = vadd.f32 0.0036580483, %v4339_v20  ;;  %v4211_v58 = vsel %vm11429_vm8, %v4210_v10, %v4206_v9  ;;  %vm4244_vm12 = vweird.f32 %v11404_v0  ;;  %v4263_v54 = vmul.f32 %v4262_v11, %v11283_v34  ;;  %vm11499_vm14 = vmor %vm4163_vm9, %vm4164_vm10 }
 0x810   : > { %v11476_v36 = vmin.f32 %v4415_v57, 16.0  ;;  %v4162_v1 = vadd.f32 %v11396_v42, %v4161_v6  ;;  %v11479_v63 = vadd.f32 1.0, %v4276_v47  ;;  %v4297_v62 = vmul.f32 2.1237322e-06, %v11357_v41  ;;  %vm11511_vm15 = vmor %vm4243_vm11, %vm4244_vm12 }
 0x811   : > { %v4495_v7 = vmul.f32 %v11465_v43, %v11465_v43  ;;  %v4242_v20 = vadd.f32 %v11404_v0, %v4241_v55  ;;  %v4356_v37 = vmul.f32 %v4355_v21, %v11304_v16  ;;  %v4313_v10 = vadd.f32 0.112945676, %v4312_v38 }
 0x812   : > { %v4390_v59 = vmul.f32 %v4389_v14, %v11424_v46  ;;  %vm11487_vm13 = vcmp.eq.f32.partialorder %v4167_v51, 8.507059e+37  ;;  %v4247_v11 = vand.u32 2147483647, %v11352_v53  ;;  %v4249_v57 = vand.u32 2147483648, %v11352_v53  ;;  %v7598_v53 = vld [vmem:[#allocation16] sm:$0xff] }
 0x813   : > { %v4341_v9 = vmul.f32 %v4340_v18, %v11304_v16  ;;  %v4212_v6 = vmul.f32 %v4211_v58, %v11410_v44  ;;  %v4170_v51 = vor.u32 1.1754944e-38, %v4169_v29  ;;  %v4264_v55 = vadd.f32 0.18741608, %v4263_v54  ;;  %v2889_v29 = vpop.f32.mrf.mxu2  ;;  %6122 = vmatpush.bf16.msrb.mxu1 %v7598_v53  ;;  %v14109_v53 = vld [vmem:[#allocation55_spill] sm:$0xff] }
 0x814   : > { %v4428_v21 = vmul.f32 3.8918573e-05, %v11476_v36  ;;  %v4166_v38 = vsel %vm11499_vm14, %v11396_v42, %v4162_v1  ;;  %8223 = vrcp.f32 %v11479_v63  ;;  %v4298_v52 = vadd.f32 0.00028619796, %v4297_v62  ;;  %v7606_v1 = vld [vmem:[#allocation16 + $0x40] sm:$0xff] }
 0x815   : > { %v11516_v14 = vmin.f32 %v4495_v7, 16.0  ;;  %v4246_v18 = vsel %vm11511_vm15, %v11404_v0, %v4242_v20  ;;  %v11521_v58 = vadd.f32 1.0, %v4356_v37  ;;  %v4314_v42 = vmul.f32 %v4313_v10, %v11357_v41  ;;  %v7614_v62 = vld [vmem:[#allocation16 + $0x80] sm:$0xff]  ;;  %6171 = vmatpush.bf16.msrb.mxu2 %v7606_v1 }
 0x816   : > { %v4391_v54 = vadd.f32 0.014752088, %v4390_v59  ;;  %v4227_v47 = vmul.f32 %v4226_v40, %v11100_v45  ;;  %vm4248_vm0 = vcmp.eq.f32.partialorder %v4247_v11, 8.507059e+37  ;;  %v4250_v12 = vor.u32 1.1754944e-38, %v4249_v57  ;;  %v7622_v7 = vld [vmem:[#allocation16 + $0xc0] sm:$0xff]  ;;  %6220 = vmatpush.bf16.msrb.mxu0 %v7614_v62 }
 0x817   : > { %v4342_v26 = vadd.f32 0.05243302, %v4341_v9  ;;  %v7329_v17 = vclamps-f32 %v4212_v6, 1.0  ;;  %v4171_v28 = vsel %vm11487_vm13, %v4170_v51, %v4166_v38  ;;  %v4429_v44 = vadd.f32 0.001143296, %v4428_v21  ;;  %6269 = vmatpush.bf16.msrb.mxu3 %v7622_v7  ;;  %v14099_v51 = vld [vmem:[#allocation56_spill] sm:$0xff] }
 0x818   : > { %v11528_v0 = vadd.f32 %v2889_v29, %v9664_v23  ;;  %v4251_v20 = vsel %vm4248_vm0, %v4250_v12, %v4246_v18  ;;  %v4265_v37 = vmul.f32 %v4264_v55, %v11283_v34  ;;  %v4299_v45 = vmul.f32 %v4298_v52, %v11357_v41  ;;  %v14100_v55 = vld [vmem:[#allocation58_spill] sm:$0xff]  ;;  %v14102_v38 = vld [vmem:[#allocation53_spill] sm:$0xff]  ;;  %v14103_v52 = vld [vmem:[#allocation52_spill] sm:$0xff] }
 0x819   : > { %v4508_v40 = vmul.f32 3.8918573e-05, %v11516_v14  ;;  %8225 = vrcp.f32 %v11521_v58  ;;  %v4315_v10 = vadd.f32 0.4994258, %v4314_v42  ;;  %v4377_v59 = vmul.f32 2.1237322e-06, %v11424_v46 }
 0x81a   : > { %v4392_v19 = vmul.f32 %v4391_v54, %v11424_v46  ;;  %v11536_v11 = vpop.eup %8223  ;;  %v14098_v57 = vclamps-f32 %v11381_v49, 1.0  ;;  %v4172_v34 = vmul.f32 %v4171_v28, %v11444_v5  ;;  %v11542_v9 = vmul.f32 0.5, %v11245_v32  ;;  %v14105_v5 = vld [vmem:[#allocation39_spill] sm:$0xff]  ;;  %v14106_v32 = vld [vmem:[#allocation54_spill] sm:$0xff] }
 0x81b   : > { %v4343_v6 = vmul.f32 %v4342_v26, %v11304_v16  ;;  %v14101_v21 = vpack.c.bf16 %v14099_v51, %v14100_v55  ;;  %v14104_v29 = vpack.c.bf16 %v14102_v38, %v14103_v52  ;;  %v5721_v18 = vadd.f32 1.0, %v7329_v17  ;;  %v14108_v26 = vld [vmem:[#allocation57_spill] sm:$0xff] }
 0x81c   : > { %v5719_v12 = vadd.f32 1.0, %v14098_v57  ;;  %v4252_v42 = vmul.f32 %v4251_v20, %v4227_v47  ;;  %v4430_v49 = vmul.f32 %v4429_v44, %v11476_v36  ;;  %v11553_v54 = vmul.f32 0.70710677, %v11528_v0 }
 0x81d   : > { %6123 = vmatmul.bf16.vlgmr.msrb.gmra.mxu1 %v14101_v21  ;;  %6172 = vmatmul.bf16.vlgmr.msrb.gmra.mxu2 %v14104_v29  ;;  %v14107_v28 = vpack.c.bf16 %v14105_v5, %v14106_v32  ;;  %v14110_v1 = vpack.c.bf16 %v14108_v26, %v14109_v53  ;;  %v11563_v62 = vmul.f32 %v11384_v60, %v11229_v8  ;;  %v4266_v7 = vadd.f32 1.1283791, %v4265_v37 }
 0x81e   : > { %v4300_v17 = vadd.f32 0.0036580483, %v4299_v45  ;;  %v4509_v47 = vadd.f32 0.001143296, %v4508_v40  ;;  %v4279_v44 = vmul.f32 %v11536_v11, %v11479_v63  ;;  %v4316_v20 = vmul.f32 %v4315_v10, %v11357_v41 }
 0x81f   : > { %6221 = vmatmul.bf16.vlgmr.msrb.gmra.mxu0 %v14107_v28  ;;  %6270 = vmatmul.bf16.vlgmr.msrb.gmra.mxu3 %v14110_v1  ;;  %v4378_v57 = vadd.f32 0.00028619796, %v4377_v59  ;;  %v4393_v51 = vadd.f32 0.112945676, %v4392_v19  ;;  %v11569_v55 = vmul.f32 %v5719_v12, %v11288_v31  ;;  %v7328_v21 = vclamps-f32 %v4172_v34, 1.0  ;;  %v11574_v8 = vpop.eup %8225  ;;  %v2987_v19 = vpop.f32.mrf.mxu3 }
 0x820   : > { %v4344_v38 = vadd.f32 0.18741608, %v4343_v6  ;;  %v11572_v52 = vmul.f32 0.5, %v11307_v30  ;;  %v7330_v60 = vclamps-f32 %v4252_v42, 1.0  ;;  %v11577_v37 = vmul.f32 0.5, %v11360_v3 }
 0x821   : > { %v4431_v45 = vadd.f32 0.014752088, %v4430_v49  ;;  %v4455_v40 = vmul.f32 %v11553_v54, %v11553_v54  ;;  %v11582_v10 = vmul.f32 %v5721_v18, %v11387_v25  ;;  %v11585_v31 = vmul.f32 %v4266_v7, %v11239_v24 }
 0x822   : > { %v4301_v59 = vmul.f32 %v4300_v17, %v11357_v41  ;;  %v4510_v30 = vmul.f32 %v4509_v47, %v11516_v14  ;;  %v4280_v12 = vsub.f32 1.0, %v4279_v44  ;;  %v11589_v34 = vadd.f32 1.0, %v4316_v20 }
 0x823   : > { %14111 = vst [vmem:[#allocation68_spill] sm:$0xff] %v11582_v10  ;;  %v4379_v3 = vmul.f32 %v4378_v57, %v11424_v46  ;;  %v4394_v6 = vmul.f32 %v4393_v51, %v11424_v46  ;;  %v5720_v29 = vadd.f32 1.0, %v7328_v21  ;;  %v4345_v42 = vmul.f32 %v4344_v38, %v11304_v16  ;;  %v2842_v16 = vpop.f32.mrf.mxu1 }
 0x824   : > { %v4359_v25 = vmul.f32 %v11574_v8, %v11521_v58  ;;  %v4417_v24 = vmul.f32 2.1237322e-06, %v11476_v36  ;;  %v5722_v18 = vadd.f32 1.0, %v7330_v60  ;;  %v4432_v49 = vmul.f32 %v4431_v45, %v11476_v36 }
 0x825   : > { %v11598_v5 = vmin.f32 %v4455_v40, 16.0  ;;  %v11601_v32 = vadd.f32 %v2987_v19, %v13980_v22  ;;  %vm4283_vm2 = vweird.f32 %v11479_v63  ;;  %v4287_v28 = vand.u32 2147483647, %v11479_v63 }
 0x826   : > { %v4302_v26 = vadd.f32 0.05243302, %v4301_v59  ;;  %v4511_v53 = vadd.f32 0.014752088, %v4510_v30  ;;  %v4281_v1 = vmul.f32 %v11536_v11, %v4280_v12  ;;  %8227 = vrcp.f32 %v11589_v34 }
 0x827   : > { %v4380_v7 = vadd.f32 0.0036580483, %v4379_v3  ;;  %v4395_v17 = vadd.f32 0.4994258, %v4394_v6  ;;  %v11608_v47 = vmul.f32 %v5720_v29, %v11391_v39  ;;  %v4289_v44 = vand.u32 2147483648, %v11479_v63 }
 0x828   : > { %v4360_v20 = vsub.f32 1.0, %v4359_v25  ;;  %v4418_v57 = vadd.f32 0.00028619796, %v4417_v24  ;;  %v4433_v51 = vadd.f32 0.112945676, %v4432_v49  ;;  %v11616_v60 = vadd.f32 %v2842_v16, %v9651_v4 }
 0x829   : > { %v4468_v21 = vmul.f32 3.8918573e-05, %v11598_v5  ;;  %v11613_v38 = vmul.f32 0.70710677, %v11601_v32  ;;  %v11619_v45 = vmul.f32 %v5722_v18, %v11394_v27  ;;  %v4346_v40 = vadd.f32 1.1283791, %v4345_v42 }
 0x82a   : > { %v4303_v39 = vmul.f32 %v4302_v26, %v11357_v41  ;;  %v4512_v59 = vmul.f32 %v4511_v53, %v11516_v14  ;;  %v4282_v30 = vadd.f32 %v11536_v11, %v4281_v1  ;;  %vm4284_vm3 = vweird.f32 %v11536_v11 }
 0x82b   : > { %14112 = vst [vmem:[#allocation56_spill] sm:$0xff] %v11619_v45  ;;  %v4381_v19 = vmul.f32 %v4380_v7, %v11424_v46  ;;  %v4396_v12 = vmul.f32 %v4395_v17, %v11424_v46  ;;  %vm11627_vm4 = vcmp.eq.f32.partialorder %v4287_v28, 8.507059e+37  ;;  %v4290_v6 = vor.u32 1.1754944e-38, %v4289_v44  ;;  %vm11643_vm5 = vmor %vm4283_vm2, %vm4284_vm3 }
 0x82c   : > { %v4361_v27 = vmul.f32 %v11574_v8, %v4360_v20  ;;  %v4419_v29 = vmul.f32 %v4418_v57, %v11476_v36  ;;  %v11633_v42 = vpop.eup %8227  ;;  %v4434_v25 = vmul.f32 %v4433_v51, %v11476_v36  ;;  %v4469_v24 = vadd.f32 0.001143296, %v4468_v21 }
 0x82d   : > { %v4535_v18 = vmul.f32 %v11613_v38, %v11613_v38  ;;  %v11639_v49 = vmul.f32 0.70710677, %v11616_v60  ;;  %v4347_v26 = vmul.f32 %v4346_v40, %v11273_v33  ;;  %v4369_v53 = vand.u32 2147483648, %v11521_v58 }
 0x82e   : > { %v4304_v16 = vadd.f32 0.18741608, %v4303_v39  ;;  %v4513_v1 = vadd.f32 0.112945676, %v4512_v59  ;;  %v4286_v7 = vsel %vm11643_vm5, %v11536_v11, %v4282_v30  ;;  %vm4364_vm6 = vweird.f32 %v11574_v8 }
 0x82f   : > { %v4382_v17 = vadd.f32 0.05243302, %v4381_v19  ;;  %v11653_v44 = vadd.f32 1.0, %v4396_v12  ;;  %v4362_v63 = vadd.f32 %v11574_v8, %v4361_v27  ;;  %v4319_v20 = vmul.f32 %v11633_v42, %v11589_v34 }
 0x830   : > { %v4420_v57 = vadd.f32 0.0036580483, %v4419_v29  ;;  %v4497_v33 = vmul.f32 2.1237322e-06, %v11516_v14  ;;  %v4435_v51 = vadd.f32 0.4994258, %v4434_v25  ;;  %v4470_v21 = vmul.f32 %v4469_v24, %v11598_v5 }
 0x831   : > { %v11660_v40 = vmin.f32 %v4535_v18, 16.0  ;;  %v4575_v11 = vmul.f32 %v11639_v49, %v11639_v49  ;;  %vm4363_vm7 = vweird.f32 %v11521_v58  ;;  %v4367_v39 = vand.u32 2147483647, %v11521_v58 }
 0x832   : > { %v4370_v59 = vor.u32 1.1754944e-38, %v4369_v53  ;;  %v4514_v30 = vmul.f32 %v4513_v1, %v11516_v14  ;;  %v4291_v19 = vsel %vm11627_vm4, %v4290_v6, %v4286_v7  ;;  %vm11671_vm8 = vmor %vm4363_vm7, %vm4364_vm6  ;;  %v4305_v27 = vmul.f32 %v4304_v16, %v11357_v41 }
 0x833   : > { %v4383_v29 = vmul.f32 %v4382_v17, %v11424_v46  ;;  %8229 = vrcp.f32 %v11653_v44  ;;  %v4366_v58 = vsel %vm11671_vm8, %v11574_v8, %v4362_v63  ;;  %v4320_v25 = vsub.f32 1.0, %v4319_v20 }
 0x834   : > { %v4421_v3 = vmul.f32 %v4420_v57, %v11476_v36  ;;  %v4498_v6 = vadd.f32 0.00028619796, %v4497_v33  ;;  %v4436_v24 = vmul.f32 %v4435_v51, %v11476_v36  ;;  %v4471_v18 = vadd.f32 0.014752088, %v4470_v21  ;;  %v2940_v51 = vpop.f32.mrf.mxu0 }
 0x835   : > { %v4548_v28 = vmul.f32 3.8918573e-05, %v11660_v40  ;;  %v11684_v53 = vmin.f32 %v4575_v11, 16.0  ;;  %v4292_v41 = vmul.f32 %v4291_v19, %v11585_v31  ;;  %vm4368_vm1 = vcmp.eq.f32.partialorder %v4367_v39, 8.507059e+37 }
 0x836   : > { %v11688_v16 = vmul.f32 0.5, %v11414_v35  ;;  %v4515_v1 = vadd.f32 0.4994258, %v4514_v30  ;;  %v4371_v7 = vsel %vm4368_vm1, %v4370_v59, %v4366_v58  ;;  %v4306_v8 = vadd.f32 1.1283791, %v4305_v27 }
 0x837   : > { %v4384_v17 = vadd.f32 0.18741608, %v4383_v29  ;;  %v11691_v63 = vmul.f32 0.5, %v11439_v48  ;;  %v4321_v20 = vmul.f32 %v11633_v42, %v4320_v25  ;;  %vm4323_vm9 = vweird.f32 %v11589_v34 }
 0x838   : > { %v4422_v57 = vadd.f32 0.05243302, %v4421_v3  ;;  %v4499_v33 = vmul.f32 %v4498_v6, %v11516_v14  ;;  %v11698_v21 = vadd.f32 1.0, %v4436_v24  ;;  %v4472_v35 = vmul.f32 %v4471_v18, %v11598_v5 }
 0x839   : > { %v11696_v31 = vpop.eup %8229  ;;  %v4549_v11 = vadd.f32 0.001143296, %v4548_v28  ;;  %v4588_v39 = vmul.f32 3.8918573e-05, %v11684_v53  ;;  %v7331_v59 = vclamps-f32 %v4292_v41, 1.0  ;;  %v4372_v48 = vmul.f32 %v4371_v7, %v4347_v26 }
 0x83a   : > { %v4516_v30 = vmul.f32 %v4515_v1, %v11516_v14  ;;  %v4457_v19 = vmul.f32 2.1237322e-06, %v11598_v5  ;;  %vm4324_vm10 = vweird.f32 %v11633_v42  ;;  %v4329_v12 = vand.u32 2147483648, %v11589_v34 }
 0x83b   : > { %v4385_v27 = vmul.f32 %v4384_v17, %v11424_v46  ;;  %v11708_v29 = vadd.f32 %v2940_v51, %v9653_v2  ;;  %v4322_v58 = vadd.f32 %v11633_v42, %v4321_v20  ;;  %v4399_v25 = vmul.f32 %v11696_v31, %v11653_v44  ;;  %vm11723_vm11 = vmor %vm4323_vm9, %vm4324_vm10 }
 0x83c   : > { %v4423_v26 = vmul.f32 %v4422_v57, %v11476_v36  ;;  %v4500_v3 = vadd.f32 0.0036580483, %v4499_v33  ;;  %8231 = vrcp.f32 %v11698_v21  ;;  %v4473_v6 = vadd.f32 0.112945676, %v4472_v35 }
 0x83d   : > { %v4550_v24 = vmul.f32 %v4549_v11, %v11660_v40  ;;  %v4589_v18 = vadd.f32 0.001143296, %v4588_v39  ;;  %v7333_v28 = vclamps-f32 %v4372_v48, 1.0  ;;  %v4327_v46 = vand.u32 2147483647, %v11589_v34 }
 0x83e   : > { %v11717_v41 = vadd.f32 1.0, %v4516_v30  ;;  %v4458_v1 = vadd.f32 0.00028619796, %v4457_v19  ;;  %v5723_v7 = vadd.f32 1.0, %v7331_v59  ;;  %v4386_v20 = vadd.f32 1.1283791, %v4385_v27 }
 0x83f   : > { %v11728_v57 = vmul.f32 0.5, %v11528_v0  ;;  %v11731_v33 = vmul.f32 0.70710677, %v11708_v29  ;;  %v4326_v51 = vsel %vm11723_vm11, %v11633_v42, %v4322_v58  ;;  %v4400_v35 = vsub.f32 1.0, %v4399_v25 }
 0x840   : > { %v4424_v11 = vadd.f32 0.18741608, %v4423_v26  ;;  %v4501_v39 = vmul.f32 %v4500_v3, %v11516_v14  ;;  %v4330_v34 = vor.u32 1.1754944e-38, %v4329_v12  ;;  %v4474_v59 = vmul.f32 %v4473_v6, %v11598_v5 }
 0x841   : > { %v4551_v48 = vadd.f32 0.014752088, %v4550_v24  ;;  %v4590_v30 = vmul.f32 %v4589_v18, %v11684_v53  ;;  %v5725_v19 = vadd.f32 1.0, %v7333_v28  ;;  %vm4328_vm12 = vcmp.eq.f32.partialorder %v4327_v46, 8.507059e+37  ;;  %v2891_v18 = vpop.f32.mrf.mxu2 }
 0x842   : > { %8233 = vrcp.f32 %v11717_v41  ;;  %v4459_v0 = vmul.f32 %v4458_v1, %v11598_v5  ;;  %v11741_v27 = vpop.eup %8231  ;;  %v11744_v42 = vmul.f32 %v5723_v7, %v11399_v50  ;;  %v4307_v58 = vmul.f32 %v4306_v8, %v11325_v15 }
 0x843   : > { %v4331_v25 = vsel %vm4328_vm12, %v4330_v34, %v4326_v51  ;;  %v4655_v12 = vmul.f32 %v11731_v33, %v11731_v33  ;;  %v4387_v26 = vmul.f32 %v4386_v20, %v11376_v13  ;;  %v4401_v3 = vmul.f32 %v11696_v31, %v4400_v35 }
 0x844   : > { %v4425_v6 = vmul.f32 %v4424_v11, %v11476_v36  ;;  %v4502_v24 = vadd.f32 0.05243302, %v4501_v39  ;;  %v4475_v28 = vadd.f32 0.4994258, %v4474_v59  ;;  %v4537_v46 = vmul.f32 2.1237322e-06, %v11660_v40 }
 0x845   : > { %v4552_v50 = vmul.f32 %v4551_v48, %v11660_v40  ;;  %v4591_v1 = vadd.f32 0.014752088, %v4590_v30  ;;  %v11755_v15 = vmul.f32 %v5725_v19, %v11542_v9  ;;  %v4332_v8 = vmul.f32 %v4331_v25, %v4307_v58 }
 0x846   : > { %v4439_v7 = vmul.f32 %v11741_v27, %v11698_v21  ;;  %v4460_v13 = vadd.f32 0.0036580483, %v4459_v0  ;;  %v4407_v17 = vand.u32 2147483647, %v11653_v44  ;;  %v4409_v36 = vand.u32 2147483648, %v11653_v44 }
 0x847   : > { %14121 = vst [vmem:[#allocation58_spill] sm:$0xff] %v11755_v15  ;;  %v11761_v20 = vmin.f32 %v4655_v12, 16.0  ;;  %v11764_v51 = vadd.f32 %v2891_v18, %v9664_v23  ;;  %v4402_v11 = vadd.f32 %v11696_v31, %v4401_v3  ;;  %vm4404_vm13 = vweird.f32 %v11696_v31  ;;  %v14154_v15 = vld [vmem:[#allocation66_spill] sm:$0xff] }
 0x848   : > { %v11766_v35 = vpop.eup %8233  ;;  %v4426_v9 = vadd.f32 1.1283791, %v4425_v6  ;;  %v4503_v39 = vmul.f32 %v4502_v24, %v11516_v14  ;;  %v4476_v34 = vmul.f32 %v4475_v28, %v11598_v5  ;;  %v4538_v59 = vadd.f32 0.00028619796, %v4537_v46 }
 0x849   : > { %v4553_v48 = vadd.f32 0.112945676, %v4552_v50  ;;  %v4592_v30 = vmul.f32 %v4591_v1, %v11684_v53  ;;  %v7332_v19 = vclamps-f32 %v4332_v8, 1.0  ;;  %vm4403_vm14 = vweird.f32 %v11653_v44 }
 0x84a   : > { %v4440_v0 = vsub.f32 1.0, %v4439_v7  ;;  %v4461_v58 = vmul.f32 %v4460_v13, %v11598_v5  ;;  %vm11775_vm15 = vmor %vm4403_vm14, %vm4404_vm13  ;;  %vm11779_vm0 = vcmp.eq.f32.partialorder %v4407_v17, 8.507059e+37  ;;  %v4519_v3 = vmul.f32 %v11766_v35, %v11717_v41 }
 0x84b   : > { %v4668_v6 = vmul.f32 3.8918573e-05, %v11761_v20  ;;  %v11787_v24 = vmul.f32 0.70710677, %v11764_v51  ;;  %v4406_v44 = vsel %vm11775_vm15, %v11696_v31, %v4402_v11  ;;  %v4410_v18 = vor.u32 1.1754944e-38, %v4409_v36 }
 0x84c   : > { %v11793_v28 = vmul.f32 %v4426_v9, %v11435_v61  ;;  %v4504_v46 = vadd.f32 0.18741608, %v4503_v39  ;;  %v11795_v50 = vadd.f32 1.0, %v4476_v34  ;;  %v4539_v1 = vmul.f32 %v4538_v59, %v11660_v40 }
 0x84d   : > { %v4554_v8 = vmul.f32 %v4553_v48, %v11660_v40  ;;  %v4593_v7 = vadd.f32 0.112945676, %v4592_v30  ;;  %v11799_v13 = vadd.f32 1.0, %v7332_v19  ;;  %v4441_v17 = vmul.f32 %v11741_v27, %v4440_v0  ;;  %v2989_v48 = vpop.f32.mrf.mxu3 }
 0x84e   : > { %v4462_v45 = vadd.f32 0.05243302, %v4461_v58  ;;  %v11803_v25 = vmul.f32 0.5, %v11601_v32  ;;  %v4411_v61 = vsel %vm11779_vm0, %v4410_v18, %v4406_v44  ;;  %v4520_v31 = vsub.f32 1.0, %v4519_v3 }
 0x84f   : > { %v4669_v36 = vadd.f32 0.001143296, %v4668_v6  ;;  %v4615_v11 = vmul.f32 %v11787_v24, %v11787_v24  ;;  %v4447_v9 = vand.u32 2147483647, %v11698_v21  ;;  %v4449_v39 = vand.u32 2147483648, %v11698_v21 }
 0x850   : > { %v4505_v34 = vmul.f32 %v4504_v46, %v11516_v14  ;;  %v4577_v59 = vmul.f32 2.1237322e-06, %v11684_v53  ;;  %8235 = vrcp.f32 %v11795_v50  ;;  %v4540_v32 = vadd.f32 0.0036580483, %v4539_v1 }
 0x851   : > { %v4555_v30 = vadd.f32 0.4994258, %v4554_v8  ;;  %v4594_v19 = vmul.f32 %v4593_v7, %v11684_v53  ;;  %v4412_v0 = vmul.f32 %v4411_v61, %v4387_v26  ;;  %v4442_v58 = vadd.f32 %v11741_v27, %v4441_v17 }
 0x852   : > { %vm4444_vm2 = vweird.f32 %v11741_v27  ;;  %v4463_v12 = vmul.f32 %v4462_v45, %v11598_v5  ;;  %v4521_v3 = vmul.f32 %v11766_v35, %v4520_v31  ;;  %v4670_v14 = vmul.f32 %v4669_v36, %v11761_v20 }
 0x853   : > { %v11820_v6 = vmin.f32 %v4615_v11, 16.0  ;;  %v11823_v44 = vadd.f32 %v2989_v48, %v13980_v22  ;;  %vm4443_vm3 = vweird.f32 %v11698_v21  ;;  %vm11826_vm4 = vcmp.eq.f32.partialorder %v4447_v9, 8.507059e+37 }
 0x854   : > { %v4450_v26 = vor.u32 1.1754944e-38, %v4449_v39  ;;  %v4578_v46 = vadd.f32 0.00028619796, %v4577_v59  ;;  %vm11830_vm5 = vmor %vm4443_vm3, %vm4444_vm2  ;;  %v4506_v45 = vadd.f32 1.1283791, %v4505_v34  ;;  %v4541_v8 = vmul.f32 %v4540_v32, %v11660_v40 }
 0x855   : > { %v4556_v7 = vmul.f32 %v4555_v30, %v11660_v40  ;;  %v4595_v17 = vadd.f32 0.4994258, %v4594_v19  ;;  %v7334_v61 = vclamps-f32 %v4412_v0, 1.0  ;;  %v4446_v21 = vsel %vm11830_vm5, %v11741_v27, %v4442_v58 }
 0x856   : > { %vm4524_vm6 = vweird.f32 %v11766_v35  ;;  %v4464_v31 = vadd.f32 0.18741608, %v4463_v12  ;;  %v11840_v36 = vpop.eup %8235  ;;  %v4522_v11 = vadd.f32 %v11766_v35, %v4521_v3  ;;  %v4671_v9 = vadd.f32 0.014752088, %v4670_v14 }
 0x857   : > { %v4628_v39 = vmul.f32 3.8918573e-05, %v11820_v6  ;;  %v11845_v34 = vmul.f32 0.70710677, %v11823_v44  ;;  %vm4523_vm7 = vweird.f32 %v11717_v41  ;;  %v4529_v59 = vand.u32 2147483648, %v11717_v41 }
 0x858   : > { %v4579_v48 = vmul.f32 %v4578_v46, %v11684_v53  ;;  %v4657_v27 = vmul.f32 2.1237322e-06, %v11761_v20  ;;  %v4527_v32 = vand.u32 2147483647, %v11717_v41  ;;  %v4542_v30 = vadd.f32 0.05243302, %v4541_v8  ;;  %vm11860_vm8 = vmor %vm4523_vm7, %vm4524_vm6 }
 0x859   : > { %v11852_v19 = vadd.f32 1.0, %v4556_v7  ;;  %v4596_v0 = vmul.f32 %v4595_v17, %v11684_v53  ;;  %v4451_v58 = vsel %vm11826_vm4, %v4450_v26, %v4446_v21  ;;  %v4507_v12 = vmul.f32 %v4506_v45, %v11465_v43  ;;  %v2845_v17 = vpop.f32.mrf.mxu1 }
 0x85a   : > { %v4465_v14 = vmul.f32 %v4464_v31, %v11598_v5  ;;  %v4479_v41 = vmul.f32 %v11840_v36, %v11795_v50  ;;  %v4526_v46 = vsel %vm11860_vm8, %v11766_v35, %v4522_v11  ;;  %v4672_v18 = vmul.f32 %v4671_v9, %v11761_v20 }
 0x85b   : > { %v4629_v26 = vadd.f32 0.001143296, %v4628_v39  ;;  %v4695_v43 = vmul.f32 %v11845_v34, %v11845_v34  ;;  %v5726_v1 = vadd.f32 1.0, %v7334_v61  ;;  %v4530_v45 = vor.u32 1.1754944e-38, %v4529_v59 }
 0x85c   : > { %v4580_v8 = vadd.f32 0.0036580483, %v4579_v48  ;;  %v4658_v7 = vadd.f32 0.00028619796, %v4657_v27  ;;  %vm4528_vm1 = vcmp.eq.f32.partialorder %v4527_v32, 8.507059e+37  ;;  %v4543_v5 = vmul.f32 %v4542_v30, %v11660_v40 }
 0x85d   : > { %8237 = vrcp.f32 %v11852_v19  ;;  %v11875_v21 = vadd.f32 1.0, %v4596_v0  ;;  %v4452_v35 = vmul.f32 %v4451_v58, %v11793_v28  ;;  %v4531_v31 = vsel %vm4528_vm1, %v4530_v45, %v4526_v46 }
 0x85e   : > { %v4466_v11 = vadd.f32 1.1283791, %v4465_v14  ;;  %v4480_v9 = vsub.f32 1.0, %v4479_v41  ;;  %v4673_v39 = vadd.f32 0.112945676, %v4672_v18  ;;  %v4630_v3 = vmul.f32 %v4629_v26, %v11820_v6 }
 0x85f   : > { %v11879_v61 = vmin.f32 %v4695_v43, 16.0  ;;  %v11882_v59 = vadd.f32 %v2845_v17, %v9651_v4  ;;  %v11886_v48 = vmul.f32 %v11799_v13, %v11572_v52  ;;  %v11889_v27 = vmul.f32 0.5, %v11616_v60 }
 0x860   : > { %v4581_v28 = vmul.f32 %v4580_v8, %v11684_v53  ;;  %v4659_v32 = vmul.f32 %v4658_v7, %v11761_v20  ;;  %v4532_v30 = vmul.f32 %v4531_v31, %v4507_v12  ;;  %v4544_v0 = vadd.f32 0.18741608, %v4543_v5  ;;  %v2943_v7 = vpop.f32.mrf.mxu0 }
 0x861   : > { %8239 = vrcp.f32 %v11875_v21  ;;  %v11895_v58 = vmul.f32 0.5, %v11708_v29  ;;  %v11898_v14 = vmul.f32 %v5726_v1, %v11577_v37  ;;  %v7335_v41 = vclamps-f32 %v4452_v35, 1.0 }
 0x862   : > { %v11901_v52 = vmul.f32 %v4466_v11, %v11553_v54  ;;  %v4481_v60 = vmul.f32 %v11840_v36, %v4480_v9  ;;  %v4674_v46 = vmul.f32 %v4673_v39, %v11761_v20  ;;  %v4631_v12 = vadd.f32 0.014752088, %v4630_v3 }
 0x863   : > { %14132 = vst [vmem:[#allocation53_spill] sm:$0xff] %v11898_v14  ;;  %v11904_v13 = vpop.eup %8237  ;;  %v4708_v18 = vmul.f32 3.8918573e-05, %v11879_v61  ;;  %v11909_v26 = vmul.f32 0.70710677, %v11882_v59  ;;  %vm4483_vm9 = vweird.f32 %v11795_v50  ;;  %v7337_v54 = vclamps-f32 %v4532_v30, 1.0 }
 0x864   : > { %v4487_v37 = vand.u32 2147483647, %v11795_v50  ;;  %v4582_v29 = vadd.f32 0.05243302, %v4581_v28  ;;  %v4660_v43 = vadd.f32 0.0036580483, %v4659_v32  ;;  %v4545_v45 = vmul.f32 %v4544_v0, %v11660_v40 }
 0x865   : > { %v4489_v1 = vand.u32 2147483648, %v11795_v50  ;;  %v4617_v8 = vmul.f32 2.1237322e-06, %v11820_v6  ;;  %v5727_v17 = vadd.f32 1.0, %v7335_v41  ;;  %v4482_v5 = vadd.f32 %v11840_v36, %v4481_v60 }
 0x866   : > { %vm4484_vm10 = vweird.f32 %v11840_v36  ;;  %v4559_v35 = vmul.f32 %v11904_v13, %v11852_v19  ;;  %v4675_v11 = vadd.f32 0.4994258, %v4674_v46  ;;  %v4632_v9 = vmul.f32 %v4631_v12, %v11820_v6 }
 0x867   : > { %v11920_v31 = vpop.eup %8239  ;;  %v4709_v39 = vadd.f32 0.001143296, %v4708_v18  ;;  %v4735_v40 = vmul.f32 %v11909_v26, %v11909_v26  ;;  %vm11925_vm11 = vcmp.eq.f32.partialorder %v4487_v37, 8.507059e+37  ;;  %v4583_v28 = vmul.f32 %v4582_v29, %v11684_v53  ;;  %vm11936_vm12 = vmor %vm4483_vm9, %vm4484_vm10 }
 0x868   : > { %v4661_v32 = vmul.f32 %v4660_v43, %v11761_v20  ;;  %v11932_v30 = vadd.f32 %v2943_v7, %v9653_v2  ;;  %v5729_v0 = vadd.f32 1.0, %v7337_v54  ;;  %v4490_v60 = vor.u32 1.1754944e-38, %v4489_v1  ;;  %v2894_v54 = vpop.f32.mrf.mxu2 }
 0x869   : > { %v4546_v46 = vadd.f32 1.1283791, %v4545_v45  ;;  %v4618_v12 = vadd.f32 0.00028619796, %v4617_v8  ;;  %v4486_v18 = vsel %vm11936_vm12, %v11840_v36, %v4482_v5  ;;  %v4560_v37 = vsub.f32 1.0, %v4559_v35 }
 0x86a   : > { %v4599_v29 = vmul.f32 %v11920_v31, %v11875_v21  ;;  %v11946_v43 = vmul.f32 0.5, %v11764_v51  ;;  %v4676_v50 = vmul.f32 %v4675_v11, %v11761_v20  ;;  %v4633_v7 = vadd.f32 0.112945676, %v4632_v9 }
 0x86b   : > { %v4710_v14 = vmul.f32 %v4709_v39, %v11879_v61  ;;  %v11950_v1 = vmin.f32 %v4735_v40, 16.0  ;;  %v11953_v45 = vmul.f32 %v5727_v17, %v11688_v16  ;;  %v4584_v8 = vadd.f32 0.18741608, %v4583_v28 }
 0x86c   : > { %v4662_v36 = vadd.f32 0.05243302, %v4661_v32  ;;  %v11956_v5 = vmul.f32 0.70710677, %v11932_v30  ;;  %v11959_v35 = vmul.f32 %v5729_v0, %v11691_v63  ;;  %v11962_v51 = vmul.f32 %v4546_v46, %v11613_v38 }
 0x86d   : > { %14137 = vst [vmem:[#allocation52_spill] sm:$0xff] %v11953_v45  ;;  %v4619_v11 = vmul.f32 %v4618_v12, %v11820_v6  ;;  %v11966_v9 = vadd.f32 %v2894_v54, %v9664_v23  ;;  %v4491_v16 = vsel %vm11925_vm11, %v4490_v60, %v4486_v18  ;;  %v4561_v17 = vmul.f32 %v11904_v13, %v4560_v37  ;;  %v14153_v45 = vld [vmem:[#allocation40_spill] sm:$0xff] }
 0x86e   : > { %14138 = vst [vmem:[#allocation39_spill] sm:$0xff] %v11959_v35  ;;  %v4600_v39 = vsub.f32 1.0, %v4599_v29  ;;  %v4697_v40 = vmul.f32 2.1237322e-06, %v11879_v61  ;;  %v11972_v28 = vadd.f32 1.0, %v4676_v50  ;;  %v4634_v63 = vmul.f32 %v4633_v7, %v11820_v6 }
 0x86f   : > { %v4711_v32 = vadd.f32 0.014752088, %v4710_v14  ;;  %v4748_v38 = vmul.f32 3.8918573e-05, %v11950_v1  ;;  %vm4563_vm13 = vweird.f32 %v11852_v19  ;;  %v4567_v0 = vand.u32 2147483647, %v11852_v19 }
 0x870   : > { %v4663_v41 = vmul.f32 %v4662_v36, %v11761_v20  ;;  %v4815_v3 = vmul.f32 %v11956_v5, %v11956_v5  ;;  %v4492_v60 = vmul.f32 %v4491_v16, %v11901_v52  ;;  %v4569_v46 = vand.u32 2147483648, %v11852_v19 }
 0x871   : > { %v4620_v12 = vadd.f32 0.0036580483, %v4619_v11  ;;  %v11984_v18 = vmul.f32 0.70710677, %v11966_v9  ;;  %v4562_v14 = vadd.f32 %v11904_v13, %v4561_v17  ;;  %vm4564_vm14 = vweird.f32 %v11904_v13 }
 0x872   : > { %v4601_v37 = vmul.f32 %v11920_v31, %v4600_v39  ;;  %v4698_v29 = vadd.f32 0.00028619796, %v4697_v40  ;;  %8241 = vrcp.f32 %v11972_v28  ;;  %v4635_v54 = vadd.f32 0.4994258, %v4634_v63  ;;  %vm12000_vm0 = vmor %vm4563_vm13, %vm4564_vm14 }
 0x873   : > { %v4712_v50 = vmul.f32 %v4711_v32, %v11879_v61  ;;  %v4749_v7 = vadd.f32 0.001143296, %v4748_v38  ;;  %vm11991_vm15 = vcmp.eq.f32.partialorder %v4567_v0, 8.507059e+37  ;;  %v4585_v36 = vmul.f32 %v4584_v8, %v11684_v53  ;;  %v2992_v38 = vpop.f32.mrf.mxu3 }
 0x874   : > { %v4664_v11 = vadd.f32 0.18741608, %v4663_v41  ;;  %v11996_v16 = vmin.f32 %v4815_v3, 16.0  ;;  %v7336_v17 = vclamps-f32 %v4492_v60, 1.0  ;;  %v4570_v40 = vor.u32 1.1754944e-38, %v4569_v46 }
 0x875   : > { %v4621_v63 = vmul.f32 %v4620_v12, %v11820_v6  ;;  %v4775_v32 = vmul.f32 %v11984_v18, %v11984_v18  ;;  %v4566_v53 = vsel %vm12000_vm0, %v11904_v13, %v4562_v14  ;;  %vm4604_vm2 = vweird.f32 %v11920_v31 }
 0x876   : > { %v4607_v8 = vand.u32 2147483647, %v11875_v21  ;;  %v4699_v19 = vmul.f32 %v4698_v29, %v11879_v61  ;;  %v4602_v0 = vadd.f32 %v11920_v31, %v4601_v37  ;;  %v4636_v41 = vmul.f32 %v4635_v54, %v11820_v6 }
 0x877   : > { %v4713_v3 = vadd.f32 0.112945676, %v4712_v50  ;;  %v4750_v60 = vmul.f32 %v4749_v7, %v11950_v1  ;;  %v4586_v46 = vadd.f32 1.1283791, %v4585_v36  ;;  %v4609_v12 = vand.u32 2147483648, %v11875_v21  ;;  %v2847_v7 = vpop.f32.mrf.mxu1 }
 0x878   : > { %v4665_v39 = vmul.f32 %v4664_v11, %v11761_v20  ;;  %v4828_v13 = vmul.f32 3.8918573e-05, %v11996_v16  ;;  %v12019_v14 = vpop.eup %8241  ;;  %vm4603_vm3 = vweird.f32 %v11875_v21  ;;  %v4622_v29 = vadd.f32 0.05243302, %v4621_v63 }
 0x879   : > { %v12022_v35 = vmin.f32 %v4775_v32, 16.0  ;;  %v12025_v37 = vadd.f32 %v2992_v38, %v13980_v22  ;;  %v5728_v54 = vadd.f32 1.0, %v7336_v17  ;;  %v4571_v50 = vsel %vm11991_vm15, %v4570_v40, %v4566_v53  ;;  %vm12031_vm4 = vmor %vm4603_vm3, %vm4604_vm2 }
 0x87a   : > { %vm12035_vm5 = vcmp.eq.f32.partialorder %v4607_v8, 8.507059e+37  ;;  %v4700_v21 = vadd.f32 0.0036580483, %v4699_v19  ;;  %v4606_v36 = vsel %vm12031_vm4, %v11920_v31, %v4602_v0  ;;  %v12042_v11 = vadd.f32 1.0, %v4636_v41 }
 0x87b   : > { %v4714_v52 = vmul.f32 %v4713_v3, %v11879_v61  ;;  %v4751_v17 = vadd.f32 0.014752088, %v4750_v60  ;;  %v4610_v40 = vor.u32 1.1754944e-38, %v4609_v12  ;;  %v4666_v63 = vadd.f32 1.1283791, %v4665_v39 }
 0x87c   : > { %v4679_v32 = vmul.f32 %v12019_v14, %v11972_v28  ;;  %v4829_v53 = vadd.f32 0.001143296, %v4828_v13  ;;  %v4572_v8 = vmul.f32 %v4571_v50, %v11962_v51  ;;  %v4623_v38 = vmul.f32 %v4622_v29, %v11820_v6 }
 0x87d   : > { %v4788_v19 = vmul.f32 3.8918573e-05, %v12022_v35  ;;  %v12051_v20 = vmul.f32 0.70710677, %v12025_v37  ;;  %v12054_v31 = vmul.f32 %v5728_v54, %v11728_v57  ;;  %v4587_v0 = vmul.f32 %v4586_v46, %v11639_v49 }
 0x87e   : > { %v4611_v41 = vsel %vm12035_vm5, %v4610_v40, %v4606_v36  ;;  %v4701_v3 = vmul.f32 %v4700_v21, %v11879_v61  ;;  %8243 = vrcp.f32 %v12042_v11  ;;  %v4715_v51 = vadd.f32 0.4994258, %v4714_v52 }
 0x87f   : > { %14147 = vst [vmem:[#allocation54_spill] sm:$0xff] %v12054_v31  ;;  %v4737_v60 = vmul.f32 2.1237322e-06, %v11950_v1  ;;  %v4752_v12 = vmul.f32 %v4751_v17, %v11950_v1  ;;  %v12064_v39 = vmul.f32 %v4666_v63, %v11731_v33  ;;  %v4680_v13 = vsub.f32 1.0, %v4679_v32 }
 0x880   : > { %v12067_v57 = vmul.f32 0.5, %v11823_v44  ;;  %v4830_v49 = vmul.f32 %v4829_v53, %v11996_v16  ;;  %v7338_v46 = vclamps-f32 %v4572_v8, 1.0  ;;  %v4624_v29 = vadd.f32 0.18741608, %v4623_v38 }
 0x881   : > { %v4789_v54 = vadd.f32 0.001143296, %v4788_v19  ;;  %v4855_v50 = vmul.f32 %v12051_v20, %v12051_v20  ;;  %v4612_v21 = vmul.f32 %v4611_v41, %v4587_v0  ;;  %v4687_v36 = vand.u32 2147483647, %v11972_v28 }
 0x882   : > { %v4689_v52 = vand.u32 2147483648, %v11972_v28  ;;  %v12075_v33 = vmul.f32 0.5, %v11882_v59  ;;  %v4702_v17 = vadd.f32 0.05243302, %v4701_v3  ;;  %v4716_v44 = vmul.f32 %v4715_v51, %v11879_v61 }
 0x883   : > { %v4738_v40 = vadd.f32 0.00028619796, %v4737_v60  ;;  %v4753_v63 = vadd.f32 0.112945676, %v4752_v12  ;;  %v4681_v32 = vmul.f32 %v12019_v14, %v4680_v13  ;;  %vm4683_vm6 = vweird.f32 %v11972_v28 }
 0x884   : > { %v4831_v53 = vadd.f32 0.014752088, %v4830_v49  ;;  %v12081_v8 = vadd.f32 %v2847_v7, %v9651_v4  ;;  %v12083_v38 = vpop.eup %8243  ;;  %v5730_v19 = vadd.f32 1.0, %v7338_v46  ;;  %v4625_v0 = vmul.f32 %v4624_v29, %v11820_v6 }
 0x885   : > { %v4790_v59 = vmul.f32 %v4789_v54, %v12022_v35  ;;  %v12087_v41 = vmin.f32 %v4855_v50, 16.0  ;;  %v7339_v3 = vclamps-f32 %v4612_v21, 1.0  ;;  %vm4684_vm7 = vweird.f32 %v12019_v14 }
 0x886   : > { %vm12090_vm8 = vcmp.eq.f32.partialorder %v4687_v36, 8.507059e+37  ;;  %v4690_v60 = vor.u32 1.1754944e-38, %v4689_v52  ;;  %v4703_v12 = vmul.f32 %v4702_v17, %v11879_v61  ;;  %v12095_v13 = vadd.f32 1.0, %v4716_v44  ;;  %vm12119_vm1 = vmor %vm4683_vm6, %vm4684_vm7 }
 0x887   : > { %v4739_v49 = vmul.f32 %v4738_v40, %v11950_v1  ;;  %v4754_v6 = vmul.f32 %v4753_v63, %v11950_v1  ;;  %v4682_v46 = vadd.f32 %v12019_v14, %v4681_v32  ;;  %v4639_v29 = vmul.f32 %v12083_v38, %v12042_v11  ;;  %v2945_v40 = vpop.f32.mrf.mxu0  ;;  %v14151_v63 = vld [vmem:[#allocation59_spill] sm:$0xff]  ;;  %v14152_v32 = vld [vmem:[#allocation64_spill] sm:$0xff] }
 0x888   : > { %v4832_v54 = vmul.f32 %v4831_v53, %v11996_v16  ;;  %v12104_v50 = vmul.f32 0.70710677, %v12081_v8  ;;  %v12107_v7 = vmul.f32 %v5730_v19, %v11803_v25  ;;  %v4626_v21 = vadd.f32 1.1283791, %v4625_v0 }
 0x889   : > { %v4791_v36 = vadd.f32 0.014752088, %v4790_v59  ;;  %v4868_v52 = vmul.f32 3.8918573e-05, %v12087_v41  ;;  %v5731_v17 = vadd.f32 1.0, %v7339_v3  ;;  %v5827_v31 = vpack.c.bf16 %v14152_v32, %v14151_v63 }
 0x88a   : > { %14150 = vst [vmem:[#allocation57_spill] sm:$0xff] %v12107_v7  ;;  %v4817_v44 = vmul.f32 2.1237322e-06, %v11996_v16  ;;  %v5828_v53 = vpack.c.bf16 %v14154_v15, %v14153_v45  ;;  %v4704_v19 = vadd.f32 0.18741608, %v4703_v12  ;;  %8245 = vrcp.f32 %v12095_v13  ;;  %v14157_v7 = vld [vmem:[#allocation60_spill] sm:$0xff] }
 0x88b   : > { %v4740_v0 = vadd.f32 0.0036580483, %v4739_v49  ;;  %v4755_v59 = vadd.f32 0.4994258, %v4754_v6  ;;  %v4686_v3 = vsel %vm12119_vm1, %v12019_v14, %v4682_v46  ;;  %v4640_v63 = vsub.f32 1.0, %v4639_v29  ;;  %6128 = vmatmul.bf16.gmra.mxu1 %v5827_v31  ;;  %v14158_v49 = vld [vmem:[#allocation65_spill] sm:$0xff] }
 0x88c   : > { %v4833_v32 = vadd.f32 0.112945676, %v4832_v54  ;;  %v4895_v15 = vmul.f32 %v12104_v50, %v12104_v50  ;;  %6177 = vmatmul.bf16.gmra.mxu2 %v5828_v53  ;;  %v4792_v45 = vmul.f32 %v4791_v36, %v12022_v35  ;;  %v4869_v28 = vadd.f32 0.001143296, %v4868_v52 }
 0x88d   : > { %v12131_v12 = vadd.f32 %v2945_v40, %v9653_v2  ;;  %v5829_v6 = vpack.c.bf16 %v14158_v49, %v14157_v7  ;;  %v12136_v10 = vmul.f32 %v5731_v17, %v11889_v27  ;;  %v12139_v14 = vmul.f32 %v4626_v21, %v11787_v24 }
 0x88e   : > { %v4647_v46 = vand.u32 2147483647, %v12042_v11  ;;  %v4818_v29 = vadd.f32 0.00028619796, %v4817_v44  ;;  %v4691_v31 = vsel %vm12090_vm8, %v4690_v60, %v4686_v3  ;;  %vm4643_vm9 = vweird.f32 %v12042_v11  ;;  %v14162_v3 = vld [vmem:[#allocation67_spill] sm:$0xff] }
 0x88f   : > { %v4741_v54 = vmul.f32 %v4740_v0, %v11950_v1  ;;  %v4756_v36 = vmul.f32 %v4755_v59, %v11950_v1  ;;  %6226 = vmatmul.bf16.gmra.mxu0 %v5829_v6  ;;  %v4641_v7 = vmul.f32 %v12083_v38, %v4640_v63  ;;  %v4649_v27 = vand.u32 2147483648, %v12042_v11 }
 0x890   : > { %v4834_v24 = vmul.f32 %v4833_v32, %v11996_v16  ;;  %v12150_v21 = vmin.f32 %v4895_v15, 16.0  ;;  %v12152_v52 = vpop.eup %8245  ;;  %v4705_v51 = vmul.f32 %v4704_v19, %v11879_v61  ;;  %v4793_v60 = vadd.f32 0.112945676, %v4792_v45  ;;  %v14161_v19 = vld [vmem:[#allocation61_spill] sm:$0xff] }
 0x891   : > { %v4870_v17 = vmul.f32 %v4869_v28, %v12087_v41  ;;  %v12157_v44 = vmul.f32 0.70710677, %v12131_v12  ;;  %v4692_v40 = vmul.f32 %v4691_v31, %v12064_v39  ;;  %vm4644_vm10 = vweird.f32 %v12083_v38 }
 0x892   : > { %vm12161_vm11 = vcmp.eq.f32.partialorder %v4647_v46, 8.507059e+37  ;;  %v4819_v25 = vmul.f32 %v4818_v29, %v11996_v16  ;;  %v4742_v0 = vadd.f32 0.05243302, %v4741_v54  ;;  %v12166_v59 = vadd.f32 1.0, %v4756_v36  ;;  %vm12185_vm12 = vmor %vm4643_vm9, %vm4644_vm10 }
 0x893   : > { %v4777_v61 = vmul.f32 2.1237322e-06, %v12022_v35  ;;  %v5830_v63 = vpack.c.bf16 %v14162_v3, %v14161_v19  ;;  %v4642_v32 = vadd.f32 %v12083_v38, %v4641_v7  ;;  %v4719_v39 = vmul.f32 %v12152_v52, %v12095_v13  ;;  %v14166_v7 = vld [vmem:[#allocation71_spill] sm:$0xff] }
 0x894   : > { %v4835_v15 = vadd.f32 0.4994258, %v4834_v24  ;;  %v4908_v45 = vmul.f32 3.8918573e-05, %v12150_v21  ;;  %v4706_v28 = vadd.f32 1.1283791, %v4705_v51  ;;  %v4794_v49 = vmul.f32 %v4793_v60, %v12022_v35 }
 0x895   : > { %v4871_v6 = vadd.f32 0.014752088, %v4870_v17  ;;  %v4975_v46 = vmul.f32 %v12157_v44, %v12157_v44  ;;  %6275 = vmatmul.bf16.gmra.mxu3 %v5830_v63  ;;  %v7341_v29 = vclamps-f32 %v4692_v40, 1.0  ;;  %v4650_v31 = vor.u32 1.1754944e-38, %v4649_v27 }
 0x896   : > { %v12179_v54 = vmul.f32 0.5, %v11932_v30  ;;  %v4820_v36 = vadd.f32 0.0036580483, %v4819_v25  ;;  %v4743_v24 = vmul.f32 %v4742_v0, %v11950_v1  ;;  %8247 = vrcp.f32 %v12166_v59 }
 0x897   : > { %v12192_v51 = vmul.f32 0.5, %v11966_v9  ;;  %v4778_v27 = vadd.f32 0.00028619796, %v4777_v61  ;;  %v4646_v30 = vsel %vm12185_vm12, %v12083_v38, %v4642_v32  ;;  %v4720_v60 = vsub.f32 1.0, %v4719_v39  ;;  %v14165_v61 = vld [vmem:[#allocation73_spill] sm:$0xff]  ;;  %v14167_v38 = vld [vmem:[#allocation75_spill] sm:$0xff] }
 0x898   : > { %v4836_v17 = vmul.f32 %v4835_v15, %v11996_v16  ;;  %v4909_v11 = vadd.f32 0.001143296, %v4908_v45  ;;  %v12199_v40 = vmul.f32 %v4706_v28, %v11845_v34  ;;  %v4795_v25 = vadd.f32 0.4994258, %v4794_v49 }
 0x899   : > { %v4872_v0 = vmul.f32 %v4871_v6, %v12087_v41  ;;  %v12202_v19 = vmin.f32 %v4975_v46, 16.0  ;;  %v5733_v3 = vadd.f32 1.0, %v7341_v29  ;;  %v4821_v9 = vmul.f32 %v4820_v36, %v11996_v16  ;;  %v14169_v36 = vld [vmem:[#allocation74_spill] sm:$0xff] }
 0x89a   : > { %v5831_v63 = vpack.c.bf16 %v14165_v61, %v11200_v56  ;;  %v5832_v32 = vpack.c.bf16 %v14167_v38, %v14166_v7  ;;  %v4651_v39 = vsel %vm12161_vm11, %v4650_v31, %v4646_v30  ;;  %vm4723_vm13 = vweird.f32 %v12095_v13  ;;  %v14168_v31 = vld [vmem:[#allocation70_spill] sm:$0xff] }
 0x89b   : > { %v4744_v34 = vadd.f32 0.18741608, %v4743_v24  ;;  %v4779_v15 = vmul.f32 %v4778_v27, %v12022_v35  ;;  %v4721_v45 = vmul.f32 %v12152_v52, %v4720_v60  ;;  %v4727_v28 = vand.u32 2147483647, %v12095_v13 }
 0x89c   : > { %v12215_v49 = vadd.f32 1.0, %v4836_v17  ;;  %v4910_v6 = vmul.f32 %v4909_v11, %v12150_v21  ;;  %6133 = vmatmul.bf16.gmra.mxu1 %v5831_v63  ;;  %6182 = vmatmul.bf16.gmra.mxu2 %v5832_v32  ;;  %v12218_v56 = vpop.eup %8247  ;;  %v4796_v53 = vmul.f32 %v4795_v25, %v12022_v35  ;;  %v4873_v46 = vadd.f32 0.112945676, %v4872_v0  ;;  %v2896_v0 = vpop.f32.mrf.mxu2 }
 0x89d   : > { %v4988_v29 = vmul.f32 3.8918573e-05, %v12202_v19  ;;  %v5833_v24 = vpack.c.bf16 %v14169_v36, %v14168_v31  ;;  %v12225_v27 = vmul.f32 %v5733_v3, %v11895_v58  ;;  %v4652_v30 = vmul.f32 %v4651_v39, %v12139_v14 }
 0x89e   : > { %v4729_v60 = vand.u32 2147483648, %v12095_v13  ;;  %v4822_v17 = vadd.f32 0.05243302, %v4821_v9  ;;  %vm4724_vm14 = vweird.f32 %v12152_v52  ;;  %v4745_v11 = vmul.f32 %v4744_v34, %v11950_v1 }
 0x89f   : > { %v4780_v61 = vadd.f32 0.0036580483, %v4779_v15  ;;  %v4857_v25 = vmul.f32 2.1237322e-06, %v12087_v41  ;;  %6231 = vmatmul.bf16.gmra.mxu0 %v5833_v24  ;;  %v4722_v63 = vadd.f32 %v12152_v52, %v4721_v45  ;;  %v4759_v58 = vmul.f32 %v12218_v56, %v12166_v59  ;;  %vm12254_vm0 = vmor %vm4723_vm13, %vm4724_vm14 }
 0x8a0   : > { %v4911_v3 = vadd.f32 0.014752088, %v4910_v6  ;;  %v12236_v14 = vadd.f32 %v2896_v0, %v9664_v23  ;;  %8249 = vrcp.f32 %v12215_v49  ;;  %v12239_v9 = vadd.f32 1.0, %v4796_v53  ;;  %v14174_v53 = vld [vmem:[#allocation72_spill] sm:$0xff] }
 0x8a1   : > { %v4874_v1 = vmul.f32 %v4873_v46, %v12087_v41  ;;  %v4989_v7 = vadd.f32 0.001143296, %v4988_v29  ;;  %v7340_v38 = vclamps-f32 %v4652_v30, 1.0  ;;  %vm12242_vm15 = vcmp.eq.f32.partialorder %v4727_v28, 8.507059e+37 }
 0x8a2   : > { %v4823_v39 = vmul.f32 %v4822_v17, %v11996_v16  ;;  %v12248_v34 = vmul.f32 0.70710677, %v12236_v14  ;;  %v4746_v45 = vadd.f32 1.1283791, %v4745_v11  ;;  %v4858_v6 = vadd.f32 0.00028619796, %v4857_v25 }
 0x8a3   : > { %v4897_v28 = vmul.f32 2.1237322e-06, %v12150_v21  ;;  %v5834_v46 = vpack.c.bf16 %v11563_v62, %v14174_v53  ;;  %v4726_v29 = vsel %vm12254_vm0, %v12152_v52, %v4722_v63  ;;  %v4781_v31 = vmul.f32 %v4780_v61, %v12022_v35 }
 0x8a4   : > { %v4912_v36 = vmul.f32 %v4911_v3, %v12150_v21  ;;  %v4935_v13 = vmul.f32 %v12248_v34, %v12248_v34  ;;  %v4760_v24 = vsub.f32 1.0, %v4759_v58  ;;  %8251 = vrcp.f32 %v12239_v9 }
 0x8a5   : > { %v4875_v30 = vadd.f32 0.4994258, %v4874_v1  ;;  %v4990_v17 = vmul.f32 %v4989_v7, %v12202_v19  ;;  %6280 = vmatmul.bf16.gmra.mxu3 %v5834_v46  ;;  %v4730_v11 = vor.u32 1.1754944e-38, %v4729_v60  ;;  %v4824_v62 = vadd.f32 0.18741608, %v4823_v39 }
 0x8a6   : > { %v12271_v25 = vmul.f32 0.5, %v12025_v37  ;;  %v12273_v52 = vmin.f32 %v4935_v13, 16.0  ;;  %v12275_v61 = vpop.eup %8249  ;;  %v5732_v0 = vadd.f32 1.0, %v7340_v38  ;;  %v12278_v63 = vmul.f32 %v4746_v45, %v11909_v26 }
 0x8a7   : > { %v4859_v58 = vmul.f32 %v4858_v6, %v12087_v41  ;;  %v4898_v3 = vadd.f32 0.00028619796, %v4897_v28  ;;  %v4731_v1 = vsel %vm12242_vm15, %v4730_v11, %v4726_v29  ;;  %vm4763_vm2 = vweird.f32 %v12166_v59 }
 0x8a8   : > { %v4782_v60 = vadd.f32 0.05243302, %v4781_v31  ;;  %v4913_v7 = vadd.f32 0.112945676, %v4912_v36  ;;  %v4761_v37 = vmul.f32 %v12218_v56, %v4760_v24  ;;  %v4876_v39 = vmul.f32 %v4875_v30, %v12087_v41 }
 0x8a9   : > { %v4991_v15 = vadd.f32 0.014752088, %v4990_v17  ;;  %v4948_v38 = vmul.f32 3.8918573e-05, %v12273_v52  ;;  %v4767_v26 = vand.u32 2147483647, %v12166_v59  ;;  %v4825_v6 = vmul.f32 %v4824_v62, %v11996_v16 }
 0x8aa   : > { %v4769_v45 = vand.u32 2147483648, %v12166_v59  ;;  %v4839_v32 = vmul.f32 %v12275_v61, %v12215_v49  ;;  %v12292_v28 = vpop.eup %8251  ;;  %v4732_v53 = vmul.f32 %v4731_v1, %v12199_v40  ;;  %v4860_v46 = vadd.f32 0.0036580483, %v4859_v58 }
 0x8ab   : > { %v4899_v29 = vmul.f32 %v4898_v3, %v12150_v21  ;;  %v4949_v31 = vadd.f32 0.001143296, %v4948_v38  ;;  %vm4764_vm3 = vweird.f32 %v12218_v56  ;;  %v4783_v36 = vmul.f32 %v4782_v60, %v12022_v35 }
 0x8ac   : > { %v4914_v13 = vmul.f32 %v4913_v7, %v12150_v21  ;;  %v4977_v24 = vmul.f32 2.1237322e-06, %v12202_v19  ;;  %v4762_v16 = vadd.f32 %v12218_v56, %v4761_v37  ;;  %v12301_v30 = vadd.f32 1.0, %v4876_v39  ;;  %vm12319_vm5 = vmor %vm4763_vm2, %vm4764_vm3 }
 0x8ad   : > { %v4992_v17 = vmul.f32 %v4991_v15, %v12202_v19  ;;  %v4950_v40 = vmul.f32 %v4949_v31, %v12273_v52  ;;  %vm12305_vm4 = vcmp.eq.f32.partialorder %v4767_v26, 8.507059e+37  ;;  %v4826_v62 = vadd.f32 1.1283791, %v4825_v6 }
 0x8ae   : > { %v4840_v58 = vsub.f32 1.0, %v4839_v32  ;;  %v4799_v3 = vmul.f32 %v12292_v28, %v12239_v9  ;;  %v7342_v1 = vclamps-f32 %v4732_v53, 1.0  ;;  %v4770_v60 = vor.u32 1.1754944e-38, %v4769_v45 }
 0x8af   : > { %v4861_v7 = vmul.f32 %v4860_v46, %v12087_v41  ;;  %v4900_v37 = vadd.f32 0.0036580483, %v4899_v29  ;;  %v12313_v39 = vmul.f32 %v5732_v0, %v11946_v43  ;;  %v4915_v38 = vadd.f32 0.4994258, %v4914_v13 }
 0x8b0   : > { %v4978_v26 = vadd.f32 0.00028619796, %v4977_v24  ;;  %v4951_v6 = vadd.f32 0.014752088, %v4950_v40  ;;  %v4766_v45 = vsel %vm12319_vm5, %v12218_v56, %v4762_v16  ;;  %v4784_v32 = vadd.f32 0.18741608, %v4783_v36 }
 0x8b1   : > { %8253 = vrcp.f32 %v12301_v30  ;;  %v4993_v43 = vadd.f32 0.112945676, %v4992_v17  ;;  %v4827_v0 = vmul.f32 %v4826_v62, %v11956_v5  ;;  %v4841_v53 = vmul.f32 %v12275_v61, %v4840_v58  ;;  %v2994_v62 = vpop.f32.mrf.mxu3 }
 0x8b2   : > { %v4800_v59 = vsub.f32 1.0, %v4799_v3  ;;  %v12330_v46 = vmul.f32 0.5, %v12081_v8  ;;  %v5734_v29 = vadd.f32 1.0, %v7342_v1  ;;  %v4862_v31 = vadd.f32 0.05243302, %v4861_v7 }
 0x8b3   : > { %v4901_v13 = vmul.f32 %v4900_v37, %v12150_v21  ;;  %v4952_v24 = vmul.f32 %v4951_v6, %v12273_v52  ;;  %v4771_v56 = vsel %vm12305_vm4, %v4770_v60, %v4766_v45  ;;  %v4847_v36 = vand.u32 2147483647, %v12215_v49 }
 0x8b4   : > { %v4916_v16 = vmul.f32 %v4915_v38, %v12150_v21  ;;  %v4979_v5 = vmul.f32 %v4978_v26, %v12202_v19  ;;  %vm4843_vm6 = vweird.f32 %v12215_v49  ;;  %v4849_v8 = vand.u32 2147483648, %v12215_v49 }
 0x8b5   : > { %v4785_v17 = vmul.f32 %v4784_v32, %v12022_v35  ;;  %v4994_v40 = vmul.f32 %v4993_v43, %v12202_v19  ;;  %v4842_v58 = vadd.f32 %v12275_v61, %v4841_v53  ;;  %vm4844_vm7 = vweird.f32 %v12275_v61 }
 0x8b6   : > { %v4801_v11 = vmul.f32 %v12292_v28, %v4800_v59  ;;  %v12347_v3 = vadd.f32 %v2994_v62, %v13980_v22  ;;  %v4772_v60 = vmul.f32 %v4771_v56, %v12278_v63  ;;  %v4863_v7 = vmul.f32 %v4862_v31, %v12087_v41  ;;  %vm12364_vm1 = vmor %vm4843_vm6, %vm4844_vm7 }
 0x8b7   : > { %v12349_v1 = vpop.eup %8253  ;;  %v4902_v37 = vadd.f32 0.05243302, %v4901_v13  ;;  %v4953_v35 = vadd.f32 0.112945676, %v4952_v24  ;;  %vm12353_vm8 = vcmp.eq.f32.partialorder %v4847_v36, 8.507059e+37  ;;  %v12357_v38 = vadd.f32 1.0, %v4916_v16 }
 0x8b8   : > { %v4980_v26 = vadd.f32 0.0036580483, %v4979_v5  ;;  %v12360_v6 = vmul.f32 0.70710677, %v12347_v3  ;;  %v4850_v63 = vor.u32 1.1754944e-38, %v4849_v8  ;;  %vm4804_vm9 = vweird.f32 %v12292_v28 }
 0x8b9   : > { %v4809_v32 = vand.u32 2147483648, %v12239_v9  ;;  %v4995_v43 = vadd.f32 0.4994258, %v4994_v40  ;;  %v4846_v53 = vsel %vm12364_vm1, %v12275_v61, %v4842_v58  ;;  %v4802_v59 = vadd.f32 %v12292_v28, %v4801_v11 }
 0x8ba   : > { %v4879_v31 = vmul.f32 %v12349_v1, %v12301_v30  ;;  %v5015_v49 = vmul.f32 %v12360_v6, %v12360_v6  ;;  %vm4803_vm10 = vweird.f32 %v12239_v9  ;;  %v4864_v13 = vadd.f32 0.18741608, %v4863_v7 }
 0x8bb   : > { %v4903_v24 = vmul.f32 %v4902_v37, %v12150_v21  ;;  %v4954_v56 = vmul.f32 %v4953_v35, %v12273_v52  ;;  %v4807_v36 = vand.u32 2147483647, %v12239_v9  ;;  %8255 = vrcp.f32 %v12357_v38  ;;  %vm12390_vm11 = vmor %vm4803_vm10, %vm4804_vm9 }
 0x8bc   : > { %v4981_v61 = vmul.f32 %v4980_v26, %v12202_v19  ;;  %v12384_v16 = vmin.f32 %v5015_v49, 16.0  ;;  %v7343_v5 = vclamps-f32 %v4772_v60, 1.0  ;;  %v4851_v8 = vsel %vm12353_vm8, %v4850_v63, %v4846_v53 }
 0x8bd   : > { %v4786_v40 = vadd.f32 1.1283791, %v4785_v17  ;;  %v4996_v58 = vmul.f32 %v4995_v43, %v12202_v19  ;;  %v4806_v9 = vsel %vm12390_vm11, %v12292_v28, %v4802_v59  ;;  %v4810_v11 = vor.u32 1.1754944e-38, %v4809_v32 }
 0x8be   : > { %v4880_v7 = vsub.f32 1.0, %v4879_v31  ;;  %v4937_v60 = vmul.f32 2.1237322e-06, %v12273_v52  ;;  %v4865_v37 = vmul.f32 %v4864_v13, %v12087_v41  ;;  %v4904_v35 = vadd.f32 0.18741608, %v4903_v24 }
 0x8bf   : > { %v4955_v17 = vadd.f32 0.4994258, %v4954_v56  ;;  %v5028_v15 = vmul.f32 3.8918573e-05, %v12384_v16  ;;  %v4852_v26 = vmul.f32 %v4851_v8, %v4827_v0  ;;  %vm4808_vm12 = vcmp.eq.f32.partialorder %v4807_v36, 8.507059e+37 }
 0x8c0   : > { %v12402_v45 = vmul.f32 0.5, %v12131_v12  ;;  %v4982_v63 = vadd.f32 0.05243302, %v4981_v61  ;;  %v12405_v43 = vmul.f32 %v5734_v29, %v12067_v57  ;;  %v4811_v28 = vsel %vm4808_vm12, %v4810_v11, %v4806_v9 }
 0x8c1   : > { %v12407_v32 = vadd.f32 1.0, %v4996_v58  ;;  %v5029_v53 = vadd.f32 0.001143296, %v5028_v15  ;;  %v12409_v59 = vpop.eup %8255  ;;  %v5735_v41 = vadd.f32 1.0, %v7343_v5  ;;  %v4787_v31 = vmul.f32 %v4786_v40, %v11984_v18 }
 0x8c2   : > { %v4881_v49 = vmul.f32 %v12349_v1, %v4880_v7  ;;  %v4938_v0 = vadd.f32 0.00028619796, %v4937_v60  ;;  %v4866_v13 = vadd.f32 1.1283791, %v4865_v37  ;;  %v4905_v12 = vmul.f32 %v4904_v35, %v12150_v21 }
 0x8c3   : > { %v4956_v24 = vmul.f32 %v4955_v17, %v12273_v52  ;;  %v5030_v57 = vmul.f32 %v5029_v53, %v12384_v16  ;;  %v7345_v29 = vclamps-f32 %v4852_v26, 1.0  ;;  %v4812_v56 = vmul.f32 %v4811_v28, %v4787_v31  ;;  %v2948_v28 = vpop.f32.mrf.mxu0 }
 0x8c4   : > { %v4887_v36 = vand.u32 2147483647, %v12301_v30  ;;  %v4983_v61 = vmul.f32 %v4982_v63, %v12202_v19  ;;  %v4889_v5 = vand.u32 2147483648, %v12301_v30  ;;  %v4919_v18 = vmul.f32 %v12409_v59, %v12357_v38  ;;  %v2850_v63 = vpop.f32.mrf.mxu1 }
 0x8c5   : > { %8257 = vrcp.f32 %v12407_v32  ;;  %v5031_v8 = vadd.f32 0.014752088, %v5030_v57  ;;  %v12423_v21 = vmul.f32 %v5735_v41, %v12075_v33  ;;  %v4882_v40 = vadd.f32 %v12349_v1, %v4881_v49 }
 0x8c6   : > { %vm4884_vm13 = vweird.f32 %v12349_v1  ;;  %v4939_v62 = vmul.f32 %v4938_v0, %v12273_v52  ;;  %v4867_v58 = vmul.f32 %v4866_v13, %v12051_v20  ;;  %v4906_v9 = vadd.f32 1.1283791, %v4905_v12 }
 0x8c7   : > { %v12429_v11 = vadd.f32 1.0, %v4956_v24  ;;  %v5032_v7 = vmul.f32 %v5031_v8, %v12384_v16  ;;  %v5737_v60 = vadd.f32 1.0, %v7345_v29  ;;  %v7344_v37 = vclamps-f32 %v4812_v56, 1.0 }
 0x8c8   : > { %vm4883_vm14 = vweird.f32 %v12301_v30  ;;  %v4984_v35 = vadd.f32 0.18741608, %v4983_v61  ;;  %vm12437_vm0 = vcmp.eq.f32.partialorder %v4887_v36, 8.507059e+37  ;;  %v4890_v15 = vor.u32 1.1754944e-38, %v4889_v5 }
 0x8c9   : > { %vm12433_vm15 = vmor %vm4883_vm14, %vm4884_vm13  ;;  %v4920_v20 = vsub.f32 1.0, %v4919_v18  ;;  %v5033_v26 = vadd.f32 0.112945676, %v5032_v7  ;;  %v4940_v41 = vadd.f32 0.0036580483, %v4939_v62  ;;  %v12445_v30 = vadd.f32 %v2850_v63, %v9651_v4  ;;  %v2899_v7 = vpop.f32.mrf.mxu2 }
 0x8ca   : > { %v4886_v53 = vsel %vm12433_vm15, %v12349_v1, %v4882_v40  ;;  %v12448_v31 = vadd.f32 %v2948_v28, %v9653_v2  ;;  %v12453_v0 = vmul.f32 %v4906_v9, %v12104_v50  ;;  %8259 = vrcp.f32 %v12429_v11 }
 0x8cb   : > { %v12450_v49 = vpop.eup %8257  ;;  %v5017_v13 = vmul.f32 2.1237322e-06, %v12384_v16  ;;  %v5034_v12 = vmul.f32 %v5033_v26, %v12384_v16  ;;  %v5736_v24 = vadd.f32 1.0, %v7344_v37  ;;  %v4985_v1 = vmul.f32 %v4984_v35, %v12202_v19 }
 0x8cc   : > { %v12460_v57 = vmul.f32 0.70710677, %v12445_v30  ;;  %v12463_v29 = vmul.f32 0.70710677, %v12448_v31  ;;  %v12466_v56 = vmul.f32 %v5737_v60, %v12179_v54  ;;  %v4891_v50 = vsel %vm12437_vm0, %v4890_v15, %v4886_v53 }
 0x8cd   : > { %v4921_v36 = vmul.f32 %v12409_v59, %v4920_v20  ;;  %v5035_v61 = vadd.f32 0.4994258, %v5034_v12  ;;  %v4999_v5 = vmul.f32 %v12450_v49, %v12407_v32  ;;  %v4941_v19 = vmul.f32 %v4940_v41, %v12273_v52 }
 0x8ce   : > { %14189 = vst [vmem:[#allocation55_spill] sm:$0xff] %v12466_v56  ;;  %v5055_v18 = vmul.f32 %v12460_v57, %v12460_v57  ;;  %v5135_v8 = vmul.f32 %v12463_v29, %v12463_v29  ;;  %v4927_v54 = vand.u32 2147483647, %v12357_v38  ;;  %v4929_v40 = vand.u32 2147483648, %v12357_v38 }
 0x8cf   : > { %v5018_v62 = vadd.f32 0.00028619796, %v5017_v13  ;;  %v5036_v9 = vmul.f32 %v5035_v61, %v12384_v16  ;;  %v12482_v60 = vmul.f32 %v5736_v24, %v12192_v51  ;;  %vm4923_vm2 = vweird.f32 %v12357_v38 }
 0x8d0   : > { %v4986_v37 = vadd.f32 1.1283791, %v4985_v1  ;;  %v12485_v35 = vmin.f32 %v5055_v18, 16.0  ;;  %v12487_v33 = vpop.eup %8259  ;;  %v4892_v17 = vmul.f32 %v4891_v50, %v4867_v58  ;;  %v4922_v15 = vadd.f32 %v12409_v59, %v4921_v36 }
 0x8d1   : > { %14190 = vst [vmem:[#allocation59_spill] sm:$0xff] %v12482_v60  ;;  %vm4924_vm3 = vweird.f32 %v12409_v59  ;;  %v12491_v20 = vmin.f32 %v5135_v8, 16.0  ;;  %v5000_v26 = vsub.f32 1.0, %v4999_v5  ;;  %v4942_v63 = vadd.f32 0.05243302, %v4941_v19 }
 0x8d2   : > { %v5068_v28 = vmul.f32 3.8918573e-05, %v12485_v35  ;;  %v12495_v51 = vadd.f32 %v2899_v7, %v9664_v23  ;;  %vm12497_vm4 = vcmp.eq.f32.partialorder %v4927_v54, 8.507059e+37  ;;  %v4930_v41 = vor.u32 1.1754944e-38, %v4929_v40  ;;  %vm12517_vm5 = vmor %vm4923_vm2, %vm4924_vm3 }
 0x8d3   : > { %v5019_v58 = vmul.f32 %v5018_v62, %v12384_v16  ;;  %v12502_v13 = vadd.f32 1.0, %v5036_v9  ;;  %v12505_v12 = vmul.f32 %v4986_v37, %v12157_v44  ;;  %v12508_v24 = vmul.f32 0.5, %v12236_v14 }
 0x8d4   : > { %v4959_v1 = vmul.f32 %v12487_v33, %v12429_v11  ;;  %v5057_v50 = vmul.f32 2.1237322e-06, %v12485_v35  ;;  %v7346_v36 = vclamps-f32 %v4892_v17, 1.0  ;;  %vm5003_vm6 = vweird.f32 %v12407_v32 }
 0x8d5   : > { %v5069_v44 = vadd.f32 0.001143296, %v5068_v28  ;;  %v5148_v14 = vmul.f32 3.8918573e-05, %v12491_v20  ;;  %v4926_v5 = vsel %vm12517_vm5, %v12409_v59, %v4922_v15  ;;  %v5001_v19 = vmul.f32 %v12450_v49, %v5000_v26 }
 0x8d6   : > { %v4943_v18 = vmul.f32 %v4942_v63, %v12273_v52  ;;  %v12529_v8 = vmul.f32 0.70710677, %v12495_v51  ;;  %v5020_v38 = vadd.f32 0.0036580483, %v5019_v58  ;;  %8261 = vrcp.f32 %v12502_v13 }
 0x8d7   : > { %v5070_v54 = vmul.f32 %v5069_v44, %v12485_v35  ;;  %v5149_v40 = vadd.f32 0.001143296, %v5148_v14  ;;  %v4960_v62 = vsub.f32 1.0, %v4959_v1  ;;  %v5058_v9 = vadd.f32 0.00028619796, %v5057_v50  ;;  %v2997_v1 = vpop.f32.mrf.mxu3 }
 0x8d8   : > { %v5137_v7 = vmul.f32 2.1237322e-06, %v12491_v20  ;;  %v5095_v59 = vmul.f32 %v12529_v8, %v12529_v8  ;;  %v5007_v37 = vand.u32 2147483647, %v12407_v32  ;;  %v5009_v17 = vand.u32 2147483648, %v12407_v32 }
 0x8d9   : > { %v5071_v15 = vadd.f32 0.014752088, %v5070_v54  ;;  %v5150_v26 = vmul.f32 %v5149_v40, %v12491_v20  ;;  %v5002_v63 = vadd.f32 %v12450_v49, %v5001_v19  ;;  %vm5004_vm7 = vweird.f32 %v12450_v49 }
 0x8da   : > { %v4944_v28 = vadd.f32 0.18741608, %v4943_v18  ;;  %v12541_v58 = vmin.f32 %v5095_v59, 16.0  ;;  %v4931_v50 = vsel %vm12497_vm4, %v4930_v41, %v4926_v5  ;;  %v5021_v61 = vmul.f32 %v5020_v38, %v12384_v16  ;;  %vm12553_vm8 = vmor %vm5003_vm6, %vm5004_vm7 }
 0x8db   : > { %v5072_v44 = vmul.f32 %v5071_v15, %v12485_v35  ;;  %v5151_v14 = vadd.f32 0.014752088, %v5150_v26  ;;  %v5738_v56 = vadd.f32 1.0, %v7346_v36  ;;  %v4961_v54 = vmul.f32 %v12487_v33, %v4960_v62 }
 0x8dc   : > { %v5059_v40 = vmul.f32 %v5058_v9, %v12485_v35  ;;  %v5138_v19 = vadd.f32 0.00028619796, %v5137_v7  ;;  %v12549_v60 = vpop.eup %8261  ;;  %vm12557_vm1 = vcmp.eq.f32.partialorder %v5007_v37, 8.507059e+37  ;;  %v5108_v36 = vmul.f32 3.8918573e-05, %v12541_v58  ;;  %v2852_v7 = vpop.f32.mrf.mxu1 }
 0x8dd   : > { %v5073_v41 = vadd.f32 0.112945676, %v5072_v44  ;;  %v12563_v5 = vadd.f32 %v2997_v1, %v13980_v22  ;;  %v4932_v38 = vmul.f32 %v4931_v50, %v12453_v0  ;;  %v5006_v32 = vsel %vm12553_vm8, %v12450_v49, %v5002_v63 }
 0x8de   : > { %v5010_v62 = vor.u32 1.1754944e-38, %v5009_v17  ;;  %v4945_v9 = vmul.f32 %v4944_v28, %v12273_v52  ;;  %vm4964_vm9 = vweird.f32 %v12487_v33  ;;  %v5022_v59 = vadd.f32 0.05243302, %v5021_v61 }
 0x8df   : > { %14199 = vst [vmem:[#allocation64_spill] sm:$0xff] %v12563_v5  ;;  %v5152_v37 = vmul.f32 %v5151_v14, %v12491_v20  ;;  %v5109_v15 = vadd.f32 0.001143296, %v5108_v36  ;;  %v4962_v26 = vadd.f32 %v12487_v33, %v4961_v54  ;;  %v5039_v1 = vmul.f32 %v12549_v60, %v12502_v13 }
 0x8e0   : > { %v5060_v0 = vadd.f32 0.0036580483, %v5059_v40  ;;  %v5139_v50 = vmul.f32 %v5138_v19, %v12491_v20  ;;  %v5074_v49 = vmul.f32 %v5073_v41, %v12485_v35  ;;  %v12579_v52 = vmul.f32 0.70710677, %v12563_v5 }
 0x8e1   : > { %v5110_v17 = vmul.f32 %v5109_v15, %v12541_v58  ;;  %v12582_v63 = vadd.f32 %v2852_v7, %v9651_v4  ;;  %v5011_v28 = vsel %vm12557_vm1, %v5010_v62, %v5006_v32  ;;  %v4946_v61 = vadd.f32 1.1283791, %v4945_v9 }
 0x8e2   : > { %14200 = vst [vmem:[#allocation40_spill] sm:$0xff] %v12579_v52  ;;  %v4969_v44 = vand.u32 2147483648, %v12429_v11  ;;  %v5097_v14 = vmul.f32 2.1237322e-06, %v12541_v58  ;;  %vm4963_vm10 = vweird.f32 %v12429_v11  ;;  %v4967_v54 = vand.u32 2147483647, %v12429_v11 }
 0x8e3   : > { %v5023_v40 = vmul.f32 %v5022_v59, %v12384_v16  ;;  %v5153_v19 = vadd.f32 0.112945676, %v5152_v37  ;;  %vm12593_vm11 = vmor %vm4963_vm10, %vm4964_vm9  ;;  %v5040_v53 = vsub.f32 1.0, %v5039_v1  ;;  %v5061_v41 = vmul.f32 %v5060_v0, %v12485_v35 }
 0x8e4   : > { %v5140_v36 = vadd.f32 0.0036580483, %v5139_v50  ;;  %v5111_v32 = vadd.f32 0.014752088, %v5110_v17  ;;  %v4966_v62 = vsel %vm12593_vm11, %v12487_v33, %v4962_v26  ;;  %v5075_v9 = vadd.f32 0.4994258, %v5074_v49 }
 0x8e5   : > { %v5175_v11 = vmul.f32 %v12579_v52, %v12579_v52  ;;  %v12604_v7 = vmul.f32 0.70710677, %v12582_v63  ;;  %v7347_v59 = vclamps-f32 %v4932_v38, 1.0  ;;  %v5012_v37 = vmul.f32 %v5011_v28, %v12505_v12 }
 0x8e6   : > { %v4970_v15 = vor.u32 1.1754944e-38, %v4969_v44  ;;  %v5098_v1 = vadd.f32 0.00028619796, %v5097_v14  ;;  %vm4968_vm12 = vcmp.eq.f32.partialorder %v4967_v54, 8.507059e+37  ;;  %v5024_v0 = vadd.f32 0.18741608, %v5023_v40 }
 0x8e7   : > { %v5154_v50 = vmul.f32 %v5153_v19, %v12491_v20  ;;  %v5112_v17 = vmul.f32 %v5111_v32, %v12541_v58  ;;  %v5041_v33 = vmul.f32 %v12549_v60, %v5040_v53  ;;  %v5062_v26 = vadd.f32 0.05243302, %v5061_v41 }
 0x8e8   : > { %v4971_v18 = vsel %vm4968_vm12, %v4970_v15, %v4966_v62  ;;  %v5141_v49 = vmul.f32 %v5140_v36, %v12491_v20  ;;  %v4947_v5 = vmul.f32 %v4946_v61, %v12248_v34  ;;  %v5076_v38 = vmul.f32 %v5075_v9, %v12485_v35 }
 0x8e9   : > { %v12613_v52 = vmin.f32 %v5175_v11, 16.0  ;;  %v5215_v12 = vmul.f32 %v12604_v7, %v12604_v7  ;;  %v12618_v28 = vmul.f32 %v5738_v56, %v12271_v25  ;;  %v5739_v44 = vadd.f32 1.0, %v7347_v59 }
 0x8ea   : > { %v7349_v14 = vclamps-f32 %v5012_v37, 1.0  ;;  %v5099_v54 = vmul.f32 %v5098_v1, %v12541_v58  ;;  %v4972_v40 = vmul.f32 %v4971_v18, %v4947_v5  ;;  %v5025_v19 = vmul.f32 %v5024_v0, %v12384_v16 }
 0x8eb   : > { %v5155_v53 = vadd.f32 0.4994258, %v5154_v50  ;;  %v5113_v41 = vadd.f32 0.112945676, %v5112_v17  ;;  %v5042_v34 = vadd.f32 %v12549_v60, %v5041_v33  ;;  %vm5044_vm13 = vweird.f32 %v12549_v60 }
 0x8ec   : > { %v5063_v61 = vmul.f32 %v5062_v26, %v12485_v35  ;;  %v5142_v36 = vadd.f32 0.05243302, %v5141_v49  ;;  %v5049_v32 = vand.u32 2147483648, %v12502_v13  ;;  %v12626_v25 = vadd.f32 1.0, %v5076_v38  ;;  %v2950_v49 = vpop.f32.mrf.mxu0 }
 0x8ed   : > { %v5188_v56 = vmul.f32 3.8918573e-05, %v12613_v52  ;;  %v12629_v62 = vmin.f32 %v5215_v12, 16.0  ;;  %v5741_v5 = vadd.f32 1.0, %v7349_v14  ;;  %vm5043_vm14 = vweird.f32 %v12502_v13 }
 0x8ee   : > { %v5047_v16 = vand.u32 2147483647, %v12502_v13  ;;  %v5100_v9 = vadd.f32 0.0036580483, %v5099_v54  ;;  %v7348_v11 = vclamps-f32 %v4972_v40, 1.0  ;;  %vm12633_vm15 = vmor %vm5043_vm14, %vm5044_vm13  ;;  %v5156_v15 = vmul.f32 %v5155_v53, %v12491_v20 }
 0x8ef   : > { %v5026_v59 = vadd.f32 1.1283791, %v5025_v19  ;;  %v5114_v1 = vmul.f32 %v5113_v41, %v12541_v58  ;;  %v5046_v0 = vsel %vm12633_vm15, %v12549_v60, %v5042_v34  ;;  %v5064_v50 = vadd.f32 0.18741608, %v5063_v61 }
 0x8f0   : > { %v5143_v17 = vmul.f32 %v5142_v36, %v12491_v20  ;;  %v5177_v13 = vmul.f32 2.1237322e-06, %v12613_v52  ;;  %v5050_v18 = vor.u32 1.1754944e-38, %v5049_v32  ;;  %8263 = vrcp.f32 %v12626_v25 }
 0x8f1   : > { %v5189_v33 = vadd.f32 0.001143296, %v5188_v56  ;;  %v5228_v26 = vmul.f32 3.8918573e-05, %v12629_v62  ;;  %v12647_v38 = vmul.f32 %v5739_v44, %v12330_v46  ;;  %v12650_v12 = vmul.f32 0.5, %v12347_v3 }
 0x8f2   : > { %vm5048_vm0 = vcmp.eq.f32.partialorder %v5047_v16, 8.507059e+37  ;;  %v5101_v60 = vmul.f32 %v5100_v9, %v12541_v58  ;;  %v5027_v14 = vmul.f32 %v5026_v59, %v12360_v6  ;;  %v12654_v40 = vadd.f32 1.0, %v5156_v15 }
 0x8f3   : > { %v5051_v54 = vsel %vm5048_vm0, %v5050_v18, %v5046_v0  ;;  %v5115_v19 = vadd.f32 0.4994258, %v5114_v1  ;;  %v5065_v53 = vmul.f32 %v5064_v50, %v12485_v35  ;;  %v5144_v41 = vadd.f32 0.18741608, %v5143_v17 }
 0x8f4   : > { %v5178_v34 = vadd.f32 0.00028619796, %v5177_v13  ;;  %v12658_v61 = vadd.f32 %v2950_v49, %v9653_v2  ;;  %v12661_v46 = vmul.f32 %v5741_v5, %v12402_v45  ;;  %v5740_v3 = vadd.f32 1.0, %v7348_v11  ;;  %v2901_v11 = vpop.f32.mrf.mxu2 }
 0x8f5   : > { %v5190_v44 = vmul.f32 %v5189_v33, %v12613_v52  ;;  %v5229_v36 = vadd.f32 0.001143296, %v5228_v26  ;;  %v5052_v32 = vmul.f32 %v5051_v54, %v5027_v14  ;;  %v12665_v6 = vmul.f32 0.5, %v12445_v30 }
 0x8f6   : > { %v12668_v56 = vmul.f32 0.5, %v12448_v31  ;;  %v5102_v35 = vadd.f32 0.05243302, %v5101_v60  ;;  %v12670_v16 = vpop.eup %8263  ;;  %8265 = vrcp.f32 %v12654_v40  ;;  %v5116_v9 = vmul.f32 %v5115_v19, %v12541_v58 }
 0x8f7   : > { %v5217_v45 = vmul.f32 2.1237322e-06, %v12629_v62  ;;  %v5230_v5 = vmul.f32 %v5229_v36, %v12629_v62  ;;  %v5066_v59 = vadd.f32 1.1283791, %v5065_v53  ;;  %v5145_v37 = vmul.f32 %v5144_v41, %v12491_v20 }
 0x8f8   : > { %v5179_v30 = vmul.f32 %v5178_v34, %v12613_v52  ;;  %v12679_v31 = vmul.f32 0.70710677, %v12658_v61  ;;  %v12682_v15 = vmul.f32 %v5740_v3, %v12508_v24  ;;  %v12685_v1 = vmul.f32 0.5, %v12495_v51 }
 0x8f9   : > { %v5191_v0 = vadd.f32 0.014752088, %v5190_v44  ;;  %v5231_v50 = vadd.f32 0.014752088, %v5230_v5  ;;  %v7350_v17 = vclamps-f32 %v5052_v32, 1.0  ;;  %v5079_v13 = vmul.f32 %v12670_v16, %v12626_v25 }
 0x8fa   : > { %v12690_v18 = vmul.f32 0.5, %v12582_v63  ;;  %v12693_v20 = vadd.f32 %v2901_v11, %v9664_v23  ;;  %v5103_v33 = vmul.f32 %v5102_v35, %v12541_v58  ;;  %v12696_v26 = vadd.f32 1.0, %v5116_v9 }
 0x8fb   : > { %v5218_v24 = vadd.f32 0.00028619796, %v5217_v45  ;;  %v5232_v51 = vmul.f32 %v5231_v50, %v12629_v62  ;;  %v12700_v49 = vmul.f32 %v5066_v59, %v12460_v57  ;;  %v5146_v60 = vadd.f32 1.1283791, %v5145_v37 }
 0x8fc   : > { %v5180_v14 = vadd.f32 0.0036580483, %v5179_v30  ;;  %v5295_v54 = vmul.f32 %v12679_v31, %v12679_v31  ;;  %v12704_v63 = vpop.eup %8265  ;;  %v5087_v19 = vand.u32 2147483647, %v12626_v25  ;;  %v5089_v53 = vand.u32 2147483648, %v12626_v25 }
 0x8fd   : > { %v5192_v41 = vmul.f32 %v5191_v0, %v12613_v52  ;;  %v5233_v34 = vadd.f32 0.112945676, %v5232_v51  ;;  %v5742_v3 = vadd.f32 1.0, %v7350_v17  ;;  %v5080_v44 = vsub.f32 1.0, %v5079_v13 }
 0x8fe   : > { %v12709_v36 = vmin.f32 %v5295_v54, 16.0  ;;  %v12712_v57 = vmul.f32 0.70710677, %v12693_v20  ;;  %v5104_v32 = vadd.f32 0.18741608, %v5103_v33  ;;  %8267 = vrcp.f32 %v12696_v26 }
 0x8ff   : > { %v5219_v35 = vmul.f32 %v5218_v24, %v12629_v62  ;;  %v5234_v9 = vmul.f32 %v5233_v34, %v12629_v62  ;;  %v5159_v45 = vmul.f32 %v12704_v63, %v12654_v40  ;;  %v5181_v5 = vmul.f32 %v5180_v14, %v12613_v52 }
 0x900   : > { %v5297_v11 = vmul.f32 2.1237322e-06, %v12709_v36  ;;  %v5308_v59 = vmul.f32 3.8918573e-05, %v12709_v36  ;;  %vm5083_vm2 = vweird.f32 %v12626_v25  ;;  %v12723_v37 = vor.u32 1.1754944e-38, %v5089_v53 }
 0x901   : > { %v12726_v30 = vmul.f32 %v5146_v60, %v12463_v29  ;;  %v5193_v0 = vadd.f32 0.112945676, %v5192_v41  ;;  %v5255_v50 = vmul.f32 %v12712_v57, %v12712_v57  ;;  %v12731_v17 = vmul.f32 %v5742_v3, %v12650_v12 }
 0x902   : > { %v5081_v13 = vmul.f32 %v12670_v16, %v5080_v44  ;;  %v5167_v33 = vand.u32 2147483647, %v12654_v40  ;;  %v5235_v24 = vadd.f32 0.4994258, %v5234_v9  ;;  %v5169_v51 = vand.u32 2147483648, %v12654_v40 }
 0x903   : > { %v5105_v14 = vmul.f32 %v5104_v32, %v12541_v58  ;;  %v5220_v54 = vadd.f32 0.0036580483, %v5219_v35  ;;  %v5309_v53 = vadd.f32 0.001143296, %v5308_v59  ;;  %v5160_v29 = vsub.f32 1.0, %v5159_v45  ;;  %v2999_v35 = vpop.f32.mrf.mxu3 }
 0x904   : > { %v5182_v60 = vadd.f32 0.05243302, %v5181_v5  ;;  %v5236_v41 = vmul.f32 %v5235_v24, %v12629_v62  ;;  %v5298_v34 = vadd.f32 0.00028619796, %v5297_v11  ;;  %v12738_v23 = vpop.eup %8267  ;;  %vm5084_vm3 = vweird.f32 %v12670_v16 }
 0x905   : > { %v5194_v12 = vmul.f32 %v5193_v0, %v12613_v52  ;;  %v5310_v3 = vmul.f32 %v5309_v53, %v12709_v36  ;;  %v12743_v44 = vmin.f32 %v5255_v50, 16.0  ;;  %v5082_v9 = vadd.f32 %v12670_v16, %v5081_v13  ;;  %v14208_v50 = vld [vmem:[#allocation58_spill] sm:$0xff]  ;;  %vm12773_vm6 = vmor %vm5083_vm2, %vm5084_vm3 }
 0x906   : > { %vm12746_vm4 = vcmp.eq.f32.partialorder %v5087_v19, 8.507059e+37  ;;  %vm5163_vm5 = vweird.f32 %v12654_v40  ;;  %v12751_v32 = vadd.f32 1.0, %v5236_v41  ;;  %v5835_v45 = vpack.c.bf16 %v11744_v42, %v11569_v55  ;;  %v14207_v19 = vld [vmem:[#allocation68_spill] sm:$0xff] }
 0x907   : > { %v5836_v5 = vpack.c.bf16 %v11886_v48, %v11608_v47  ;;  %v5221_v11 = vmul.f32 %v5220_v54, %v12629_v62  ;;  %v5311_v59 = vadd.f32 0.014752088, %v5310_v3  ;;  %v5257_v0 = vmul.f32 2.1237322e-06, %v12743_v44  ;;  %v14217_v41 = vld [vmem:[#allocation52_spill] sm:$0xff] }
 0x908   : > { %v5837_v13 = vpack.c.bf16 %v14208_v50, %v14207_v19  ;;  %v5161_v24 = vmul.f32 %v12704_v63, %v5160_v29  ;;  %v5119_v53 = vmul.f32 %v12738_v23, %v12696_v26  ;;  %8269 = vrcp.f32 %v12751_v32  ;;  %6138 = vmatmul.bf16.gmra.mxu1 %v5835_v45 }
 0x909   : > { %v5299_v55 = vmul.f32 %v5298_v34, %v12709_v36  ;;  %6187 = vmatmul.bf16.gmra.mxu2 %v5836_v5  ;;  %v5170_v47 = vor.u32 1.1754944e-38, %v5169_v51  ;;  %v5106_v42 = vadd.f32 1.1283791, %v5105_v14  ;;  %v5195_v48 = vadd.f32 0.4994258, %v5194_v12 }
 0x90a   : > { %v12767_v54 = vadd.f32 %v2999_v35, %v13980_v22  ;;  %6236 = vmatmul.bf16.gmra.mxu0 %v5837_v13  ;;  %vm5164_vm7 = vweird.f32 %v12704_v63  ;;  %vm12778_vm8 = vcmp.eq.f32.partialorder %v5167_v33, 8.507059e+37  ;;  %v5183_v51 = vmul.f32 %v5182_v60, %v12613_v52  ;;  %v14214_v13 = vld [vmem:[#allocation53_spill] sm:$0xff] }
 0x90b   : > { %v12784_v14 = vmul.f32 0.5, %v12658_v61  ;;  %v5312_v34 = vmul.f32 %v5311_v59, %v12709_v36  ;;  %v5086_v25 = vsel %vm12773_vm6, %v12670_v16, %v5082_v9  ;;  %v5222_v12 = vadd.f32 0.05243302, %v5221_v11  ;;  %v14213_v59 = vld [vmem:[#allocation56_spill] sm:$0xff]  ;;  %vm12812_vm1 = vmor %vm5163_vm5, %vm5164_vm7 }
 0x90c   : > { %v5258_v3 = vadd.f32 0.00028619796, %v5257_v0  ;;  %v5268_v35 = vmul.f32 3.8918573e-05, %v12743_v44  ;;  %v5162_v33 = vadd.f32 %v12704_v63, %v5161_v24  ;;  %v5120_v45 = vsub.f32 1.0, %v5119_v53  ;;  %v14218_v53 = vld [vmem:[#allocation54_spill] sm:$0xff] }
 0x90d   : > { %v5300_v5 = vadd.f32 0.0036580483, %v5299_v55  ;;  %v5313_v19 = vadd.f32 0.112945676, %v5312_v34  ;;  %v5196_v60 = vmul.f32 %v5195_v48, %v12613_v52  ;;  %v12794_v61 = vmul.f32 0.70710677, %v12767_v54 }
 0x90e   : > { %v5269_v50 = vadd.f32 0.001143296, %v5268_v35  ;;  %v5838_v22 = vpack.c.bf16 %v14214_v13, %v14213_v59  ;;  %v12798_v29 = vpop.eup %8269  ;;  %v12801_v16 = vmul.f32 %v5106_v42, %v12529_v8  ;;  %v5127_v9 = vand.u32 2147483647, %v12696_v26 }
 0x90f   : > { %v5184_v11 = vadd.f32 0.18741608, %v5183_v51  ;;  %v5314_v0 = vmul.f32 %v5313_v19, %v12709_v36  ;;  %v5091_v24 = vsel %vm12746_vm4, %v12723_v37, %v5086_v25  ;;  %v5239_v8 = vmul.f32 %v12798_v29, %v12751_v32 }
 0x910   : > { %v5259_v55 = vmul.f32 %v5258_v3, %v12743_v44  ;;  %v5270_v42 = vmul.f32 %v5269_v50, %v12743_v44  ;;  %6285 = vmatmul.bf16.gmra.mxu3 %v5838_v22  ;;  %v5166_v37 = vsel %vm12812_vm1, %v12704_v63, %v5162_v33  ;;  %vm5123_vm9 = vweird.f32 %v12696_v26 }
 0x911   : > { %v5301_v40 = vmul.f32 %v5300_v5, %v12709_v36  ;;  %v5315_v58 = vadd.f32 0.4994258, %v5314_v0  ;;  %v5335_v48 = vmul.f32 %v12794_v61, %v12794_v61  ;;  %v5121_v51 = vmul.f32 %v12738_v23, %v5120_v45 }
 0x912   : > { %v12828_v34 = vadd.f32 1.0, %v5196_v60  ;;  %v5223_v25 = vmul.f32 %v5222_v12, %v12629_v62  ;;  %v5271_v3 = vadd.f32 0.014752088, %v5270_v42  ;;  %v12832_v22 = vmul.f32 %v5091_v24, %v12700_v49 }
 0x913   : > { %v5129_v63 = vand.u32 2147483648, %v12696_v26  ;;  %v5316_v35 = vmul.f32 %v5315_v58, %v12709_v36  ;;  %v12836_v33 = vmin.f32 %v5335_v48, 16.0  ;;  %v5171_v5 = vsel %vm12778_vm8, %v5170_v47, %v5166_v37 }
 0x914   : > { %v5240_v19 = vsub.f32 1.0, %v5239_v8  ;;  %v5260_v50 = vadd.f32 0.0036580483, %v5259_v55  ;;  %v5272_v45 = vmul.f32 %v5271_v3, %v12743_v44  ;;  %vm5124_vm10 = vweird.f32 %v12738_v23 }
 0x915   : > { %v5302_v12 = vadd.f32 0.05243302, %v5301_v40  ;;  %v12842_v60 = vadd.f32 1.0, %v5316_v35  ;;  %v5337_v49 = vmul.f32 2.1237322e-06, %v12836_v33  ;;  %v5122_v59 = vadd.f32 %v12738_v23, %v5121_v51  ;;  %vm12872_vm12 = vmor %vm5123_vm9, %vm5124_vm10 }
 0x916   : > { %8271 = vrcp.f32 %v12828_v34  ;;  %v5224_v13 = vadd.f32 0.18741608, %v5223_v25  ;;  %v5273_v0 = vadd.f32 0.112945676, %v5272_v45  ;;  %v5348_v47 = vmul.f32 3.8918573e-05, %v12836_v33 }
 0x917   : > { %8273 = vrcp.f32 %v12842_v60  ;;  %v5839_v24 = vpack.c.bf16 %v12136_v10, %v14217_v41  ;;  %v5840_v8 = vpack.c.bf16 %v12313_v39, %v14218_v53  ;;  %v12854_v55 = vmul.f32 %v5184_v11, %v12613_v52 }
 0x918   : > { %v5241_v42 = vmul.f32 %v12798_v29, %v5240_v19  ;;  %v5261_v37 = vmul.f32 %v5260_v50, %v12743_v44  ;;  %v5274_v40 = vmul.f32 %v5273_v0, %v12743_v44  ;;  %vm12859_vm11 = vcmp.eq.f32.partialorder %v5127_v9, 8.507059e+37  ;;  %v14224_v0 = vld [vmem:[#allocation57_spill] sm:$0xff] }
 0x919   : > { %v5130_v48 = vor.u32 1.1754944e-38, %v5129_v63  ;;  %v5303_v51 = vmul.f32 %v5302_v12, %v12709_v36  ;;  %v5338_v10 = vadd.f32 0.00028619796, %v5337_v49  ;;  %6143 = vmatmul.bf16.gmra.mxu1 %v5839_v24  ;;  %6192 = vmatmul.bf16.gmra.mxu2 %v5840_v8  ;;  %v7351_v39 = vclamps-f32 %v12832_v22, 1.0 }
 0x91a   : > { %v12866_v52 = vmul.f32 %v5171_v5, %v12726_v30  ;;  %v5225_v11 = vmul.f32 %v5224_v13, %v12629_v62  ;;  %v5275_v25 = vadd.f32 0.4994258, %v5274_v40  ;;  %v5126_v3 = vsel %vm12872_vm12, %v12738_v23, %v5122_v59  ;;  %v14223_v30 = vld [vmem:[#allocation39_spill] sm:$0xff] }
 0x91b   : > { %v5247_v63 = vand.u32 2147483647, %v12751_v32  ;;  %v5349_v35 = vadd.f32 0.001143296, %v5348_v47  ;;  %v5841_v5 = vpack.c.bf16 %v12225_v27, %v14223_v30  ;;  %v5242_v26 = vadd.f32 %v12798_v29, %v5241_v42 }
 0x91c   : > { %v12883_v19 = vpop.eup %8271  ;;  %vm5244_vm13 = vweird.f32 %v12798_v29  ;;  %v5262_v50 = vadd.f32 0.05243302, %v5261_v37  ;;  %v5276_v62 = vmul.f32 %v5275_v25, %v12743_v44  ;;  %v5249_v12 = vand.u32 2147483648, %v12751_v32 }
 0x91d   : > { %v8274_v45 = vpop.eup %8273  ;;  %v5304_v49 = vadd.f32 0.18741608, %v5303_v51  ;;  %v5339_v23 = vmul.f32 %v5338_v10, %v12836_v33  ;;  %v5350_v59 = vmul.f32 %v5349_v35, %v12836_v33  ;;  %6241 = vmatmul.bf16.gmra.mxu0 %v5841_v5  ;;  %v5226_v13 = vadd.f32 1.1283791, %v5225_v11 }
 0x91e   : > { %vm5243_vm14 = vweird.f32 %v12751_v32  ;;  %v5319_v27 = vmul.f32 %v8274_v45, %v12842_v60  ;;  %v5842_v47 = vpack.c.bf16 %v12405_v43, %v14224_v0  ;;  %v5131_v41 = vsel %vm12859_vm11, %v5130_v48, %v5126_v3 }
 0x91f   : > { %v5199_v24 = vmul.f32 %v12883_v19, %v12828_v34  ;;  %vm12901_vm15 = vmor %vm5243_vm14, %vm5244_vm13  ;;  %v12905_v8 = vadd.f32 1.0, %v5276_v62  ;;  %v5351_v32 = vadd.f32 0.014752088, %v5350_v59  ;;  %vm5248_vm0 = vcmp.eq.f32.partialorder %v5247_v63, 8.507059e+37 }
 0x920   : > { %v5246_v42 = vsel %vm12901_vm15, %v12798_v29, %v5242_v26  ;;  %v5320_v43 = vsub.f32 1.0, %v5319_v27  ;;  %v5263_v37 = vmul.f32 %v5262_v50, %v12743_v44  ;;  %6290 = vmatmul.bf16.gmra.mxu3 %v5842_v47  ;;  %v5250_v40 = vor.u32 1.1754944e-38, %v5249_v12 }
 0x921   : > { %v5305_v58 = vmul.f32 %v5304_v49, %v12709_v36  ;;  %8275 = vrcp.f32 %v12905_v8  ;;  %v5340_v48 = vadd.f32 0.0036580483, %v5339_v23  ;;  %vm5324_vm2 = vweird.f32 %v8274_v45 }
 0x922   : > { %v5321_v51 = vmul.f32 %v8274_v45, %v5320_v43  ;;  %v5329_v10 = vand.u32 2147483648, %v12842_v60  ;;  %v5352_v9 = vmul.f32 %v5351_v32, %v12836_v33  ;;  %v7353_v11 = vclamps-f32 %v12866_v52, 1.0 }
 0x923   : > { %v5227_v29 = vmul.f32 %v5226_v13, %v12604_v7  ;;  %v5251_v25 = vsel %vm5248_vm0, %v5250_v40, %v5246_v42  ;;  %v5327_v3 = vand.u32 2147483647, %v12842_v60  ;;  %vm5323_vm3 = vweird.f32 %v12842_v60  ;;  %v14227_v13 = vld [vmem:[#allocation59_spill] sm:$0xff] }
 0x924   : > { %v5322_v63 = vadd.f32 %v8274_v45, %v5321_v51  ;;  %v5264_v36 = vadd.f32 0.18741608, %v5263_v37  ;;  %v5353_v35 = vadd.f32 0.112945676, %v5352_v9  ;;  %v12920_v30 = vmul.f32 %v5131_v41, %v12801_v16  ;;  %vm5325_vm4 = vmor %vm5323_vm3, %vm5324_vm2  ;;  %v14228_v42 = vld [vmem:[#allocation55_spill] sm:$0xff]  ;;  %v2855_v37 = vpop.f32.mrf.mxu1 }
 0x925   : > { %v5200_v5 = vsub.f32 1.0, %v5199_v24  ;;  %v5306_v26 = vadd.f32 1.1283791, %v5305_v58  ;;  %v5341_v50 = vmul.f32 %v5340_v48, %v12836_v33  ;;  %v5252_v62 = vmul.f32 %v5251_v25, %v5227_v29 }
 0x926   : > { %v5326_v12 = vsel %vm5325_vm4, %v8274_v45, %v5322_v63  ;;  %v5330_v49 = vor.u32 1.1754944e-38, %v5329_v10  ;;  %v5354_v7 = vmul.f32 %v5353_v35, %v12836_v33  ;;  %v5207_v59 = vand.u32 2147483647, %v12828_v34 }
 0x927   : > { %v8276_v23 = vpop.eup %8275  ;;  %vm5328_vm5 = vcmp.eq.f32.partialorder %v5327_v3, 8.507059e+37  ;;  %v5843_v60 = vpack.c.bf16 %v12647_v38, %v12423_v21  ;;  %v5844_v16 = vpack.c.bf16 %v12682_v15, %v14227_v13  ;;  %vm5203_vm6 = vweird.f32 %v12828_v34 }
 0x928   : > { %v5209_v27 = vand.u32 2147483648, %v12828_v34  ;;  %v5331_v0 = vsel %vm5328_vm5, %v5330_v49, %v5326_v12  ;;  %v5265_v45 = vmul.f32 %v5264_v36, %v12743_v44  ;;  %v5279_v47 = vmul.f32 %v8276_v23, %v12905_v8 }
 0x929   : > { %v7352_v41 = vclamps-f32 %v12920_v30, 1.0  ;;  %v5307_v24 = vmul.f32 %v5306_v26, %v12679_v31  ;;  %v5342_v53 = vadd.f32 0.05243302, %v5341_v50  ;;  %v5355_v32 = vadd.f32 0.4994258, %v5354_v7  ;;  %6148 = vmatmul.bf16.gmra.mxu1 %v5843_v60  ;;  %6197 = vmatmul.bf16.gmra.mxu2 %v5844_v16 }
 0x92a   : > { %v5201_v21 = vmul.f32 %v12883_v19, %v5200_v5  ;;  %v7355_v38 = vclamps-f32 %v5252_v62, 1.0  ;;  %v5280_v15 = vsub.f32 1.0, %v5279_v47  ;;  %v5845_v43 = vpack.c.bf16 %v12661_v46, %v14228_v42 }
 0x92b   : > { %v5332_v40 = vmul.f32 %v5331_v0, %v5307_v24  ;;  %v5289_v44 = vand.u32 2147483648, %v12905_v8  ;;  %v5356_v58 = vmul.f32 %v5355_v32, %v12836_v33  ;;  %v12941_v48 = vadd.f32 %v2855_v37, %v9651_v4  ;;  %v14231_v0 = vld [vmem:[#allocation40_spill] sm:$0xff] }
 0x92c   : > { %v5266_v31 = vadd.f32 1.1283791, %v5265_v45  ;;  %v5281_v51 = vmul.f32 %v8276_v23, %v5280_v15  ;;  %vm5284_vm7 = vweird.f32 %v8276_v23  ;;  %v5287_v10 = vand.u32 2147483647, %v12905_v8 }
 0x92d   : > { %vm5204_vm8 = vweird.f32 %v12883_v19  ;;  %v5343_v9 = vmul.f32 %v5342_v53, %v12836_v33  ;;  %v12946_v29 = vadd.f32 1.0, %v5356_v58  ;;  %6246 = vmatmul.bf16.gmra.mxu0 %v5845_v43  ;;  %v12949_v46 = vmul.f32 0.70710677, %v12941_v48 }
 0x92e   : > { %v5202_v25 = vadd.f32 %v12883_v19, %v5201_v21  ;;  %v5282_v3 = vadd.f32 %v8276_v23, %v5281_v51  ;;  %vm5283_vm1 = vweird.f32 %v12905_v8  ;;  %v5846_v63 = vpack.c.bf16 %v12731_v17, %v12618_v28  ;;  %vm12966_vm11 = vmor %vm5203_vm6, %vm5204_vm8 }
 0x92f   : > { %v5747_v36 = vadd.f32 1.0, %v7355_v38  ;;  %v7357_v35 = vclamps-f32 %v5332_v40, 1.0  ;;  %vm5285_vm9 = vmor %vm5283_vm1, %vm5284_vm7  ;;  %v5290_v30 = vor.u32 1.1754944e-38, %v5289_v44  ;;  %8277 = vrcp.f32 %v12946_v29 }
 0x930   : > { %v5267_v5 = vmul.f32 %v5266_v31, %v12712_v57  ;;  %v5286_v26 = vsel %vm5285_vm9, %v8276_v23, %v5282_v3  ;;  %vm5288_vm10 = vcmp.eq.f32.partialorder %v5287_v10, 8.507059e+37  ;;  %6295 = vmatmul.bf16.gmra.mxu3 %v5846_v63  ;;  %v5375_v50 = vmul.f32 %v12949_v46, %v12949_v46  ;;  %v2953_v63 = vpop.f32.mrf.mxu0 }
 0x931   : > { %v5743_v8 = vadd.f32 1.0, %v7351_v39  ;;  %v5186_v62 = vadd.f32 1.1283791, %v12854_v55  ;;  %v5291_v57 = vsel %vm5288_vm10, %v5290_v30, %v5286_v26  ;;  %v5344_v17 = vadd.f32 0.18741608, %v5343_v9 }
 0x932   : > { %v5745_v12 = vadd.f32 1.0, %v7353_v11  ;;  %v5206_v22 = vsel %vm12966_vm11, %v12883_v19, %v5202_v25  ;;  %v5292_v39 = vmul.f32 %v5291_v57, %v5267_v5  ;;  %v12975_v49 = vmin.f32 %v5375_v50, 16.0  ;;  %v14232_v57 = vld [vmem:[#allocation64_spill] sm:$0xff] }
 0x933   : > { %vm5208_vm12 = vcmp.eq.f32.partialorder %v5207_v59, 8.507059e+37  ;;  %v5210_v55 = vor.u32 1.1754944e-38, %v5209_v27  ;;  %v5811_v34 = vmul.f32 %v5747_v36, %v12690_v18  ;;  %v5749_v7 = vadd.f32 1.0, %v7357_v35 }
 0x934   : > { %v5744_v23 = vadd.f32 1.0, %v7352_v41  ;;  %v7356_v60 = vclamps-f32 %v5292_v39, 1.0  ;;  %v5377_v13 = vmul.f32 2.1237322e-06, %v12975_v49  ;;  %v5388_v16 = vmul.f32 3.8918573e-05, %v12975_v49  ;;  %v2904_v39 = vpop.f32.mrf.mxu2 }
 0x935   : > { %v8278_v52 = vpop.eup %8277  ;;  %v5807_v11 = vmul.f32 %v5743_v8, %v12665_v6  ;;  %v5187_v45 = vmul.f32 %v5186_v62, %v14231_v0  ;;  %v5211_v19 = vsel %vm5208_vm12, %v5210_v55, %v5206_v22  ;;  %v5345_v47 = vmul.f32 %v5344_v17, %v12836_v33  ;;  %v3002_v55 = vpop.f32.mrf.mxu3 }
 0x936   : > { %v3060_v59 = vmul.f32 0.5, %v12693_v20  ;;  %v5748_v27 = vadd.f32 1.0, %v7356_v60  ;;  %v5359_v18 = vmul.f32 %v8278_v52, %v12946_v29  ;;  %v5378_v24 = vadd.f32 0.00028619796, %v5377_v13  ;;  %v14233_v60 = vld [vmem:[#allocation46_spill] sm:$0xff] }
 0x937   : > { %v5809_v41 = vmul.f32 %v5745_v12, %v12668_v56  ;;  %v5813_v53 = vmul.f32 %v5749_v7, %v12784_v14  ;;  %v5847_v32 = vpack.c.bf16 %v5811_v34, %v5807_v11  ;;  %v5389_v21 = vadd.f32 0.001143296, %v5388_v16  ;;  %v14234_v11 = vld [vmem:[#allocation47_spill] sm:$0xff] }
 0x938   : > { %v5808_v38 = vmul.f32 %v5744_v23, %v12685_v1  ;;  %v5212_v6 = vmul.f32 %v5211_v19, %v5187_v45  ;;  %v5812_v15 = vmul.f32 %v5748_v27, %v3060_v59  ;;  %v5360_v42 = vsub.f32 1.0, %v5359_v18  ;;  %v2857_v27 = vpop.f32.mrf.mxu1 }
 0x939   : > { %v5346_v43 = vadd.f32 1.1283791, %v5345_v47  ;;  %v5369_v33 = vand.u32 2147483648, %v12946_v29  ;;  %6153 = vmatmul.bf16.gmra.mxu1 %v5847_v32  ;;  %v5379_v20 = vmul.f32 %v5378_v24, %v12975_v49  ;;  %v5390_v37 = vmul.f32 %v5389_v21, %v12975_v49 }
 0x93a   : > { %v5361_v40 = vmul.f32 %v8278_v52, %v5360_v42  ;;  %vm5364_vm13 = vweird.f32 %v8278_v52  ;;  %v5367_v56 = vand.u32 2147483647, %v12946_v29  ;;  %v5848_v14 = vpack.c.bf16 %v5812_v15, %v5808_v38 }
 0x93b   : > { %v5849_v44 = vpack.c.bf16 %v5813_v53, %v5809_v41  ;;  %v5391_v58 = vadd.f32 0.014752088, %v5390_v37  ;;  %vm5363_vm14 = vweird.f32 %v12946_v29  ;;  %v5370_v1 = vor.u32 1.1754944e-38, %v5369_v33 }
 0x93c   : > { %v5362_v31 = vadd.f32 %v8278_v52, %v5361_v40  ;;  %6202 = vmatmul.bf16.gmra.mxu2 %v5848_v14  ;;  %vm5365_vm15 = vmor %vm5363_vm14, %vm5364_vm13  ;;  %v5380_v51 = vadd.f32 0.0036580483, %v5379_v20  ;;  %v7354_v9 = vclamps-f32 %v5212_v6, 1.0  ;;  %v5347_v25 = vmul.f32 %v5346_v43, %v12794_v61 }
 0x93d   : > { %6251 = vmatmul.bf16.gmra.mxu0 %v5849_v44  ;;  %v5392_v10 = vmul.f32 %v5391_v58, %v12975_v49  ;;  %vm5368_vm0 = vcmp.eq.f32.partialorder %v5367_v56, 8.507059e+37  ;;  %v12996_v30 = vadd.f32 %v2953_v63, %v9653_v2  ;;  %v3058_v17 = vmul.f32 0.5, %v14232_v57 }
 0x93e   : > { %v5366_v3 = vsel %vm5365_vm15, %v8278_v52, %v5362_v31  ;;  %v5381_v29 = vmul.f32 %v5380_v51, %v12975_v49  ;;  %v5746_v8 = vadd.f32 1.0, %v7354_v9  ;;  %v3062_v12 = vmul.f32 0.5, %v12767_v54 }
 0x93f   : > { %v5371_v36 = vsel %vm5368_vm0, %v5370_v1, %v5366_v3  ;;  %v5393_v35 = vadd.f32 0.112945676, %v5392_v10  ;;  %v13001_v50 = vmul.f32 0.70710677, %v12996_v30  ;;  %v13011_v13 = vadd.f32 %v2904_v39, %v14233_v60 }
 0x940   : > { %v5372_v5 = vmul.f32 %v5371_v36, %v5347_v25  ;;  %v5382_v34 = vadd.f32 0.05243302, %v5381_v29  ;;  %v5810_v16 = vmul.f32 %v5746_v8, %v3058_v17  ;;  %v13014_v0 = vadd.f32 %v3002_v55, %v14234_v11  ;;  %v2955_v25 = vpop.f32.mrf.mxu0 }
 0x941   : > { %v5394_v26 = vmul.f32 %v5393_v35, %v12975_v49  ;;  %v5455_v61 = vmul.f32 %v13001_v50, %v13001_v50  ;;  %v13021_v59 = vmul.f32 0.70710677, %v13011_v13  ;;  %v13031_v21 = vadd.f32 %v2857_v27, %v9651_v4 }
 0x942   : > { %v7358_v62 = vclamps-f32 %v5372_v5, 1.0  ;;  %14235 = vst [vmem:[#allocation66_spill] sm:$0xff] %v13014_v0  ;;  %v5383_v18 = vmul.f32 %v5382_v34, %v12975_v49  ;;  %v13028_v32 = vmul.f32 0.70710677, %v13014_v0  ;;  %v13062_v34 = vadd.f32 %v2955_v25, %v9653_v2 }
 0x943   : > { %v5395_v28 = vadd.f32 0.4994258, %v5394_v26  ;;  %v13008_v23 = vmin.f32 %v5455_v61, 16.0  ;;  %v5415_v53 = vmul.f32 %v13021_v59, %v13021_v59  ;;  %v13040_v33 = vmul.f32 0.70710677, %v13031_v21 }
 0x944   : > { %v5750_v22 = vadd.f32 1.0, %v7358_v62  ;;  %v5495_v42 = vmul.f32 %v13028_v32, %v13028_v32  ;;  %v5384_v43 = vadd.f32 0.18741608, %v5383_v18 }
 0x945   : > { %v5396_v7 = vmul.f32 %v5395_v28, %v12975_v49  ;;  %v5457_v54 = vmul.f32 2.1237322e-06, %v13008_v23  ;;  %v5468_v19 = vmul.f32 3.8918573e-05, %v13008_v23  ;;  %v13035_v15 = vmin.f32 %v5415_v53, 16.0 }
 0x946   : > { %v5814_v52 = vmul.f32 %v5750_v22, %v3062_v12  ;;  %v13044_v14 = vmin.f32 %v5495_v42, 16.0  ;;  %v5535_v44 = vmul.f32 %v13040_v33, %v13040_v33  ;;  %v5385_v3 = vmul.f32 %v5384_v43, %v12975_v49 }
 0x947   : > { %v13016_v45 = vadd.f32 1.0, %v5396_v7  ;;  %v5458_v24 = vadd.f32 0.00028619796, %v5457_v54  ;;  %v5469_v41 = vadd.f32 0.001143296, %v5468_v19  ;;  %v2906_v19 = vpop.f32.mrf.mxu2 }
 0x948   : > { %v5850_v47 = vpack.c.bf16 %v5814_v52, %v5810_v16  ;;  %v5417_v40 = vmul.f32 2.1237322e-06, %v13035_v15  ;;  %v5428_v4 = vmul.f32 3.8918573e-05, %v13035_v15  ;;  %v5497_v9 = vmul.f32 2.1237322e-06, %v13044_v14 }
 0x949   : > { %8279 = vrcp.f32 %v13016_v45  ;;  %v5459_v38 = vmul.f32 %v5458_v24, %v13008_v23  ;;  %v5470_v6 = vmul.f32 %v5469_v41, %v13008_v23  ;;  %v13053_v35 = vmin.f32 %v5535_v44, 16.0  ;;  %v13087_v44 = vpop.f32.mrf.mxu1 }
 0x94a   : > { %6300 = vmatmul.bf16.gmra.mxu3 %v5850_v47  ;;  %v5418_v51 = vadd.f32 0.00028619796, %v5417_v40  ;;  %v5429_v10 = vadd.f32 0.001143296, %v5428_v4  ;;  %v5498_v26 = vadd.f32 0.00028619796, %v5497_v9  ;;  %v13067_v47 = vpop.f32.mrf.mxu3  ;;  %vm5403_vm3 = vweird.f32 %v13016_v45 }
 0x94b   : > { %v5460_v20 = vadd.f32 0.0036580483, %v5459_v38  ;;  %v5471_v37 = vadd.f32 0.014752088, %v5470_v6  ;;  %v5508_v8 = vmul.f32 3.8918573e-05, %v13044_v14 }
 0x94c   : > { %v5419_v5 = vmul.f32 %v5418_v51, %v13035_v15  ;;  %v5430_v29 = vmul.f32 %v5429_v10, %v13035_v15  ;;  %v5537_v57 = vmul.f32 2.1237322e-06, %v13053_v35  ;;  %v5499_v49 = vmul.f32 %v5498_v26, %v13044_v14 }
 0x94d   : > { %v5461_v31 = vmul.f32 %v5460_v20, %v13008_v23  ;;  %v5472_v1 = vmul.f32 %v5471_v37, %v13008_v23  ;;  %v5509_v22 = vadd.f32 0.001143296, %v5508_v8  ;;  %v5409_v7 = vand.u32 2147483648, %v13016_v45 }
 0x94e   : > { %v5420_v17 = vadd.f32 0.0036580483, %v5419_v5  ;;  %v5431_v12 = vadd.f32 0.014752088, %v5430_v29  ;;  %v5538_v54 = vadd.f32 0.00028619796, %v5537_v57 }
 0x94f   : > { %v8280_v56 = vpop.eup %8279  ;;  %v5473_v36 = vadd.f32 0.112945676, %v5472_v1  ;;  %v5462_v28 = vadd.f32 0.05243302, %v5461_v31  ;;  %v5510_v52 = vmul.f32 %v5509_v22, %v13044_v14  ;;  %v5407_v27 = vand.u32 2147483647, %v13016_v45 }
 0x950   : > { %v5399_v58 = vmul.f32 %v8280_v56, %v13016_v45  ;;  %vm5404_vm2 = vweird.f32 %v8280_v56  ;;  %v5432_v16 = vmul.f32 %v5431_v12, %v13035_v15  ;;  %v5386_v2 = vadd.f32 1.1283791, %v5385_v3 }
 0x951   : > { %v5474_v61 = vmul.f32 %v5473_v36, %v13008_v23  ;;  %v5463_v18 = vmul.f32 %v5462_v28, %v13008_v23  ;;  %vm13073_vm4 = vmor %vm5403_vm3, %vm5404_vm2  ;;  %v5421_v53 = vmul.f32 %v5420_v17, %v13035_v15  ;;  %v5500_v6 = vadd.f32 0.0036580483, %v5499_v49 }
 0x952   : > { %v5400_v63 = vsub.f32 1.0, %v5399_v58  ;;  %v5433_v38 = vadd.f32 0.112945676, %v5432_v16  ;;  %v5511_v20 = vadd.f32 0.014752088, %v5510_v52  ;;  %v5410_v37 = vor.u32 1.1754944e-38, %v5409_v7  ;;  %v13089_v58 = vpop.f32.mrf.mxu0  ;;  %v13124_v7 = vpop.f32.mrf.mxu1 }
 0x953   : > { %v5475_v55 = vadd.f32 0.4994258, %v5474_v61  ;;  %v13083_v45 = vmul.f32 0.70710677, %v13062_v34  ;;  %v5539_v4 = vmul.f32 %v5538_v54, %v13053_v35  ;;  %vm5408_vm5 = vcmp.eq.f32.partialorder %v5407_v27, 8.507059e+37  ;;  %v13105_v61 = vpop.f32.mrf.mxu3 }
 0x954   : > { %v5401_v62 = vmul.f32 %v8280_v56, %v5400_v63  ;;  %v5434_v40 = vmul.f32 %v5433_v38, %v13035_v15  ;;  %v5464_v31 = vadd.f32 0.18741608, %v5463_v18  ;;  %v5422_v1 = vadd.f32 0.05243302, %v5421_v53 }
 0x955   : > { %v5476_v24 = vmul.f32 %v5475_v55, %v13008_v23  ;;  %v5501_v51 = vmul.f32 %v5500_v6, %v13044_v14  ;;  %v5387_v10 = vmul.f32 %v5386_v2, %v12949_v46  ;;  %v5512_v25 = vmul.f32 %v5511_v20, %v13044_v14  ;;  %v13103_v46 = vpop.f32.mrf.mxu2 }
 0x956   : > { %v5402_v39 = vadd.f32 %v8280_v56, %v5401_v62  ;;  %v5435_v9 = vadd.f32 0.4994258, %v5434_v40  ;;  %v5615_v3 = vmul.f32 %v13083_v45, %v13083_v45  ;;  %v5540_v63 = vadd.f32 0.0036580483, %v5539_v4 }
 0x957   : > { %v13080_v43 = vadd.f32 1.0, %v5476_v24  ;;  %v5465_v5 = vmul.f32 %v5464_v31, %v13008_v23  ;;  %v5513_v26 = vadd.f32 0.112945676, %v5512_v25  ;;  %v13100_v8 = vmul.f32 0.5, %v12941_v48 }
 0x958   : > { %v5406_v42 = vsel %vm13073_vm4, %v8280_v56, %v5402_v39  ;;  %v5436_v29 = vmul.f32 %v5435_v9, %v13035_v15  ;;  %v5423_v62 = vmul.f32 %v5422_v1, %v13035_v15  ;;  %v5502_v28 = vadd.f32 0.05243302, %v5501_v51 }
 0x959   : > { %8281 = vrcp.f32 %v13080_v43  ;;  %v5411_v56 = vsel %vm5408_vm5, %v5410_v37, %v5406_v42  ;;  %v5514_v12 = vmul.f32 %v5513_v26, %v13044_v14  ;;  %v5548_v23 = vmul.f32 3.8918573e-05, %v13053_v35 }
 0x95a   : > { %v5412_v36 = vmul.f32 %v5411_v56, %v5387_v10  ;;  %v13109_v17 = vadd.f32 1.0, %v5436_v29  ;;  %v13113_v49 = vmin.f32 %v5615_v3, 16.0  ;;  %v13116_v48 = vmul.f32 0.5, %v12996_v30  ;;  %v13126_v16 = vpop.f32.mrf.mxu0 }
 0x95b   : > { %v13121_v39 = vmul.f32 0.5, %v13031_v21  ;;  %v5541_v55 = vmul.f32 %v5540_v63, %v13053_v35  ;;  %v5466_v54 = vadd.f32 1.1283791, %v5465_v5  ;;  %v13130_v27 = vadd.f32 %v2906_v19, %v14233_v60  ;;  %v13149_v51 = vpop.f32.mrf.mxu3 }
 0x95c   : > { %v7359_v52 = vclamps-f32 %v5412_v36, 1.0  ;;  %8283 = vrcp.f32 %v13109_v17  ;;  %v5424_v18 = vadd.f32 0.18741608, %v5423_v62  ;;  %v5503_v24 = vmul.f32 %v5502_v28, %v13044_v14  ;;  %v13171_v62 = vpop.f32.mrf.mxu1 }
 0x95d   : > { %v5515_v2 = vadd.f32 0.4994258, %v5514_v12  ;;  %vm5483_vm6 = vweird.f32 %v13080_v43  ;;  %v5487_v21 = vand.u32 2147483647, %v13080_v43  ;;  %v5549_v41 = vadd.f32 0.001143296, %v5548_v23  ;;  %v13147_v1 = vpop.f32.mrf.mxu2 }
 0x95e   : > { %v5617_v53 = vmul.f32 2.1237322e-06, %v13113_v49  ;;  %v5542_v42 = vadd.f32 0.05243302, %v5541_v55  ;;  %v5628_v60 = vmul.f32 3.8918573e-05, %v13113_v49  ;;  %v5425_v31 = vmul.f32 %v5424_v18, %v13035_v15 }
 0x95f   : > { %v13107_v57 = vpop.eup %8281  ;;  %v5516_v6 = vmul.f32 %v5515_v2, %v13044_v14  ;;  %v5550_v19 = vmul.f32 %v5549_v41, %v13053_v35  ;;  %v13142_v37 = vmul.f32 0.70710677, %v13130_v27  ;;  %v5489_v4 = vand.u32 2147483648, %v13080_v43 }
 0x960   : > { %v5479_v22 = vmul.f32 %v13107_v57, %v13080_v43  ;;  %vm5484_vm7 = vweird.f32 %v13107_v57  ;;  %v5618_v20 = vadd.f32 0.00028619796, %v5617_v53  ;;  %v5504_v56 = vadd.f32 0.18741608, %v5503_v24 }
 0x961   : > { %v13153_v9 = vadd.f32 1.0, %v5516_v6  ;;  %v5551_v25 = vadd.f32 0.014752088, %v5550_v19  ;;  %v5629_v63 = vadd.f32 0.001143296, %v5628_v60  ;;  %v5467_v36 = vmul.f32 %v5466_v54, %v13001_v50  ;;  %vm13161_vm8 = vmor %vm5483_vm6, %vm5484_vm7 }
 0x962   : > { %v5480_v30 = vsub.f32 1.0, %v5479_v22  ;;  %v13151_v10 = vpop.eup %8283  ;;  %v5619_v3 = vmul.f32 %v5618_v20, %v13113_v49  ;;  %v5543_v5 = vmul.f32 %v5542_v42, %v13053_v35  ;;  %v13167_v29 = vmul.f32 0.5, %v13062_v34  ;;  %v13173_v28 = vpop.f32.mrf.mxu0 }
 0x963   : > { %v5575_v26 = vmul.f32 %v13142_v37, %v13142_v37  ;;  %v5751_v50 = vadd.f32 1.0, %v7359_v52  ;;  %vm5488_vm1 = vcmp.eq.f32.partialorder %v5487_v21, 8.507059e+37  ;;  %v5439_v12 = vmul.f32 %v13151_v10, %v13109_v17  ;;  %v13201_v60 = vpop.f32.mrf.mxu3 }
 0x964   : > { %v5481_v38 = vmul.f32 %v13107_v57, %v5480_v30  ;;  %v5490_v23 = vor.u32 1.1754944e-38, %v5489_v4  ;;  %v5426_v22 = vadd.f32 1.1283791, %v5425_v31  ;;  %v5505_v34 = vmul.f32 %v5504_v56, %v13044_v14  ;;  %v13209_v56 = vpop.f32.mrf.mxu1 }
 0x965   : > { %v5552_v55 = vmul.f32 %v5551_v25, %v13053_v35  ;;  %8285 = vrcp.f32 %v13153_v9  ;;  %v5620_v54 = vadd.f32 0.0036580483, %v5619_v3  ;;  %v5630_v30 = vmul.f32 %v5629_v63, %v13113_v49 }
 0x966   : > { %v5482_v40 = vadd.f32 %v13107_v57, %v5481_v38  ;;  %v13186_v52 = vadd.f32 %v13067_v47, %v14234_v11  ;;  %v5544_v18 = vadd.f32 0.18741608, %v5543_v5  ;;  %v13188_v2 = vmin.f32 %v5575_v26, 16.0  ;;  %v13199_v47 = vpop.f32.mrf.mxu2 }
 0x967   : > { %v5553_v24 = vadd.f32 0.112945676, %v5552_v55  ;;  %v13191_v21 = vmul.f32 %v5751_v50, %v13100_v8  ;;  %v5440_v14 = vsub.f32 1.0, %v5439_v12  ;;  %v5621_v41 = vmul.f32 %v5620_v54, %v13113_v49 }
 0x968   : > { %v5486_v43 = vsel %vm13161_vm8, %v13107_v57, %v5482_v40  ;;  %14240 = vst [vmem:[#allocation60_spill] sm:$0xff] %v13186_v52  ;;  %v5631_v53 = vadd.f32 0.014752088, %v5630_v30  ;;  %v13195_v38 = vmul.f32 %v5426_v22, %v13021_v59  ;;  %v5506_v6 = vadd.f32 1.1283791, %v5505_v34 }
 0x969   : > { %v5491_v57 = vsel %vm5488_vm1, %v5490_v23, %v5486_v43  ;;  %v5554_v42 = vmul.f32 %v5553_v24, %v13053_v35  ;;  %v5577_v11 = vmul.f32 2.1237322e-06, %v13188_v2  ;;  %v5622_v20 = vadd.f32 0.05243302, %v5621_v41 }
 0x96a   : > { %v5492_v19 = vmul.f32 %v5491_v57, %v5467_v36  ;;  %v5632_v8 = vmul.f32 %v5631_v53, %v13113_v49  ;;  %v13205_v40 = vmul.f32 0.70710677, %v13186_v52  ;;  %vm5443_vm9 = vweird.f32 %v13109_v17  ;;  %v13211_v25 = vpop.f32.mrf.mxu0 }
 0x96b   : > { %v5545_v59 = vmul.f32 %v5544_v18, %v13053_v35  ;;  %v5555_v4 = vadd.f32 0.4994258, %v5554_v42  ;;  %v5578_v31 = vadd.f32 0.00028619796, %v5577_v11  ;;  %v13213_v3 = vpop.eup %8285  ;;  %v5441_v63 = vmul.f32 %v13151_v10, %v5440_v14  ;;  %v13240_v42 = vpop.f32.mrf.mxu3 }
 0x96c   : > { %v5447_v36 = vand.u32 2147483647, %v13109_v17  ;;  %v5623_v15 = vmul.f32 %v5622_v20, %v13113_v49  ;;  %v5633_v5 = vadd.f32 0.112945676, %v5632_v8  ;;  %v5449_v26 = vand.u32 2147483648, %v13109_v17 }
 0x96d   : > { %v5556_v50 = vmul.f32 %v5555_v4, %v13053_v35  ;;  %v5579_v43 = vmul.f32 %v5578_v31, %v13188_v2  ;;  %v5588_v12 = vmul.f32 3.8918573e-05, %v13188_v2  ;;  %v7361_v23 = vclamps-f32 %v5492_v19, 1.0 }
 0x96e   : > { %v13223_v22 = vmul.f32 %v5506_v6, %v13028_v32  ;;  %v5634_v34 = vmul.f32 %v5633_v5, %v13113_v49  ;;  %v5655_v55 = vmul.f32 %v13205_v40, %v13205_v40  ;;  %v5519_v54 = vmul.f32 %v13213_v3, %v13153_v9  ;;  %v13238_v6 = vpop.f32.mrf.mxu2  ;;  %v13264_v5 = vpop.f32.mrf.mxu1 }
 0x96f   : > { %v5529_v30 = vand.u32 2147483648, %v13153_v9  ;;  %v5546_v57 = vadd.f32 1.1283791, %v5545_v59  ;;  %v13231_v35 = vadd.f32 1.0, %v5556_v50  ;;  %v5442_v18 = vadd.f32 %v13151_v10, %v5441_v63  ;;  %v13250_v59 = vld [vmem:[%s14243_s14] ss:$0 sm:$0xff] }
 0x970   : > { %vm5444_vm10 = vweird.f32 %v13151_v10  ;;  %v5624_v24 = vadd.f32 0.18741608, %v5623_v15  ;;  %v5635_v32 = vadd.f32 0.4994258, %v5634_v34  ;;  %v5580_v14 = vadd.f32 0.0036580483, %v5579_v43 }
 0x971   : > { %8287 = vrcp.f32 %v13231_v35  ;;  %v5589_v41 = vadd.f32 0.001143296, %v5588_v12  ;;  %v13236_v53 = vmin.f32 %v5655_v55, 16.0  ;;  %v5753_v11 = vadd.f32 1.0, %v7361_v23  ;;  %vm13254_vm12 = vmor %vm5443_vm9, %vm5444_vm10  ;;  %s6718_s14 = sshll.u32 %s9076_s4, 4  ;;  %s6719_s14 = int_to_ptr.vmem [resolvable:$true] %s6718_s14 }
 0x972   : > { %vm13242_vm11 = vcmp.eq.f32.partialorder %v5447_v36, 8.507059e+37  ;;  %v5450_v20 = vor.u32 1.1754944e-38, %v5449_v26  ;;  %v5636_v8 = vmul.f32 %v5635_v32, %v13113_v49  ;;  %v5520_v31 = vsub.f32 1.0, %v5519_v54  ;;  %v13266_v26 = vpop.f32.mrf.mxu0 }
 0x973   : > { %v13259_v36 = vor.u32 1.1754944e-38, %v5529_v30  ;;  %v13262_v15 = vmul.f32 %v5546_v57, %v13040_v33  ;;  %v5446_v17 = vsel %vm13254_vm12, %v13151_v10, %v5442_v18  ;;  %v5567_v50 = vand.u32 2147483647, %v13231_v35  ;;  %v13305_v4 = vpop.f32.mrf.mxu3 }
 0x974   : > { %v5625_v43 = vmul.f32 %v5624_v24, %v13113_v49  ;;  %v13273_v12 = vadd.f32 1.0, %v5636_v8  ;;  %v5569_v23 = vand.u32 2147483648, %v13231_v35  ;;  %v5581_v34 = vmul.f32 %v5580_v14, %v13188_v2 }
 0x975   : > { %v5590_v33 = vmul.f32 %v5589_v41, %v13188_v2  ;;  %v5657_v55 = vmul.f32 2.1237322e-06, %v13236_v53  ;;  %v13280_v54 = vmul.f32 %v5753_v11, %v13116_v48  ;;  %v5668_v10 = vmul.f32 3.8918573e-05, %v13236_v53 }
 0x976   : > { %8289 = vrcp.f32 %v13273_v12  ;;  %v6125_v49 = vadd.f32 %v13250_v59, %v13087_v44  ;;  %v13288_v57 = vsel %vm13242_vm11, %v5450_v20, %v5446_v17  ;;  %v13291_v18 = vmul.f32 %v13213_v3, %v5520_v31  ;;  %v13303_v8 = vpop.f32.mrf.mxu2 }
 0x977   : > { %v8288_v30 = vpop.eup %8287  ;;  %v5591_v24 = vadd.f32 0.014752088, %v5590_v33  ;;  %v5658_v32 = vadd.f32 0.00028619796, %v5657_v55  ;;  %vm5563_vm13 = vweird.f32 %v13231_v35  ;;  %vm13295_vm14 = vcmp.eq.f32.partialorder %v5567_v50, 8.507059e+37  ;;  %v13311_v55 = vpop.f32.mrf.mxu1 }
 0x978   : > { %v5559_v48 = vmul.f32 %v8288_v30, %v13231_v35  ;;  %v13299_v41 = vadd.f32 1.1283791, %v5625_v43  ;;  %v5570_v44 = vor.u32 1.1754944e-38, %v5569_v23  ;;  %v5582_v11 = vadd.f32 0.05243302, %v5581_v34 }
 0x979   : > { %v5592_v19 = vmul.f32 %v5591_v24, %v13188_v2  ;;  %v5659_v20 = vmul.f32 %v5658_v32, %v13236_v53  ;;  %v5647_v17 = vand.u32 2147483647, %v13273_v12  ;;  %v5669_v33 = vadd.f32 0.001143296, %v5668_v10 }
 0x97a   : > { %v5560_v31 = vsub.f32 1.0, %v5559_v48  ;;  %v6174_v50 = vadd.f32 %v13103_v46, %v6125_v49  ;;  %vm5643_vm15 = vweird.f32 %v13273_v12  ;;  %v5649_v43 = vand.u32 2147483648, %v13273_v12  ;;  %v13313_v24 = vpop.f32.mrf.mxu0 }
 0x97b   : > { %v5593_v23 = vadd.f32 0.112945676, %v5592_v19  ;;  %v5660_v34 = vadd.f32 0.0036580483, %v5659_v20  ;;  %vm5564_vm0 = vweird.f32 %v8288_v30  ;;  %v5670_v48 = vmul.f32 %v5669_v33, %v13236_v53 }
 0x97c   : > { %v8290_v32 = vpop.eup %8289  ;;  %v5561_v63 = vmul.f32 %v8288_v30, %v5560_v31  ;;  %v6223_v52 = vadd.f32 %v13089_v58, %v6174_v50  ;;  %v5583_v46 = vmul.f32 %v5582_v11, %v13188_v2  ;;  %v6127_v19 = vadd.f32 %v13250_v59, %v13124_v7  ;;  %vm5565_vm3 = vmor %vm5563_vm13, %vm5564_vm0 }
 0x97d   : > { %v5639_v10 = vmul.f32 %v8290_v32, %v13273_v12  ;;  %v5594_v49 = vmul.f32 %v5593_v23, %v13188_v2  ;;  %vm5524_vm2 = vweird.f32 %v13213_v3  ;;  %v5671_v0 = vadd.f32 0.014752088, %v5670_v48  ;;  %v14248_v48 = vld [vmem:[#allocation35_spill] sm:$0xff] }
 0x97e   : > { %v5562_v20 = vadd.f32 %v8288_v30, %v5561_v63  ;;  %v6272_v31 = vadd.f32 %v13105_v61, %v6223_v52  ;;  %v6130_v33 = vadd.f32 %v13250_v59, %v13171_v62  ;;  %v5661_v11 = vmul.f32 %v5660_v34, %v13236_v53  ;;  %v6185_v34 = vpop.f32.mrf.mxu2 }
 0x97f   : > { %v5640_v58 = vsub.f32 1.0, %v5639_v10  ;;  %v5595_v50 = vadd.f32 0.4994258, %v5594_v49  ;;  %v6176_v23 = vadd.f32 %v13147_v1, %v6127_v19  ;;  %vm5523_vm4 = vweird.f32 %v13153_v9  ;;  %v13339_v49 = vpop.f32.mrf.mxu3 }
 0x980   : > { %v5566_v7 = vsel %vm5565_vm3, %v8288_v30, %v5562_v20  ;;  %vm5644_vm5 = vweird.f32 %v8290_v32  ;;  %v5672_v63 = vmul.f32 %v5671_v0, %v13236_v53  ;;  %v13333_v61 = vadd.f32 %v6272_v31, %v14248_v48  ;;  %vm13382_vm1 = vmor %vm5523_vm4, %vm5524_vm2 }
 0x981   : > { %v5571_v62 = vsel %vm13295_vm14, %v5570_v44, %v5566_v7  ;;  %v5641_v52 = vmul.f32 %v8290_v32, %v5640_v58  ;;  %v5596_v35 = vmul.f32 %v5595_v50, %v13188_v2  ;;  %v6225_v10 = vadd.f32 %v13126_v16, %v6176_v23  ;;  %vm5645_vm6 = vmor %vm5643_vm15, %vm5644_vm5 }
 0x982   : > { %v5572_v1 = vmul.f32 %v5571_v62, %v13262_v15  ;;  %v5650_v30 = vor.u32 1.1754944e-38, %v5649_v43  ;;  %v5673_v19 = vadd.f32 0.112945676, %v5672_v63  ;;  %6329 = vadd.xlane.f32.xlu1 %v13333_v61  ;;  %v6179_v0 = vadd.f32 %v13199_v47, %v6130_v33 }
 0x983   : > { %v5642_v20 = vadd.f32 %v8290_v32, %v5641_v52  ;;  %v5584_v31 = vadd.f32 0.18741608, %v5583_v46  ;;  %v13344_v14 = vadd.f32 1.0, %v5596_v35  ;;  %v5662_v44 = vadd.f32 0.05243302, %v5661_v11  ;;  %v14255_v52 = vld [vmem:[#allocation37_spill] sm:$0xff] }
 0x984   : > { %v7363_v16 = vclamps-f32 %v5572_v1, 1.0  ;;  %v5674_v15 = vmul.f32 %v5673_v19, %v13236_v53  ;;  %v6274_v43 = vadd.f32 %v13149_v51, %v6225_v10  ;;  %v6228_v23 = vadd.f32 %v13173_v28, %v6179_v0 }
 0x985   : > { %v6139_v58 = vpop.f32.mrf.mxu1  ;;  %v5627_v47 = vmul.f32 %v13299_v41, %v13083_v45  ;;  %v5646_v46 = vsel %vm5645_vm6, %v8290_v32, %v5642_v20  ;;  %vm5648_vm7 = vcmp.eq.f32.partialorder %v5647_v17, 8.507059e+37  ;;  %8291 = vrcp.f32 %v13344_v14  ;;  %v14252_v32 = vld [vmem:[#allocation36_spill] sm:$0xff] }
 0x986   : > { %v13359_v33 = vmul.f32 %v13288_v57, %v13195_v38  ;;  %v5522_v12 = vadd.f32 %v13213_v3, %v13291_v18  ;;  %v5755_v11 = vadd.f32 1.0, %v7363_v16  ;;  %v5651_v7 = vsel %vm5648_vm7, %v5650_v30, %v5646_v46 }
 0x987   : > { %v13346_v50 = vpop.f32.mrf.mxu0  ;;  %v5652_v63 = vmul.f32 %v5651_v7, %v5627_v47  ;;  %v5675_v51 = vadd.f32 0.4994258, %v5674_v15  ;;  %v6277_v28 = vadd.f32 %v13201_v60, %v6228_v23  ;;  %v6132_v45 = vadd.f32 %v13250_v59, %v13209_v56 }
 0x988   : > { %v14249_v41 = vand.u32 2147483647, %v13153_v9  ;;  %v5819_v38 = vmul.f32 %v5755_v11, %v13121_v39  ;;  %v5585_v57 = vmul.f32 %v5584_v31, %v13188_v2  ;;  %v5663_v18 = vmul.f32 %v5662_v44, %v13236_v53 }
 0x989   : > { %v13376_v48 = vadd.f32 %v6274_v43, %v14252_v32  ;;  %v7365_v56 = vclamps-f32 %v5652_v63, 1.0  ;;  %v5676_v62 = vmul.f32 %v5675_v51, %v13236_v53  ;;  %v6181_v39 = vadd.f32 %v13238_v6, %v6132_v45 }
 0x98a   : > { %vm13368_vm8 = vcmp.eq.f32.partialorder %v14249_v41, 8.507059e+37  ;;  %v13389_v2 = vadd.f32 %v6277_v28, %v14255_v52  ;;  %v7360_v10 = vclamps-f32 %v13359_v33, 1.0  ;;  %v5526_v1 = vsel %vm13382_vm1, %v13213_v3, %v5522_v12  ;;  %v14257_v41 = vld [vmem:[#allocation41_spill] sm:$0xff] }
 0x98b   : > { %6331 = vadd.xlane.f32.xlu2 %v13376_v48  ;;  %v6135_v9 = vadd.f32 %v13250_v59, %v13264_v5  ;;  %v6137_v30 = vadd.f32 %v13250_v59, %v13311_v55  ;;  %v8292_v19 = vpop.eup %8291  ;;  %v5757_v6 = vadd.f32 1.0, %v7365_v56  ;;  %v13400_v0 = vadd.f32 1.0, %v5676_v62 }
 0x98c   : > { %v6188_v35 = vpop.f32.mrf.mxu2  ;;  %v6230_v20 = vadd.f32 %v13211_v25, %v6181_v39  ;;  %6333 = vadd.xlane.f32.xlu0 %v13389_v2  ;;  %v5851_v31 = vpack.c.bf16 %v5819_v38, %v13191_v21  ;;  %v5586_v16 = vadd.f32 1.1283791, %v5585_v57  ;;  %v5599_v15 = vmul.f32 %v8292_v19, %v13344_v14  ;;  %v14258_v57 = vld [vmem:[#allocation42_spill] sm:$0xff] }
 0x98d   : > { %v6141_v3 = vpop.f32.mrf.mxu1  ;;  %v6184_v5 = vadd.f32 %v13303_v8, %v6135_v9  ;;  %v6186_v43 = vadd.f32 %v6185_v34, %v6137_v30  ;;  %v5821_v55 = vmul.f32 %v5757_v6, %v13167_v29  ;;  %v5664_v47 = vadd.f32 0.18741608, %v5663_v18  ;;  %v14259_v6 = vld [vmem:[#allocation44_spill] sm:$0xff] }
 0x98e   : > { %8293 = vrcp.f32 %v13400_v0  ;;  %v6140_v25 = vadd.f32 %v13250_v59, %v6139_v58  ;;  %6158 = vmatmul.bf16.gmra.mxu1 %v5851_v31  ;;  %v5600_v46 = vsub.f32 1.0, %v5599_v15  ;;  %v5607_v21 = vand.u32 2147483647, %v13344_v14  ;;  %v14256_v58 = vld [vmem:[#allocation38_spill] sm:$0xff] }
 0x98f   : > { %v6239_v23 = vpop.f32.mrf.mxu0  ;;  %v6279_v33 = vadd.f32 %v13240_v42, %v6230_v20  ;;  %v6233_v12 = vadd.f32 %v13266_v26, %v6184_v5  ;;  %v5609_v11 = vand.u32 2147483648, %v13344_v14  ;;  %v6235_v8 = vadd.f32 %v13313_v24, %v6186_v43  ;;  %v14260_v43 = vld [vmem:[#allocation45_spill] sm:$0xff] }
 0x990   : > { %v5853_v34 = vpack.c.bf16 %v5821_v55, %v13280_v54  ;;  %v6189_v29 = vadd.f32 %v6188_v35, %v6140_v25  ;;  %v5601_v7 = vmul.f32 %v8292_v19, %v5600_v46  ;;  %vm5604_vm9 = vweird.f32 %v8292_v19 }
 0x991   : > { %v6282_v63 = vadd.f32 %v13305_v4, %v6233_v12  ;;  %v13418_v51 = vadd.f32 %v6279_v33, %v14256_v58  ;;  %v5531_v42 = vsel %vm13368_vm8, %v13259_v36, %v5526_v1  ;;  %v6284_v26 = vadd.f32 %v13339_v49, %v6235_v8 }
 0x992   : > { %6256 = vmatmul.bf16.gmra.mxu0 %v5853_v34  ;;  %v6238_v28 = vadd.f32 %v13346_v50, %v6189_v29  ;;  %v6142_v24 = vadd.f32 %v13250_v59, %v6141_v3  ;;  %v5602_v45 = vadd.f32 %v8292_v19, %v5601_v7  ;;  %vm5603_vm10 = vweird.f32 %v13344_v14 }
 0x993   : > { %v6286_v44 = vpop.f32.mrf.mxu3  ;;  %v5665_v4 = vmul.f32 %v5664_v47, %v13236_v53  ;;  %6335 = vadd.xlane.f32.xlu1 %v13418_v51  ;;  %v13430_v38 = vadd.f32 %v6282_v63, %v14257_v41  ;;  %vm5605_vm11 = vmor %vm5603_vm10, %vm5604_vm9  ;;  %v5610_v36 = vor.u32 1.1754944e-38, %v5609_v11  ;;  %v13434_v50 = vadd.f32 %v6284_v26, %v14258_v57  ;;  %v14263_v41 = vld [vmem:[#allocation60_spill] sm:$0xff] }
 0x994   : > { %v6190_v54 = vpop.f32.mrf.mxu2  ;;  %v8294_v17 = vpop.eup %8293  ;;  %v6287_v49 = vadd.f32 %v6286_v44, %v6238_v28  ;;  %v5587_v14 = vmul.f32 %v5586_v16, %v13142_v37  ;;  %v5606_v56 = vsel %vm5605_vm11, %v8292_v19, %v5602_v45  ;;  %vm5608_vm12 = vcmp.eq.f32.partialorder %v5607_v21, 8.507059e+37  ;;  %v14261_v28 = vld [vmem:[#allocation49_spill] sm:$0xff]  ;;  %v14262_v45 = vld [vmem:[#allocation66_spill] sm:$0xff] }
 0x995   : > { %v6191_v18 = vadd.f32 %v6190_v54, %v6142_v24  ;;  %v5679_v53 = vmul.f32 %v8294_v17, %v13400_v0  ;;  %6337 = vadd.xlane.f32.xlu2 %v13430_v38  ;;  %v5752_v62 = vadd.f32 1.0, %v7360_v10  ;;  %v5611_v39 = vsel %vm5608_vm12, %v5610_v36, %v5606_v56  ;;  %6339 = vadd.xlane.f32.xlu0 %v13434_v50 }
 0x996   : > { %v6144_v60 = vpop.f32.mrf.mxu1  ;;  %v5532_v1 = vmul.f32 %v5531_v42, %v13223_v22  ;;  %v5612_v9 = vmul.f32 %v5611_v39, %v5587_v14  ;;  %v13442_v20 = vadd.f32 %v6287_v49, %v14259_v6  ;;  %v5666_v37 = vadd.f32 1.1283791, %v5665_v4  ;;  %v14264_v39 = vld [vmem:[#allocation48_spill] sm:$0xff] }
 0x997   : > { %v6240_v52 = vadd.f32 %v6239_v23, %v6191_v18  ;;  %v5680_v30 = vsub.f32 1.0, %v5679_v53  ;;  %v5687_v19 = vand.u32 2147483647, %v13400_v0  ;;  %v5689_v31 = vand.u32 2147483648, %v13400_v0 }
 0x998   : > { %v7364_v3 = vclamps-f32 %v5612_v9, 1.0  ;;  %vm5684_vm13 = vweird.f32 %v8294_v17  ;;  %v6145_v16 = vadd.f32 %v13250_v59, %v6144_v60  ;;  %v3064_v15 = vmul.f32 0.5, %v13011_v13 }
 0x999   : > { %v5681_v10 = vmul.f32 %v8294_v17, %v5680_v30  ;;  %v3068_v22 = vmul.f32 0.5, %v13130_v27  ;;  %vm5683_vm14 = vweird.f32 %v13400_v0  ;;  %v7362_v21 = vclamps-f32 %v5532_v1, 1.0 }
 0x99a   : > { %v6242_v35 = vpop.f32.mrf.mxu0  ;;  %v5756_v55 = vadd.f32 1.0, %v7364_v3  ;;  %v5816_v46 = vmul.f32 %v5752_v62, %v3064_v15  ;;  %v5667_v33 = vmul.f32 %v5666_v37, %v13205_v40  ;;  %vm5685_vm15 = vmor %vm5683_vm14, %vm5684_vm13  ;;  %v5690_v12 = vor.u32 1.1754944e-38, %v5689_v31 }
 0x99b   : > { %v6288_v32 = vpop.f32.mrf.mxu3  ;;  %v5682_v47 = vadd.f32 %v8294_v17, %v5681_v10  ;;  %6341 = vadd.xlane.f32.xlu1 %v13442_v20  ;;  %vm5688_vm0 = vcmp.eq.f32.partialorder %v5687_v19, 8.507059e+37  ;;  %v5754_v42 = vadd.f32 1.0, %v7362_v21  ;;  %v3066_v4 = vmul.f32 0.5, %v14262_v45 }
 0x99c   : > { %v6289_v44 = vadd.f32 %v6288_v32, %v6240_v52  ;;  %v6193_v5 = vpop.f32.mrf.mxu2  ;;  %v5820_v27 = vmul.f32 %v5756_v55, %v3068_v22 }
 0x99d   : > { %v6194_v25 = vadd.f32 %v6193_v5, %v6145_v16  ;;  %v5686_v8 = vsel %vm5685_vm15, %v8294_v17, %v5682_v47  ;;  %v3070_v17 = vmul.f32 0.5, %v14263_v41  ;;  %v5818_v32 = vmul.f32 %v5754_v42, %v3066_v4  ;;  %v14266_v47 = vld [vmem:[#allocation51_spill] sm:$0xff]  ;;  %v14269_v4 = vld [vmem:[#allocation34_spill] sm:$0xff] }
 0x99e   : > { %v13450_v23 = vadd.f32 %v6289_v44, %v14260_v43  ;;  %v6146_v11 = vpop.f32.mrf.mxu1  ;;  %v5691_v29 = vsel %vm5688_vm0, %v5690_v12, %v5686_v8  ;;  %v5852_v0 = vpack.c.bf16 %v5820_v27, %v5816_v46  ;;  %v14265_v44 = vld [vmem:[#allocation50_spill] sm:$0xff] }
 0x99f   : > { %v6243_v34 = vadd.f32 %v6242_v35, %v6194_v25  ;;  %v5692_v7 = vmul.f32 %v5691_v29, %v5667_v33  ;;  %v6147_v40 = vadd.f32 %v13250_v59, %v6146_v11 }
 0x9a0   : > { %6343 = vadd.xlane.f32.xlu2 %v13450_v23  ;;  %6207 = vmatmul.bf16.gmra.mxu2 %v5852_v0  ;;  %v14267_v0 = vld [vmem:[#allocation63_spill] sm:$0xff] }
 0x9a1   : > { %v7366_v26 = vclamps-f32 %v5692_v7, 1.0 }
 0x9a2   : > { %v6244_v58 = vpop.f32.mrf.mxu0 }
 0x9a3   : > { %v6291_v13 = vpop.f32.mrf.mxu3  ;;  %v5758_v36 = vadd.f32 1.0, %v7366_v26 }
 0x9a4   : > { %v6292_v63 = vadd.f32 %v6291_v13, %v6243_v34  ;;  %v6195_v54 = vpop.f32.mrf.mxu2 }
 0x9a5   : > { %v6196_v49 = vadd.f32 %v6195_v54, %v6147_v40  ;;  %v5822_v60 = vmul.f32 %v5758_v36, %v3070_v17 }
 0x9a6   : > { %v13458_v24 = vadd.f32 %v6292_v63, %v14261_v28  ;;  %v6149_v18 = vpop.f32.mrf.mxu1  ;;  %v14268_v28 = vld [vmem:[#allocation62_spill] sm:$0xff] }
 0x9a7   : > { %v6245_v14 = vadd.f32 %v6244_v58, %v6196_v49  ;;  %v5854_v56 = vpack.c.bf16 %v5822_v60, %v5818_v32  ;;  %v6150_v62 = vadd.f32 %v13250_v59, %v6149_v18 }
 0x9a8   : > { %6345 = vadd.xlane.f32.xlu0 %v13458_v24 }
 0x9a9   : > { %6305 = vmatmul.bf16.gmra.mxu3 %v5854_v56 }
 0x9aa   : > { %v6247_v35 = vpop.f32.mrf.mxu0 }
 0x9ab   : > { %v6293_v57 = vpop.f32.mrf.mxu3 }
 0x9ac   : > { %v6294_v53 = vadd.f32 %v6293_v57, %v6245_v14  ;;  %v6198_v1 = vpop.f32.mrf.mxu2 }
 0x9ad   : > { %v6199_v9 = vadd.f32 %v6198_v1, %v6150_v62 }
 0x9ae   : > { %v6320_v52 = vadd.f32 %v6294_v53, %v14264_v39  ;;  %v6151_v37 = vpop.f32.mrf.mxu1 }
 0x9af   : > { %v6248_v6 = vadd.f32 %v6247_v35, %v6199_v9  ;;  %v6152_v31 = vadd.f32 %v13250_v59, %v6151_v37 }
 0x9b0   : > { %6347 = vadd.xlane.f32.xlu1 %v6320_v52 }
 0x9b2   : > { %v6249_v15 = vpop.f32.mrf.mxu0 }
 0x9b3   : > { %v6296_v30 = vpop.f32.mrf.mxu3 }
 0x9b4   : > { %v6297_v19 = vadd.f32 %v6296_v30, %v6248_v6  ;;  %v6200_v10 = vpop.f32.mrf.mxu2 }
 0x9b5   : > { %v6201_v16 = vadd.f32 %v6200_v10, %v6152_v31 }
 0x9b6   : > { %v13467_v3 = vadd.f32 %v6297_v19, %v14265_v44  ;;  %v6154_v55 = vpop.f32.mrf.mxu1 }
 0x9b7   : > { %v6250_v22 = vadd.f32 %v6249_v15, %v6201_v16  ;;  %v6155_v21 = vadd.f32 %v13250_v59, %v6154_v55 }
 0x9b8   : > { %6349 = vadd.xlane.f32.xlu2 %v13467_v3 }
 0x9ba   : > { %v6252_v12 = vpop.f32.mrf.mxu0 }
 0x9bb   : > { %v6298_v5 = vpop.f32.mrf.mxu3 }
 0x9bc   : > { %v6299_v43 = vadd.f32 %v6298_v5, %v6250_v22  ;;  %v14270_v22 = vld [vmem:[#allocation43_spill] sm:$0xff] }
 0x9be   : > { %v13471_v25 = vadd.f32 %v6299_v43, %v14266_v47  ;;  %v6156_v13 = vpop.f32.mrf.mxu1 }
 0x9bf   : > { %v6203_v46 = vpop.f32.mrf.mxu2  ;;  %v6157_v8 = vadd.f32 %v13250_v59, %v6156_v13 }
 0x9c0   : > { %6351 = vadd.xlane.f32.xlu0 %v13471_v25  ;;  %v6204_v33 = vadd.f32 %v6203_v46, %v6155_v21 }
 0x9c2   : > { %v6253_v11 = vadd.f32 %v6252_v12, %v6204_v33  ;;  %v6254_v58 = vpop.f32.mrf.mxu0 }
 0x9c7   : > { %v6205_v27 = vpop.f32.mrf.mxu2 }
 0x9c8   : > { %v6206_v7 = vadd.f32 %v6205_v27, %v6157_v8 }
 0x9ca   : > { %v6255_v42 = vadd.f32 %v6254_v58, %v6206_v7 }
 0x9cd   : > { %v6301_v34 = vpop.f32.mrf.mxu3 }
 0x9ce   : > { %v6302_v29 = vadd.f32 %v6301_v34, %v6253_v11  ;;  %v14271_v11 = vld [vmem:[#allocation69_spill] sm:$0xff] }
 0x9d0   : > { %v13477_v63 = vadd.f32 %v6302_v29, %v14267_v0 }
 0x9d2   : > { %6353 = vadd.xlane.f32.xlu1 %v13477_v63 }
 0x9d5   : > { %v6303_v26 = vpop.f32.mrf.mxu3 }
 0x9d6   : > { %v6304_v40 = vadd.f32 %v6303_v26, %v6255_v42 }
 0x9d8   : > { %v13481_v54 = vadd.f32 %v6304_v40, %v14268_v28 }
 0x9da   : > { %6355 = vadd.xlane.f32.xlu2 %v13481_v54 }
 0x9f5   : > { %v6330_v45 = vpop.xlane.xlu1 %6329 }
 0x9f6   : > { %v6361_v41 = vmul.f32 %v6330_v45, %v14269_v4 }
 0x9f8   : > { %v13486_v17 = vsub.f32 %v13333_v61, %v6361_v41 }
 0x9fa   : > { %v6393_v36 = vmul.f32 %v13486_v17, %v13486_v17 }
 0x9fc   : > { %6409 = vadd.xlane.f32.xlu2 %v6393_v36 }
 0x9fe   : > { %v6332_v19 = vpop.xlane.xlu2 %6331 }
 0x9ff   : > { %v6334_v21 = vpop.xlane.xlu0 %6333 }
 0xa00   : > { %v6363_v12 = vmul.f32 %v6334_v21, %v14269_v4 }
 0xa02   : > { %v13526_v34 = vsub.f32 %v13389_v2, %v6363_v12 }
 0xa04   : > { %v6395_v0 = vmul.f32 %v13526_v34, %v13526_v34 }
 0xa06   : > { %v6336_v49 = vpop.xlane.xlu1 %6335 }
 0xa07   : > { %v6364_v57 = vmul.f32 %v6336_v49, %v14269_v4 }
 0xa08   : > { %v6338_v47 = vpop.xlane.xlu2 %6337  ;;  %v6340_v7 = vpop.xlane.xlu0 %6339 }
 0xa09   : > { %v13492_v18 = vsub.f32 %v13418_v51, %v6364_v57  ;;  %v6365_v13 = vmul.f32 %v6338_v47, %v14269_v4  ;;  %v6366_v42 = vmul.f32 %v6340_v7, %v14269_v4 }
 0xa0b   : > { %v6396_v32 = vmul.f32 %v13492_v18, %v13492_v18  ;;  %v6159_v53 = vpop.f32.mrf.mxu1  ;;  %v13529_v29 = vsub.f32 %v13430_v38, %v6365_v13  ;;  %v13542_v45 = vsub.f32 %v13434_v50, %v6366_v42 }
 0xa0c   : > { %v6160_v35 = vadd.f32 %v13250_v59, %v6159_v53 }
 0xa0d   : > { %6415 = vadd.xlane.f32.xlu2 %v6396_v32  ;;  %v6397_v40 = vmul.f32 %v13529_v29, %v13529_v29 }
 0xa0e   : > { %v6342_v60 = vpop.xlane.xlu1 %6341 }
 0xa0f   : > { %v6367_v14 = vmul.f32 %v6342_v60, %v14269_v4 }
 0xa11   : > { %v13498_v61 = vsub.f32 %v13442_v20, %v6367_v14  ;;  %v6257_v20 = vpop.f32.mrf.mxu0 }
 0xa13   : > { %v6399_v56 = vmul.f32 %v13498_v61, %v13498_v61  ;;  %v6161_v6 = vpop.f32.mrf.mxu1 }
 0xa14   : > { %v6162_v31 = vadd.f32 %v13250_v59, %v6161_v6 }
 0xa15   : > { %6421 = vadd.xlane.f32.xlu2 %v6399_v56 }
 0xa19   : > { %v6259_v43 = vpop.f32.mrf.mxu0 }
 0xa1b   : > { %v6346_v49 = vpop.xlane.xlu0 %6345 }
 0xa1c   : > { %v6369_v57 = vmul.f32 %v6346_v49, %v14269_v4 }
 0xa23   : > { %v6348_v62 = vpop.xlane.xlu1 %6347  ;;  %v6208_v9 = vpop.f32.mrf.mxu2 }
 0xa24   : > { %v6370_v39 = vmul.f32 %v6348_v62, %v14269_v4  ;;  %v6209_v30 = vadd.f32 %v6208_v9, %v6160_v35 }
 0xa26   : > { %v13503_v51 = vsub.f32 %v6320_v52, %v6370_v39  ;;  %v6258_v37 = vadd.f32 %v6257_v20, %v6209_v30  ;;  %v6362_v52 = vmul.f32 %v6332_v19, %v14269_v4 }
 0xa28   : > { %v6402_v1 = vmul.f32 %v13503_v51, %v13503_v51  ;;  %v13515_v46 = vsub.f32 %v13376_v48, %v6362_v52  ;;  %v6344_v48 = vpop.xlane.xlu2 %6343  ;;  %v13582_v52 = vld [vmem:[%s14272_s13] ss:$0 sm:$0xff]  ;;  %s8601_s13 = sshra.s32 %s6721_s5, 4  ;;  %s8602_s13 = int_to_ptr.hbm [resolvable:$true] %s8601_s13 }
 0xa29   : > { %v6368_v26 = vmul.f32 %v6344_v48, %v14269_v4  ;;  %s8603_s24 = scalar_lea.hbm %s8602_s13, 128  ;;  %p8608_p1 = scmp.lt.s32.totalorder %s8602_s13, %s14276_s10 }
 0xa2a   : > { %6427 = vadd.xlane.f32.xlu2 %v6402_v1  ;;  %v6394_v8 = vmul.f32 %v13515_v46, %v13515_v46  ;;  %p8604_p10 = scmp.ne.s32.totalorder %s8602_s13, %s8603_s24  ;;  %p8609_p3 = scmp.lt.s32.totalorder %s8607_s15, %s8603_s24 }
 0xa2b   : > { %v6210_v10 = vpop.f32.mrf.mxu2  ;;  %v13545_v41 = vsub.f32 %v13450_v23, %v6368_v26  ;;  %v13556_v23 = vsub.f32 %v13458_v24, %v6369_v57 }
 0xa2c   : > { %v6306_v44 = vpop.f32.mrf.mxu3  ;;  %v6211_v15 = vadd.f32 %v6210_v10, %v6162_v31  ;;  %p8605_p13 = pnand %p8604_p10, %p9009_p12  ;;  %p8610_p9 = por %p8609_p3, %p8608_p1 }
 0xa2d   : > { %v6307_v16 = vadd.f32 %v6306_v44, %v6258_v37  ;;  %v6400_v60 = vmul.f32 %v13545_v41, %v13545_v41  ;;  %v6401_v39 = vmul.f32 %v13556_v23, %v13556_v23 }
 0xa2e   : > { %v6260_v55 = vadd.f32 %v6259_v43, %v6211_v15  ;;  %v13587_v43 = vld [vmem:[%s14273_s9] ss:$0 sm:$0xff]  ;;  %p8606_p0 = pneg %p8605_p13 }
 0xa2f   : > { %v13511_v5 = vadd.f32 %v6307_v16, %v14270_v22 }
 0xa30   : > { %v6350_v38 = vpop.xlane.xlu2 %6349  ;;  %p8611_p11 = pnand %p8610_p9, %p8606_p0 }
 0xa31   : > { %6357 = vadd.xlane.f32.xlu0 %v13511_v5  ;;  %v6371_v32 = vmul.f32 %v6350_v38, %v14269_v4 }
 0xa33   : > { %v13559_v14 = vsub.f32 %v13467_v3, %v6371_v32  ;;  %v6352_v56 = vpop.xlane.xlu0 %6351 }
 0xa34   : > { %v6308_v33 = vpop.f32.mrf.mxu3  ;;  %v6372_v62 = vmul.f32 %v6352_v56, %v14269_v4 }
 0xa35   : > { %v6309_v59 = vadd.f32 %v6308_v33, %v6260_v55  ;;  %v6403_v35 = vmul.f32 %v13559_v14, %v13559_v14 }
 0xa36   : > { %v13571_v24 = vsub.f32 %v13471_v25, %v6372_v62 }
 0xa37   : > { %v13520_v27 = vadd.f32 %v6309_v59, %v14271_v11 }
 0xa38   : > { %v6404_v9 = vmul.f32 %v13571_v24, %v13571_v24 }
 0xa39   : > { %6359 = vadd.xlane.f32.xlu1 %v13520_v27  ;;  %6411 = vadd.xlane.f32.xlu0 %v6394_v8 }
 0xa41   : > { %6413 = vadd.xlane.f32.xlu1 %v6395_v0  ;;  %6417 = vadd.xlane.f32.xlu0 %v6397_v40 }
 0xa45   : > { %v6354_v58 = vpop.xlane.xlu1 %6353 }
 0xa46   : > { %v6373_v28 = vmul.f32 %v6354_v58, %v14269_v4 }
 0xa48   : > { %v13539_v2 = vsub.f32 %v13477_v63, %v6373_v28  ;;  %v6398_v63 = vmul.f32 %v13542_v45, %v13542_v45 }
 0xa49   : > { %6423 = vadd.xlane.f32.xlu0 %v6400_v60 }
 0xa4a   : > { %v6405_v36 = vmul.f32 %v13539_v2, %v13539_v2  ;;  %6419 = vadd.xlane.f32.xlu1 %v6398_v63 }
 0xa4c   : > { %6433 = vadd.xlane.f32.xlu2 %v6405_v36 }
 0xa4d   : > { %v6356_v50 = vpop.xlane.xlu2 %6355 }
 0xa4e   : > { %v6374_v53 = vmul.f32 %v6356_v50, %v14269_v4 }
 0xa50   : > { %v13568_v1 = vsub.f32 %v13481_v54, %v6374_v53 }
 0xa51   : > { %6429 = vadd.xlane.f32.xlu0 %v6403_v35 }
 0xa52   : > { %6425 = vadd.xlane.f32.xlu1 %v6401_v39  ;;  %v6406_v3 = vmul.f32 %v13568_v1, %v13568_v1 }
 0xa59   : > { %6435 = vadd.xlane.f32.xlu0 %v6406_v3 }
 0xa5a   : > { %6431 = vadd.xlane.f32.xlu1 %v6404_v9 }
 0xa6f   : > { %v6410_v30 = vpop.xlane.xlu2 %6409 }
 0xa70   : > { %v6441_v20 = vmul.f32 %v6410_v30, %v14269_v4 }
 0xa72   : > { %v6457_v6 = vadd.f32 1e-05, %v6441_v20 }
 0xa74   : > { %8295 = vrsqrt.f32 %v6457_v6  ;;  %vm6479_vm3 = vweird.f32 %v6457_v6 }
 0xa7a   : > { %v8296_v37 = vpop.eup %8295 }
 0xa7b   : > { %v6474_v19 = vmul.f32 %v8296_v37, %v6457_v6  ;;  %vm6480_vm2 = vweird.f32 %v8296_v37 }
 0xa7c   : > { %vm6481_vm4 = vmor %vm6479_vm3, %vm6480_vm2 }
 0xa7d   : > { %v6475_v54 = vmul.f32 %v8296_v37, %v6474_v19 }
 0xa7f   : > { %v6476_v31 = vmul.f32 0.5, %v6475_v54 }
 0xa80   : > { %v6416_v44 = vpop.xlane.xlu2 %6415 }
 0xa81   : > { %v6444_v25 = vmul.f32 %v6416_v44, %v14269_v4  ;;  %v6477_v10 = vsub.f32 1.5, %v6476_v31 }
 0xa83   : > { %v6460_v16 = vadd.f32 1e-05, %v6444_v25  ;;  %v6478_v15 = vmul.f32 %v8296_v37, %v6477_v10 }
 0xa85   : > { %8297 = vrsqrt.f32 %v6460_v16  ;;  %v6482_v22 = vsel %vm6481_vm4, %v8296_v37, %v6478_v15  ;;  %vm6509_vm6 = vweird.f32 %v6460_v16 }
 0xa86   : > { %v6633_v55 = vmul.f32 %v6482_v22, %v13486_v17 }
 0xa88   : > { %v6422_v47 = vpop.xlane.xlu2 %6421  ;;  %v6652_v21 = vmul.f32 %v13582_v52, %v6633_v55 }
 0xa89   : > { %v6447_v33 = vmul.f32 %v6422_v47, %v14269_v4 }
 0xa8a   : > { %v6671_v12 = vadd.f32 %v13587_v43, %v6652_v21 }
 0xa8b   : > { %v8298_v59 = vpop.eup %8297  ;;  %v6463_v13 = vadd.f32 1e-05, %v6447_v33 }
 0xa8c   : > { %v6504_v11 = vmul.f32 %v8298_v59, %v6460_v16  ;;  %6687 = vst [vmem:[%s9076_s4] sm:$0xff] %v6671_v12  ;;  %vm6510_vm5 = vweird.f32 %v8298_v59 }
 0xa8d   : > { %8299 = vrsqrt.f32 %v6463_v13  ;;  %vm6511_vm7 = vmor %vm6509_vm6, %vm6510_vm5  ;;  %vm6539_vm1 = vweird.f32 %v6463_v13 }
 0xa8e   : > { %v6505_v8 = vmul.f32 %v8298_v59, %v6504_v11 }
 0xa90   : > { %v6506_v48 = vmul.f32 0.5, %v6505_v8 }
 0xa92   : > { %v6507_v7 = vsub.f32 1.5, %v6506_v48 }
 0xa93   : > { %v8300_v0 = vpop.eup %8299 }
 0xa94   : > { %v6508_v58 = vmul.f32 %v8298_v59, %v6507_v7  ;;  %v6534_v17 = vmul.f32 %v8300_v0, %v6463_v13  ;;  %vm6540_vm8 = vweird.f32 %v8300_v0 }
 0xa95   : > { %vm6541_vm9 = vmor %vm6539_vm1, %vm6540_vm8 }
 0xa96   : > { %v6512_v42 = vsel %vm6511_vm7, %v8298_v59, %v6508_v58  ;;  %v6535_v26 = vmul.f32 %v8300_v0, %v6534_v17 }
 0xa97   : > { %v6636_v40 = vmul.f32 %v6512_v42, %v13492_v18 }
 0xa98   : > { %v6536_v28 = vmul.f32 0.5, %v6535_v26 }
 0xa99   : > { %v6655_v36 = vmul.f32 %v13582_v52, %v6636_v40 }
 0xa9a   : > { %v6537_v57 = vsub.f32 1.5, %v6536_v28 }
 0xa9b   : > { %v6674_v32 = vadd.f32 %v13587_v43, %v6655_v36 }
 0xa9c   : > { %v6538_v60 = vmul.f32 %v8300_v0, %v6537_v57 }
 0xa9d   : > { %v6428_v38 = vpop.xlane.xlu2 %6427  ;;  %6690 = vst [vmem:[%s9076_s4 + $0x18] sm:$0xff] %v6674_v32 }
 0xa9e   : > { %v6450_v49 = vmul.f32 %v6428_v38, %v14269_v4  ;;  %v6542_v50 = vsel %vm6541_vm9, %v8300_v0, %v6538_v60 }
 0xa9f   : > { %v6639_v18 = vmul.f32 %v6542_v50, %v13498_v61 }
 0xaa0   : > { %v6466_v63 = vadd.f32 1e-05, %v6450_v49 }
 0xaa1   : > { %v6658_v56 = vmul.f32 %v13582_v52, %v6639_v18 }
 0xaa2   : > { %8301 = vrsqrt.f32 %v6466_v63  ;;  %vm6569_vm11 = vweird.f32 %v6466_v63 }
 0xaa3   : > { %v6677_v62 = vadd.f32 %v13587_v43, %v6658_v56 }
 0xaa4   : > { %v6358_v39 = vpop.xlane.xlu0 %6357 }
 0xaa5   : > { %6693 = vst [vmem:[%s9076_s4 + $0x30] sm:$0xff] %v6677_v62  ;;  %v6375_v3 = vmul.f32 %v6358_v39, %v14269_v4 }
 0xaa7   : > { %v13605_v30 = vsub.f32 %v13511_v5, %v6375_v3 }
 0xaa8   : > { %v8302_v53 = vpop.eup %8301 }
 0xaa9   : > { %v6564_v35 = vmul.f32 %v8302_v53, %v6466_v63  ;;  %v6407_v6 = vmul.f32 %v13605_v30, %v13605_v30  ;;  %vm6570_vm10 = vweird.f32 %v8302_v53 }
 0xaaa   : > { %vm6571_vm12 = vmor %vm6569_vm11, %vm6570_vm10 }
 0xaab   : > { %v6565_v9 = vmul.f32 %v8302_v53, %v6564_v35  ;;  %6437 = vadd.xlane.f32.xlu1 %v6407_v6 }
 0xaac   : > { %v6360_v61 = vpop.xlane.xlu1 %6359  ;;  %v6412_v19 = vpop.xlane.xlu0 %6411 }
 0xaad   : > { %v6566_v20 = vmul.f32 0.5, %v6565_v9  ;;  %v6376_v31 = vmul.f32 %v6360_v61, %v14269_v4  ;;  %v6442_v44 = vmul.f32 %v6412_v19, %v14269_v4 }
 0xaaf   : > { %v6567_v37 = vsub.f32 1.5, %v6566_v20  ;;  %v13612_v5 = vsub.f32 %v13520_v27, %v6376_v31  ;;  %v6458_v10 = vadd.f32 1e-05, %v6442_v44 }
 0xab1   : > { %v6568_v54 = vmul.f32 %v8302_v53, %v6567_v37  ;;  %8303 = vrsqrt.f32 %v6458_v10  ;;  %v6408_v22 = vmul.f32 %v13612_v5, %v13612_v5  ;;  %vm6489_vm14 = vweird.f32 %v6458_v10 }
 0xab3   : > { %v6572_v25 = vsel %vm6571_vm12, %v8302_v53, %v6568_v54  ;;  %6439 = vadd.xlane.f32.xlu2 %v6408_v22 }
 0xab4   : > { %v6642_v16 = vmul.f32 %v6572_v25, %v13503_v51  ;;  %v6414_v47 = vpop.xlane.xlu1 %6413  ;;  %v6418_v21 = vpop.xlane.xlu0 %6417 }
 0xab5   : > { %v6443_v33 = vmul.f32 %v6414_v47, %v14269_v4  ;;  %v6445_v27 = vmul.f32 %v6418_v21, %v14269_v4 }
 0xab6   : > { %v6661_v15 = vmul.f32 %v13582_v52, %v6642_v16 }
 0xab7   : > { %v8304_v59 = vpop.eup %8303  ;;  %v6459_v12 = vadd.f32 1e-05, %v6443_v33  ;;  %v6461_v13 = vadd.f32 1e-05, %v6445_v27 }
 0xab8   : > { %v6680_v55 = vadd.f32 %v13587_v43, %v6661_v15  ;;  %v6484_v51 = vmul.f32 %v8304_v59, %v6458_v10  ;;  %vm6490_vm13 = vweird.f32 %v8304_v59 }
 0xab9   : > { %8305 = vrsqrt.f32 %v6459_v12  ;;  %vm6491_vm15 = vmor %vm6489_vm14, %vm6490_vm13  ;;  %vm6499_vm3 = vweird.f32 %v6459_v12  ;;  %vm6519_vm5 = vweird.f32 %v6461_v13 }
 0xaba   : > { %6696 = vst [vmem:[%s9076_s4 + $0x48] sm:$0xff] %v6680_v55  ;;  %v6485_v48 = vmul.f32 %v8304_v59, %v6484_v51  ;;  %8307 = vrsqrt.f32 %v6461_v13 }
 0xabc   : > { %v6486_v0 = vmul.f32 0.5, %v6485_v48  ;;  %v6424_v17 = vpop.xlane.xlu0 %6423 }
 0xabd   : > { %v6420_v58 = vpop.xlane.xlu1 %6419  ;;  %v6448_v26 = vmul.f32 %v6424_v17, %v14269_v4 }
 0xabe   : > { %v6446_v42 = vmul.f32 %v6420_v58, %v14269_v4  ;;  %v6487_v40 = vsub.f32 1.5, %v6486_v0 }
 0xabf   : > { %v6434_v11 = vpop.xlane.xlu2 %6433  ;;  %v8306_v28 = vpop.eup %8305  ;;  %v13630_v36 = vadd.f32 1e-05, %v6448_v26 }
 0xac0   : > { %v6453_v8 = vmul.f32 %v6434_v11, %v14269_v4  ;;  %v13628_v38 = vadd.f32 1e-05, %v6446_v42  ;;  %v8308_v49 = vpop.eup %8307  ;;  %v6488_v57 = vmul.f32 %v8304_v59, %v6487_v40  ;;  %v6494_v32 = vmul.f32 %v8306_v28, %v6459_v12 }
 0xac1   : > { %v6514_v63 = vmul.f32 %v8308_v49, %v6461_v13  ;;  %vm6500_vm0 = vweird.f32 %v8306_v28  ;;  %vm6520_vm2 = vweird.f32 %v8308_v49  ;;  %vm6549_vm13 = vweird.f32 %v13630_v36 }
 0xac2   : > { %v13623_v7 = vadd.f32 1e-05, %v6453_v8  ;;  %v6492_v60 = vsel %vm6491_vm15, %v8304_v59, %v6488_v57  ;;  %v6495_v50 = vmul.f32 %v8306_v28, %v6494_v32  ;;  %vm6501_vm4 = vmor %vm6499_vm3, %vm6500_vm0  ;;  %vm6529_vm8 = vweird.f32 %v13628_v38 }
 0xac3   : > { %v6634_v56 = vmul.f32 %v6492_v60, %v13515_v46  ;;  %v6515_v53 = vmul.f32 %v8308_v49, %v6514_v63  ;;  %vm6521_vm6 = vmor %vm6519_vm5, %vm6520_vm2 }
 0xac4   : > { %8309 = vrsqrt.f32 %v13623_v7  ;;  %v6496_v62 = vmul.f32 0.5, %v6495_v50  ;;  %v6430_v35 = vpop.xlane.xlu0 %6429  ;;  %vm6599_vm7 = vweird.f32 %v13623_v7 }
 0xac5   : > { %8311 = vrsqrt.f32 %v13628_v38  ;;  %v6426_v39 = vpop.xlane.xlu1 %6425  ;;  %v6653_v9 = vmul.f32 %v13582_v52, %v6634_v56  ;;  %v6516_v20 = vmul.f32 0.5, %v6515_v53  ;;  %v6451_v37 = vmul.f32 %v6430_v35, %v14269_v4 }
 0xac6   : > { %8313 = vrsqrt.f32 %v13630_v36  ;;  %v6449_v6 = vmul.f32 %v6426_v39, %v14269_v4  ;;  %v6497_v61 = vsub.f32 1.5, %v6496_v62 }
 0xac7   : > { %v6672_v54 = vadd.f32 %v13587_v43, %v6653_v9  ;;  %v6517_v31 = vsub.f32 1.5, %v6516_v20  ;;  %v13648_v25 = vadd.f32 1e-05, %v6451_v37 }
 0xac8   : > { %v13646_v44 = vadd.f32 1e-05, %v6449_v6  ;;  %v6498_v16 = vmul.f32 %v8306_v28, %v6497_v61 }
 0xac9   : > { %6688 = vst [vmem:[%s9076_s4 + $0x8] sm:$0xff] %v6672_v54  ;;  %v6518_v55 = vmul.f32 %v8308_v49, %v6517_v31 }
 0xaca   : > { %v13634_v18 = vpop.eup %8309  ;;  %8315 = vrsqrt.f32 %v13646_v44  ;;  %v6502_v21 = vsel %vm6501_vm4, %v8306_v28, %v6498_v16  ;;  %vm6559_vm2 = vweird.f32 %v13646_v44  ;;  %vm6579_vm4 = vweird.f32 %v13648_v25 }
 0xacb   : > { %v6594_v3 = vmul.f32 %v13634_v18, %v13623_v7  ;;  %v13643_v19 = vpop.eup %8311  ;;  %8317 = vrsqrt.f32 %v13648_v25  ;;  %v6635_v27 = vmul.f32 %v6502_v21, %v13526_v34  ;;  %v6522_v59 = vsel %vm6521_vm6, %v8308_v49, %v6518_v55 }
 0xacc   : > { %v8314_v10 = vpop.eup %8313  ;;  %v6524_v15 = vmul.f32 %v13643_v19, %v13628_v38  ;;  %v6637_v13 = vmul.f32 %v6522_v59, %v13529_v29  ;;  %vm6600_vm1 = vweird.f32 %v13634_v18  ;;  %v6436_v48 = vpop.xlane.xlu0 %6435  ;;  %vm6530_vm9 = vweird.f32 %v13643_v19 }
 0xacd   : > { %v6595_v46 = vmul.f32 %v13634_v18, %v6594_v3  ;;  %v6544_v47 = vmul.f32 %v8314_v10, %v13630_v36  ;;  %v6432_v8 = vpop.xlane.xlu1 %6431  ;;  %v6654_v0 = vmul.f32 %v13582_v52, %v6635_v27  ;;  %v6454_v42 = vmul.f32 %v6436_v48, %v14269_v4  ;;  %vm6601_vm11 = vmor %vm6599_vm7, %vm6600_vm1 }
 0xace   : > { %v6525_v33 = vmul.f32 %v13643_v19, %v6524_v15  ;;  %v6452_v17 = vmul.f32 %v6432_v8, %v14269_v4  ;;  %v6656_v34 = vmul.f32 %v13582_v52, %v6637_v13  ;;  %vm6550_vm10 = vweird.f32 %v8314_v10  ;;  %vm6531_vm12 = vmor %vm6529_vm8, %vm6530_vm9 }
 0xacf   : > { %v6596_v22 = vmul.f32 0.5, %v6595_v46  ;;  %v6545_v12 = vmul.f32 %v8314_v10, %v6544_v47  ;;  %v6673_v28 = vadd.f32 %v13587_v43, %v6654_v0  ;;  %v13679_v56 = vadd.f32 1e-05, %v6454_v42  ;;  %vm6551_vm14 = vmor %vm6549_vm13, %vm6550_vm10 }
 0xad0   : > { %v6526_v51 = vmul.f32 0.5, %v6525_v33  ;;  %v8316_v40 = vpop.eup %8315  ;;  %v13670_v57 = vadd.f32 1e-05, %v6452_v17  ;;  %v6675_v63 = vadd.f32 %v13587_v43, %v6656_v34 }
 0xad1   : > { %v6597_v11 = vsub.f32 1.5, %v6596_v22  ;;  %v6546_v58 = vmul.f32 0.5, %v6545_v12  ;;  %v8318_v32 = vpop.eup %8317  ;;  %v6554_v50 = vmul.f32 %v8316_v40, %v13646_v44  ;;  %6689 = vst [vmem:[%s9076_s4 + $0x10] sm:$0xff] %v6673_v28  ;;  %vm6560_vm15 = vweird.f32 %v8316_v40 }
 0xad2   : > { %v6527_v26 = vsub.f32 1.5, %v6526_v51  ;;  %v6574_v62 = vmul.f32 %v8318_v32, %v13648_v25  ;;  %6691 = vst [vmem:[%s9076_s4 + $0x20] sm:$0xff] %v6675_v63  ;;  %8319 = vrsqrt.f32 %v13670_v57  ;;  %vm6580_vm0 = vweird.f32 %v8318_v32  ;;  %vm6561_vm3 = vmor %vm6559_vm2, %vm6560_vm15 }
 0xad3   : > { %v6598_v29 = vmul.f32 %v13634_v18, %v6597_v11  ;;  %v6547_v49 = vsub.f32 1.5, %v6546_v58  ;;  %v6555_v7 = vmul.f32 %v8316_v40, %v6554_v50  ;;  %8321 = vrsqrt.f32 %v13679_v56  ;;  %vm6581_vm5 = vmor %vm6579_vm4, %vm6580_vm0 }
 0xad4   : > { %v6528_v60 = vmul.f32 %v13643_v19, %v6527_v26  ;;  %v6575_v20 = vmul.f32 %v8318_v32, %v6574_v62  ;;  %vm6589_vm7 = vweird.f32 %v13670_v57  ;;  %vm6609_vm9 = vweird.f32 %v13679_v56 }
 0xad5   : > { %v6548_v53 = vmul.f32 %v8314_v10, %v6547_v49  ;;  %v6602_v39 = vsel %vm6601_vm11, %v13634_v18, %v6598_v29  ;;  %v6556_v6 = vmul.f32 0.5, %v6555_v7 }
 0xad6   : > { %v6532_v35 = vsel %vm6531_vm12, %v13643_v19, %v6528_v60  ;;  %v6645_v3 = vmul.f32 %v6602_v39, %v13539_v2  ;;  %v6576_v61 = vmul.f32 0.5, %v6575_v20 }
 0xad7   : > { %v6638_v38 = vmul.f32 %v6532_v35, %v13542_v45  ;;  %v6552_v9 = vsel %vm6551_vm14, %v8314_v10, %v6548_v53  ;;  %v6557_v46 = vsub.f32 1.5, %v6556_v6 }
 0xad8   : > { %v6640_v36 = vmul.f32 %v6552_v9, %v13545_v41  ;;  %v6664_v18 = vmul.f32 %v13582_v52, %v6645_v3  ;;  %v6577_v41 = vsub.f32 1.5, %v6576_v61  ;;  %v8320_v54 = vpop.eup %8319 }
 0xad9   : > { %v6657_v37 = vmul.f32 %v13582_v52, %v6638_v38  ;;  %v6558_v10 = vmul.f32 %v8316_v40, %v6557_v46  ;;  %v6584_v15 = vmul.f32 %v8320_v54, %v13670_v57  ;;  %v8322_v22 = vpop.eup %8321  ;;  %vm6590_vm6 = vweird.f32 %v8320_v54 }
 0xada   : > { %v6659_v2 = vmul.f32 %v13582_v52, %v6640_v36  ;;  %v6683_v45 = vadd.f32 %v13587_v43, %v6664_v18  ;;  %v6578_v16 = vmul.f32 %v8318_v32, %v6577_v41  ;;  %v6604_v27 = vmul.f32 %v8322_v22, %v13679_v56  ;;  %vm6591_vm1 = vmor %vm6589_vm7, %vm6590_vm6 }
 0xadb   : > { %v6676_v19 = vadd.f32 %v13587_v43, %v6657_v37  ;;  %v6562_v55 = vsel %vm6561_vm3, %v8316_v40, %v6558_v10  ;;  %v6585_v33 = vmul.f32 %v8320_v54, %v6584_v15  ;;  %vm6610_vm8 = vweird.f32 %v8322_v22 }
 0xadc   : > { %v6678_v31 = vadd.f32 %v13587_v43, %v6659_v2  ;;  %6699 = vst [vmem:[%s9076_s4 + $0x60] sm:$0xff] %v6683_v45  ;;  %v6641_v47 = vmul.f32 %v6562_v55, %v13556_v23  ;;  %v6582_v21 = vsel %vm6581_vm5, %v8318_v32, %v6578_v16  ;;  %v6605_v25 = vmul.f32 %v8322_v22, %v6604_v27  ;;  %vm6611_vm10 = vmor %vm6609_vm9, %vm6610_vm8 }
 0xadd   : > { %6692 = vst [vmem:[%s9076_s4 + $0x28] sm:$0xff] %v6676_v19  ;;  %v6643_v44 = vmul.f32 %v6582_v21, %v13559_v14  ;;  %v6586_v12 = vmul.f32 0.5, %v6585_v33 }
 0xade   : > { %6694 = vst [vmem:[%s9076_s4 + $0x38] sm:$0xff] %v6678_v31  ;;  %v6660_v59 = vmul.f32 %v13582_v52, %v6641_v47  ;;  %v6606_v8 = vmul.f32 0.5, %v6605_v25 }
 0xadf   : > { %v6662_v13 = vmul.f32 %v13582_v52, %v6643_v44  ;;  %v6587_v11 = vsub.f32 1.5, %v6586_v12 }
 0xae0   : > { %v6679_v51 = vadd.f32 %v13587_v43, %v6660_v59  ;;  %v6607_v0 = vsub.f32 1.5, %v6606_v8 }
 0xae1   : > { %v6681_v23 = vadd.f32 %v13587_v43, %v6662_v13  ;;  %v6588_v48 = vmul.f32 %v8320_v54, %v6587_v11 }
 0xae2   : > { %6695 = vst [vmem:[%s9076_s4 + $0x40] sm:$0xff] %v6679_v51  ;;  %v6608_v58 = vmul.f32 %v8322_v22, %v6607_v0 }
 0xae3   : > { %6697 = vst [vmem:[%s9076_s4 + $0x50] sm:$0xff] %v6681_v23  ;;  %v6592_v14 = vsel %vm6591_vm1, %v8320_v54, %v6588_v48 }
 0xae4   : > { %v6644_v17 = vmul.f32 %v6592_v14, %v13571_v24  ;;  %v6612_v42 = vsel %vm6611_vm10, %v8322_v22, %v6608_v58 }
 0xae5   : > { %v6646_v26 = vmul.f32 %v6612_v42, %v13568_v1 }
 0xae6   : > { %v6663_v34 = vmul.f32 %v13582_v52, %v6644_v17 }
 0xae7   : > { %v6665_v40 = vmul.f32 %v13582_v52, %v6646_v26 }
 0xae8   : > { %v6682_v29 = vadd.f32 %v13587_v43, %v6663_v34 }
 0xae9   : > { %v6684_v28 = vadd.f32 %v13587_v43, %v6665_v40 }
 0xaea   : > { %6698 = vst [vmem:[%s9076_s4 + $0x58] sm:$0xff] %v6682_v29 }
 0xaeb   : > { %6700 = vst [vmem:[%s9076_s4 + $0x68] sm:$0xff] %v6684_v28 }
 0xb1e   : > { %v6438_v49 = vpop.xlane.xlu1 %6437 }
 0xb1f   : > { %v6455_v57 = vmul.f32 %v6438_v49, %v14269_v4 }
 0xb21   : > { %v6471_v32 = vadd.f32 1e-05, %v6455_v57 }
 0xb23   : > { %8323 = vrsqrt.f32 %v6471_v32  ;;  %vm6619_vm12 = vweird.f32 %v6471_v32 }
 0xb26   : > { %v6440_v24 = vpop.xlane.xlu2 %6439 }
 0xb27   : > { %v6456_v63 = vmul.f32 %v6440_v24, %v14269_v4 }
 0xb29   : > { %v8324_v60 = vpop.eup %8323  ;;  %v6472_v1 = vadd.f32 1e-05, %v6456_v63 }
 0xb2a   : > { %v6614_v50 = vmul.f32 %v8324_v60, %v6471_v32  ;;  %vm6620_vm11 = vweird.f32 %v8324_v60 }
 0xb2b   : > { %8325 = vrsqrt.f32 %v6472_v1  ;;  %vm6621_vm13 = vmor %vm6619_vm12, %vm6620_vm11  ;;  %vm6629_vm15 = vweird.f32 %v6472_v1 }
 0xb2c   : > { %v6615_v56 = vmul.f32 %v8324_v60, %v6614_v50 }
 0xb2e   : > { %v6616_v53 = vmul.f32 0.5, %v6615_v56 }
 0xb30   : > { %v6617_v62 = vsub.f32 1.5, %v6616_v53 }
 0xb31   : > { %v8326_v39 = vpop.eup %8325 }
 0xb32   : > { %v6618_v35 = vmul.f32 %v8324_v60, %v6617_v62  ;;  %v6624_v7 = vmul.f32 %v8326_v39, %v6472_v1  ;;  %vm6630_vm14 = vweird.f32 %v8326_v39 }
 0xb33   : > { %vm6631_vm0 = vmor %vm6629_vm15, %vm6630_vm14 }
 0xb34   : > { %v6622_v3 = vsel %vm6621_vm13, %v8324_v60, %v6618_v35  ;;  %v6625_v38 = vmul.f32 %v8326_v39, %v6624_v7 }
 0xb35   : > { %v6647_v4 = vmul.f32 %v6622_v3, %v13605_v30 }
 0xb36   : > { %v6626_v9 = vmul.f32 0.5, %v6625_v38 }
 0xb37   : > { %v6666_v20 = vmul.f32 %v13582_v52, %v6647_v4 }
 0xb38   : > { %v6627_v36 = vsub.f32 1.5, %v6626_v9 }
 0xb39   : > { %v6685_v6 = vadd.f32 %v13587_v43, %v6666_v20 }
 0xb3a   : > { %v6628_v18 = vmul.f32 %v8326_v39, %v6627_v36 }
 0xb3b   : > { %6701 = vst [vmem:[%s9076_s4 + $0x70] sm:$0xff] %v6685_v6 }
 0xb3c   : > { %v6632_v30 = vsel %vm6631_vm0, %v8326_v39, %v6628_v18 }
 0xb3d   : > { %v6648_v37 = vmul.f32 %v6632_v30, %v13612_v5 }
 0xb3f   : > { %v6667_v61 = vmul.f32 %v13582_v52, %v6648_v37 }
 0xb41   : > { %v6686_v2 = vadd.f32 %v13587_v43, %v6667_v61 }
 0xb43   : > { %6702 = vst [vmem:[%s9076_s4 + $0x78] sm:$0xff] %v6686_v2 }
 0xb44   : > { %8614 = shalt.err (!%p8611_p11)
}
 0xb45   : > { %s8744_s23 = smov 128   ;;  %s8745_s4 = smov 8  }
 0xb46   : > { %7880 = dma.vmem_to_hbm [thread:$0]  (%p9009_p12), %s6719_s14, 2048, %s6721_s5, %s6704_s11, %s8744_s23, %s8744_s23, %s8745_s4  }
 0xb47 PF: > { %s14278_s21 = sld [smem:[#allocation26_spill]]  ;;  %p7925_p2 = scmp.ge.s32.totalorder %s8729_s1, 2 }
 0xb49   : > { %p7909_p4 = pnand %p7925_p2, %p9013_p7 }
 0xb4b   : > { %p7910_p5 = pneg %p7909_p4 }
 0xb4d   : > { %s6735_s12 = sand.u32 1, %s14278_s21  }
 0xb4e   : > { %s6736_s16 = scalar_lea.sflag [#allocation6], %s6735_s12 }
 0xb4f   : > { %8684 = dma.done.wait (%p7910_p5), %s6736_s16, 2048  }
 0xb50   : > { %8686 = vsyncadd (%p7910_p5), %s6736_s16, 4294965248  ;;  %s39_s1 = sadd.s32 1, %s8729_s1   ;;  %s14280_s8 = sld [smem:[#allocation29_spill]] }
 0xb51   : > { %p36_p6 = scmp.ge.s32.totalorder %s39_s1, 6   ;;  %s14281_s22 = sld [smem:[#allocation31_spill]] }
 0xb52   : > { %s14282_s24 = smov %s8693_s25  ;;  %s14283_s25 = smov %s8697_s26 }
 0xb53   : > { %s14284_s26 = smov %s9026_s3  ;;  %s14285_s27 = smov %s8705_s28 }
 0xb54   : > { %s14286_s28 = smov %s8709_s29  ;;  %s14287_s29 = smov %s9023_s2 }
 0xb55   : > { %s14288_s0 = smov %s8721_s18  ;;  %s14289_s30 = smov %s8725_s19 }
 0xb56   : > { %s14290_s18 = smov %s14280_s8  ;;  %38 = sbr.rel (!%p36_p6) target bundleno = 33 (0x21), region = 174 }
 0xb57   : > { %s14291_s19 = smov %s14281_s22 }
 0xb5b   :  { %6742 = vsyncpa [#allocation5], 1 }
 0xb5c   :  { %6744 = vsyncpa [#allocation5 + $0x1], 1 }
 0xb5d   :  { %6745 = vsyncpa [#allocation8], 1 }
 0xb5e   :  { %6747 = vsyncpa [#allocation8 + $0x1], 1 }
 0xb5f   :  { %6748 = vsyncpa [#allocation11], 1 }
 0xb60   :  { %6749 = vsyncpa [#allocation14], 1 }
 0xb61   :  { %6750 = vsyncpa [#allocation17], 1 }
 0xb62   :  { %6751 = vsyncpa [#allocation6], 1 }
 0xb63   :  { %6753 = vsyncpa [#allocation6 + $0x1], 1 }

</bundles_post_ra>
